<compile_context>
chip_gen: v7x
topology: tpu7x:2x2x1
jax: 0.10.0
libtpu: 0.0.40
codegen_flags: <defaults>
</compile_context>

<pallas_src>
import functools

import jax
import jax.numpy as jnp
from jax.experimental import pallas as pl
from jax.experimental.pallas import tpu as pltpu


NEG_INF = -1e30              # mask value for padded classifier lanes (must stay f32)
PAD_GRANULE = 256            # node-count pad granule (bounds quadratic pad waste)
FEATURE_DIMS = {"content": 310, "bert": 768, "profile": 10, "spacy": 300}


def _vmem_limit_bytes():
    """Per-generation VMEM cap (v7x: 64 MiB physical, v5e/v6e: 128 MiB)."""
    try:
        cap = int(pltpu.get_tpu_info().vmem_capacity_bytes)
    except Exception:
        cap = 64 * 1024 * 1024                    # conservative (v7x-safe) fallback
    return min((cap * 3) // 4, 112 * 1024 * 1024)


VMEM_LIMIT_BYTES = _vmem_limit_bytes()


def _fused_fits(npad, c):
    """Resident-adjacency fused kernel working set vs. the VMEM budget."""
    need = 2 * npad * npad + 16 * npad * c + (2 << 20)
    return need <= (VMEM_LIMIT_BYTES * 3) // 5


# ----------------------------------------------------------------------------
# Fused single-launch kernel (adjacency resident in VMEM, read once)
# ----------------------------------------------------------------------------
def _fused_kernel(adj_ref, y_ref, b1_ref, w2_ref, pool_ref, b2_ref,
                  lin1_w_ref, lin1_b_ref, lin2_w_ref, lin2_b_ref, o_ref):
    adj = adj_ref[...]                                             # (npad, npad) bf16
    # conv1 aggregation + bias (f32 accumulation on the MXU).
    z = jnp.dot(adj, y_ref[...], preferred_element_type=jnp.float32) + b1_ref[...]
    # conv2 linear transform folded as a block-diagonal epilogue; kept in f32
    # (tiny matmul) so activations are rounded to bf16 only once.
    t = jnp.dot(z, w2_ref[...], preferred_element_type=jnp.float32)
    t = t.astype(jnp.bfloat16)
    # conv2 aggregation + bias (post-propagation, matching GCNConv).
    h = jnp.dot(adj, t, preferred_element_type=jnp.float32) + b2_ref[...]
    # global mean pool (pool rows already hold 1/count), then relu(lin1)/lin2 head.
    pooled = jnp.dot(pool_ref[...], h.astype(jnp.bfloat16),
                     preferred_element_type=jnp.float32)
    zz = jnp.dot(pooled, lin1_w_ref[...], preferred_element_type=jnp.float32)
    zz = jnp.maximum(zz + lin1_b_ref[...], 0.0)
    logits = jnp.dot(zz, lin2_w_ref[...],
                     preferred_element_type=jnp.float32) + lin2_b_ref[...]
    # padded lanes carry a -1e30 bias (f32) -> exp() == 0, so the log_softmax of
    # the valid lanes is exact; padded lanes are sliced off in the wrapper.
    m = jnp.max(logits, axis=-1, keepdims=True)
    lse = jnp.log(jnp.sum(jnp.exp(logits - m), axis=-1, keepdims=True)) + m
    o_ref[...] = (logits - lse).astype(o_ref.dtype)


def _fused_forward_call(adj_p, y_p, b1, w2_bd, pool_p, b2,
                        lin1_w, lin1_b, lin2_w_pad, lin2_b_pad):
    g = pool_p.shape[0]
    out_pad = lin2_w_pad.shape[1]
    vmem_spec = pl.BlockSpec(memory_space=pltpu.MemorySpace.VMEM)
    return pl.pallas_call(
        _fused_kernel,
        out_shape=jax.ShapeDtypeStruct((g, out_pad), jnp.float32),
        in_specs=[vmem_spec] * 10,
        out_specs=vmem_spec,
        compiler_params=pltpu.CompilerParams(vmem_limit_bytes=VMEM_LIMIT_BYTES),
    )(adj_p, y_p, b1, w2_bd, pool_p, b2, lin1_w, lin1_b, lin2_w_pad, lin2_b_pad)


# ----------------------------------------------------------------------------
# Tiled fallback kernels (large graphs; VMEM use independent of N)
# ----------------------------------------------------------------------------
def _agg1_kernel(adj_ref, y_ref, b1_ref, w2_ref, t_ref, acc_ref):
    """Z = A_hat @ Y + b1 ; T = Z @ blockdiag(W2).  Grid = (row tile i, k tile k)."""
    k = pl.program_id(1)
    nk = pl.num_programs(1)
    part = jnp.dot(adj_ref[...], y_ref[...], preferred_element_type=jnp.float32)

    @pl.when(k == 0)
    def _():                                   # direct write: no zero-then-add pass
        acc_ref[...] = part

    @pl.when(k > 0)
    def _():
        acc_ref[...] += part

    @pl.when(k == nk - 1)
    def _():
        z = acc_ref[...] + b1_ref[...]
        t = jnp.dot(z, w2_ref[...], preferred_element_type=jnp.float32)
        t_ref[...] = t.astype(t_ref.dtype)


def _agg2_kernel(adj_ref, t_ref, pool_ref, b2_ref, part_ref, acc_ref):
    """H_i = A_hat[i,:] @ T + b2 ; partial_pooled[i] = pool[:, i] @ H_i.

    Each row tile writes its own pooled partial, so the row axis is truly parallel
    (megacore-friendly); the tiny (ni, G, 4H) partials are reduced in XLA.
    """
    k = pl.program_id(1)
    nk = pl.num_programs(1)
    part = jnp.dot(adj_ref[...], t_ref[...], preferred_element_type=jnp.float32)

    @pl.when(k == 0)
    def _():
        acc_ref[...] = part

    @pl.when(k > 0)
    def _():
        acc_ref[...] += part

    @pl.when(k == nk - 1)
    def _():
        h = (acc_ref[...] + b2_ref[...]).astype(jnp.bfloat16)
        pooled = jnp.dot(pool_ref[...], h, preferred_element_type=jnp.float32)
        part_ref[...] = pooled[None, :, :]


def _gcn_agg1_tiled(adj_p, y_p, b1, w2_bd, tm, tk):
    npad = adj_p.shape[0]
    c = y_p.shape[1]
    grid = (npad // tm, npad // tk)
    return pl.pallas_call(
        _agg1_kernel,
        out_shape=jax.ShapeDtypeStruct((npad, c), jnp.bfloat16),
        grid_spec=pltpu.PrefetchScalarGridSpec(
            num_scalar_prefetch=0,
            grid=grid,
            in_specs=[
                pl.BlockSpec((tm, tk), lambda i, k: (i, k)),   # adj tile
                pl.BlockSpec((tk, c), lambda i, k: (k, 0)),    # Y tile
                pl.BlockSpec((1, c), lambda i, k: (0, 0)),     # b1 (resident)
                pl.BlockSpec((c, c), lambda i, k: (0, 0)),     # blockdiag(W2), f32
            ],
            out_specs=pl.BlockSpec((tm, c), lambda i, k: (i, 0)),
            scratch_shapes=[pltpu.VMEM((tm, c), jnp.float32)],
        ),
        compiler_params=pltpu.CompilerParams(
            dimension_semantics=("parallel", "arbitrary"),
            vmem_limit_bytes=VMEM_LIMIT_BYTES,
        ),
    )(adj_p, y_p, b1, w2_bd)


def _gcn_agg2_tiled(adj_p, t_p, pool_p, b2, tm, tk):
    npad, c = t_p.shape
    g = pool_p.shape[0]
    grid = (npad // tm, npad // tk)
    return pl.pallas_call(
        _agg2_kernel,
        out_shape=jax.ShapeDtypeStruct((grid[0], g, c), jnp.float32),
        grid_spec=pltpu.PrefetchScalarGridSpec(
            num_scalar_prefetch=0,
            grid=grid,
            in_specs=[
                pl.BlockSpec((tm, tk), lambda i, k: (i, k)),   # adj tile
                pl.BlockSpec((tk, c), lambda i, k: (k, 0)),    # T tile
                pl.BlockSpec((g, tm), lambda i, k: (0, i)),    # pool tile (bf16)
                pl.BlockSpec((1, c), lambda i, k: (0, 0)),     # b2
            ],
            out_specs=pl.BlockSpec((1, g, c), lambda i, k: (i, 0, 0)),
            scratch_shapes=[pltpu.VMEM((tm, c), jnp.float32)],
        ),
        compiler_params=pltpu.CompilerParams(
            dimension_semantics=("parallel", "arbitrary"),
            vmem_limit_bytes=VMEM_LIMIT_BYTES,
        ),
    )(adj_p, t_p, pool_p, b2)


# ----------------------------------------------------------------------------
# One-time graph preparation (hoisted out of the jitted forward)
# ----------------------------------------------------------------------------
def prepare_graph(adj, pool_mat, granule=PAD_GRANULE):
    """Pad the node dimension and cast to bf16 ONCE per graph (reused across calls)."""
    n = adj.shape[0]
    npad = ((n + granule - 1) // granule) * granule
    adj_p = jnp.pad(adj.astype(jnp.bfloat16), ((0, npad - n), (0, npad - n)))
    pool_p = jnp.pad(pool_mat.astype(jnp.bfloat16), ((0, 0), (0, npad - n)))
    return adj_p, pool_p


# ----------------------------------------------------------------------------
# Forward pass (eval mode: dropout == identity)
# ----------------------------------------------------------------------------
@functools.partial(jax.jit, static_argnames=("features", "force_tiled"))
def parallel_feature_net(params, xs, adj_p, pool_p, features, force_tiled=False):
    npad = adj_p.shape[0]
    n = xs[features[0]].shape[0]
    out_dim = params["lin2_w"].shape[1]

    # Per-branch conv1 linear transform (cheap: N*F*H) in XLA, bf16 on the MXU,
    # written straight into the concatenated (N, 4H) slab.
    ys = [jnp.dot(xs[f].astype(jnp.bfloat16),
                  params[f]["w1"].astype(jnp.bfloat16),
                  preferred_element_type=jnp.float32) for f in features]
    y = jnp.concatenate(ys, axis=1).astype(jnp.bfloat16)          # (N, 4H)
    c = y.shape[1]
    y_p = jnp.pad(y, ((0, npad - n), (0, 0)))

    b1 = jnp.concatenate([params[f]["b1"] for f in features], axis=1)   # (1, 4H)
    b2 = jnp.concatenate([params[f]["b2"] for f in features], axis=1)   # (1, 4H)
    w2_bd = jax.scipy.linalg.block_diag(
        *[params[f]["w2"] for f in features])                            # (4H, 4H) f32

    if (not force_tiled) and _fused_fits(npad, c):
        # Resident-adjacency fused path: A_hat read once, everything in one launch.
        out_pad = ((out_dim + 127) // 128) * 128
        lin2_w_pad = jnp.pad(params["lin2_w"], ((0, 0), (0, out_pad - out_dim)))
        lin2_b_pad = jnp.concatenate(
            [params["lin2_b"],
             jnp.full((1, out_pad - out_dim), NEG_INF, jnp.float32)], axis=1)
        logp = _fused_forward_call(adj_p, y_p, b1, w2_bd, pool_p, b2,
                                   params["lin1_w"], params["lin1_b"],
                                   lin2_w_pad, lin2_b_pad)
        return logp[:, :out_dim]

    # Tiled fallback (large graphs): two HBM passes over A_hat.
    tm = tk = 512 if npad % 512 == 0 else 256
    t = _gcn_agg1_tiled(adj_p, y_p, b1, w2_bd, tm, tk)
    partials = _gcn_agg2_tiled(adj_p, t, pool_p, b2, tm, tk)
    pooled = jnp.sum(partials, axis=0)                            # (G, 4H) tiny reduce
    h = jax.nn.relu(pooled @ params["lin1_w"] + params["lin1_b"])
    logits = h @ params["lin2_w"] + params["lin2_b"]
    return jax.nn.log_softmax(logits, axis=-1)


# ----------------------------------------------------------------------------
# Plain-JAX glue: parameter init, graph normalization, pooling matrix, reference
# ----------------------------------------------------------------------------
def init_params(key, features, hidden_dim, out_dim):
    params = {}
    for feat in features:
        in_dim = FEATURE_DIMS[feat]
        key, k1, k2 = jax.random.split(key, 3)
        params[feat] = {
            "w1": 0.1 * jax.random.normal(k1, (in_dim, hidden_dim), jnp.float32),
            "b1": jnp.zeros((1, hidden_dim), jnp.float32),
            "w2": 0.1 * jax.random.normal(k2, (hidden_dim, hidden_dim), jnp.float32),
            "b2": jnp.zeros((1, hidden_dim), jnp.float32),
        }
    key, k1, k2 = jax.random.split(key, 3)
    params["lin1_w"] = 0.1 * jax.random.normal(
        k1, (hidden_dim * len(features), hidden_dim), jnp.float32)
    params["lin1_b"] = jnp.zeros((1, hidden_dim), jnp.float32)
    params["lin2_w"] = 0.1 * jax.random.normal(k2, (hidden_dim, out_dim), jnp.float32)
    params["lin2_b"] = jnp.zeros((1, out_dim), jnp.float32)
    return params


def normalized_adjacency(edge_index, num_nodes):
    """A_hat = D^{-1/2} (A_sym + I) D^{-1/2} — GCN symmetric normalization."""
    src, dst = edge_index
    a = jnp.zeros((num_nodes, num_nodes), jnp.float32)
    a = a.at[src, dst].set(1.0)
    a = a.at[dst, src].set(1.0)                       # undirected
    a = a + jnp.eye(num_nodes, dtype=jnp.float32)     # self loops
    deg = jnp.sum(a, axis=1)
    d_inv_sqrt = 1.0 / jnp.sqrt(jnp.maximum(deg, 1e-12))
    return a * d_inv_sqrt[:, None] * d_inv_sqrt[None, :]


def mean_pool_matrix(batch, num_graphs):
    onehot = (batch[None, :] == jnp.arange(num_graphs)[:, None]).astype(jnp.float32)
    counts = jnp.maximum(jnp.sum(onehot, axis=1, keepdims=True), 1.0)
    return onehot / counts  # (G, N)


def reference_forward(params, xs, adj, pool_mat, features):
    """Pure-JAX f32 reference of the module's eval-mode forward."""
    embs = []
    for f in features:
        p = params[f]
        z = adj @ (xs[f] @ p["w1"]) + p["b1"]
        h = adj @ (z @ p["w2"]) + p["b2"]
        embs.append(h)
    emb = jnp.concatenate(embs, axis=1)
    pooled = pool_mat @ emb
    h = jax.nn.relu(pooled @ params["lin1_w"] + params["lin1_b"])
    logits = h @ params["lin2_w"] + params["lin2_b"]
    return jax.nn.log_softmax(logits, axis=-1)


# ----------------------------------------------------------------------------
# Demo
# ----------------------------------------------------------------------------
if __name__ == "__main__":
    features = ("content", "bert", "profile", "spacy")
    hidden_dim = 32
    out_dim = 4
    num_graphs = 8
    nodes_per_graph = 128
    num_nodes = num_graphs * nodes_per_graph          # 1024

    key = jax.random.PRNGKey(0)
    key, pkey = jax.random.split(key)
    params = init_params(pkey, features, hidden_dim, out_dim)

    # Node features per branch.
    xs = {}
    for feat in features:
        key, k = jax.random.split(key)
        xs[feat] = jax.random.normal(k, (num_nodes, FEATURE_DIMS[feat]), jnp.float32)

    # num_graphs ring graphs of nodes_per_graph nodes each (shared across branches).
    offs = jnp.arange(num_graphs) * nodes_per_graph
    local = jnp.arange(nodes_per_graph)
    src = (offs[:, None] + local[None, :]).reshape(-1)
    dst = (offs[:, None] + (local[None, :] + 1) % nodes_per_graph).reshape(-1)
    edge_index = jnp.stack([src, dst])
    batch = jnp.repeat(jnp.arange(num_graphs), nodes_per_graph)

    adj = normalized_adjacency(edge_index, num_nodes)
    pool_mat = mean_pool_matrix(batch, num_graphs)

    # Padded bf16 adjacency / pooling matrix prepared ONCE (reused every forward).
    adj_p, pool_p = prepare_graph(adj, pool_mat)
    adj_p, pool_p = jax.block_until_ready((adj_p, pool_p))

    ref = reference_forward(params, xs, adj, pool_mat, features)

    # Fused resident-adjacency path (auto-selected at this size).
    out = parallel_feature_net(params, xs, adj_p, pool_p, features)
    out = jax.block_until_ready(out)
    assert out.shape == (num_graphs, out_dim)
    assert bool(jnp.allclose(jnp.sum(jnp.exp(out), axis=-1), 1.0, atol=1e-3))
    assert bool(jnp.allclose(out, ref, atol=1e-1)), (
        f"fused max abs err {float(jnp.max(jnp.abs(out - ref)))}")

    # Tiled large-graph path, exercised on the same data for correctness.
    out_t = parallel_feature_net(params, xs, adj_p, pool_p, features, force_tiled=True)
    out_t = jax.block_until_ready(out_t)
    assert out_t.shape == (num_graphs, out_dim)
    assert bool(jnp.allclose(out_t, ref, atol=1e-1)), (
        f"tiled max abs err {float(jnp.max(jnp.abs(out_t - ref)))}")

    print("KERNEL_OK")
</pallas_src>

<mosaic_0001>
module attributes {stable_mosaic.version = 11 : i64} {
  func.func @_fused_kernel(%arg0: memref<1024x1024xbf16, #tpu.memory_space<vmem>>, %arg1: memref<1024x128xbf16, #tpu.memory_space<vmem>>, %arg2: memref<1x128xf32, #tpu.memory_space<vmem>>, %arg3: memref<128x128xf32, #tpu.memory_space<vmem>>, %arg4: memref<8x1024xbf16, #tpu.memory_space<vmem>>, %arg5: memref<1x128xf32, #tpu.memory_space<vmem>>, %arg6: memref<128x32xf32, #tpu.memory_space<vmem>>, %arg7: memref<1x32xf32, #tpu.memory_space<vmem>>, %arg8: memref<32x128xf32, #tpu.memory_space<vmem>>, %arg9: memref<1x128xf32, #tpu.memory_space<vmem>>, %arg10: memref<8x128xf32, #tpu.memory_space<vmem>>) attributes {dimension_semantics = [], scalar_prefetch = 0 : i64, scratch_operands = 0 : i64, tpu.core_type = #tpu.core_type<tc>} {
    %c0 = arith.constant 0 : index
    %c0_0 = arith.constant 0 : index
    %0 = vector.load %arg0[%c0, %c0_0] : memref<1024x1024xbf16, #tpu.memory_space<vmem>>, vector<1024x1024xbf16>
    %c0_1 = arith.constant 0 : index
    %c0_2 = arith.constant 0 : index
    %1 = vector.load %arg1[%c0_1, %c0_2] : memref<1024x128xbf16, #tpu.memory_space<vmem>>, vector<1024x128xbf16>
    %cst = arith.constant dense<0.000000e+00> : vector<1024x128xf32>
    %2 = tpu.matmul %0, %1, %cst {dimension_numbers = #tpu.dot_dimension_numbers<[1], [0], [0], [1], [0, 0, 1, 1], [], []>} : vector<1024x1024xbf16>, vector<1024x128xbf16>, vector<1024x128xf32> -> vector<1024x128xf32>
    %c0_3 = arith.constant 0 : index
    %c0_4 = arith.constant 0 : index
    %3 = vector.load %arg2[%c0_3, %c0_4] : memref<1x128xf32, #tpu.memory_space<vmem>>, vector<1x128xf32>
    %4 = vector.broadcast %3 : vector<1x128xf32> to vector<1024x128xf32>
    %5 = arith.addf %2, %4 : vector<1024x128xf32>
    %c0_5 = arith.constant 0 : index
    %c0_6 = arith.constant 0 : index
    %6 = vector.load %arg3[%c0_5, %c0_6] : memref<128x128xf32, #tpu.memory_space<vmem>>, vector<128x128xf32>
    %cst_7 = arith.constant dense<0.000000e+00> : vector<1024x128xf32>
    %7 = tpu.matmul %5, %6, %cst_7 {dimension_numbers = #tpu.dot_dimension_numbers<[1], [0], [0], [1], [0, 0, 1, 1], [], []>} : vector<1024x128xf32>, vector<128x128xf32>, vector<1024x128xf32> -> vector<1024x128xf32>
    %8 = arith.truncf %7 : vector<1024x128xf32> to vector<1024x128xbf16>
    %cst_8 = arith.constant dense<0.000000e+00> : vector<1024x128xf32>
    %9 = tpu.matmul %0, %8, %cst_8 {dimension_numbers = #tpu.dot_dimension_numbers<[1], [0], [0], [1], [0, 0, 1, 1], [], []>} : vector<1024x1024xbf16>, vector<1024x128xbf16>, vector<1024x128xf32> -> vector<1024x128xf32>
    %c0_9 = arith.constant 0 : index
    %c0_10 = arith.constant 0 : index
    %10 = vector.load %arg5[%c0_9, %c0_10] : memref<1x128xf32, #tpu.memory_space<vmem>>, vector<1x128xf32>
    %11 = vector.broadcast %10 : vector<1x128xf32> to vector<1024x128xf32>
    %12 = arith.addf %9, %11 : vector<1024x128xf32>
    %c0_11 = arith.constant 0 : index
    %c0_12 = arith.constant 0 : index
    %13 = vector.load %arg4[%c0_11, %c0_12] : memref<8x1024xbf16, #tpu.memory_space<vmem>>, vector<8x1024xbf16>
    %14 = arith.truncf %12 : vector<1024x128xf32> to vector<1024x128xbf16>
    %cst_13 = arith.constant dense<0.000000e+00> : vector<8x128xf32>
    %15 = tpu.matmul %13, %14, %cst_13 {dimension_numbers = #tpu.dot_dimension_numbers<[1], [0], [0], [1], [0, 0, 1, 1], [], []>} : vector<8x1024xbf16>, vector<1024x128xbf16>, vector<8x128xf32> -> vector<8x128xf32>
    %c0_14 = arith.constant 0 : index
    %c0_15 = arith.constant 0 : index
    %16 = vector.load %arg6[%c0_14, %c0_15] : memref<128x32xf32, #tpu.memory_space<vmem>>, vector<128x32xf32>
    %cst_16 = arith.constant dense<0.000000e+00> : vector<8x32xf32>
    %17 = tpu.matmul %15, %16, %cst_16 {dimension_numbers = #tpu.dot_dimension_numbers<[1], [0], [0], [1], [0, 0, 1, 1], [], []>} : vector<8x128xf32>, vector<128x32xf32>, vector<8x32xf32> -> vector<8x32xf32>
    %c0_17 = arith.constant 0 : index
    %c0_18 = arith.constant 0 : index
    %18 = vector.load %arg7[%c0_17, %c0_18] : memref<1x32xf32, #tpu.memory_space<vmem>>, vector<1x32xf32>
    %19 = vector.broadcast %18 : vector<1x32xf32> to vector<8x32xf32>
    %20 = arith.addf %17, %19 : vector<8x32xf32>
    %cst_19 = arith.constant 0.000000e+00 : f32
    %21 = vector.broadcast %cst_19 : f32 to vector<8x32xf32>
    %22 = arith.maximumf %20, %21 : vector<8x32xf32>
    %c0_20 = arith.constant 0 : index
    %c0_21 = arith.constant 0 : index
    %23 = vector.load %arg8[%c0_20, %c0_21] : memref<32x128xf32, #tpu.memory_space<vmem>>, vector<32x128xf32>
    %cst_22 = arith.constant dense<0.000000e+00> : vector<8x128xf32>
    %24 = tpu.matmul %22, %23, %cst_22 {dimension_numbers = #tpu.dot_dimension_numbers<[1], [0], [0], [1], [0, 0, 1, 1], [], []>} : vector<8x32xf32>, vector<32x128xf32>, vector<8x128xf32> -> vector<8x128xf32>
    %c0_23 = arith.constant 0 : index
    %c0_24 = arith.constant 0 : index
    %25 = vector.load %arg9[%c0_23, %c0_24] : memref<1x128xf32, #tpu.memory_space<vmem>>, vector<1x128xf32>
    %26 = vector.broadcast %25 : vector<1x128xf32> to vector<8x128xf32>
    %27 = arith.addf %24, %26 : vector<8x128xf32>
    %cst_25 = arith.constant dense<0xFF800000> : vector<8xf32>
    %28 = vector.multi_reduction <maximumf>, %27, %cst_25 [1] : vector<8x128xf32> to vector<8xf32>
    %29 = vector.shape_cast %28 : vector<8xf32> to vector<8x1xf32>
    %30 = vector.broadcast %29 : vector<8x1xf32> to vector<8x128xf32>
    %31 = arith.subf %27, %30 : vector<8x128xf32>
    %32 = math.exp %31 : vector<8x128xf32>
    %cst_26 = arith.constant dense<0.000000e+00> : vector<8xf32>
    %33 = vector.multi_reduction <add>, %32, %cst_26 [1] : vector<8x128xf32> to vector<8xf32>
    %34 = vector.shape_cast %33 : vector<8xf32> to vector<8x1xf32>
    %35 = math.log %34 : vector<8x1xf32>
    %36 = arith.addf %35, %29 : vector<8x1xf32>
    %37 = vector.broadcast %36 : vector<8x1xf32> to vector<8x128xf32>
    %38 = arith.subf %27, %37 : vector<8x128xf32>
    %c0_27 = arith.constant 0 : index
    %c0_28 = arith.constant 0 : index
    %39 = vector.load %arg10[%c0_27, %c0_28] : memref<8x128xf32, #tpu.memory_space<vmem>>, vector<8x128xf32>
    tpu.vector_store %arg10[%c0_27, %c0_28], %38 {strides = array<i32>} : memref<8x128xf32, #tpu.memory_space<vmem>>, vector<8x128xf32>,
    return
  }
}

</mosaic_0001>

<bundles_post_ra>
// kernel: parallel_feature_net.1
= control target key start
LH: loop header
LB: loop body
LE: loop exit
PB: predicated region body
PF: predicated region fallthrough
CT: control target
= control target key end

     0   :  { %v17540_v0 = vmov 0   ;;  %vm12297_vm0 = vmmov 0   ;;  %vm9140_vm1 = vcmask 261120   ;;  %s17529_s1 = inlined_call_operand.vmem [shape: bf16[1024,128], index: 1, kind: input, shape index: {}]   ;;  %s17530_s0 = inlined_call_operand.vmem [shape: bf16[1024,1024], index: 0, kind: input, shape index: {}]   ;;  %s17531_s3 = inlined_call_operand.vmem [shape: f32[128,128], index: 3, kind: input, shape index: {}]   ;;  %s17532_s2 = inlined_call_operand.vmem [shape: f32[1,128], index: 2, kind: input, shape index: {}]   ;;  %s17533_s5 = inlined_call_operand.vmem [shape: f32[1,128], index: 5, kind: input, shape index: {}]   ;;  %s17534_s4 = inlined_call_operand.vmem [shape: bf16[8,1024], index: 4, kind: input, shape index: {}]   ;;  %s17535_s6 = inlined_call_operand.vmem [shape: f32[128,32], index: 6, kind: input, shape index: {}]   ;;  %s17536_s8 = inlined_call_operand.vmem [shape: f32[32,128], index: 8, kind: input, shape index: {}]   ;;  %s17537_s7 = inlined_call_operand.vmem [shape: f32[1,32], index: 7, kind: input, shape index: {}]   ;;  %s17538_s9 = inlined_call_operand.vmem [shape: f32[1,128], index: 9, kind: input, shape index: {}]   ;;  %s17539_s10 = inlined_call_operand.vmem [shape: f32[8,128], index: 10, kind: output, shape index: {}]  }
   0x1   :  { %3627 = vmatprep.subr.bf16.mxu0 %v17540_v0  ;;  %v12217_v1 = vld [vmem:[%s17529_s1] sm:$0xff]   ;;  %v12218_v2 = vld [vmem:[%s17529_s1 + $0x8] sm:$0xff]   ;;  %v12219_v3 = vld [vmem:[%s17529_s1 + $0x10] sm:$0xff]  }
   0x2   :  { %3628 = vmatpush1.bf16.msra.mxu0 %v12217_v1  ;;  %v12220_v4 = vld [vmem:[%s17529_s1 + $0x18] sm:$0xff]   ;;  %v12221_v5 = vld [vmem:[%s17529_s1 + $0x20] sm:$0xff]   ;;  %v12222_v9 = vld [vmem:[%s17529_s1 + $0x28] sm:$0xff]  }
   0x3   :  { %3629 = vmatprep.subr.bf16.mxu0 %v17540_v0  ;;  %v36_v6 = vld [vmem:[%s17530_s0] sm:$0xff]  ;;  %v12223_v10 = vld [vmem:[%s17529_s1 + $0x30] sm:$0xff]   ;;  %v12224_v11 = vld [vmem:[%s17529_s1 + $0x38] sm:$0xff]  }
   0x4   :  { %v40_v7 = vld [vmem:[%s17530_s0 + $0x20] sm:$0xff]  ;;  %v12226_v13 = vld [vmem:[%s17529_s1 + $0x48] sm:$0xff]   ;;  %v12227_v14 = vld [vmem:[%s17529_s1 + $0x50] sm:$0xff]  }
   0x5   :  { %v12380_v8 = vcombine.high %v36_v6, %v40_v7  ;;  %v12225_v12 = vld [vmem:[%s17529_s1 + $0x40] sm:$0xff]   ;;  %v12228_v15 = vld [vmem:[%s17529_s1 + $0x58] sm:$0xff]   ;;  %v12230_v17 = vld [vmem:[%s17529_s1 + $0x68] sm:$0xff]   ;;  %v12433_v22 = vcombine.low %v36_v6, %v40_v7 }
   0x6   :  { %3630 = vmatpush1.bf16.msra.mxu0 %v12218_v2  ;;  %v12229_v16 = vld [vmem:[%s17529_s1 + $0x60] sm:$0xff]   ;;  %v12231_v18 = vld [vmem:[%s17529_s1 + $0x70] sm:$0xff]   ;;  %v12232_v19 = vld [vmem:[%s17529_s1 + $0x78] sm:$0xff]  }
   0x7   :  { %3631 = vmatprep.subr.bf16.mxu0 %v17540_v0  ;;  %3659 = vmatprep.mubr.bf16.mxu0 %v12380_v8  ;;  %v44_v20 = vld [vmem:[%s17530_s0 + $0x40] sm:$0xff]  ;;  %v12234_v53 = vld [vmem:[%s17529_s1 + $0x88] sm:$0xff]   ;;  %v12235_v7 = vld [vmem:[%s17529_s1 + $0x90] sm:$0xff]  }
   0x8   :  { %v48_v21 = vld [vmem:[%s17530_s0 + $0x60] sm:$0xff] }
   0x9   :  { %v12435_v23 = vcombine.high %v44_v20, %v48_v21  ;;  %v52_v24 = vld [vmem:[%s17530_s0 + $0x80] sm:$0xff]  ;;  %v12446_v26 = vcombine.low %v44_v20, %v48_v21 }
   0xa   :  { %3632 = vmatpush1.bf16.msra.mxu0 %v12219_v3  ;;  %v56_v25 = vld [vmem:[%s17530_s0 + $0xa0] sm:$0xff] }
   0xb   :  { %3633 = vmatprep.subr.bf16.mxu0 %v17540_v0  ;;  %v12448_v27 = vcombine.high %v52_v24, %v56_v25  ;;  %v60_v28 = vld [vmem:[%s17530_s0 + $0xc0] sm:$0xff]  ;;  %v12458_v30 = vcombine.low %v52_v24, %v56_v25 }
   0xc   :  { %v64_v29 = vld [vmem:[%s17530_s0 + $0xe0] sm:$0xff] }
   0xd   :  { %v12460_v31 = vcombine.high %v60_v28, %v64_v29  ;;  %v68_v32 = vld [vmem:[%s17530_s0 + $0x100] sm:$0xff]  ;;  %v12470_v34 = vcombine.low %v60_v28, %v64_v29  ;;  %v12236_v29 = vld [vmem:[%s17529_s1 + $0x98] sm:$0xff]  }
   0xe   :  { %3634 = vmatpush1.bf16.msra.mxu0 %v12220_v4  ;;  %v72_v33 = vld [vmem:[%s17530_s0 + $0x120] sm:$0xff] }
   0xf   :  { %3635 = vmatprep.subr.bf16.mxu0 %v17540_v0  ;;  %v12472_v35 = vcombine.high %v68_v32, %v72_v33  ;;  %v12233_v36 = vld [vmem:[%s17529_s1 + $0x80] sm:$0xff]   ;;  %v12486_v39 = vcombine.low %v68_v32, %v72_v33 }
  0x10   :  { %v76_v37 = vld [vmem:[%s17530_s0 + $0x140] sm:$0xff] }
  0x11   :  { %v80_v38 = vld [vmem:[%s17530_s0 + $0x160] sm:$0xff] }
  0x12   :  { %3636 = vmatpush1.bf16.msra.mxu0 %v12221_v5  ;;  %v12488_v40 = vcombine.high %v76_v37, %v80_v38  ;;  %v84_v41 = vld [vmem:[%s17530_s0 + $0x180] sm:$0xff]  ;;  %v12498_v43 = vcombine.low %v76_v37, %v80_v38 }
  0x13   :  { %3637 = vmatprep.subr.bf16.mxu0 %v17540_v0  ;;  %v88_v42 = vld [vmem:[%s17530_s0 + $0x1a0] sm:$0xff] }
  0x14   :  { %v12500_v44 = vcombine.high %v84_v41, %v88_v42  ;;  %v92_v45 = vld [vmem:[%s17530_s0 + $0x1c0] sm:$0xff]  ;;  %v12510_v47 = vcombine.low %v84_v41, %v88_v42 }
  0x15   :  { %v96_v46 = vld [vmem:[%s17530_s0 + $0x1e0] sm:$0xff] }
  0x16   :  { %3638 = vmatpush1.bf16.msra.mxu0 %v12222_v9  ;;  %18064 = vst [vmem:[#allocation2_spill] sm:$0xff] %v12510_v47  ;;  %v12512_v48 = vcombine.high %v92_v45, %v96_v46  ;;  %v100_v49 = vld [vmem:[%s17530_s0 + $0x200] sm:$0xff]  ;;  %v12522_v51 = vcombine.low %v92_v45, %v96_v46 }
  0x17   :  { %3639 = vmatprep.subr.bf16.mxu0 %v17540_v0  ;;  %v104_v50 = vld [vmem:[%s17530_s0 + $0x220] sm:$0xff] }
  0x18   :  { %18065 = vst [vmem:[#allocation3_spill] sm:$0xff] %v12512_v48  ;;  %18066 = vst [vmem:[#allocation4_spill] sm:$0xff] %v12522_v51  ;;  %v12524_v52 = vcombine.high %v100_v49, %v104_v50  ;;  %v108_v54 = vld [vmem:[%s17530_s0 + $0x240] sm:$0xff]  ;;  %v12538_v56 = vcombine.low %v100_v49, %v104_v50 }
  0x19   :  { %v112_v55 = vld [vmem:[%s17530_s0 + $0x260] sm:$0xff] }
  0x1a   :  { %3640 = vmatpush1.bf16.msra.mxu0 %v12223_v10  ;;  %18067 = vst [vmem:[#allocation5_spill] sm:$0xff] %v12524_v52  ;;  %18068 = vst [vmem:[#allocation6_spill] sm:$0xff] %v12538_v56  ;;  %v12540_v57 = vcombine.high %v108_v54, %v112_v55  ;;  %v116_v58 = vld [vmem:[%s17530_s0 + $0x280] sm:$0xff]  ;;  %v12550_v60 = vcombine.low %v108_v54, %v112_v55 }
  0x1b   :  { %3641 = vmatprep.subr.bf16.mxu0 %v17540_v0  ;;  %v120_v59 = vld [vmem:[%s17530_s0 + $0x2a0] sm:$0xff] }
  0x1c   :  { %18069 = vst [vmem:[#allocation7_spill] sm:$0xff] %v12540_v57  ;;  %18070 = vst [vmem:[#allocation8_spill] sm:$0xff] %v12550_v60  ;;  %v12552_v61 = vcombine.high %v116_v58, %v120_v59  ;;  %v124_v62 = vld [vmem:[%s17530_s0 + $0x2c0] sm:$0xff]  ;;  %v12562_v1 = vcombine.low %v116_v58, %v120_v59 }
  0x1d   :  { %v128_v63 = vld [vmem:[%s17530_s0 + $0x2e0] sm:$0xff] }
  0x1e   :  { %3642 = vmatpush1.bf16.msra.mxu0 %v12224_v11  ;;  %18071 = vst [vmem:[#allocation9_spill] sm:$0xff] %v12552_v61  ;;  %18072 = vst [vmem:[#allocation10_spill] sm:$0xff] %v12562_v1  ;;  %v12564_v2 = vcombine.high %v124_v62, %v128_v63  ;;  %v132_v3 = vld [vmem:[%s17530_s0 + $0x300] sm:$0xff]  ;;  %v12574_v5 = vcombine.low %v124_v62, %v128_v63 }
  0x1f   :  { %3643 = vmatprep.subr.bf16.mxu0 %v17540_v0  ;;  %v136_v4 = vld [vmem:[%s17530_s0 + $0x320] sm:$0xff] }
  0x20   :  { %18073 = vst [vmem:[#allocation11_spill] sm:$0xff] %v12564_v2  ;;  %18074 = vst [vmem:[#allocation12_spill] sm:$0xff] %v12574_v5  ;;  %v12576_v6 = vcombine.high %v132_v3, %v136_v4  ;;  %v140_v9 = vld [vmem:[%s17530_s0 + $0x340] sm:$0xff]  ;;  %v12590_v11 = vcombine.low %v132_v3, %v136_v4 }
  0x21   :  { %v144_v10 = vld [vmem:[%s17530_s0 + $0x360] sm:$0xff] }
  0x22   :  { %3644 = vmatpush1.bf16.msra.mxu0 %v12225_v12  ;;  %18075 = vst [vmem:[#allocation13_spill] sm:$0xff] %v12576_v6  ;;  %18076 = vst [vmem:[#allocation14_spill] sm:$0xff] %v12590_v11  ;;  %v12592_v12 = vcombine.high %v140_v9, %v144_v10  ;;  %v164_v21 = vld [vmem:[%s17530_s0 + $0x400] sm:$0xff] }
  0x23   :  { %3645 = vmatprep.subr.bf16.mxu0 %v17540_v0  ;;  %v168_v24 = vld [vmem:[%s17530_s0 + $0x420] sm:$0xff] }
  0x24   :  { %18077 = vst [vmem:[#allocation15_spill] sm:$0xff] %v12592_v12  ;;  %v12628_v28 = vcombine.high %v164_v21, %v168_v24  ;;  %v172_v32 = vld [vmem:[%s17530_s0 + $0x440] sm:$0xff] }
  0x25   :  { %v176_v33 = vld [vmem:[%s17530_s0 + $0x460] sm:$0xff] }
  0x26   :  { %3646 = vmatpush1.bf16.msra.mxu0 %v12226_v13  ;;  %v148_v13 = vld [vmem:[%s17530_s0 + $0x380] sm:$0xff]  ;;  %18083 = vst [vmem:[#allocation21_spill] sm:$0xff] %v12628_v28  ;;  %v12644_v37 = vcombine.high %v172_v32, %v176_v33  ;;  %v12654_v42 = vcombine.low %v172_v32, %v176_v33 }
  0x27   :  { %3647 = vmatprep.subr.bf16.mxu0 %v17540_v0  ;;  %v180_v38 = vld [vmem:[%s17530_s0 + $0x480] sm:$0xff] }
  0x28   :  { %18085 = vst [vmem:[#allocation23_spill] sm:$0xff] %v12644_v37  ;;  %v184_v41 = vld [vmem:[%s17530_s0 + $0x4a0] sm:$0xff]  ;;  %18086 = vst [vmem:[#allocation24_spill] sm:$0xff] %v12654_v42 }
  0x29   :  { %v12656_v45 = vcombine.high %v180_v38, %v184_v41  ;;  %v188_v46 = vld [vmem:[%s17530_s0 + $0x4c0] sm:$0xff]  ;;  %v12666_v50 = vcombine.low %v180_v38, %v184_v41  ;;  %v12238_v41 = vld [vmem:[%s17529_s1 + $0xa8] sm:$0xff]  }
  0x2a   :  { %3648 = vmatpush1.bf16.msra.mxu0 %v12227_v14  ;;  %v152_v14 = vld [vmem:[%s17530_s0 + $0x3a0] sm:$0xff] }
  0x2b   :  { %3649 = vmatprep.subr.bf16.mxu0 %v17540_v0  ;;  %18087 = vst [vmem:[#allocation25_spill] sm:$0xff] %v12656_v45  ;;  %v192_v49 = vld [vmem:[%s17530_s0 + $0x4e0] sm:$0xff]  ;;  %18088 = vst [vmem:[#allocation26_spill] sm:$0xff] %v12666_v50 }
  0x2c   :  { %v196_v54 = vld [vmem:[%s17530_s0 + $0x500] sm:$0xff]  ;;  %v12678_v58 = vcombine.low %v188_v46, %v192_v49 }
  0x2d   :  { %v200_v55 = vld [vmem:[%s17530_s0 + $0x520] sm:$0xff] }
  0x2e   :  { %3650 = vmatpush1.bf16.msra.mxu0 %v12228_v15  ;;  %v12602_v15 = vcombine.low %v140_v9, %v144_v10  ;;  %18090 = vst [vmem:[#allocation28_spill] sm:$0xff] %v12678_v58  ;;  %v12680_v59 = vcombine.high %v196_v54, %v200_v55  ;;  %v12237_v62 = vld [vmem:[%s17529_s1 + $0xa0] sm:$0xff]   ;;  %v12694_v4 = vcombine.low %v196_v54, %v200_v55 }
  0x2f   :  { %3651 = vmatprep.subr.bf16.mxu0 %v17540_v0  ;;  %v204_v63 = vld [vmem:[%s17530_s0 + $0x540] sm:$0xff] }
  0x30   :  { %18078 = vst [vmem:[#allocation16_spill] sm:$0xff] %v12602_v15  ;;  %18091 = vst [vmem:[#allocation29_spill] sm:$0xff] %v12680_v59  ;;  %v208_v3 = vld [vmem:[%s17530_s0 + $0x560] sm:$0xff] }
  0x31   :  { %18092 = vst [vmem:[#allocation30_spill] sm:$0xff] %v12694_v4  ;;  %v212_v9 = vld [vmem:[%s17530_s0 + $0x580] sm:$0xff] }
  0x32   :  { %3652 = vmatpush1.bf16.msra.mxu0 %v12229_v16  ;;  %v12604_v16 = vcombine.high %v148_v13, %v152_v14  ;;  %v216_v10 = vld [vmem:[%s17530_s0 + $0x5a0] sm:$0xff] }
  0x33   :  { %3653 = vmatprep.subr.bf16.mxu0 %v17540_v0  ;;  %v232_v32 = vld [vmem:[%s17530_s0 + $0x620] sm:$0xff] }
  0x34   :  { %18079 = vst [vmem:[#allocation17_spill] sm:$0xff] %v12604_v16 }
  0x36   :  { %3654 = vmatpush1.bf16.msra.mxu0 %v12230_v17  ;;  %v156_v17 = vld [vmem:[%s17530_s0 + $0x3c0] sm:$0xff] }
  0x37   :  { %3655 = vmatprep.subr.bf16.mxu0 %v17540_v0 }
  0x3a   :  { %3656 = vmatpush1.bf16.msra.mxu0 %v12231_v18  ;;  %v160_v18 = vld [vmem:[%s17530_s0 + $0x3e0] sm:$0xff] }
  0x3b   :  { %3657 = vmatprep.subr.bf16.mxu0 %v17540_v0  ;;  %v12616_v20 = vcombine.high %v156_v17, %v160_v18  ;;  %v12626_v25 = vcombine.low %v156_v17, %v160_v18  ;;  %v220_v17 = vld [vmem:[%s17530_s0 + $0x5c0] sm:$0xff] }
  0x3c   :  { %v224_v18 = vld [vmem:[%s17530_s0 + $0x5e0] sm:$0xff] }
  0x3d   :  { %18081 = vst [vmem:[#allocation19_spill] sm:$0xff] %v12616_v20  ;;  %18082 = vst [vmem:[#allocation20_spill] sm:$0xff] %v12626_v25  ;;  %v12730_v33 = vcombine.low %v220_v17, %v224_v18 }
  0x3e   :  { %3658 = vmatpush1.bf16.msra.mxu0 %v12232_v19  ;;  %v12614_v19 = vcombine.low %v148_v13, %v152_v14  ;;  %v12706_v13 = vcombine.low %v204_v63, %v208_v3  ;;  %v12708_v14 = vcombine.high %v212_v9, %v216_v10 }
  0x3f   :  { %4172 = vmatprep.subr.bf16.mxu0 %v17540_v0  ;;  %18098 = vst [vmem:[#allocation36_spill] sm:$0xff] %v12730_v33 }
  0x40   :  { %18080 = vst [vmem:[#allocation18_spill] sm:$0xff] %v12614_v19  ;;  %18094 = vst [vmem:[#allocation32_spill] sm:$0xff] %v12706_v13 }
  0x41   :  { %3660 = vmatmul.mubr.bf16.vlgmr.msra.gmra.mrb[0].mxu0 %v12433_v22  ;;  %18095 = vst [vmem:[#allocation33_spill] sm:$0xff] %v12708_v14 }
  0x42   :  { %3667 = vmatprep.mubr.bf16.mxu0 %v12435_v23  ;;  %4173 = vmatpush1.bf16.msra.mxu0 %v12233_v36  ;;  %v12642_v36 = vcombine.low %v164_v21, %v168_v24  ;;  %v12718_v21 = vcombine.low %v212_v9, %v216_v10  ;;  %v12720_v24 = vcombine.high %v220_v17, %v224_v18  ;;  %v252_v10 = vld [vmem:[%s17530_s0 + $0x6c0] sm:$0xff] }
  0x43   :  { %4174 = vmatprep.subr.bf16.mxu0 %v17540_v0  ;;  %v256_v17 = vld [vmem:[%s17530_s0 + $0x6e0] sm:$0xff] }
  0x44   :  { %18084 = vst [vmem:[#allocation22_spill] sm:$0xff] %v12642_v36  ;;  %18096 = vst [vmem:[#allocation34_spill] sm:$0xff] %v12718_v21 }
  0x45   :  { %18097 = vst [vmem:[#allocation35_spill] sm:$0xff] %v12720_v24 }
  0x46   :  { %4175 = vmatpush1.bf16.msra.mxu0 %v12234_v53  ;;  %v12668_v53 = vcombine.high %v188_v46, %v192_v49  ;;  %v236_v46 = vld [vmem:[%s17530_s0 + $0x640] sm:$0xff] }
  0x47   :  { %4176 = vmatprep.subr.bf16.mxu0 %v17540_v0  ;;  %v240_v49 = vld [vmem:[%s17530_s0 + $0x660] sm:$0xff] }
  0x48   :  { %18089 = vst [vmem:[#allocation27_spill] sm:$0xff] %v12668_v53  ;;  %v12748_v55 = vcombine.high %v236_v46, %v240_v49 }
  0x49   :  { %3668 = vmatmul.mubr.bf16.gmra.mrb[4].mxu0 %v12446_v26 }
  0x4a   :  { %3675 = vmatprep.mubr.bf16.mxu0 %v12448_v27  ;;  %4177 = vmatpush1.bf16.msra.mxu0 %v12235_v7  ;;  %v12696_v7 = vcombine.high %v204_v63, %v208_v3  ;;  %18101 = vst [vmem:[#allocation39_spill] sm:$0xff] %v12748_v55  ;;  %v248_v63 = vld [vmem:[%s17530_s0 + $0x6a0] sm:$0xff]  ;;  %v12758_v3 = vcombine.low %v236_v46, %v240_v49 }
  0x4b   :  { %4178 = vmatprep.subr.bf16.mxu0 %v17540_v0  ;;  %v12782_v46 = vcombine.low %v252_v10, %v256_v17 }
  0x4c   :  { %18093 = vst [vmem:[#allocation31_spill] sm:$0xff] %v12696_v7  ;;  %18102 = vst [vmem:[#allocation40_spill] sm:$0xff] %v12758_v3 }
  0x4d   :  { %18106 = vst [vmem:[#allocation44_spill] sm:$0xff] %v12782_v46 }
  0x4e   :  { %4179 = vmatpush1.bf16.msra.mxu0 %v12236_v29  ;;  %v228_v29 = vld [vmem:[%s17530_s0 + $0x600] sm:$0xff] }
  0x4f   :  { %4180 = vmatprep.subr.bf16.mxu0 %v17540_v0  ;;  %v12732_v38 = vcombine.high %v228_v29, %v232_v32  ;;  %v12746_v54 = vcombine.low %v228_v29, %v232_v32  ;;  %v12772_v29 = vcombine.high %v252_v10, %v256_v17  ;;  %v260_v32 = vld [vmem:[%s17530_s0 + $0x700] sm:$0xff]  ;;  %v18108_v10 = vmov 0  }
  0x51   :  { %3676 = vmatmul.mubr.bf16.gmra.mrb[8].mxu0 %v12458_v30  ;;  %18099 = vst [vmem:[#allocation37_spill] sm:$0xff] %v12732_v38  ;;  %18100 = vst [vmem:[#allocation38_spill] sm:$0xff] %v12746_v54 }
  0x52   :  { %3683 = vmatprep.mubr.bf16.mxu0 %v12460_v31  ;;  %4181 = vmatpush1.bf16.msra.mxu0 %v12237_v62  ;;  %v244_v62 = vld [vmem:[%s17530_s0 + $0x680] sm:$0xff]  ;;  %18105 = vst [vmem:[#allocation43_spill] sm:$0xff] %v12772_v29 }
  0x53   :  { %4182 = vmatprep.subr.bf16.mxu0 %v17540_v0  ;;  %v12760_v9 = vcombine.high %v244_v62, %v248_v63  ;;  %v12770_v18 = vcombine.low %v244_v62, %v248_v63  ;;  %v12239_v62 = vld [vmem:[%s17529_s1 + $0xb0] sm:$0xff]   ;;  %v268_v63 = vld [vmem:[%s17530_s0 + $0x740] sm:$0xff] }
  0x55   :  { %18103 = vst [vmem:[#allocation41_spill] sm:$0xff] %v12760_v9  ;;  %18104 = vst [vmem:[#allocation42_spill] sm:$0xff] %v12770_v18 }
  0x56   :  { %4183 = vmatpush1.bf16.msra.mxu0 %v12238_v41  ;;  %v264_v41 = vld [vmem:[%s17530_s0 + $0x720] sm:$0xff] }
  0x57   :  { %4184 = vmatprep.subr.bf16.mxu0 %v17540_v0  ;;  %v12784_v49 = vcombine.high %v260_v32, %v264_v41  ;;  %v272_v0 = vld [vmem:[%s17530_s0 + $0x760] sm:$0xff]  ;;  %v12798_v17 = vcombine.low %v260_v32, %v264_v41 }
  0x58   :  { %v284_v32 = vld [vmem:[%s17530_s0 + $0x7c0] sm:$0xff] }
  0x59   :  { %3684 = vmatmul.mubr.bf16.gmra.mrb[12].mxu0 %v12470_v34  ;;  %18107 = vst [vmem:[#allocation45_spill] sm:$0xff] %v12784_v49  ;;  %18109 = vst [vmem:[#allocation46_spill] sm:$0xff] %v12798_v17  ;;  %v288_v41 = vld [vmem:[%s17530_s0 + $0x7e0] sm:$0xff] }
  0x5a   :  { %3691 = vmatprep.mubr.bf16.mxu0 %v12472_v35  ;;  %4185 = vmatpush1.bf16.msra.mxu0 %v12239_v62 }
  0x5b   :  { %4186 = vmatprep.subr.bf16.mxu0 %v18108_v10 }
  0x61   :  { %3692 = vmatmul.mubr.bf16.gmra.mrb[16].mxu0 %v12486_v39 }
  0x62   :  { %3699 = vmatprep.mubr.bf16.mxu0 %v12488_v40 }
  0x69   :  { %3700 = vmatmul.mubr.bf16.gmra.mrb[20].mxu0 %v12498_v43 }
  0x6a   :  { %3707 = vmatprep.mubr.bf16.mxu0 %v12500_v44 }
  0x71   :  { %3708 = vmatmul.mubr.bf16.gmra.mrb[24].mxu0 %v12510_v47 }
  0x72   :  { %3715 = vmatprep.mubr.bf16.mxu0 %v12512_v48 }
  0x79   :  { %3716 = vmatmul.mubr.bf16.gmra.mrb[28].mxu0 %v12522_v51 }
  0x7a   :  { %3723 = vmatprep.mubr.bf16.mxu0 %v12524_v52 }
  0x81   :  { %3724 = vmatmul.mubr.bf16.gmra.mrb[32].mxu0 %v12538_v56 }
  0x82   :  { %3731 = vmatprep.mubr.bf16.mxu0 %v12540_v57 }
  0x89   :  { %3732 = vmatmul.mubr.bf16.gmra.mrb[36].mxu0 %v12550_v60 }
  0x8a   :  { %3739 = vmatprep.mubr.bf16.mxu0 %v12552_v61 }
  0x91   :  { %3740 = vmatmul.mubr.bf16.gmra.mrb[40].mxu0 %v12562_v1 }
  0x92   :  { %3747 = vmatprep.mubr.bf16.mxu0 %v12564_v2 }
  0x99   :  { %3748 = vmatmul.mubr.bf16.gmra.mrb[44].mxu0 %v12574_v5 }
  0x9a   :  { %3755 = vmatprep.mubr.bf16.mxu0 %v12576_v6 }
  0xa1   :  { %3756 = vmatmul.mubr.bf16.gmra.mrb[48].mxu0 %v12590_v11 }
  0xa2   :  { %3763 = vmatprep.mubr.bf16.mxu0 %v12592_v12 }
  0xa9   :  { %3764 = vmatmul.mubr.bf16.gmra.mrb[52].mxu0 %v12602_v15 }
  0xaa   :  { %3771 = vmatprep.mubr.bf16.mxu0 %v12604_v16 }
  0xb1   :  { %3772 = vmatmul.mubr.bf16.gmra.mrb[56].mxu0 %v12614_v19 }
  0xb2   :  { %3779 = vmatprep.mubr.bf16.mxu0 %v12616_v20 }
  0xb9   :  { %3780 = vmatmul.mubr.bf16.gmra.mrb[60].mxu0 %v12626_v25 }
  0xba   :  { %3787 = vmatprep.mubr.bf16.mxu0 %v12628_v28 }
  0xc1   :  { %3788 = vmatmul.mubr.bf16.gmra.mrb[64].mxu0 %v12642_v36  ;;  %v347_v36 = vld [vmem:[%s17530_s0 + $0x9b8] sm:$0xff] }
  0xc2   :  { %3795 = vmatprep.mubr.bf16.mxu0 %v12644_v37 }
  0xc9   :  { %3796 = vmatmul.mubr.bf16.gmra.mrb[68].mxu0 %v12654_v42  ;;  %v339_v42 = vld [vmem:[%s17530_s0 + $0x978] sm:$0xff] }
  0xca   :  { %3803 = vmatprep.mubr.bf16.mxu0 %v12656_v45 }
  0xd1   :  { %3804 = vmatmul.mubr.bf16.gmra.mrb[72].mxu0 %v12666_v50  ;;  %v331_v50 = vld [vmem:[%s17530_s0 + $0x938] sm:$0xff] }
  0xd2   :  { %3811 = vmatprep.mubr.bf16.mxu0 %v12668_v53 }
  0xd9   :  { %3812 = vmatmul.mubr.bf16.gmra.mrb[76].mxu0 %v12678_v58  ;;  %v323_v58 = vld [vmem:[%s17530_s0 + $0x8f8] sm:$0xff] }
  0xda   :  { %3819 = vmatprep.mubr.bf16.mxu0 %v12680_v59 }
  0xe1   :  { %3820 = vmatmul.mubr.bf16.gmra.mrb[80].mxu0 %v12694_v4  ;;  %v315_v4 = vld [vmem:[%s17530_s0 + $0x8b8] sm:$0xff] }
  0xe2   :  { %3827 = vmatprep.mubr.bf16.mxu0 %v12696_v7 }
  0xe9   :  { %3828 = vmatmul.mubr.bf16.gmra.mrb[84].mxu0 %v12706_v13  ;;  %v307_v13 = vld [vmem:[%s17530_s0 + $0x878] sm:$0xff] }
  0xea   :  { %3835 = vmatprep.mubr.bf16.mxu0 %v12708_v14 }
  0xf1   :  { %3836 = vmatmul.mubr.bf16.gmra.mrb[88].mxu0 %v12718_v21  ;;  %v299_v21 = vld [vmem:[%s17530_s0 + $0x838] sm:$0xff] }
  0xf2   :  { %3843 = vmatprep.mubr.bf16.mxu0 %v12720_v24 }
  0xf9   :  { %3844 = vmatmul.mubr.bf16.gmra.mrb[92].mxu0 %v12730_v33  ;;  %v291_v33 = vld [vmem:[%s17530_s0 + $0x7f8] sm:$0xff] }
  0xfa   :  { %3851 = vmatprep.mubr.bf16.mxu0 %v12732_v38 }
 0x101   :  { %3852 = vmatmul.mubr.bf16.gmra.mrb[96].mxu0 %v12746_v54  ;;  %v283_v54 = vld [vmem:[%s17530_s0 + $0x7b8] sm:$0xff] }
 0x102   :  { %3859 = vmatprep.mubr.bf16.mxu0 %v12748_v55 }
 0x109   :  { %3860 = vmatmul.mubr.bf16.gmra.mrb[100].mxu0 %v12758_v3  ;;  %v5816_v3 = vld [vmem:[%s17531_s3 + $0x48] sm:$0xff] }
 0x10a   :  { %3867 = vmatprep.mubr.bf16.mxu0 %v12760_v9 }
 0x111   :  { %3868 = vmatmul.mubr.bf16.gmra.mrb[104].mxu0 %v12770_v18  ;;  %v12810_v18 = vcombine.low %v268_v63, %v272_v0 }
 0x112   :  { %3875 = vmatprep.mubr.bf16.mxu0 %v12772_v29  ;;  %v280_v29 = vld [vmem:[%s17530_s0 + $0x7a0] sm:$0xff] }
 0x113   :  { %18111 = vst [vmem:[#allocation48_spill] sm:$0xff] %v12810_v18 }
 0x119   :  { %3876 = vmatmul.mubr.bf16.gmra.mrb[108].mxu0 %v12782_v46  ;;  %v12800_v46 = vcombine.high %v268_v63, %v272_v0  ;;  %v292_v0 = vld [vmem:[%s17530_s0 + $0x800] sm:$0xff] }
 0x11a   :  { %3883 = vmatprep.mubr.bf16.mxu0 %v12784_v49  ;;  %v276_v49 = vld [vmem:[%s17530_s0 + $0x780] sm:$0xff] }
 0x11b   :  { %18110 = vst [vmem:[#allocation47_spill] sm:$0xff] %v12800_v46  ;;  %v12812_v62 = vcombine.high %v276_v49, %v280_v29  ;;  %v296_v63 = vld [vmem:[%s17530_s0 + $0x820] sm:$0xff] }
 0x11d   :  { %18112 = vst [vmem:[#allocation49_spill] sm:$0xff] %v12812_v62 }
 0x121   :  { %3884 = vmatmul.mubr.bf16.gmra.mrb[112].mxu0 %v12798_v17  ;;  %v12824_v17 = vcombine.high %v284_v32, %v288_v41 }
 0x122   :  { %3891 = vmatprep.mubr.bf16.mxu0 %v12800_v46  ;;  %v12822_v46 = vcombine.low %v276_v49, %v280_v29  ;;  %v12240_v29 = vld [vmem:[%s17529_s1 + $0xb8] sm:$0xff]   ;;  %v300_v49 = vld [vmem:[%s17530_s0 + $0x840] sm:$0xff] }
 0x123   :  { %18114 = vst [vmem:[#allocation51_spill] sm:$0xff] %v12824_v17  ;;  %4187 = vmatpush1.bf16.msra.mxu0 %v12240_v29 }
 0x124   :  { %18113 = vst [vmem:[#allocation50_spill] sm:$0xff] %v12822_v46  ;;  %4188 = vmatprep.subr.bf16.mxu0 %v18108_v10 }
 0x129   :  { %3892 = vmatmul.mubr.bf16.gmra.mrb[116].mxu0 %v12810_v18  ;;  %v12836_v18 = vcombine.high %v292_v0, %v296_v63 }
 0x12a   :  { %3899 = vmatprep.mubr.bf16.mxu0 %v12812_v62  ;;  %v12834_v62 = vcombine.low %v284_v32, %v288_v41  ;;  %v12850_v32 = vcombine.low %v292_v0, %v296_v63  ;;  %v316_v0 = vld [vmem:[%s17530_s0 + $0x8c0] sm:$0xff] }
 0x12b   :  { %18116 = vst [vmem:[#allocation53_spill] sm:$0xff] %v12836_v18  ;;  %v320_v63 = vld [vmem:[%s17530_s0 + $0x8e0] sm:$0xff] }
 0x12c   :  { %18115 = vst [vmem:[#allocation52_spill] sm:$0xff] %v12834_v62  ;;  %18117 = vst [vmem:[#allocation54_spill] sm:$0xff] %v12850_v32 }
 0x131   :  { %3900 = vmatmul.mubr.bf16.gmra.mrb[120].mxu0 %v12822_v46 }
 0x132   :  { %3907 = vmatprep.mubr.bf16.mxu0 %v12824_v17  ;;  %v304_v17 = vld [vmem:[%s17530_s0 + $0x860] sm:$0xff] }
 0x133   :  { %v12852_v41 = vcombine.high %v300_v49, %v304_v17  ;;  %v12862_v46 = vcombine.low %v300_v49, %v304_v17  ;;  %v324_v17 = vld [vmem:[%s17530_s0 + $0x900] sm:$0xff] }
 0x134   :  { %v328_v49 = vld [vmem:[%s17530_s0 + $0x920] sm:$0xff] }
 0x135   :  { %18118 = vst [vmem:[#allocation55_spill] sm:$0xff] %v12852_v41  ;;  %18119 = vst [vmem:[#allocation56_spill] sm:$0xff] %v12862_v46 }
 0x139   :  { %3908 = vmatmul.mubr.bf16.gmra.mrb[124].mxu0 %v12834_v62  ;;  %v312_v62 = vld [vmem:[%s17530_s0 + $0x8a0] sm:$0xff] }
 0x13a   :  { %3915 = vmatprep.mubr.bf16.mxu0 %v12836_v18  ;;  %v308_v18 = vld [vmem:[%s17530_s0 + $0x880] sm:$0xff] }
 0x13b   :  { %v12864_v29 = vcombine.high %v308_v18, %v312_v62 }
 0x13d   :  { %18120 = vst [vmem:[#allocation57_spill] sm:$0xff] %v12864_v29 }
 0x141   :  { %3916 = vmatmul.mubr.bf16.gmra.mrb[128].mxu0 %v12850_v32  ;;  %v12876_v32 = vcombine.high %v316_v0, %v320_v63 }
 0x142   :  { %3923 = vmatprep.mubr.bf16.mxu0 %v12852_v41  ;;  %v12874_v41 = vcombine.low %v308_v18, %v312_v62  ;;  %v12241_v18 = vld [vmem:[%s17529_s1 + $0xc0] sm:$0xff]  }
 0x143   :  { %18122 = vst [vmem:[#allocation59_spill] sm:$0xff] %v12876_v32  ;;  %v332_v62 = vld [vmem:[%s17530_s0 + $0x940] sm:$0xff]  ;;  %4189 = vmatpush1.bf16.msra.mxu0 %v12241_v18 }
 0x144   :  { %18121 = vst [vmem:[#allocation58_spill] sm:$0xff] %v12874_v41  ;;  %4190 = vmatprep.subr.bf16.mxu0 %v18108_v10 }
 0x149   :  { %3924 = vmatmul.mubr.bf16.gmra.mrb[132].mxu0 %v12862_v46  ;;  %v12888_v46 = vcombine.high %v324_v17, %v328_v49 }
 0x14a   :  { %3931 = vmatprep.mubr.bf16.mxu0 %v12864_v29  ;;  %v12886_v29 = vcombine.low %v316_v0, %v320_v63  ;;  %v12902_v0 = vcombine.low %v324_v17, %v328_v49  ;;  %v348_v17 = vld [vmem:[%s17530_s0 + $0x9c0] sm:$0xff] }
 0x14b   :  { %18124 = vst [vmem:[#allocation61_spill] sm:$0xff] %v12888_v46  ;;  %v352_v49 = vld [vmem:[%s17530_s0 + $0x9e0] sm:$0xff] }
 0x14c   :  { %18123 = vst [vmem:[#allocation60_spill] sm:$0xff] %v12886_v29  ;;  %18125 = vst [vmem:[#allocation62_spill] sm:$0xff] %v12902_v0 }
 0x151   :  { %3932 = vmatmul.mubr.bf16.gmra.mrb[136].mxu0 %v12874_v41 }
 0x152   :  { %3939 = vmatprep.mubr.bf16.mxu0 %v12876_v32  ;;  %v336_v32 = vld [vmem:[%s17530_s0 + $0x960] sm:$0xff] }
 0x153   :  { %v12904_v63 = vcombine.high %v332_v62, %v336_v32  ;;  %v12914_v41 = vcombine.low %v332_v62, %v336_v32  ;;  %v356_v32 = vld [vmem:[%s17530_s0 + $0xa00] sm:$0xff] }
 0x154   :  { %v360_v62 = vld [vmem:[%s17530_s0 + $0xa20] sm:$0xff] }
 0x155   :  { %18126 = vst [vmem:[#allocation63_spill] sm:$0xff] %v12904_v63  ;;  %18127 = vst [vmem:[#allocation64_spill] sm:$0xff] %v12914_v41 }
 0x159   :  { %3940 = vmatmul.mubr.bf16.gmra.mrb[140].mxu0 %v12886_v29  ;;  %v344_v29 = vld [vmem:[%s17530_s0 + $0x9a0] sm:$0xff] }
 0x15a   :  { %3947 = vmatprep.mubr.bf16.mxu0 %v12888_v46  ;;  %v340_v46 = vld [vmem:[%s17530_s0 + $0x980] sm:$0xff] }
 0x15b   :  { %v12916_v18 = vcombine.high %v340_v46, %v344_v29 }
 0x15d   :  { %18128 = vst [vmem:[#allocation65_spill] sm:$0xff] %v12916_v18 }
 0x161   :  { %3948 = vmatmul.mubr.bf16.gmra.mrb[144].mxu0 %v12902_v0  ;;  %v12928_v0 = vcombine.high %v348_v17, %v352_v49 }
 0x162   :  { %3955 = vmatprep.mubr.bf16.mxu0 %v12904_v63  ;;  %v12926_v63 = vcombine.low %v340_v46, %v344_v29  ;;  %v12242_v46 = vld [vmem:[%s17529_s1 + $0xc8] sm:$0xff]   ;;  %v364_v29 = vld [vmem:[%s17530_s0 + $0xa40] sm:$0xff] }
 0x163   :  { %18130 = vst [vmem:[#allocation67_spill] sm:$0xff] %v12928_v0  ;;  %4191 = vmatpush1.bf16.msra.mxu0 %v12242_v46 }
 0x164   :  { %18129 = vst [vmem:[#allocation66_spill] sm:$0xff] %v12926_v63  ;;  %4192 = vmatprep.subr.bf16.mxu0 %v18108_v10 }
 0x169   :  { %3956 = vmatmul.mubr.bf16.gmra.mrb[148].mxu0 %v12914_v41  ;;  %v12940_v41 = vcombine.high %v356_v32, %v360_v62 }
 0x16a   :  { %3963 = vmatprep.mubr.bf16.mxu0 %v12916_v18  ;;  %v12938_v18 = vcombine.low %v348_v17, %v352_v49  ;;  %v12954_v17 = vcombine.low %v356_v32, %v360_v62  ;;  %v380_v32 = vld [vmem:[%s17530_s0 + $0xac0] sm:$0xff] }
 0x16b   :  { %18132 = vst [vmem:[#allocation69_spill] sm:$0xff] %v12940_v41  ;;  %v384_v62 = vld [vmem:[%s17530_s0 + $0xae0] sm:$0xff] }
 0x16c   :  { %18131 = vst [vmem:[#allocation68_spill] sm:$0xff] %v12938_v18  ;;  %18133 = vst [vmem:[#allocation70_spill] sm:$0xff] %v12954_v17 }
 0x171   :  { %3964 = vmatmul.mubr.bf16.gmra.mrb[152].mxu0 %v12926_v63 }
 0x172   :  { %3971 = vmatprep.mubr.bf16.mxu0 %v12928_v0  ;;  %v368_v0 = vld [vmem:[%s17530_s0 + $0xa60] sm:$0xff] }
 0x173   :  { %v12956_v49 = vcombine.high %v364_v29, %v368_v0  ;;  %v12966_v63 = vcombine.low %v364_v29, %v368_v0  ;;  %v388_v0 = vld [vmem:[%s17530_s0 + $0xb00] sm:$0xff] }
 0x174   :  { %v392_v29 = vld [vmem:[%s17530_s0 + $0xb20] sm:$0xff] }
 0x175   :  { %18134 = vst [vmem:[#allocation71_spill] sm:$0xff] %v12956_v49  ;;  %18135 = vst [vmem:[#allocation72_spill] sm:$0xff] %v12966_v63 }
 0x179   :  { %3972 = vmatmul.mubr.bf16.gmra.mrb[156].mxu0 %v12938_v18  ;;  %v376_v18 = vld [vmem:[%s17530_s0 + $0xaa0] sm:$0xff] }
 0x17a   :  { %3979 = vmatprep.mubr.bf16.mxu0 %v12940_v41  ;;  %v372_v41 = vld [vmem:[%s17530_s0 + $0xa80] sm:$0xff] }
 0x17b   :  { %v12968_v46 = vcombine.high %v372_v41, %v376_v18 }
 0x17d   :  { %18136 = vst [vmem:[#allocation73_spill] sm:$0xff] %v12968_v46 }
 0x181   :  { %3980 = vmatmul.mubr.bf16.gmra.mrb[160].mxu0 %v12954_v17  ;;  %v12980_v17 = vcombine.high %v380_v32, %v384_v62 }
 0x182   :  { %3987 = vmatprep.mubr.bf16.mxu0 %v12956_v49  ;;  %v12978_v49 = vcombine.low %v372_v41, %v376_v18  ;;  %v12243_v41 = vld [vmem:[%s17529_s1 + $0xd0] sm:$0xff]   ;;  %v396_v18 = vld [vmem:[%s17530_s0 + $0xb40] sm:$0xff] }
 0x183   :  { %18138 = vst [vmem:[#allocation75_spill] sm:$0xff] %v12980_v17  ;;  %4193 = vmatpush1.bf16.msra.mxu0 %v12243_v41 }
 0x184   :  { %18137 = vst [vmem:[#allocation74_spill] sm:$0xff] %v12978_v49  ;;  %4194 = vmatprep.subr.bf16.mxu0 %v18108_v10 }
 0x189   :  { %3988 = vmatmul.mubr.bf16.gmra.mrb[164].mxu0 %v12966_v63  ;;  %v12992_v63 = vcombine.high %v388_v0, %v392_v29 }
 0x18a   :  { %3995 = vmatprep.mubr.bf16.mxu0 %v12968_v46  ;;  %v12990_v46 = vcombine.low %v380_v32, %v384_v62  ;;  %v13006_v32 = vcombine.low %v388_v0, %v392_v29  ;;  %v12244_v0 = vld [vmem:[%s17529_s1 + $0xd8] sm:$0xff]   ;;  %v412_v29 = vld [vmem:[%s17530_s0 + $0xbc0] sm:$0xff] }
 0x18b   :  { %18140 = vst [vmem:[#allocation77_spill] sm:$0xff] %v12992_v63  ;;  %4195 = vmatpush1.bf16.msra.mxu0 %v12244_v0 }
 0x18c   :  { %18139 = vst [vmem:[#allocation76_spill] sm:$0xff] %v12990_v46  ;;  %18141 = vst [vmem:[#allocation78_spill] sm:$0xff] %v13006_v32  ;;  %4196 = vmatprep.subr.bf16.mxu0 %v18108_v10 }
 0x191   :  { %3996 = vmatmul.mubr.bf16.gmra.mrb[168].mxu0 %v12978_v49 }
 0x192   :  { %4003 = vmatprep.mubr.bf16.mxu0 %v12980_v17  ;;  %v400_v17 = vld [vmem:[%s17530_s0 + $0xb60] sm:$0xff] }
 0x193   :  { %v13008_v62 = vcombine.high %v396_v18, %v400_v17  ;;  %v13018_v49 = vcombine.low %v396_v18, %v400_v17 }
 0x195   :  { %18142 = vst [vmem:[#allocation79_spill] sm:$0xff] %v13008_v62  ;;  %18143 = vst [vmem:[#allocation80_spill] sm:$0xff] %v13018_v49 }
 0x199   :  { %4004 = vmatmul.mubr.bf16.gmra.mrb[172].mxu0 %v12990_v46  ;;  %v408_v46 = vld [vmem:[%s17530_s0 + $0xba0] sm:$0xff] }
 0x19a   :  { %4011 = vmatprep.mubr.bf16.mxu0 %v12992_v63  ;;  %v404_v63 = vld [vmem:[%s17530_s0 + $0xb80] sm:$0xff] }
 0x19b   :  { %v13020_v41 = vcombine.high %v404_v63, %v408_v46  ;;  %v13034_v17 = vcombine.low %v404_v63, %v408_v46  ;;  %v420_v63 = vld [vmem:[%s17530_s0 + $0xc00] sm:$0xff] }
 0x19c   :  { %v424_v46 = vld [vmem:[%s17530_s0 + $0xc20] sm:$0xff] }
 0x19d   :  { %18144 = vst [vmem:[#allocation81_spill] sm:$0xff] %v13020_v41  ;;  %18145 = vst [vmem:[#allocation82_spill] sm:$0xff] %v13034_v17 }
 0x1a1   :  { %4012 = vmatmul.mubr.bf16.gmra.mrb[176].mxu0 %v13006_v32 }
 0x1a2   :  { %4019 = vmatprep.mubr.bf16.mxu0 %v13008_v62  ;;  %v416_v62 = vld [vmem:[%s17530_s0 + $0xbe0] sm:$0xff] }
 0x1a3   :  { %v13036_v18 = vcombine.high %v412_v29, %v416_v62  ;;  %v13053_v0 = vcombine.low %v412_v29, %v416_v62  ;;  %v428_v62 = vld [vmem:[%s17530_s0 + $0xc40] sm:$0xff]  ;;  %v13073_v29 = vcombine.low %v420_v63, %v424_v46 }
 0x1a5   :  { %18146 = vst [vmem:[#allocation83_spill] sm:$0xff] %v13036_v18  ;;  %18147 = vst [vmem:[#allocation84_spill] sm:$0xff] %v13053_v0 }
 0x1a6   :  { %18149 = vst [vmem:[#allocation86_spill] sm:$0xff] %v13073_v29 }
 0x1a9   :  { %4020 = vmatmul.mubr.bf16.gmra.mrb[180].mxu0 %v13018_v49  ;;  %v12245_v49 = vld [vmem:[%s17529_s1 + $0xe0] sm:$0xff]  }
 0x1aa   :  { %4027 = vmatprep.mubr.bf16.mxu0 %v13020_v41  ;;  %4197 = vmatpush1.bf16.msra.mxu0 %v12245_v49  ;;  %v12246_v41 = vld [vmem:[%s17529_s1 + $0xe8] sm:$0xff]   ;;  %v12247_v49 = vld [vmem:[%s17529_s1 + $0xf0] sm:$0xff]  }
 0x1ab   :  { %4198 = vmatprep.subr.bf16.mxu0 %v18108_v10 }
 0x1ae   :  { %4199 = vmatpush1.bf16.msra.mxu0 %v12246_v41  ;;  %v432_v41 = vld [vmem:[%s17530_s0 + $0xc60] sm:$0xff] }
 0x1af   :  { %4200 = vmatprep.subr.bf16.mxu0 %v18108_v10  ;;  %v13086_v32 = vcombine.low %v428_v62, %v432_v41 }
 0x1b1   :  { %4028 = vmatmul.mubr.bf16.gmra.mrb[184].mxu0 %v13034_v17  ;;  %v13055_v17 = vcombine.high %v420_v63, %v424_v46  ;;  %18151 = vst [vmem:[#allocation88_spill] sm:$0xff] %v13086_v32  ;;  %v448_v46 = vld [vmem:[%s17530_s0 + $0xce0] sm:$0xff] }
 0x1b2   :  { %4035 = vmatprep.mubr.bf16.mxu0 %v13036_v18  ;;  %4201 = vmatpush1.bf16.msra.mxu0 %v12247_v49  ;;  %v12248_v18 = vld [vmem:[%s17529_s1 + $0xf8] sm:$0xff]   ;;  %v436_v49 = vld [vmem:[%s17530_s0 + $0xc80] sm:$0xff] }
 0x1b3   :  { %18148 = vst [vmem:[#allocation85_spill] sm:$0xff] %v13055_v17  ;;  %4202 = vmatprep.subr.bf16.mxu0 %v18108_v10 }
 0x1b6   :  { %4203 = vmatpush1.bf16.msra.mxu0 %v12248_v18  ;;  %v444_v18 = vld [vmem:[%s17530_s0 + $0xcc0] sm:$0xff] }
 0x1b7   :  { %4717 = vmatprep.subr.bf16.mxu0 %v18108_v10 }
 0x1b9   :  { %4036 = vmatmul.mubr.bf16.gmra.mrb[188].mxu0 %v13053_v0  ;;  %v13075_v0 = vcombine.high %v428_v62, %v432_v41  ;;  %v452_v62 = vld [vmem:[%s17530_s0 + $0xd00] sm:$0xff] }
 0x1ba   :  { %4043 = vmatprep.mubr.bf16.mxu0 %v13055_v17  ;;  %v440_v17 = vld [vmem:[%s17530_s0 + $0xca0] sm:$0xff] }
 0x1bb   :  { %18150 = vst [vmem:[#allocation87_spill] sm:$0xff] %v13075_v0  ;;  %v13088_v63 = vcombine.high %v436_v49, %v440_v17  ;;  %v456_v41 = vld [vmem:[%s17530_s0 + $0xd20] sm:$0xff] }
 0x1bd   :  { %18152 = vst [vmem:[#allocation89_spill] sm:$0xff] %v13088_v63 }
 0x1c1   :  { %4044 = vmatmul.mubr.bf16.gmra.mrb[192].mxu0 %v13073_v29  ;;  %v13100_v29 = vcombine.high %v444_v18, %v448_v46 }
 0x1c2   :  { %4051 = vmatprep.mubr.bf16.mxu0 %v13075_v0  ;;  %v13098_v0 = vcombine.low %v436_v49, %v440_v17  ;;  %v460_v17 = vld [vmem:[%s17530_s0 + $0xd40] sm:$0xff] }
 0x1c3   :  { %18154 = vst [vmem:[#allocation91_spill] sm:$0xff] %v13100_v29  ;;  %v464_v49 = vld [vmem:[%s17530_s0 + $0xd60] sm:$0xff] }
 0x1c4   :  { %18153 = vst [vmem:[#allocation90_spill] sm:$0xff] %v13098_v0 }
 0x1c9   :  { %4052 = vmatmul.mubr.bf16.gmra.mrb[196].mxu0 %v13086_v32  ;;  %v13112_v32 = vcombine.high %v452_v62, %v456_v41 }
 0x1ca   :  { %4059 = vmatprep.mubr.bf16.mxu0 %v13088_v63  ;;  %v13110_v63 = vcombine.low %v444_v18, %v448_v46  ;;  %v468_v18 = vld [vmem:[%s17530_s0 + $0xd80] sm:$0xff] }
 0x1cb   :  { %18156 = vst [vmem:[#allocation93_spill] sm:$0xff] %v13112_v32  ;;  %v472_v46 = vld [vmem:[%s17530_s0 + $0xda0] sm:$0xff] }
 0x1cc   :  { %18155 = vst [vmem:[#allocation92_spill] sm:$0xff] %v13110_v63 }
 0x1d1   :  { %4060 = vmatmul.mubr.bf16.gmra.mrb[200].mxu0 %v13098_v0  ;;  %v13124_v0 = vcombine.high %v460_v17, %v464_v49 }
 0x1d2   :  { %4067 = vmatprep.mubr.bf16.mxu0 %v13100_v29  ;;  %v13122_v29 = vcombine.low %v452_v62, %v456_v41  ;;  %v476_v62 = vld [vmem:[%s17530_s0 + $0xdc0] sm:$0xff] }
 0x1d3   :  { %18158 = vst [vmem:[#allocation95_spill] sm:$0xff] %v13124_v0  ;;  %v480_v41 = vld [vmem:[%s17530_s0 + $0xde0] sm:$0xff] }
 0x1d4   :  { %18157 = vst [vmem:[#allocation94_spill] sm:$0xff] %v13122_v29 }
 0x1d9   :  { %4068 = vmatmul.mubr.bf16.gmra.mrb[204].mxu0 %v13110_v63  ;;  %v13136_v63 = vcombine.high %v468_v18, %v472_v46 }
 0x1da   :  { %4075 = vmatprep.mubr.bf16.mxu0 %v13112_v32  ;;  %v13134_v32 = vcombine.low %v460_v17, %v464_v49  ;;  %v484_v17 = vld [vmem:[%s17530_s0 + $0xe00] sm:$0xff] }
 0x1db   :  { %18160 = vst [vmem:[#allocation97_spill] sm:$0xff] %v13136_v63  ;;  %v488_v49 = vld [vmem:[%s17530_s0 + $0xe20] sm:$0xff] }
 0x1dc   :  { %18159 = vst [vmem:[#allocation96_spill] sm:$0xff] %v13134_v32 }
 0x1e1   :  { %4076 = vmatmul.mubr.bf16.gmra.mrb[208].mxu0 %v13122_v29  ;;  %v13148_v29 = vcombine.high %v476_v62, %v480_v41 }
 0x1e2   :  { %4083 = vmatprep.mubr.bf16.mxu0 %v13124_v0  ;;  %v13146_v0 = vcombine.low %v468_v18, %v472_v46  ;;  %v492_v18 = vld [vmem:[%s17530_s0 + $0xe40] sm:$0xff] }
 0x1e3   :  { %18162 = vst [vmem:[#allocation99_spill] sm:$0xff] %v13148_v29  ;;  %v496_v46 = vld [vmem:[%s17530_s0 + $0xe60] sm:$0xff] }
 0x1e4   :  { %18161 = vst [vmem:[#allocation98_spill] sm:$0xff] %v13146_v0 }
 0x1e9   :  { %4084 = vmatmul.mubr.bf16.gmra.mrb[212].mxu0 %v13134_v32  ;;  %v13160_v32 = vcombine.high %v484_v17, %v488_v49 }
 0x1ea   :  { %4091 = vmatprep.mubr.bf16.mxu0 %v13136_v63  ;;  %v13158_v63 = vcombine.low %v476_v62, %v480_v41  ;;  %v500_v62 = vld [vmem:[%s17530_s0 + $0xe80] sm:$0xff] }
 0x1eb   :  { %18164 = vst [vmem:[#allocation101_spill] sm:$0xff] %v13160_v32  ;;  %v504_v41 = vld [vmem:[%s17530_s0 + $0xea0] sm:$0xff] }
 0x1ec   :  { %18163 = vst [vmem:[#allocation100_spill] sm:$0xff] %v13158_v63 }
 0x1f1   :  { %4092 = vmatmul.mubr.bf16.gmra.mrb[216].mxu0 %v13146_v0  ;;  %v13172_v0 = vcombine.high %v492_v18, %v496_v46 }
 0x1f2   :  { %4099 = vmatprep.mubr.bf16.mxu0 %v13148_v29  ;;  %v13170_v29 = vcombine.low %v484_v17, %v488_v49  ;;  %v508_v17 = vld [vmem:[%s17530_s0 + $0xec0] sm:$0xff] }
 0x1f3   :  { %18166 = vst [vmem:[#allocation103_spill] sm:$0xff] %v13172_v0  ;;  %v512_v49 = vld [vmem:[%s17530_s0 + $0xee0] sm:$0xff] }
 0x1f4   :  { %18165 = vst [vmem:[#allocation102_spill] sm:$0xff] %v13170_v29 }
 0x1f9   :  { %4100 = vmatmul.mubr.bf16.gmra.mrb[220].mxu0 %v13158_v63  ;;  %v13184_v63 = vcombine.high %v500_v62, %v504_v41 }
 0x1fa   :  { %4107 = vmatprep.mubr.bf16.mxu0 %v13160_v32  ;;  %v13182_v32 = vcombine.low %v492_v18, %v496_v46  ;;  %v516_v18 = vld [vmem:[%s17530_s0 + $0xf00] sm:$0xff] }
 0x1fb   :  { %18168 = vst [vmem:[#allocation105_spill] sm:$0xff] %v13184_v63  ;;  %v520_v46 = vld [vmem:[%s17530_s0 + $0xf20] sm:$0xff] }
 0x1fc   :  { %18167 = vst [vmem:[#allocation104_spill] sm:$0xff] %v13182_v32 }
 0x201   :  { %4108 = vmatmul.mubr.bf16.gmra.mrb[224].mxu0 %v13170_v29  ;;  %v13196_v29 = vcombine.high %v508_v17, %v512_v49 }
 0x202   :  { %4115 = vmatprep.mubr.bf16.mxu0 %v13172_v0  ;;  %v13194_v0 = vcombine.low %v500_v62, %v504_v41  ;;  %v524_v62 = vld [vmem:[%s17530_s0 + $0xf40] sm:$0xff] }
 0x203   :  { %18170 = vst [vmem:[#allocation107_spill] sm:$0xff] %v13196_v29  ;;  %v528_v41 = vld [vmem:[%s17530_s0 + $0xf60] sm:$0xff] }
 0x204   :  { %18169 = vst [vmem:[#allocation106_spill] sm:$0xff] %v13194_v0 }
 0x209   :  { %4116 = vmatmul.mubr.bf16.gmra.mrb[228].mxu0 %v13182_v32  ;;  %v13208_v32 = vcombine.high %v516_v18, %v520_v46 }
 0x20a   :  { %4123 = vmatprep.mubr.bf16.mxu0 %v13184_v63  ;;  %v13206_v63 = vcombine.low %v508_v17, %v512_v49  ;;  %v532_v17 = vld [vmem:[%s17530_s0 + $0xf80] sm:$0xff] }
 0x20b   :  { %18172 = vst [vmem:[#allocation109_spill] sm:$0xff] %v13208_v32  ;;  %v536_v49 = vld [vmem:[%s17530_s0 + $0xfa0] sm:$0xff] }
 0x20c   :  { %18171 = vst [vmem:[#allocation108_spill] sm:$0xff] %v13206_v63 }
 0x211   :  { %4124 = vmatmul.mubr.bf16.gmra.mrb[232].mxu0 %v13194_v0  ;;  %v13220_v0 = vcombine.high %v524_v62, %v528_v41 }
 0x212   :  { %4131 = vmatprep.mubr.bf16.mxu0 %v13196_v29  ;;  %v13218_v29 = vcombine.low %v516_v18, %v520_v46  ;;  %v540_v18 = vld [vmem:[%s17530_s0 + $0xfc0] sm:$0xff] }
 0x213   :  { %18174 = vst [vmem:[#allocation111_spill] sm:$0xff] %v13220_v0  ;;  %v544_v46 = vld [vmem:[%s17530_s0 + $0xfe0] sm:$0xff] }
 0x214   :  { %18173 = vst [vmem:[#allocation110_spill] sm:$0xff] %v13218_v29 }
 0x219   :  { %4132 = vmatmul.mubr.bf16.gmra.mrb[236].mxu0 %v13206_v63  ;;  %v13232_v63 = vcombine.high %v532_v17, %v536_v49 }
 0x21a   :  { %4139 = vmatprep.mubr.bf16.mxu0 %v13208_v32  ;;  %v13230_v32 = vcombine.low %v524_v62, %v528_v41  ;;  %v37_v62 = vld [vmem:[%s17530_s0 + $0x8] sm:$0xff] }
 0x21b   :  { %18176 = vst [vmem:[#allocation113_spill] sm:$0xff] %v13232_v63  ;;  %v41_v41 = vld [vmem:[%s17530_s0 + $0x28] sm:$0xff] }
 0x21c   :  { %18175 = vst [vmem:[#allocation112_spill] sm:$0xff] %v13230_v32 }
 0x221   :  { %4140 = vmatmul.mubr.bf16.gmra.mrb[240].mxu0 %v13218_v29  ;;  %v13244_v29 = vcombine.high %v540_v18, %v544_v46 }
 0x222   :  { %4147 = vmatprep.mubr.bf16.mxu0 %v13220_v0  ;;  %v13242_v0 = vcombine.low %v532_v17, %v536_v49  ;;  %v45_v17 = vld [vmem:[%s17530_s0 + $0x48] sm:$0xff] }
 0x223   :  { %18178 = vst [vmem:[#allocation115_spill] sm:$0xff] %v13244_v29  ;;  %v49_v49 = vld [vmem:[%s17530_s0 + $0x68] sm:$0xff] }
 0x224   :  { %18177 = vst [vmem:[#allocation114_spill] sm:$0xff] %v13242_v0 }
 0x229   :  { %4148 = vmatmul.mubr.bf16.gmra.mrb[244].mxu0 %v13230_v32  ;;  %v13256_v32 = vcombine.high %v37_v62, %v41_v41 }
 0x22a   :  { %4155 = vmatprep.mubr.bf16.mxu0 %v13232_v63  ;;  %v13254_v63 = vcombine.low %v540_v18, %v544_v46  ;;  %v53_v18 = vld [vmem:[%s17530_s0 + $0x88] sm:$0xff] }
 0x22b   :  { %18180 = vst [vmem:[#allocation117_spill] sm:$0xff] %v13256_v32  ;;  %v57_v46 = vld [vmem:[%s17530_s0 + $0xa8] sm:$0xff] }
 0x22c   :  { %18179 = vst [vmem:[#allocation116_spill] sm:$0xff] %v13254_v63 }
 0x231   :  { %4156 = vmatmul.mubr.bf16.gmra.mrb[248].mxu0 %v13242_v0  ;;  %v13268_v0 = vcombine.high %v45_v17, %v49_v49 }
 0x232   :  { %4163 = vmatprep.mubr.bf16.mxu0 %v13244_v29  ;;  %v13266_v29 = vcombine.low %v37_v62, %v41_v41  ;;  %v61_v62 = vld [vmem:[%s17530_s0 + $0xc8] sm:$0xff] }
 0x233   :  { %18182 = vst [vmem:[#allocation119_spill] sm:$0xff] %v13268_v0  ;;  %v65_v41 = vld [vmem:[%s17530_s0 + $0xe8] sm:$0xff] }
 0x234   :  { %18181 = vst [vmem:[#allocation118_spill] sm:$0xff] %v13266_v29 }
 0x239   :  { %4164 = vmatmul.mubr.bf16.gmra.mrb[252].mxu0 %v13254_v63  ;;  %v13280_v63 = vcombine.high %v53_v18, %v57_v46 }
 0x23a   :  { %4204 = vmatprep.mubr.bf16.mxu0 %v13256_v32  ;;  %v13278_v32 = vcombine.low %v45_v17, %v49_v49  ;;  %v69_v17 = vld [vmem:[%s17530_s0 + $0x108] sm:$0xff] }
 0x23b   :  { %18184 = vst [vmem:[#allocation121_spill] sm:$0xff] %v13280_v63  ;;  %v73_v49 = vld [vmem:[%s17530_s0 + $0x128] sm:$0xff] }
 0x23c   :  { %18183 = vst [vmem:[#allocation120_spill] sm:$0xff] %v13278_v32 }
 0x241   :  { %4205 = vmatmul.mubr.bf16.vlgmr.msra.gmra.mrb[0].mxu0 %v13266_v29  ;;  %v13292_v29 = vcombine.high %v61_v62, %v65_v41 }
 0x242   :  { %4212 = vmatprep.mubr.bf16.mxu0 %v13268_v0  ;;  %v13290_v0 = vcombine.low %v53_v18, %v57_v46  ;;  %v12249_v18 = vld [vmem:[%s17529_s1 + $0x100] sm:$0xff]   ;;  %v77_v46 = vld [vmem:[%s17530_s0 + $0x148] sm:$0xff] }
 0x243   :  { %18186 = vst [vmem:[#allocation123_spill] sm:$0xff] %v13292_v29  ;;  %4718 = vmatpush1.bf16.msra.mxu0 %v12249_v18 }
 0x244   :  { %18185 = vst [vmem:[#allocation122_spill] sm:$0xff] %v13290_v0  ;;  %4719 = vmatprep.subr.bf16.mxu0 %v18108_v10 }
 0x249   :  { %4213 = vmatmul.mubr.bf16.gmra.mrb[4].mxu0 %v13278_v32  ;;  %v13304_v32 = vcombine.high %v69_v17, %v73_v49 }
 0x24a   :  { %4220 = vmatprep.mubr.bf16.mxu0 %v13280_v63  ;;  %v13302_v63 = vcombine.low %v61_v62, %v65_v41  ;;  %v13318_v62 = vcombine.low %v69_v17, %v73_v49  ;;  %v93_v17 = vld [vmem:[%s17530_s0 + $0x1c8] sm:$0xff] }
 0x24b   :  { %18188 = vst [vmem:[#allocation125_spill] sm:$0xff] %v13304_v32  ;;  %v97_v49 = vld [vmem:[%s17530_s0 + $0x1e8] sm:$0xff] }
 0x24c   :  { %18187 = vst [vmem:[#allocation124_spill] sm:$0xff] %v13302_v63  ;;  %18189 = vst [vmem:[#allocation126_spill] sm:$0xff] %v13318_v62 }
 0x251   :  { %4221 = vmatmul.mubr.bf16.gmra.mrb[8].mxu0 %v13290_v0 }
 0x252   :  { %4228 = vmatprep.mubr.bf16.mxu0 %v13292_v29  ;;  %v81_v29 = vld [vmem:[%s17530_s0 + $0x168] sm:$0xff] }
 0x253   :  { %v13320_v41 = vcombine.high %v77_v46, %v81_v29  ;;  %v13330_v0 = vcombine.low %v77_v46, %v81_v29  ;;  %v101_v29 = vld [vmem:[%s17530_s0 + $0x208] sm:$0xff] }
 0x254   :  { %v105_v46 = vld [vmem:[%s17530_s0 + $0x228] sm:$0xff] }
 0x255   :  { %18190 = vst [vmem:[#allocation127_spill] sm:$0xff] %v13320_v41  ;;  %18191 = vst [vmem:[#allocation128_spill] sm:$0xff] %v13330_v0 }
 0x259   :  { %4229 = vmatmul.mubr.bf16.gmra.mrb[12].mxu0 %v13302_v63  ;;  %v89_v63 = vld [vmem:[%s17530_s0 + $0x1a8] sm:$0xff] }
 0x25a   :  { %4236 = vmatprep.mubr.bf16.mxu0 %v13304_v32  ;;  %v85_v32 = vld [vmem:[%s17530_s0 + $0x188] sm:$0xff] }
 0x25b   :  { %v13332_v18 = vcombine.high %v85_v32, %v89_v63 }
 0x25d   :  { %18192 = vst [vmem:[#allocation129_spill] sm:$0xff] %v13332_v18 }
 0x261   :  { %4237 = vmatmul.mubr.bf16.gmra.mrb[16].mxu0 %v13318_v62  ;;  %v13344_v62 = vcombine.high %v93_v17, %v97_v49 }
 0x262   :  { %4244 = vmatprep.mubr.bf16.mxu0 %v13320_v41  ;;  %v13342_v41 = vcombine.low %v85_v32, %v89_v63  ;;  %v12250_v32 = vld [vmem:[%s17529_s1 + $0x108] sm:$0xff]  }
 0x263   :  { %18194 = vst [vmem:[#allocation131_spill] sm:$0xff] %v13344_v62  ;;  %v109_v63 = vld [vmem:[%s17530_s0 + $0x248] sm:$0xff]  ;;  %4720 = vmatpush1.bf16.msra.mxu0 %v12250_v32 }
 0x264   :  { %18193 = vst [vmem:[#allocation130_spill] sm:$0xff] %v13342_v41  ;;  %4721 = vmatprep.subr.bf16.mxu0 %v18108_v10 }
 0x269   :  { %4245 = vmatmul.mubr.bf16.gmra.mrb[20].mxu0 %v13330_v0  ;;  %v13356_v0 = vcombine.high %v101_v29, %v105_v46 }
 0x26a   :  { %4252 = vmatprep.mubr.bf16.mxu0 %v13332_v18  ;;  %v13354_v18 = vcombine.low %v93_v17, %v97_v49  ;;  %v13370_v17 = vcombine.low %v101_v29, %v105_v46  ;;  %v125_v29 = vld [vmem:[%s17530_s0 + $0x2c8] sm:$0xff] }
 0x26b   :  { %18196 = vst [vmem:[#allocation133_spill] sm:$0xff] %v13356_v0  ;;  %v129_v46 = vld [vmem:[%s17530_s0 + $0x2e8] sm:$0xff] }
 0x26c   :  { %18195 = vst [vmem:[#allocation132_spill] sm:$0xff] %v13354_v18  ;;  %18197 = vst [vmem:[#allocation134_spill] sm:$0xff] %v13370_v17 }
 0x271   :  { %4253 = vmatmul.mubr.bf16.gmra.mrb[24].mxu0 %v13342_v41 }
 0x272   :  { %4260 = vmatprep.mubr.bf16.mxu0 %v13344_v62  ;;  %v113_v62 = vld [vmem:[%s17530_s0 + $0x268] sm:$0xff] }
 0x273   :  { %v13372_v49 = vcombine.high %v109_v63, %v113_v62  ;;  %v13382_v41 = vcombine.low %v109_v63, %v113_v62  ;;  %v133_v62 = vld [vmem:[%s17530_s0 + $0x308] sm:$0xff] }
 0x274   :  { %v137_v63 = vld [vmem:[%s17530_s0 + $0x328] sm:$0xff] }
 0x275   :  { %18198 = vst [vmem:[#allocation135_spill] sm:$0xff] %v13372_v49  ;;  %18199 = vst [vmem:[#allocation136_spill] sm:$0xff] %v13382_v41 }
 0x279   :  { %4261 = vmatmul.mubr.bf16.gmra.mrb[28].mxu0 %v13354_v18  ;;  %v121_v18 = vld [vmem:[%s17530_s0 + $0x2a8] sm:$0xff] }
 0x27a   :  { %4268 = vmatprep.mubr.bf16.mxu0 %v13356_v0  ;;  %v117_v0 = vld [vmem:[%s17530_s0 + $0x288] sm:$0xff] }
 0x27b   :  { %v13384_v32 = vcombine.high %v117_v0, %v121_v18 }
 0x27d   :  { %18200 = vst [vmem:[#allocation137_spill] sm:$0xff] %v13384_v32 }
 0x281   :  { %4269 = vmatmul.mubr.bf16.gmra.mrb[32].mxu0 %v13370_v17  ;;  %v13396_v17 = vcombine.high %v125_v29, %v129_v46 }
 0x282   :  { %4276 = vmatprep.mubr.bf16.mxu0 %v13372_v49  ;;  %v13394_v49 = vcombine.low %v117_v0, %v121_v18  ;;  %v12251_v0 = vld [vmem:[%s17529_s1 + $0x110] sm:$0xff]   ;;  %v141_v18 = vld [vmem:[%s17530_s0 + $0x348] sm:$0xff] }
 0x283   :  { %18202 = vst [vmem:[#allocation139_spill] sm:$0xff] %v13396_v17  ;;  %4722 = vmatpush1.bf16.msra.mxu0 %v12251_v0 }
 0x284   :  { %18201 = vst [vmem:[#allocation138_spill] sm:$0xff] %v13394_v49  ;;  %4723 = vmatprep.subr.bf16.mxu0 %v18108_v10 }
 0x289   :  { %4277 = vmatmul.mubr.bf16.gmra.mrb[36].mxu0 %v13382_v41  ;;  %v13408_v41 = vcombine.high %v133_v62, %v137_v63 }
 0x28a   :  { %4284 = vmatprep.mubr.bf16.mxu0 %v13384_v32  ;;  %v13406_v32 = vcombine.low %v125_v29, %v129_v46  ;;  %v13422_v29 = vcombine.low %v133_v62, %v137_v63  ;;  %v157_v62 = vld [vmem:[%s17530_s0 + $0x3c8] sm:$0xff] }
 0x28b   :  { %18204 = vst [vmem:[#allocation141_spill] sm:$0xff] %v13408_v41  ;;  %v161_v63 = vld [vmem:[%s17530_s0 + $0x3e8] sm:$0xff] }
 0x28c   :  { %18203 = vst [vmem:[#allocation140_spill] sm:$0xff] %v13406_v32  ;;  %18205 = vst [vmem:[#allocation142_spill] sm:$0xff] %v13422_v29 }
 0x291   :  { %4285 = vmatmul.mubr.bf16.gmra.mrb[40].mxu0 %v13394_v49 }
 0x292   :  { %4292 = vmatprep.mubr.bf16.mxu0 %v13396_v17  ;;  %v145_v17 = vld [vmem:[%s17530_s0 + $0x368] sm:$0xff] }
 0x293   :  { %v13424_v46 = vcombine.high %v141_v18, %v145_v17  ;;  %v13434_v49 = vcombine.low %v141_v18, %v145_v17  ;;  %v165_v17 = vld [vmem:[%s17530_s0 + $0x408] sm:$0xff] }
 0x294   :  { %v169_v18 = vld [vmem:[%s17530_s0 + $0x428] sm:$0xff] }
 0x295   :  { %18206 = vst [vmem:[#allocation143_spill] sm:$0xff] %v13424_v46  ;;  %18207 = vst [vmem:[#allocation144_spill] sm:$0xff] %v13434_v49 }
 0x299   :  { %4293 = vmatmul.mubr.bf16.gmra.mrb[44].mxu0 %v13406_v32  ;;  %v153_v32 = vld [vmem:[%s17530_s0 + $0x3a8] sm:$0xff] }
 0x29a   :  { %4300 = vmatprep.mubr.bf16.mxu0 %v13408_v41  ;;  %v149_v41 = vld [vmem:[%s17530_s0 + $0x388] sm:$0xff] }
 0x29b   :  { %v13436_v0 = vcombine.high %v149_v41, %v153_v32 }
 0x29d   :  { %18208 = vst [vmem:[#allocation145_spill] sm:$0xff] %v13436_v0 }
 0x2a1   :  { %4301 = vmatmul.mubr.bf16.gmra.mrb[48].mxu0 %v13422_v29  ;;  %v13448_v29 = vcombine.high %v157_v62, %v161_v63 }
 0x2a2   :  { %4308 = vmatprep.mubr.bf16.mxu0 %v13424_v46  ;;  %v13446_v46 = vcombine.low %v149_v41, %v153_v32  ;;  %v12252_v41 = vld [vmem:[%s17529_s1 + $0x118] sm:$0xff]   ;;  %v173_v32 = vld [vmem:[%s17530_s0 + $0x448] sm:$0xff] }
 0x2a3   :  { %18210 = vst [vmem:[#allocation147_spill] sm:$0xff] %v13448_v29  ;;  %4724 = vmatpush1.bf16.msra.mxu0 %v12252_v41 }
 0x2a4   :  { %18209 = vst [vmem:[#allocation146_spill] sm:$0xff] %v13446_v46  ;;  %4725 = vmatprep.subr.bf16.mxu0 %v18108_v10 }
 0x2a9   :  { %4309 = vmatmul.mubr.bf16.gmra.mrb[52].mxu0 %v13434_v49  ;;  %v13460_v49 = vcombine.high %v165_v17, %v169_v18 }
 0x2aa   :  { %4316 = vmatprep.mubr.bf16.mxu0 %v13436_v0  ;;  %v13458_v0 = vcombine.low %v157_v62, %v161_v63  ;;  %v13474_v62 = vcombine.low %v165_v17, %v169_v18  ;;  %v189_v17 = vld [vmem:[%s17530_s0 + $0x4c8] sm:$0xff] }
 0x2ab   :  { %18212 = vst [vmem:[#allocation149_spill] sm:$0xff] %v13460_v49  ;;  %v193_v18 = vld [vmem:[%s17530_s0 + $0x4e8] sm:$0xff] }
 0x2ac   :  { %18211 = vst [vmem:[#allocation148_spill] sm:$0xff] %v13458_v0  ;;  %18213 = vst [vmem:[#allocation150_spill] sm:$0xff] %v13474_v62 }
 0x2b1   :  { %4317 = vmatmul.mubr.bf16.gmra.mrb[56].mxu0 %v13446_v46 }
 0x2b2   :  { %4324 = vmatprep.mubr.bf16.mxu0 %v13448_v29  ;;  %v177_v29 = vld [vmem:[%s17530_s0 + $0x468] sm:$0xff] }
 0x2b3   :  { %v13476_v63 = vcombine.high %v173_v32, %v177_v29  ;;  %v13486_v46 = vcombine.low %v173_v32, %v177_v29  ;;  %v197_v29 = vld [vmem:[%s17530_s0 + $0x508] sm:$0xff] }
 0x2b4   :  { %v201_v32 = vld [vmem:[%s17530_s0 + $0x528] sm:$0xff] }
 0x2b5   :  { %18214 = vst [vmem:[#allocation151_spill] sm:$0xff] %v13476_v63  ;;  %18215 = vst [vmem:[#allocation152_spill] sm:$0xff] %v13486_v46 }
 0x2b9   :  { %4325 = vmatmul.mubr.bf16.gmra.mrb[60].mxu0 %v13458_v0  ;;  %v185_v0 = vld [vmem:[%s17530_s0 + $0x4a8] sm:$0xff] }
 0x2ba   :  { %4332 = vmatprep.mubr.bf16.mxu0 %v13460_v49  ;;  %v181_v49 = vld [vmem:[%s17530_s0 + $0x488] sm:$0xff] }
 0x2bb   :  { %v13488_v41 = vcombine.high %v181_v49, %v185_v0 }
 0x2bd   :  { %18216 = vst [vmem:[#allocation153_spill] sm:$0xff] %v13488_v41 }
 0x2c1   :  { %4333 = vmatmul.mubr.bf16.gmra.mrb[64].mxu0 %v13474_v62  ;;  %v13500_v62 = vcombine.high %v189_v17, %v193_v18 }
 0x2c2   :  { %4340 = vmatprep.mubr.bf16.mxu0 %v13476_v63  ;;  %v13498_v63 = vcombine.low %v181_v49, %v185_v0  ;;  %v12253_v49 = vld [vmem:[%s17529_s1 + $0x120] sm:$0xff]   ;;  %v205_v0 = vld [vmem:[%s17530_s0 + $0x548] sm:$0xff] }
 0x2c3   :  { %18218 = vst [vmem:[#allocation155_spill] sm:$0xff] %v13500_v62  ;;  %4726 = vmatpush1.bf16.msra.mxu0 %v12253_v49 }
 0x2c4   :  { %18217 = vst [vmem:[#allocation154_spill] sm:$0xff] %v13498_v63  ;;  %4727 = vmatprep.subr.bf16.mxu0 %v18108_v10 }
 0x2c9   :  { %4341 = vmatmul.mubr.bf16.gmra.mrb[68].mxu0 %v13486_v46  ;;  %v13512_v46 = vcombine.high %v197_v29, %v201_v32 }
 0x2ca   :  { %4348 = vmatprep.mubr.bf16.mxu0 %v13488_v41  ;;  %v13510_v41 = vcombine.low %v189_v17, %v193_v18  ;;  %v13526_v17 = vcombine.low %v197_v29, %v201_v32  ;;  %v221_v29 = vld [vmem:[%s17530_s0 + $0x5c8] sm:$0xff] }
 0x2cb   :  { %18220 = vst [vmem:[#allocation157_spill] sm:$0xff] %v13512_v46  ;;  %v225_v32 = vld [vmem:[%s17530_s0 + $0x5e8] sm:$0xff] }
 0x2cc   :  { %18219 = vst [vmem:[#allocation156_spill] sm:$0xff] %v13510_v41  ;;  %18221 = vst [vmem:[#allocation158_spill] sm:$0xff] %v13526_v17 }
 0x2d1   :  { %4349 = vmatmul.mubr.bf16.gmra.mrb[72].mxu0 %v13498_v63 }
 0x2d2   :  { %4356 = vmatprep.mubr.bf16.mxu0 %v13500_v62  ;;  %v209_v62 = vld [vmem:[%s17530_s0 + $0x568] sm:$0xff] }
 0x2d3   :  { %v13528_v18 = vcombine.high %v205_v0, %v209_v62  ;;  %v13538_v63 = vcombine.low %v205_v0, %v209_v62  ;;  %v229_v62 = vld [vmem:[%s17530_s0 + $0x608] sm:$0xff] }
 0x2d4   :  { %v233_v0 = vld [vmem:[%s17530_s0 + $0x628] sm:$0xff] }
 0x2d5   :  { %18222 = vst [vmem:[#allocation159_spill] sm:$0xff] %v13528_v18  ;;  %18223 = vst [vmem:[#allocation160_spill] sm:$0xff] %v13538_v63 }
 0x2d9   :  { %4357 = vmatmul.mubr.bf16.gmra.mrb[76].mxu0 %v13510_v41  ;;  %v217_v41 = vld [vmem:[%s17530_s0 + $0x5a8] sm:$0xff] }
 0x2da   :  { %4364 = vmatprep.mubr.bf16.mxu0 %v13512_v46  ;;  %v213_v46 = vld [vmem:[%s17530_s0 + $0x588] sm:$0xff] }
 0x2db   :  { %v13540_v49 = vcombine.high %v213_v46, %v217_v41 }
 0x2dd   :  { %18224 = vst [vmem:[#allocation161_spill] sm:$0xff] %v13540_v49 }
 0x2e1   :  { %4365 = vmatmul.mubr.bf16.gmra.mrb[80].mxu0 %v13526_v17  ;;  %v13552_v17 = vcombine.high %v221_v29, %v225_v32 }
 0x2e2   :  { %4372 = vmatprep.mubr.bf16.mxu0 %v13528_v18  ;;  %v13550_v18 = vcombine.low %v213_v46, %v217_v41  ;;  %v12254_v46 = vld [vmem:[%s17529_s1 + $0x128] sm:$0xff]  }
 0x2e3   :  { %18226 = vst [vmem:[#allocation163_spill] sm:$0xff] %v13552_v17  ;;  %v237_v41 = vld [vmem:[%s17530_s0 + $0x648] sm:$0xff]  ;;  %4728 = vmatpush1.bf16.msra.mxu0 %v12254_v46 }
 0x2e4   :  { %18225 = vst [vmem:[#allocation162_spill] sm:$0xff] %v13550_v18  ;;  %4729 = vmatprep.subr.bf16.mxu0 %v18108_v10 }
 0x2e9   :  { %4373 = vmatmul.mubr.bf16.gmra.mrb[84].mxu0 %v13538_v63  ;;  %v13564_v63 = vcombine.high %v229_v62, %v233_v0 }
 0x2ea   :  { %4380 = vmatprep.mubr.bf16.mxu0 %v13540_v49  ;;  %v13562_v49 = vcombine.low %v221_v29, %v225_v32  ;;  %v13578_v29 = vcombine.low %v229_v62, %v233_v0  ;;  %v253_v62 = vld [vmem:[%s17530_s0 + $0x6c8] sm:$0xff] }
 0x2eb   :  { %18228 = vst [vmem:[#allocation165_spill] sm:$0xff] %v13564_v63  ;;  %v257_v0 = vld [vmem:[%s17530_s0 + $0x6e8] sm:$0xff] }
 0x2ec   :  { %18227 = vst [vmem:[#allocation164_spill] sm:$0xff] %v13562_v49  ;;  %18229 = vst [vmem:[#allocation166_spill] sm:$0xff] %v13578_v29 }
 0x2f1   :  { %4381 = vmatmul.mubr.bf16.gmra.mrb[88].mxu0 %v13550_v18 }
 0x2f2   :  { %4388 = vmatprep.mubr.bf16.mxu0 %v13552_v17  ;;  %v241_v17 = vld [vmem:[%s17530_s0 + $0x668] sm:$0xff] }
 0x2f3   :  { %v13580_v32 = vcombine.high %v237_v41, %v241_v17  ;;  %v13590_v18 = vcombine.low %v237_v41, %v241_v17  ;;  %v261_v17 = vld [vmem:[%s17530_s0 + $0x708] sm:$0xff] }
 0x2f4   :  { %v265_v41 = vld [vmem:[%s17530_s0 + $0x728] sm:$0xff] }
 0x2f5   :  { %18230 = vst [vmem:[#allocation167_spill] sm:$0xff] %v13580_v32  ;;  %18231 = vst [vmem:[#allocation168_spill] sm:$0xff] %v13590_v18 }
 0x2f9   :  { %4389 = vmatmul.mubr.bf16.gmra.mrb[92].mxu0 %v13562_v49  ;;  %v249_v49 = vld [vmem:[%s17530_s0 + $0x6a8] sm:$0xff] }
 0x2fa   :  { %4396 = vmatprep.mubr.bf16.mxu0 %v13564_v63  ;;  %v245_v63 = vld [vmem:[%s17530_s0 + $0x688] sm:$0xff] }
 0x2fb   :  { %v13592_v46 = vcombine.high %v245_v63, %v249_v49 }
 0x2fd   :  { %18232 = vst [vmem:[#allocation169_spill] sm:$0xff] %v13592_v46 }
 0x301   :  { %4397 = vmatmul.mubr.bf16.gmra.mrb[96].mxu0 %v13578_v29  ;;  %v13604_v29 = vcombine.high %v253_v62, %v257_v0 }
 0x302   :  { %4404 = vmatprep.mubr.bf16.mxu0 %v13580_v32  ;;  %v13602_v32 = vcombine.low %v245_v63, %v249_v49  ;;  %v12255_v63 = vld [vmem:[%s17529_s1 + $0x130] sm:$0xff]   ;;  %v269_v49 = vld [vmem:[%s17530_s0 + $0x748] sm:$0xff] }
 0x303   :  { %18234 = vst [vmem:[#allocation171_spill] sm:$0xff] %v13604_v29  ;;  %4730 = vmatpush1.bf16.msra.mxu0 %v12255_v63 }
 0x304   :  { %18233 = vst [vmem:[#allocation170_spill] sm:$0xff] %v13602_v32  ;;  %4731 = vmatprep.subr.bf16.mxu0 %v18108_v10 }
 0x309   :  { %4405 = vmatmul.mubr.bf16.gmra.mrb[100].mxu0 %v13590_v18  ;;  %v13616_v18 = vcombine.high %v261_v17, %v265_v41 }
 0x30a   :  { %4412 = vmatprep.mubr.bf16.mxu0 %v13592_v46  ;;  %v13614_v46 = vcombine.low %v253_v62, %v257_v0  ;;  %v13630_v62 = vcombine.low %v261_v17, %v265_v41  ;;  %v285_v17 = vld [vmem:[%s17530_s0 + $0x7c8] sm:$0xff] }
 0x30b   :  { %18236 = vst [vmem:[#allocation173_spill] sm:$0xff] %v13616_v18  ;;  %v289_v41 = vld [vmem:[%s17530_s0 + $0x7e8] sm:$0xff] }
 0x30c   :  { %18235 = vst [vmem:[#allocation172_spill] sm:$0xff] %v13614_v46  ;;  %18237 = vst [vmem:[#allocation174_spill] sm:$0xff] %v13630_v62 }
 0x311   :  { %4413 = vmatmul.mubr.bf16.gmra.mrb[104].mxu0 %v13602_v32 }
 0x312   :  { %4420 = vmatprep.mubr.bf16.mxu0 %v13604_v29  ;;  %v273_v29 = vld [vmem:[%s17530_s0 + $0x768] sm:$0xff] }
 0x313   :  { %v13632_v0 = vcombine.high %v269_v49, %v273_v29  ;;  %v13642_v32 = vcombine.low %v269_v49, %v273_v29  ;;  %v293_v29 = vld [vmem:[%s17530_s0 + $0x808] sm:$0xff] }
 0x314   :  { %v297_v49 = vld [vmem:[%s17530_s0 + $0x828] sm:$0xff] }
 0x315   :  { %18238 = vst [vmem:[#allocation175_spill] sm:$0xff] %v13632_v0  ;;  %18239 = vst [vmem:[#allocation176_spill] sm:$0xff] %v13642_v32 }
 0x319   :  { %4421 = vmatmul.mubr.bf16.gmra.mrb[108].mxu0 %v13614_v46  ;;  %v281_v46 = vld [vmem:[%s17530_s0 + $0x7a8] sm:$0xff] }
 0x31a   :  { %4428 = vmatprep.mubr.bf16.mxu0 %v13616_v18  ;;  %v277_v18 = vld [vmem:[%s17530_s0 + $0x788] sm:$0xff] }
 0x31b   :  { %v13644_v63 = vcombine.high %v277_v18, %v281_v46 }
 0x31d   :  { %18240 = vst [vmem:[#allocation177_spill] sm:$0xff] %v13644_v63 }
 0x321   :  { %4429 = vmatmul.mubr.bf16.gmra.mrb[112].mxu0 %v13630_v62  ;;  %v13656_v62 = vcombine.high %v285_v17, %v289_v41 }
 0x322   :  { %4436 = vmatprep.mubr.bf16.mxu0 %v13632_v0  ;;  %v13654_v0 = vcombine.low %v277_v18, %v281_v46  ;;  %v12256_v18 = vld [vmem:[%s17529_s1 + $0x138] sm:$0xff]   ;;  %v301_v46 = vld [vmem:[%s17530_s0 + $0x848] sm:$0xff] }
 0x323   :  { %18242 = vst [vmem:[#allocation179_spill] sm:$0xff] %v13656_v62  ;;  %4732 = vmatpush1.bf16.msra.mxu0 %v12256_v18 }
 0x324   :  { %18241 = vst [vmem:[#allocation178_spill] sm:$0xff] %v13654_v0  ;;  %4733 = vmatprep.subr.bf16.mxu0 %v18108_v10 }
 0x329   :  { %4437 = vmatmul.mubr.bf16.gmra.mrb[116].mxu0 %v13642_v32  ;;  %v13668_v32 = vcombine.high %v293_v29, %v297_v49 }
 0x32a   :  { %4444 = vmatprep.mubr.bf16.mxu0 %v13644_v63  ;;  %v13666_v63 = vcombine.low %v285_v17, %v289_v41  ;;  %v13682_v17 = vcombine.low %v293_v29, %v297_v49  ;;  %v317_v29 = vld [vmem:[%s17530_s0 + $0x8c8] sm:$0xff] }
 0x32b   :  { %18244 = vst [vmem:[#allocation181_spill] sm:$0xff] %v13668_v32  ;;  %v321_v49 = vld [vmem:[%s17530_s0 + $0x8e8] sm:$0xff] }
 0x32c   :  { %18243 = vst [vmem:[#allocation180_spill] sm:$0xff] %v13666_v63  ;;  %18245 = vst [vmem:[#allocation182_spill] sm:$0xff] %v13682_v17 }
 0x331   :  { %4445 = vmatmul.mubr.bf16.gmra.mrb[120].mxu0 %v13654_v0 }
 0x332   :  { %4452 = vmatprep.mubr.bf16.mxu0 %v13656_v62  ;;  %v305_v62 = vld [vmem:[%s17530_s0 + $0x868] sm:$0xff] }
 0x333   :  { %v13684_v41 = vcombine.high %v301_v46, %v305_v62  ;;  %v13694_v0 = vcombine.low %v301_v46, %v305_v62  ;;  %v325_v62 = vld [vmem:[%s17530_s0 + $0x908] sm:$0xff] }
 0x334   :  { %v329_v46 = vld [vmem:[%s17530_s0 + $0x928] sm:$0xff] }
 0x335   :  { %18246 = vst [vmem:[#allocation183_spill] sm:$0xff] %v13684_v41  ;;  %18247 = vst [vmem:[#allocation184_spill] sm:$0xff] %v13694_v0 }
 0x339   :  { %4453 = vmatmul.mubr.bf16.gmra.mrb[124].mxu0 %v13666_v63  ;;  %v313_v63 = vld [vmem:[%s17530_s0 + $0x8a8] sm:$0xff] }
 0x33a   :  { %4460 = vmatprep.mubr.bf16.mxu0 %v13668_v32  ;;  %v309_v32 = vld [vmem:[%s17530_s0 + $0x888] sm:$0xff] }
 0x33b   :  { %v13696_v18 = vcombine.high %v309_v32, %v313_v63 }
 0x33d   :  { %18248 = vst [vmem:[#allocation185_spill] sm:$0xff] %v13696_v18 }
 0x341   :  { %4461 = vmatmul.mubr.bf16.gmra.mrb[128].mxu0 %v13682_v17  ;;  %v13708_v17 = vcombine.high %v317_v29, %v321_v49 }
 0x342   :  { %4468 = vmatprep.mubr.bf16.mxu0 %v13684_v41  ;;  %v13706_v41 = vcombine.low %v309_v32, %v313_v63  ;;  %v12257_v32 = vld [vmem:[%s17529_s1 + $0x140] sm:$0xff]   ;;  %v333_v63 = vld [vmem:[%s17530_s0 + $0x948] sm:$0xff] }
 0x343   :  { %18250 = vst [vmem:[#allocation187_spill] sm:$0xff] %v13708_v17  ;;  %4734 = vmatpush1.bf16.msra.mxu0 %v12257_v32 }
 0x344   :  { %18249 = vst [vmem:[#allocation186_spill] sm:$0xff] %v13706_v41  ;;  %4735 = vmatprep.subr.bf16.mxu0 %v18108_v10 }
 0x349   :  { %4469 = vmatmul.mubr.bf16.gmra.mrb[132].mxu0 %v13694_v0  ;;  %v13720_v0 = vcombine.high %v325_v62, %v329_v46 }
 0x34a   :  { %4476 = vmatprep.mubr.bf16.mxu0 %v13696_v18  ;;  %v13718_v18 = vcombine.low %v317_v29, %v321_v49  ;;  %v13734_v29 = vcombine.low %v325_v62, %v329_v46  ;;  %v349_v62 = vld [vmem:[%s17530_s0 + $0x9c8] sm:$0xff] }
 0x34b   :  { %18252 = vst [vmem:[#allocation189_spill] sm:$0xff] %v13720_v0  ;;  %v353_v46 = vld [vmem:[%s17530_s0 + $0x9e8] sm:$0xff] }
 0x34c   :  { %18251 = vst [vmem:[#allocation188_spill] sm:$0xff] %v13718_v18  ;;  %18253 = vst [vmem:[#allocation190_spill] sm:$0xff] %v13734_v29 }
 0x351   :  { %4477 = vmatmul.mubr.bf16.gmra.mrb[136].mxu0 %v13706_v41 }
 0x352   :  { %4484 = vmatprep.mubr.bf16.mxu0 %v13708_v17  ;;  %v337_v17 = vld [vmem:[%s17530_s0 + $0x968] sm:$0xff] }
 0x353   :  { %v13736_v49 = vcombine.high %v333_v63, %v337_v17  ;;  %v13746_v41 = vcombine.low %v333_v63, %v337_v17  ;;  %v357_v17 = vld [vmem:[%s17530_s0 + $0xa08] sm:$0xff] }
 0x354   :  { %v361_v63 = vld [vmem:[%s17530_s0 + $0xa28] sm:$0xff] }
 0x355   :  { %18254 = vst [vmem:[#allocation191_spill] sm:$0xff] %v13736_v49  ;;  %18255 = vst [vmem:[#allocation192_spill] sm:$0xff] %v13746_v41 }
 0x359   :  { %4485 = vmatmul.mubr.bf16.gmra.mrb[140].mxu0 %v13718_v18  ;;  %v345_v18 = vld [vmem:[%s17530_s0 + $0x9a8] sm:$0xff] }
 0x35a   :  { %4492 = vmatprep.mubr.bf16.mxu0 %v13720_v0  ;;  %v341_v0 = vld [vmem:[%s17530_s0 + $0x988] sm:$0xff] }
 0x35b   :  { %v13748_v32 = vcombine.high %v341_v0, %v345_v18 }
 0x35d   :  { %18256 = vst [vmem:[#allocation193_spill] sm:$0xff] %v13748_v32 }
 0x361   :  { %4493 = vmatmul.mubr.bf16.gmra.mrb[144].mxu0 %v13734_v29  ;;  %v13760_v29 = vcombine.high %v349_v62, %v353_v46 }
 0x362   :  { %4500 = vmatprep.mubr.bf16.mxu0 %v13736_v49  ;;  %v13758_v49 = vcombine.low %v341_v0, %v345_v18  ;;  %v12258_v0 = vld [vmem:[%s17529_s1 + $0x148] sm:$0xff]  }
 0x363   :  { %18258 = vst [vmem:[#allocation195_spill] sm:$0xff] %v13760_v29  ;;  %v365_v18 = vld [vmem:[%s17530_s0 + $0xa48] sm:$0xff]  ;;  %4736 = vmatpush1.bf16.msra.mxu0 %v12258_v0 }
 0x364   :  { %18257 = vst [vmem:[#allocation194_spill] sm:$0xff] %v13758_v49  ;;  %4737 = vmatprep.subr.bf16.mxu0 %v18108_v10 }
 0x369   :  { %4501 = vmatmul.mubr.bf16.gmra.mrb[148].mxu0 %v13746_v41  ;;  %v13772_v41 = vcombine.high %v357_v17, %v361_v63 }
 0x36a   :  { %4508 = vmatprep.mubr.bf16.mxu0 %v13748_v32  ;;  %v13770_v32 = vcombine.low %v349_v62, %v353_v46  ;;  %v13786_v62 = vcombine.low %v357_v17, %v361_v63  ;;  %v381_v17 = vld [vmem:[%s17530_s0 + $0xac8] sm:$0xff] }
 0x36b   :  { %18260 = vst [vmem:[#allocation197_spill] sm:$0xff] %v13772_v41  ;;  %v385_v63 = vld [vmem:[%s17530_s0 + $0xae8] sm:$0xff] }
 0x36c   :  { %18259 = vst [vmem:[#allocation196_spill] sm:$0xff] %v13770_v32  ;;  %18261 = vst [vmem:[#allocation198_spill] sm:$0xff] %v13786_v62 }
 0x371   :  { %4509 = vmatmul.mubr.bf16.gmra.mrb[152].mxu0 %v13758_v49 }
 0x372   :  { %4516 = vmatprep.mubr.bf16.mxu0 %v13760_v29  ;;  %v369_v29 = vld [vmem:[%s17530_s0 + $0xa68] sm:$0xff] }
 0x373   :  { %v13788_v46 = vcombine.high %v365_v18, %v369_v29  ;;  %v13798_v49 = vcombine.low %v365_v18, %v369_v29  ;;  %v389_v29 = vld [vmem:[%s17530_s0 + $0xb08] sm:$0xff] }
 0x374   :  { %v393_v18 = vld [vmem:[%s17530_s0 + $0xb28] sm:$0xff] }
 0x375   :  { %18262 = vst [vmem:[#allocation199_spill] sm:$0xff] %v13788_v46  ;;  %18263 = vst [vmem:[#allocation200_spill] sm:$0xff] %v13798_v49 }
 0x379   :  { %4517 = vmatmul.mubr.bf16.gmra.mrb[156].mxu0 %v13770_v32  ;;  %v377_v32 = vld [vmem:[%s17530_s0 + $0xaa8] sm:$0xff] }
 0x37a   :  { %4524 = vmatprep.mubr.bf16.mxu0 %v13772_v41  ;;  %v373_v41 = vld [vmem:[%s17530_s0 + $0xa88] sm:$0xff] }
 0x37b   :  { %v13800_v0 = vcombine.high %v373_v41, %v377_v32 }
 0x37d   :  { %18264 = vst [vmem:[#allocation201_spill] sm:$0xff] %v13800_v0 }
 0x381   :  { %4525 = vmatmul.mubr.bf16.gmra.mrb[160].mxu0 %v13786_v62  ;;  %v13812_v62 = vcombine.high %v381_v17, %v385_v63 }
 0x382   :  { %4532 = vmatprep.mubr.bf16.mxu0 %v13788_v46  ;;  %v13810_v46 = vcombine.low %v373_v41, %v377_v32  ;;  %v12259_v41 = vld [vmem:[%s17529_s1 + $0x150] sm:$0xff]   ;;  %v397_v32 = vld [vmem:[%s17530_s0 + $0xb48] sm:$0xff] }
 0x383   :  { %18266 = vst [vmem:[#allocation203_spill] sm:$0xff] %v13812_v62  ;;  %4738 = vmatpush1.bf16.msra.mxu0 %v12259_v41 }
 0x384   :  { %18265 = vst [vmem:[#allocation202_spill] sm:$0xff] %v13810_v46  ;;  %4739 = vmatprep.subr.bf16.mxu0 %v18108_v10 }
 0x389   :  { %4533 = vmatmul.mubr.bf16.gmra.mrb[164].mxu0 %v13798_v49  ;;  %v13824_v49 = vcombine.high %v389_v29, %v393_v18 }
 0x38a   :  { %4540 = vmatprep.mubr.bf16.mxu0 %v13800_v0  ;;  %v13822_v0 = vcombine.low %v381_v17, %v385_v63  ;;  %v13838_v17 = vcombine.low %v389_v29, %v393_v18  ;;  %v12260_v29 = vld [vmem:[%s17529_s1 + $0x158] sm:$0xff]   ;;  %v413_v18 = vld [vmem:[%s17530_s0 + $0xbc8] sm:$0xff] }
 0x38b   :  { %18268 = vst [vmem:[#allocation205_spill] sm:$0xff] %v13824_v49  ;;  %4740 = vmatpush1.bf16.msra.mxu0 %v12260_v29 }
 0x38c   :  { %18267 = vst [vmem:[#allocation204_spill] sm:$0xff] %v13822_v0  ;;  %18269 = vst [vmem:[#allocation206_spill] sm:$0xff] %v13838_v17  ;;  %4741 = vmatprep.subr.bf16.mxu0 %v18108_v10 }
 0x391   :  { %4541 = vmatmul.mubr.bf16.gmra.mrb[168].mxu0 %v13810_v46 }
 0x392   :  { %4548 = vmatprep.mubr.bf16.mxu0 %v13812_v62  ;;  %v401_v62 = vld [vmem:[%s17530_s0 + $0xb68] sm:$0xff] }
 0x393   :  { %v13840_v63 = vcombine.high %v397_v32, %v401_v62  ;;  %v13850_v46 = vcombine.low %v397_v32, %v401_v62 }
 0x395   :  { %18270 = vst [vmem:[#allocation207_spill] sm:$0xff] %v13840_v63  ;;  %18271 = vst [vmem:[#allocation208_spill] sm:$0xff] %v13850_v46 }
 0x399   :  { %4549 = vmatmul.mubr.bf16.gmra.mrb[172].mxu0 %v13822_v0  ;;  %v409_v0 = vld [vmem:[%s17530_s0 + $0xba8] sm:$0xff] }
 0x39a   :  { %4556 = vmatprep.mubr.bf16.mxu0 %v13824_v49  ;;  %v405_v49 = vld [vmem:[%s17530_s0 + $0xb88] sm:$0xff] }
 0x39b   :  { %v13852_v41 = vcombine.high %v405_v49, %v409_v0  ;;  %v13866_v62 = vcombine.low %v405_v49, %v409_v0  ;;  %v421_v49 = vld [vmem:[%s17530_s0 + $0xc08] sm:$0xff] }
 0x39c   :  { %v425_v0 = vld [vmem:[%s17530_s0 + $0xc28] sm:$0xff] }
 0x39d   :  { %18272 = vst [vmem:[#allocation209_spill] sm:$0xff] %v13852_v41  ;;  %18273 = vst [vmem:[#allocation210_spill] sm:$0xff] %v13866_v62 }
 0x3a1   :  { %4557 = vmatmul.mubr.bf16.gmra.mrb[176].mxu0 %v13838_v17 }
 0x3a2   :  { %4564 = vmatprep.mubr.bf16.mxu0 %v13840_v63  ;;  %v417_v63 = vld [vmem:[%s17530_s0 + $0xbe8] sm:$0xff] }
 0x3a3   :  { %v13868_v32 = vcombine.high %v413_v18, %v417_v63  ;;  %v13885_v29 = vcombine.low %v413_v18, %v417_v63  ;;  %v429_v63 = vld [vmem:[%s17530_s0 + $0xc48] sm:$0xff]  ;;  %v13905_v18 = vcombine.low %v421_v49, %v425_v0 }
 0x3a5   :  { %18274 = vst [vmem:[#allocation211_spill] sm:$0xff] %v13868_v32  ;;  %18275 = vst [vmem:[#allocation212_spill] sm:$0xff] %v13885_v29 }
 0x3a6   :  { %18277 = vst [vmem:[#allocation214_spill] sm:$0xff] %v13905_v18 }
 0x3a9   :  { %4565 = vmatmul.mubr.bf16.gmra.mrb[180].mxu0 %v13850_v46  ;;  %v12261_v46 = vld [vmem:[%s17529_s1 + $0x160] sm:$0xff]  }
 0x3aa   :  { %4572 = vmatprep.mubr.bf16.mxu0 %v13852_v41  ;;  %4742 = vmatpush1.bf16.msra.mxu0 %v12261_v46  ;;  %v12262_v41 = vld [vmem:[%s17529_s1 + $0x168] sm:$0xff]   ;;  %v12263_v46 = vld [vmem:[%s17529_s1 + $0x170] sm:$0xff]  }
 0x3ab   :  { %4743 = vmatprep.subr.bf16.mxu0 %v18108_v10 }
 0x3ae   :  { %4744 = vmatpush1.bf16.msra.mxu0 %v12262_v41  ;;  %v433_v41 = vld [vmem:[%s17530_s0 + $0xc68] sm:$0xff] }
 0x3af   :  { %4745 = vmatprep.subr.bf16.mxu0 %v18108_v10  ;;  %v13918_v17 = vcombine.low %v429_v63, %v433_v41 }
 0x3b1   :  { %4573 = vmatmul.mubr.bf16.gmra.mrb[184].mxu0 %v13866_v62  ;;  %v13887_v62 = vcombine.high %v421_v49, %v425_v0  ;;  %18279 = vst [vmem:[#allocation216_spill] sm:$0xff] %v13918_v17  ;;  %v449_v0 = vld [vmem:[%s17530_s0 + $0xce8] sm:$0xff] }
 0x3b2   :  { %4580 = vmatprep.mubr.bf16.mxu0 %v13868_v32  ;;  %4746 = vmatpush1.bf16.msra.mxu0 %v12263_v46  ;;  %v12264_v32 = vld [vmem:[%s17529_s1 + $0x178] sm:$0xff]   ;;  %v437_v46 = vld [vmem:[%s17530_s0 + $0xc88] sm:$0xff] }
 0x3b3   :  { %18276 = vst [vmem:[#allocation213_spill] sm:$0xff] %v13887_v62  ;;  %4747 = vmatprep.subr.bf16.mxu0 %v18108_v10 }
 0x3b6   :  { %4748 = vmatpush1.bf16.msra.mxu0 %v12264_v32  ;;  %v445_v32 = vld [vmem:[%s17530_s0 + $0xcc8] sm:$0xff] }
 0x3b7   :  { %5262 = vmatprep.subr.bf16.mxu0 %v18108_v10 }
 0x3b9   :  { %4581 = vmatmul.mubr.bf16.gmra.mrb[188].mxu0 %v13885_v29  ;;  %v13907_v29 = vcombine.high %v429_v63, %v433_v41  ;;  %v453_v63 = vld [vmem:[%s17530_s0 + $0xd08] sm:$0xff] }
 0x3ba   :  { %4588 = vmatprep.mubr.bf16.mxu0 %v13887_v62  ;;  %v441_v62 = vld [vmem:[%s17530_s0 + $0xca8] sm:$0xff] }
 0x3bb   :  { %18278 = vst [vmem:[#allocation215_spill] sm:$0xff] %v13907_v29  ;;  %v13920_v49 = vcombine.high %v437_v46, %v441_v62  ;;  %v457_v41 = vld [vmem:[%s17530_s0 + $0xd28] sm:$0xff] }
 0x3bd   :  { %18280 = vst [vmem:[#allocation217_spill] sm:$0xff] %v13920_v49 }
 0x3c1   :  { %4589 = vmatmul.mubr.bf16.gmra.mrb[192].mxu0 %v13905_v18  ;;  %v13932_v18 = vcombine.high %v445_v32, %v449_v0 }
 0x3c2   :  { %4596 = vmatprep.mubr.bf16.mxu0 %v13907_v29  ;;  %v13930_v29 = vcombine.low %v437_v46, %v441_v62  ;;  %v461_v62 = vld [vmem:[%s17530_s0 + $0xd48] sm:$0xff] }
 0x3c3   :  { %18282 = vst [vmem:[#allocation219_spill] sm:$0xff] %v13932_v18  ;;  %v465_v46 = vld [vmem:[%s17530_s0 + $0xd68] sm:$0xff] }
 0x3c4   :  { %18281 = vst [vmem:[#allocation218_spill] sm:$0xff] %v13930_v29 }
 0x3c9   :  { %4597 = vmatmul.mubr.bf16.gmra.mrb[196].mxu0 %v13918_v17  ;;  %v13944_v17 = vcombine.high %v453_v63, %v457_v41 }
 0x3ca   :  { %4604 = vmatprep.mubr.bf16.mxu0 %v13920_v49  ;;  %v13942_v49 = vcombine.low %v445_v32, %v449_v0  ;;  %v469_v32 = vld [vmem:[%s17530_s0 + $0xd88] sm:$0xff] }
 0x3cb   :  { %18284 = vst [vmem:[#allocation221_spill] sm:$0xff] %v13944_v17  ;;  %v473_v0 = vld [vmem:[%s17530_s0 + $0xda8] sm:$0xff] }
 0x3cc   :  { %18283 = vst [vmem:[#allocation220_spill] sm:$0xff] %v13942_v49 }
 0x3d1   :  { %4605 = vmatmul.mubr.bf16.gmra.mrb[200].mxu0 %v13930_v29  ;;  %v13956_v29 = vcombine.high %v461_v62, %v465_v46 }
 0x3d2   :  { %4612 = vmatprep.mubr.bf16.mxu0 %v13932_v18  ;;  %v13954_v18 = vcombine.low %v453_v63, %v457_v41  ;;  %v477_v63 = vld [vmem:[%s17530_s0 + $0xdc8] sm:$0xff] }
 0x3d3   :  { %18286 = vst [vmem:[#allocation223_spill] sm:$0xff] %v13956_v29  ;;  %v481_v41 = vld [vmem:[%s17530_s0 + $0xde8] sm:$0xff] }
 0x3d4   :  { %18285 = vst [vmem:[#allocation222_spill] sm:$0xff] %v13954_v18 }
 0x3d9   :  { %4613 = vmatmul.mubr.bf16.gmra.mrb[204].mxu0 %v13942_v49  ;;  %v13968_v49 = vcombine.high %v469_v32, %v473_v0 }
 0x3da   :  { %4620 = vmatprep.mubr.bf16.mxu0 %v13944_v17  ;;  %v13966_v17 = vcombine.low %v461_v62, %v465_v46  ;;  %v485_v62 = vld [vmem:[%s17530_s0 + $0xe08] sm:$0xff] }
 0x3db   :  { %18288 = vst [vmem:[#allocation225_spill] sm:$0xff] %v13968_v49  ;;  %v489_v46 = vld [vmem:[%s17530_s0 + $0xe28] sm:$0xff] }
 0x3dc   :  { %18287 = vst [vmem:[#allocation224_spill] sm:$0xff] %v13966_v17 }
 0x3e1   :  { %4621 = vmatmul.mubr.bf16.gmra.mrb[208].mxu0 %v13954_v18  ;;  %v13980_v18 = vcombine.high %v477_v63, %v481_v41 }
 0x3e2   :  { %4628 = vmatprep.mubr.bf16.mxu0 %v13956_v29  ;;  %v13978_v29 = vcombine.low %v469_v32, %v473_v0  ;;  %v493_v32 = vld [vmem:[%s17530_s0 + $0xe48] sm:$0xff] }
 0x3e3   :  { %18290 = vst [vmem:[#allocation227_spill] sm:$0xff] %v13980_v18  ;;  %v497_v0 = vld [vmem:[%s17530_s0 + $0xe68] sm:$0xff] }
 0x3e4   :  { %18289 = vst [vmem:[#allocation226_spill] sm:$0xff] %v13978_v29 }
 0x3e9   :  { %4629 = vmatmul.mubr.bf16.gmra.mrb[212].mxu0 %v13966_v17  ;;  %v13992_v17 = vcombine.high %v485_v62, %v489_v46 }
 0x3ea   :  { %4636 = vmatprep.mubr.bf16.mxu0 %v13968_v49  ;;  %v13990_v49 = vcombine.low %v477_v63, %v481_v41  ;;  %v501_v63 = vld [vmem:[%s17530_s0 + $0xe88] sm:$0xff] }
 0x3eb   :  { %18292 = vst [vmem:[#allocation229_spill] sm:$0xff] %v13992_v17  ;;  %v505_v41 = vld [vmem:[%s17530_s0 + $0xea8] sm:$0xff] }
 0x3ec   :  { %18291 = vst [vmem:[#allocation228_spill] sm:$0xff] %v13990_v49 }
 0x3f1   :  { %4637 = vmatmul.mubr.bf16.gmra.mrb[216].mxu0 %v13978_v29  ;;  %v14004_v29 = vcombine.high %v493_v32, %v497_v0 }
 0x3f2   :  { %4644 = vmatprep.mubr.bf16.mxu0 %v13980_v18  ;;  %v14002_v18 = vcombine.low %v485_v62, %v489_v46  ;;  %v509_v62 = vld [vmem:[%s17530_s0 + $0xec8] sm:$0xff] }
 0x3f3   :  { %18294 = vst [vmem:[#allocation231_spill] sm:$0xff] %v14004_v29  ;;  %v513_v46 = vld [vmem:[%s17530_s0 + $0xee8] sm:$0xff] }
 0x3f4   :  { %18293 = vst [vmem:[#allocation230_spill] sm:$0xff] %v14002_v18 }
 0x3f9   :  { %4645 = vmatmul.mubr.bf16.gmra.mrb[220].mxu0 %v13990_v49  ;;  %v14016_v49 = vcombine.high %v501_v63, %v505_v41 }
 0x3fa   :  { %4652 = vmatprep.mubr.bf16.mxu0 %v13992_v17  ;;  %v14014_v17 = vcombine.low %v493_v32, %v497_v0  ;;  %v517_v32 = vld [vmem:[%s17530_s0 + $0xf08] sm:$0xff] }
 0x3fb   :  { %18296 = vst [vmem:[#allocation233_spill] sm:$0xff] %v14016_v49  ;;  %v521_v0 = vld [vmem:[%s17530_s0 + $0xf28] sm:$0xff] }
 0x3fc   :  { %18295 = vst [vmem:[#allocation232_spill] sm:$0xff] %v14014_v17 }
 0x401   :  { %4653 = vmatmul.mubr.bf16.gmra.mrb[224].mxu0 %v14002_v18  ;;  %v14028_v18 = vcombine.high %v509_v62, %v513_v46 }
 0x402   :  { %4660 = vmatprep.mubr.bf16.mxu0 %v14004_v29  ;;  %v14026_v29 = vcombine.low %v501_v63, %v505_v41  ;;  %v525_v63 = vld [vmem:[%s17530_s0 + $0xf48] sm:$0xff] }
 0x403   :  { %18298 = vst [vmem:[#allocation235_spill] sm:$0xff] %v14028_v18  ;;  %v529_v41 = vld [vmem:[%s17530_s0 + $0xf68] sm:$0xff] }
 0x404   :  { %18297 = vst [vmem:[#allocation234_spill] sm:$0xff] %v14026_v29 }
 0x409   :  { %4661 = vmatmul.mubr.bf16.gmra.mrb[228].mxu0 %v14014_v17  ;;  %v14040_v17 = vcombine.high %v517_v32, %v521_v0 }
 0x40a   :  { %4668 = vmatprep.mubr.bf16.mxu0 %v14016_v49  ;;  %v14038_v49 = vcombine.low %v509_v62, %v513_v46  ;;  %v533_v62 = vld [vmem:[%s17530_s0 + $0xf88] sm:$0xff] }
 0x40b   :  { %18300 = vst [vmem:[#allocation237_spill] sm:$0xff] %v14040_v17  ;;  %v537_v46 = vld [vmem:[%s17530_s0 + $0xfa8] sm:$0xff] }
 0x40c   :  { %18299 = vst [vmem:[#allocation236_spill] sm:$0xff] %v14038_v49 }
 0x411   :  { %4669 = vmatmul.mubr.bf16.gmra.mrb[232].mxu0 %v14026_v29  ;;  %v14052_v29 = vcombine.high %v525_v63, %v529_v41 }
 0x412   :  { %4676 = vmatprep.mubr.bf16.mxu0 %v14028_v18  ;;  %v14050_v18 = vcombine.low %v517_v32, %v521_v0  ;;  %v541_v32 = vld [vmem:[%s17530_s0 + $0xfc8] sm:$0xff] }
 0x413   :  { %18302 = vst [vmem:[#allocation239_spill] sm:$0xff] %v14052_v29  ;;  %v545_v0 = vld [vmem:[%s17530_s0 + $0xfe8] sm:$0xff] }
 0x414   :  { %18301 = vst [vmem:[#allocation238_spill] sm:$0xff] %v14050_v18 }
 0x419   :  { %4677 = vmatmul.mubr.bf16.gmra.mrb[236].mxu0 %v14038_v49  ;;  %v14064_v49 = vcombine.high %v533_v62, %v537_v46 }
 0x41a   :  { %4684 = vmatprep.mubr.bf16.mxu0 %v14040_v17  ;;  %v14062_v17 = vcombine.low %v525_v63, %v529_v41  ;;  %v38_v63 = vld [vmem:[%s17530_s0 + $0x10] sm:$0xff] }
 0x41b   :  { %18304 = vst [vmem:[#allocation241_spill] sm:$0xff] %v14064_v49  ;;  %v42_v41 = vld [vmem:[%s17530_s0 + $0x30] sm:$0xff] }
 0x41c   :  { %18303 = vst [vmem:[#allocation240_spill] sm:$0xff] %v14062_v17 }
 0x421   :  { %4685 = vmatmul.mubr.bf16.gmra.mrb[240].mxu0 %v14050_v18  ;;  %v14076_v18 = vcombine.high %v541_v32, %v545_v0 }
 0x422   :  { %4692 = vmatprep.mubr.bf16.mxu0 %v14052_v29  ;;  %v14074_v29 = vcombine.low %v533_v62, %v537_v46  ;;  %v46_v62 = vld [vmem:[%s17530_s0 + $0x50] sm:$0xff] }
 0x423   :  { %18306 = vst [vmem:[#allocation243_spill] sm:$0xff] %v14076_v18  ;;  %v50_v46 = vld [vmem:[%s17530_s0 + $0x70] sm:$0xff] }
 0x424   :  { %18305 = vst [vmem:[#allocation242_spill] sm:$0xff] %v14074_v29 }
 0x429   :  { %4693 = vmatmul.mubr.bf16.gmra.mrb[244].mxu0 %v14062_v17  ;;  %v14088_v17 = vcombine.high %v38_v63, %v42_v41 }
 0x42a   :  { %4700 = vmatprep.mubr.bf16.mxu0 %v14064_v49  ;;  %v14086_v49 = vcombine.low %v541_v32, %v545_v0  ;;  %v54_v32 = vld [vmem:[%s17530_s0 + $0x90] sm:$0xff] }
 0x42b   :  { %18308 = vst [vmem:[#allocation245_spill] sm:$0xff] %v14088_v17  ;;  %v58_v0 = vld [vmem:[%s17530_s0 + $0xb0] sm:$0xff] }
 0x42c   :  { %18307 = vst [vmem:[#allocation244_spill] sm:$0xff] %v14086_v49 }
 0x431   :  { %4701 = vmatmul.mubr.bf16.gmra.mrb[248].mxu0 %v14074_v29  ;;  %v14100_v29 = vcombine.high %v46_v62, %v50_v46 }
 0x432   :  { %4708 = vmatprep.mubr.bf16.mxu0 %v14076_v18  ;;  %v14098_v18 = vcombine.low %v38_v63, %v42_v41  ;;  %v62_v63 = vld [vmem:[%s17530_s0 + $0xd0] sm:$0xff] }
 0x433   :  { %18310 = vst [vmem:[#allocation247_spill] sm:$0xff] %v14100_v29  ;;  %v66_v41 = vld [vmem:[%s17530_s0 + $0xf0] sm:$0xff] }
 0x434   :  { %18309 = vst [vmem:[#allocation246_spill] sm:$0xff] %v14098_v18 }
 0x439   :  { %4709 = vmatmul.mubr.bf16.gmra.mrb[252].mxu0 %v14086_v49  ;;  %v14112_v49 = vcombine.high %v54_v32, %v58_v0 }
 0x43a   :  { %4749 = vmatprep.mubr.bf16.mxu0 %v14088_v17  ;;  %v14110_v17 = vcombine.low %v46_v62, %v50_v46  ;;  %v70_v62 = vld [vmem:[%s17530_s0 + $0x110] sm:$0xff] }
 0x43b   :  { %18312 = vst [vmem:[#allocation249_spill] sm:$0xff] %v14112_v49  ;;  %v74_v46 = vld [vmem:[%s17530_s0 + $0x130] sm:$0xff] }
 0x43c   :  { %18311 = vst [vmem:[#allocation248_spill] sm:$0xff] %v14110_v17 }
 0x441   :  { %4750 = vmatmul.mubr.bf16.vlgmr.msra.gmra.mrb[0].mxu0 %v14098_v18  ;;  %v14124_v18 = vcombine.high %v62_v63, %v66_v41 }
 0x442   :  { %4757 = vmatprep.mubr.bf16.mxu0 %v14100_v29  ;;  %v14122_v29 = vcombine.low %v54_v32, %v58_v0  ;;  %v12265_v32 = vld [vmem:[%s17529_s1 + $0x180] sm:$0xff]   ;;  %v78_v0 = vld [vmem:[%s17530_s0 + $0x150] sm:$0xff] }
 0x443   :  { %18314 = vst [vmem:[#allocation251_spill] sm:$0xff] %v14124_v18  ;;  %5263 = vmatpush1.bf16.msra.mxu0 %v12265_v32 }
 0x444   :  { %18313 = vst [vmem:[#allocation250_spill] sm:$0xff] %v14122_v29  ;;  %5264 = vmatprep.subr.bf16.mxu0 %v18108_v10 }
 0x449   :  { %4758 = vmatmul.mubr.bf16.gmra.mrb[4].mxu0 %v14110_v17  ;;  %v14136_v17 = vcombine.high %v70_v62, %v74_v46 }
 0x44a   :  { %4765 = vmatprep.mubr.bf16.mxu0 %v14112_v49  ;;  %v14134_v49 = vcombine.low %v62_v63, %v66_v41  ;;  %v14150_v63 = vcombine.low %v70_v62, %v74_v46  ;;  %v94_v62 = vld [vmem:[%s17530_s0 + $0x1d0] sm:$0xff] }
 0x44b   :  { %18316 = vst [vmem:[#allocation253_spill] sm:$0xff] %v14136_v17  ;;  %v98_v46 = vld [vmem:[%s17530_s0 + $0x1f0] sm:$0xff] }
 0x44c   :  { %18315 = vst [vmem:[#allocation252_spill] sm:$0xff] %v14134_v49  ;;  %18317 = vst [vmem:[#allocation254_spill] sm:$0xff] %v14150_v63 }
 0x451   :  { %4766 = vmatmul.mubr.bf16.gmra.mrb[8].mxu0 %v14122_v29 }
 0x452   :  { %4773 = vmatprep.mubr.bf16.mxu0 %v14124_v18  ;;  %v82_v18 = vld [vmem:[%s17530_s0 + $0x170] sm:$0xff] }
 0x453   :  { %v14152_v41 = vcombine.high %v78_v0, %v82_v18  ;;  %v14162_v29 = vcombine.low %v78_v0, %v82_v18  ;;  %v102_v18 = vld [vmem:[%s17530_s0 + $0x210] sm:$0xff] }
 0x454   :  { %v106_v0 = vld [vmem:[%s17530_s0 + $0x230] sm:$0xff] }
 0x455   :  { %18318 = vst [vmem:[#allocation255_spill] sm:$0xff] %v14152_v41  ;;  %18319 = vst [vmem:[#allocation256_spill] sm:$0xff] %v14162_v29 }
 0x459   :  { %4774 = vmatmul.mubr.bf16.gmra.mrb[12].mxu0 %v14134_v49  ;;  %v90_v49 = vld [vmem:[%s17530_s0 + $0x1b0] sm:$0xff] }
 0x45a   :  { %4781 = vmatprep.mubr.bf16.mxu0 %v14136_v17  ;;  %v86_v17 = vld [vmem:[%s17530_s0 + $0x190] sm:$0xff] }
 0x45b   :  { %v14164_v32 = vcombine.high %v86_v17, %v90_v49 }
 0x45d   :  { %18320 = vst [vmem:[#allocation257_spill] sm:$0xff] %v14164_v32 }
 0x461   :  { %4782 = vmatmul.mubr.bf16.gmra.mrb[16].mxu0 %v14150_v63  ;;  %v14176_v63 = vcombine.high %v94_v62, %v98_v46 }
 0x462   :  { %4789 = vmatprep.mubr.bf16.mxu0 %v14152_v41  ;;  %v14174_v41 = vcombine.low %v86_v17, %v90_v49  ;;  %v12266_v17 = vld [vmem:[%s17529_s1 + $0x188] sm:$0xff]   ;;  %v110_v49 = vld [vmem:[%s17530_s0 + $0x250] sm:$0xff] }
 0x463   :  { %18322 = vst [vmem:[#allocation259_spill] sm:$0xff] %v14176_v63  ;;  %5265 = vmatpush1.bf16.msra.mxu0 %v12266_v17 }
 0x464   :  { %18321 = vst [vmem:[#allocation258_spill] sm:$0xff] %v14174_v41  ;;  %5266 = vmatprep.subr.bf16.mxu0 %v18108_v10 }
 0x469   :  { %4790 = vmatmul.mubr.bf16.gmra.mrb[20].mxu0 %v14162_v29  ;;  %v14188_v29 = vcombine.high %v102_v18, %v106_v0 }
 0x46a   :  { %4797 = vmatprep.mubr.bf16.mxu0 %v14164_v32  ;;  %v14186_v32 = vcombine.low %v94_v62, %v98_v46  ;;  %v14202_v62 = vcombine.low %v102_v18, %v106_v0  ;;  %v126_v18 = vld [vmem:[%s17530_s0 + $0x2d0] sm:$0xff] }
 0x46b   :  { %18324 = vst [vmem:[#allocation261_spill] sm:$0xff] %v14188_v29  ;;  %v130_v0 = vld [vmem:[%s17530_s0 + $0x2f0] sm:$0xff] }
 0x46c   :  { %18323 = vst [vmem:[#allocation260_spill] sm:$0xff] %v14186_v32  ;;  %18325 = vst [vmem:[#allocation262_spill] sm:$0xff] %v14202_v62 }
 0x471   :  { %4798 = vmatmul.mubr.bf16.gmra.mrb[24].mxu0 %v14174_v41 }
 0x472   :  { %4805 = vmatprep.mubr.bf16.mxu0 %v14176_v63  ;;  %v114_v63 = vld [vmem:[%s17530_s0 + $0x270] sm:$0xff] }
 0x473   :  { %v14204_v46 = vcombine.high %v110_v49, %v114_v63  ;;  %v14214_v41 = vcombine.low %v110_v49, %v114_v63  ;;  %v134_v63 = vld [vmem:[%s17530_s0 + $0x310] sm:$0xff] }
 0x474   :  { %v138_v49 = vld [vmem:[%s17530_s0 + $0x330] sm:$0xff] }
 0x475   :  { %18326 = vst [vmem:[#allocation263_spill] sm:$0xff] %v14204_v46  ;;  %18327 = vst [vmem:[#allocation264_spill] sm:$0xff] %v14214_v41 }
 0x479   :  { %4806 = vmatmul.mubr.bf16.gmra.mrb[28].mxu0 %v14186_v32  ;;  %v122_v32 = vld [vmem:[%s17530_s0 + $0x2b0] sm:$0xff] }
 0x47a   :  { %4813 = vmatprep.mubr.bf16.mxu0 %v14188_v29  ;;  %v118_v29 = vld [vmem:[%s17530_s0 + $0x290] sm:$0xff] }
 0x47b   :  { %v14216_v17 = vcombine.high %v118_v29, %v122_v32 }
 0x47d   :  { %18328 = vst [vmem:[#allocation265_spill] sm:$0xff] %v14216_v17 }
 0x481   :  { %4814 = vmatmul.mubr.bf16.gmra.mrb[32].mxu0 %v14202_v62  ;;  %v14228_v62 = vcombine.high %v126_v18, %v130_v0 }
 0x482   :  { %4821 = vmatprep.mubr.bf16.mxu0 %v14204_v46  ;;  %v14226_v46 = vcombine.low %v118_v29, %v122_v32  ;;  %v12267_v29 = vld [vmem:[%s17529_s1 + $0x190] sm:$0xff]  }
 0x483   :  { %18330 = vst [vmem:[#allocation267_spill] sm:$0xff] %v14228_v62  ;;  %v142_v32 = vld [vmem:[%s17530_s0 + $0x350] sm:$0xff]  ;;  %5267 = vmatpush1.bf16.msra.mxu0 %v12267_v29 }
 0x484   :  { %18329 = vst [vmem:[#allocation266_spill] sm:$0xff] %v14226_v46  ;;  %5268 = vmatprep.subr.bf16.mxu0 %v18108_v10 }
 0x489   :  { %4822 = vmatmul.mubr.bf16.gmra.mrb[36].mxu0 %v14214_v41  ;;  %v14240_v41 = vcombine.high %v134_v63, %v138_v49 }
 0x48a   :  { %4829 = vmatprep.mubr.bf16.mxu0 %v14216_v17  ;;  %v14238_v17 = vcombine.low %v126_v18, %v130_v0  ;;  %v14254_v18 = vcombine.low %v134_v63, %v138_v49  ;;  %v158_v63 = vld [vmem:[%s17530_s0 + $0x3d0] sm:$0xff] }
 0x48b   :  { %18332 = vst [vmem:[#allocation269_spill] sm:$0xff] %v14240_v41  ;;  %v162_v49 = vld [vmem:[%s17530_s0 + $0x3f0] sm:$0xff] }
 0x48c   :  { %18331 = vst [vmem:[#allocation268_spill] sm:$0xff] %v14238_v17  ;;  %18333 = vst [vmem:[#allocation270_spill] sm:$0xff] %v14254_v18 }
 0x491   :  { %4830 = vmatmul.mubr.bf16.gmra.mrb[40].mxu0 %v14226_v46 }
 0x492   :  { %4837 = vmatprep.mubr.bf16.mxu0 %v14228_v62  ;;  %v146_v62 = vld [vmem:[%s17530_s0 + $0x370] sm:$0xff] }
 0x493   :  { %v14256_v0 = vcombine.high %v142_v32, %v146_v62  ;;  %v14266_v46 = vcombine.low %v142_v32, %v146_v62  ;;  %v166_v62 = vld [vmem:[%s17530_s0 + $0x410] sm:$0xff] }
 0x494   :  { %v170_v32 = vld [vmem:[%s17530_s0 + $0x430] sm:$0xff] }
 0x495   :  { %18334 = vst [vmem:[#allocation271_spill] sm:$0xff] %v14256_v0  ;;  %18335 = vst [vmem:[#allocation272_spill] sm:$0xff] %v14266_v46 }
 0x499   :  { %4838 = vmatmul.mubr.bf16.gmra.mrb[44].mxu0 %v14238_v17  ;;  %v154_v17 = vld [vmem:[%s17530_s0 + $0x3b0] sm:$0xff] }
 0x49a   :  { %4845 = vmatprep.mubr.bf16.mxu0 %v14240_v41  ;;  %v150_v41 = vld [vmem:[%s17530_s0 + $0x390] sm:$0xff] }
 0x49b   :  { %v14268_v29 = vcombine.high %v150_v41, %v154_v17 }
 0x49d   :  { %18336 = vst [vmem:[#allocation273_spill] sm:$0xff] %v14268_v29 }
 0x4a1   :  { %4846 = vmatmul.mubr.bf16.gmra.mrb[48].mxu0 %v14254_v18  ;;  %v14280_v18 = vcombine.high %v158_v63, %v162_v49 }
 0x4a2   :  { %4853 = vmatprep.mubr.bf16.mxu0 %v14256_v0  ;;  %v14278_v0 = vcombine.low %v150_v41, %v154_v17  ;;  %v12268_v41 = vld [vmem:[%s17529_s1 + $0x198] sm:$0xff]   ;;  %v174_v17 = vld [vmem:[%s17530_s0 + $0x450] sm:$0xff] }
 0x4a3   :  { %18338 = vst [vmem:[#allocation275_spill] sm:$0xff] %v14280_v18  ;;  %5269 = vmatpush1.bf16.msra.mxu0 %v12268_v41 }
 0x4a4   :  { %18337 = vst [vmem:[#allocation274_spill] sm:$0xff] %v14278_v0  ;;  %5270 = vmatprep.subr.bf16.mxu0 %v18108_v10 }
 0x4a9   :  { %4854 = vmatmul.mubr.bf16.gmra.mrb[52].mxu0 %v14266_v46  ;;  %v14292_v46 = vcombine.high %v166_v62, %v170_v32 }
 0x4aa   :  { %4861 = vmatprep.mubr.bf16.mxu0 %v14268_v29  ;;  %v14290_v29 = vcombine.low %v158_v63, %v162_v49  ;;  %v14306_v63 = vcombine.low %v166_v62, %v170_v32  ;;  %v190_v62 = vld [vmem:[%s17530_s0 + $0x4d0] sm:$0xff] }
 0x4ab   :  { %18340 = vst [vmem:[#allocation277_spill] sm:$0xff] %v14292_v46  ;;  %v194_v32 = vld [vmem:[%s17530_s0 + $0x4f0] sm:$0xff] }
 0x4ac   :  { %18339 = vst [vmem:[#allocation276_spill] sm:$0xff] %v14290_v29  ;;  %18341 = vst [vmem:[#allocation278_spill] sm:$0xff] %v14306_v63 }
 0x4b1   :  { %4862 = vmatmul.mubr.bf16.gmra.mrb[56].mxu0 %v14278_v0 }
 0x4b2   :  { %4869 = vmatprep.mubr.bf16.mxu0 %v14280_v18  ;;  %v178_v18 = vld [vmem:[%s17530_s0 + $0x470] sm:$0xff] }
 0x4b3   :  { %v14308_v49 = vcombine.high %v174_v17, %v178_v18  ;;  %v14318_v0 = vcombine.low %v174_v17, %v178_v18  ;;  %v198_v18 = vld [vmem:[%s17530_s0 + $0x510] sm:$0xff] }
 0x4b4   :  { %v202_v17 = vld [vmem:[%s17530_s0 + $0x530] sm:$0xff] }
 0x4b5   :  { %18342 = vst [vmem:[#allocation279_spill] sm:$0xff] %v14308_v49  ;;  %18343 = vst [vmem:[#allocation280_spill] sm:$0xff] %v14318_v0 }
 0x4b9   :  { %4870 = vmatmul.mubr.bf16.gmra.mrb[60].mxu0 %v14290_v29  ;;  %v186_v29 = vld [vmem:[%s17530_s0 + $0x4b0] sm:$0xff] }
 0x4ba   :  { %4877 = vmatprep.mubr.bf16.mxu0 %v14292_v46  ;;  %v182_v46 = vld [vmem:[%s17530_s0 + $0x490] sm:$0xff] }
 0x4bb   :  { %v14320_v41 = vcombine.high %v182_v46, %v186_v29 }
 0x4bd   :  { %18344 = vst [vmem:[#allocation281_spill] sm:$0xff] %v14320_v41 }
 0x4c1   :  { %4878 = vmatmul.mubr.bf16.gmra.mrb[64].mxu0 %v14306_v63  ;;  %v14332_v63 = vcombine.high %v190_v62, %v194_v32 }
 0x4c2   :  { %4885 = vmatprep.mubr.bf16.mxu0 %v14308_v49  ;;  %v14330_v49 = vcombine.low %v182_v46, %v186_v29  ;;  %v12269_v46 = vld [vmem:[%s17529_s1 + $0x1a0] sm:$0xff]   ;;  %v206_v29 = vld [vmem:[%s17530_s0 + $0x550] sm:$0xff] }
 0x4c3   :  { %18346 = vst [vmem:[#allocation283_spill] sm:$0xff] %v14332_v63  ;;  %5271 = vmatpush1.bf16.msra.mxu0 %v12269_v46 }
 0x4c4   :  { %18345 = vst [vmem:[#allocation282_spill] sm:$0xff] %v14330_v49  ;;  %5272 = vmatprep.subr.bf16.mxu0 %v18108_v10 }
 0x4c9   :  { %4886 = vmatmul.mubr.bf16.gmra.mrb[68].mxu0 %v14318_v0  ;;  %v14344_v0 = vcombine.high %v198_v18, %v202_v17 }
 0x4ca   :  { %4893 = vmatprep.mubr.bf16.mxu0 %v14320_v41  ;;  %v14342_v41 = vcombine.low %v190_v62, %v194_v32  ;;  %v14358_v62 = vcombine.low %v198_v18, %v202_v17  ;;  %v222_v18 = vld [vmem:[%s17530_s0 + $0x5d0] sm:$0xff] }
 0x4cb   :  { %18348 = vst [vmem:[#allocation285_spill] sm:$0xff] %v14344_v0  ;;  %v226_v17 = vld [vmem:[%s17530_s0 + $0x5f0] sm:$0xff] }
 0x4cc   :  { %18347 = vst [vmem:[#allocation284_spill] sm:$0xff] %v14342_v41  ;;  %18349 = vst [vmem:[#allocation286_spill] sm:$0xff] %v14358_v62 }
 0x4d1   :  { %4894 = vmatmul.mubr.bf16.gmra.mrb[72].mxu0 %v14330_v49 }
 0x4d2   :  { %4901 = vmatprep.mubr.bf16.mxu0 %v14332_v63  ;;  %v210_v63 = vld [vmem:[%s17530_s0 + $0x570] sm:$0xff] }
 0x4d3   :  { %v14360_v32 = vcombine.high %v206_v29, %v210_v63  ;;  %v14370_v49 = vcombine.low %v206_v29, %v210_v63  ;;  %v230_v63 = vld [vmem:[%s17530_s0 + $0x610] sm:$0xff] }
 0x4d4   :  { %v234_v29 = vld [vmem:[%s17530_s0 + $0x630] sm:$0xff] }
 0x4d5   :  { %18350 = vst [vmem:[#allocation287_spill] sm:$0xff] %v14360_v32  ;;  %18351 = vst [vmem:[#allocation288_spill] sm:$0xff] %v14370_v49 }
 0x4d9   :  { %4902 = vmatmul.mubr.bf16.gmra.mrb[76].mxu0 %v14342_v41  ;;  %v218_v41 = vld [vmem:[%s17530_s0 + $0x5b0] sm:$0xff] }
 0x4da   :  { %4909 = vmatprep.mubr.bf16.mxu0 %v14344_v0  ;;  %v214_v0 = vld [vmem:[%s17530_s0 + $0x590] sm:$0xff] }
 0x4db   :  { %v14372_v46 = vcombine.high %v214_v0, %v218_v41 }
 0x4dd   :  { %18352 = vst [vmem:[#allocation289_spill] sm:$0xff] %v14372_v46 }
 0x4e1   :  { %4910 = vmatmul.mubr.bf16.gmra.mrb[80].mxu0 %v14358_v62  ;;  %v14384_v62 = vcombine.high %v222_v18, %v226_v17 }
 0x4e2   :  { %4917 = vmatprep.mubr.bf16.mxu0 %v14360_v32  ;;  %v14382_v32 = vcombine.low %v214_v0, %v218_v41  ;;  %v12270_v0 = vld [vmem:[%s17529_s1 + $0x1a8] sm:$0xff]   ;;  %v238_v41 = vld [vmem:[%s17530_s0 + $0x650] sm:$0xff] }
 0x4e3   :  { %18354 = vst [vmem:[#allocation291_spill] sm:$0xff] %v14384_v62  ;;  %5273 = vmatpush1.bf16.msra.mxu0 %v12270_v0 }
 0x4e4   :  { %18353 = vst [vmem:[#allocation290_spill] sm:$0xff] %v14382_v32  ;;  %5274 = vmatprep.subr.bf16.mxu0 %v18108_v10 }
 0x4e9   :  { %4918 = vmatmul.mubr.bf16.gmra.mrb[84].mxu0 %v14370_v49  ;;  %v14396_v49 = vcombine.high %v230_v63, %v234_v29 }
 0x4ea   :  { %4925 = vmatprep.mubr.bf16.mxu0 %v14372_v46  ;;  %v14394_v46 = vcombine.low %v222_v18, %v226_v17  ;;  %v14410_v18 = vcombine.low %v230_v63, %v234_v29  ;;  %v254_v63 = vld [vmem:[%s17530_s0 + $0x6d0] sm:$0xff] }
 0x4eb   :  { %18356 = vst [vmem:[#allocation293_spill] sm:$0xff] %v14396_v49  ;;  %v258_v29 = vld [vmem:[%s17530_s0 + $0x6f0] sm:$0xff] }
 0x4ec   :  { %18355 = vst [vmem:[#allocation292_spill] sm:$0xff] %v14394_v46  ;;  %18357 = vst [vmem:[#allocation294_spill] sm:$0xff] %v14410_v18 }
 0x4f1   :  { %4926 = vmatmul.mubr.bf16.gmra.mrb[88].mxu0 %v14382_v32 }
 0x4f2   :  { %4933 = vmatprep.mubr.bf16.mxu0 %v14384_v62  ;;  %v242_v62 = vld [vmem:[%s17530_s0 + $0x670] sm:$0xff] }
 0x4f3   :  { %v14412_v17 = vcombine.high %v238_v41, %v242_v62  ;;  %v14422_v32 = vcombine.low %v238_v41, %v242_v62  ;;  %v262_v62 = vld [vmem:[%s17530_s0 + $0x710] sm:$0xff] }
 0x4f4   :  { %v266_v41 = vld [vmem:[%s17530_s0 + $0x730] sm:$0xff] }
 0x4f5   :  { %18358 = vst [vmem:[#allocation295_spill] sm:$0xff] %v14412_v17  ;;  %18359 = vst [vmem:[#allocation296_spill] sm:$0xff] %v14422_v32 }
 0x4f9   :  { %4934 = vmatmul.mubr.bf16.gmra.mrb[92].mxu0 %v14394_v46  ;;  %v250_v46 = vld [vmem:[%s17530_s0 + $0x6b0] sm:$0xff] }
 0x4fa   :  { %4941 = vmatprep.mubr.bf16.mxu0 %v14396_v49  ;;  %v246_v49 = vld [vmem:[%s17530_s0 + $0x690] sm:$0xff] }
 0x4fb   :  { %v14424_v0 = vcombine.high %v246_v49, %v250_v46 }
 0x4fd   :  { %18360 = vst [vmem:[#allocation297_spill] sm:$0xff] %v14424_v0 }
 0x501   :  { %4942 = vmatmul.mubr.bf16.gmra.mrb[96].mxu0 %v14410_v18  ;;  %v14436_v18 = vcombine.high %v254_v63, %v258_v29 }
 0x502   :  { %4949 = vmatprep.mubr.bf16.mxu0 %v14412_v17  ;;  %v14434_v17 = vcombine.low %v246_v49, %v250_v46  ;;  %v12271_v49 = vld [vmem:[%s17529_s1 + $0x1b0] sm:$0xff]  }
 0x503   :  { %18362 = vst [vmem:[#allocation299_spill] sm:$0xff] %v14436_v18  ;;  %v270_v46 = vld [vmem:[%s17530_s0 + $0x750] sm:$0xff]  ;;  %5275 = vmatpush1.bf16.msra.mxu0 %v12271_v49 }
 0x504   :  { %18361 = vst [vmem:[#allocation298_spill] sm:$0xff] %v14434_v17  ;;  %5276 = vmatprep.subr.bf16.mxu0 %v18108_v10 }
 0x509   :  { %4950 = vmatmul.mubr.bf16.gmra.mrb[100].mxu0 %v14422_v32  ;;  %v14448_v32 = vcombine.high %v262_v62, %v266_v41 }
 0x50a   :  { %4957 = vmatprep.mubr.bf16.mxu0 %v14424_v0  ;;  %v14446_v0 = vcombine.low %v254_v63, %v258_v29  ;;  %v14462_v63 = vcombine.low %v262_v62, %v266_v41  ;;  %v286_v62 = vld [vmem:[%s17530_s0 + $0x7d0] sm:$0xff] }
 0x50b   :  { %18364 = vst [vmem:[#allocation301_spill] sm:$0xff] %v14448_v32  ;;  %v290_v41 = vld [vmem:[%s17530_s0 + $0x7f0] sm:$0xff] }
 0x50c   :  { %18363 = vst [vmem:[#allocation300_spill] sm:$0xff] %v14446_v0  ;;  %18365 = vst [vmem:[#allocation302_spill] sm:$0xff] %v14462_v63 }
 0x511   :  { %4958 = vmatmul.mubr.bf16.gmra.mrb[104].mxu0 %v14434_v17 }
 0x512   :  { %4965 = vmatprep.mubr.bf16.mxu0 %v14436_v18  ;;  %v274_v18 = vld [vmem:[%s17530_s0 + $0x770] sm:$0xff] }
 0x513   :  { %v14464_v29 = vcombine.high %v270_v46, %v274_v18  ;;  %v14474_v17 = vcombine.low %v270_v46, %v274_v18  ;;  %v294_v18 = vld [vmem:[%s17530_s0 + $0x810] sm:$0xff] }
 0x514   :  { %v298_v46 = vld [vmem:[%s17530_s0 + $0x830] sm:$0xff] }
 0x515   :  { %18366 = vst [vmem:[#allocation303_spill] sm:$0xff] %v14464_v29  ;;  %18367 = vst [vmem:[#allocation304_spill] sm:$0xff] %v14474_v17 }
 0x519   :  { %4966 = vmatmul.mubr.bf16.gmra.mrb[108].mxu0 %v14446_v0  ;;  %v282_v0 = vld [vmem:[%s17530_s0 + $0x7b0] sm:$0xff] }
 0x51a   :  { %4973 = vmatprep.mubr.bf16.mxu0 %v14448_v32  ;;  %v278_v32 = vld [vmem:[%s17530_s0 + $0x790] sm:$0xff] }
 0x51b   :  { %v14476_v49 = vcombine.high %v278_v32, %v282_v0 }
 0x51d   :  { %18368 = vst [vmem:[#allocation305_spill] sm:$0xff] %v14476_v49 }
 0x521   :  { %4974 = vmatmul.mubr.bf16.gmra.mrb[112].mxu0 %v14462_v63  ;;  %v14488_v63 = vcombine.high %v286_v62, %v290_v41 }
 0x522   :  { %4981 = vmatprep.mubr.bf16.mxu0 %v14464_v29  ;;  %v14486_v29 = vcombine.low %v278_v32, %v282_v0  ;;  %v12272_v32 = vld [vmem:[%s17529_s1 + $0x1b8] sm:$0xff]   ;;  %v302_v0 = vld [vmem:[%s17530_s0 + $0x850] sm:$0xff] }
 0x523   :  { %18370 = vst [vmem:[#allocation307_spill] sm:$0xff] %v14488_v63  ;;  %5277 = vmatpush1.bf16.msra.mxu0 %v12272_v32 }
 0x524   :  { %18369 = vst [vmem:[#allocation306_spill] sm:$0xff] %v14486_v29  ;;  %5278 = vmatprep.subr.bf16.mxu0 %v18108_v10 }
 0x529   :  { %4982 = vmatmul.mubr.bf16.gmra.mrb[116].mxu0 %v14474_v17  ;;  %v14500_v17 = vcombine.high %v294_v18, %v298_v46 }
 0x52a   :  { %4989 = vmatprep.mubr.bf16.mxu0 %v14476_v49  ;;  %v14498_v49 = vcombine.low %v286_v62, %v290_v41  ;;  %v14514_v62 = vcombine.low %v294_v18, %v298_v46  ;;  %v318_v18 = vld [vmem:[%s17530_s0 + $0x8d0] sm:$0xff] }
 0x52b   :  { %18372 = vst [vmem:[#allocation309_spill] sm:$0xff] %v14500_v17  ;;  %v322_v46 = vld [vmem:[%s17530_s0 + $0x8f0] sm:$0xff] }
 0x52c   :  { %18371 = vst [vmem:[#allocation308_spill] sm:$0xff] %v14498_v49  ;;  %18373 = vst [vmem:[#allocation310_spill] sm:$0xff] %v14514_v62 }
 0x531   :  { %4990 = vmatmul.mubr.bf16.gmra.mrb[120].mxu0 %v14486_v29 }
 0x532   :  { %4997 = vmatprep.mubr.bf16.mxu0 %v14488_v63  ;;  %v306_v63 = vld [vmem:[%s17530_s0 + $0x870] sm:$0xff] }
 0x533   :  { %v14516_v41 = vcombine.high %v302_v0, %v306_v63  ;;  %v14526_v29 = vcombine.low %v302_v0, %v306_v63  ;;  %v326_v63 = vld [vmem:[%s17530_s0 + $0x910] sm:$0xff] }
 0x534   :  { %v330_v0 = vld [vmem:[%s17530_s0 + $0x930] sm:$0xff] }
 0x535   :  { %18374 = vst [vmem:[#allocation311_spill] sm:$0xff] %v14516_v41  ;;  %18375 = vst [vmem:[#allocation312_spill] sm:$0xff] %v14526_v29 }
 0x539   :  { %4998 = vmatmul.mubr.bf16.gmra.mrb[124].mxu0 %v14498_v49  ;;  %v314_v49 = vld [vmem:[%s17530_s0 + $0x8b0] sm:$0xff] }
 0x53a   :  { %5005 = vmatprep.mubr.bf16.mxu0 %v14500_v17  ;;  %v310_v17 = vld [vmem:[%s17530_s0 + $0x890] sm:$0xff] }
 0x53b   :  { %v14528_v32 = vcombine.high %v310_v17, %v314_v49 }
 0x53d   :  { %18376 = vst [vmem:[#allocation313_spill] sm:$0xff] %v14528_v32 }
 0x541   :  { %5006 = vmatmul.mubr.bf16.gmra.mrb[128].mxu0 %v14514_v62  ;;  %v14540_v62 = vcombine.high %v318_v18, %v322_v46 }
 0x542   :  { %5013 = vmatprep.mubr.bf16.mxu0 %v14516_v41  ;;  %v14538_v41 = vcombine.low %v310_v17, %v314_v49  ;;  %v12273_v17 = vld [vmem:[%s17529_s1 + $0x1c0] sm:$0xff]   ;;  %v334_v49 = vld [vmem:[%s17530_s0 + $0x950] sm:$0xff] }
 0x543   :  { %18378 = vst [vmem:[#allocation315_spill] sm:$0xff] %v14540_v62  ;;  %5279 = vmatpush1.bf16.msra.mxu0 %v12273_v17 }
 0x544   :  { %18377 = vst [vmem:[#allocation314_spill] sm:$0xff] %v14538_v41  ;;  %5280 = vmatprep.subr.bf16.mxu0 %v18108_v10 }
 0x549   :  { %5014 = vmatmul.mubr.bf16.gmra.mrb[132].mxu0 %v14526_v29  ;;  %v14552_v29 = vcombine.high %v326_v63, %v330_v0 }
 0x54a   :  { %5021 = vmatprep.mubr.bf16.mxu0 %v14528_v32  ;;  %v14550_v32 = vcombine.low %v318_v18, %v322_v46  ;;  %v14566_v18 = vcombine.low %v326_v63, %v330_v0  ;;  %v350_v63 = vld [vmem:[%s17530_s0 + $0x9d0] sm:$0xff] }
 0x54b   :  { %18380 = vst [vmem:[#allocation317_spill] sm:$0xff] %v14552_v29  ;;  %v354_v0 = vld [vmem:[%s17530_s0 + $0x9f0] sm:$0xff] }
 0x54c   :  { %18379 = vst [vmem:[#allocation316_spill] sm:$0xff] %v14550_v32  ;;  %18381 = vst [vmem:[#allocation318_spill] sm:$0xff] %v14566_v18 }
 0x551   :  { %5022 = vmatmul.mubr.bf16.gmra.mrb[136].mxu0 %v14538_v41 }
 0x552   :  { %5029 = vmatprep.mubr.bf16.mxu0 %v14540_v62  ;;  %v338_v62 = vld [vmem:[%s17530_s0 + $0x970] sm:$0xff] }
 0x553   :  { %v14568_v46 = vcombine.high %v334_v49, %v338_v62  ;;  %v14578_v41 = vcombine.low %v334_v49, %v338_v62  ;;  %v358_v62 = vld [vmem:[%s17530_s0 + $0xa10] sm:$0xff] }
 0x554   :  { %v362_v49 = vld [vmem:[%s17530_s0 + $0xa30] sm:$0xff] }
 0x555   :  { %18382 = vst [vmem:[#allocation319_spill] sm:$0xff] %v14568_v46  ;;  %18383 = vst [vmem:[#allocation320_spill] sm:$0xff] %v14578_v41 }
 0x559   :  { %5030 = vmatmul.mubr.bf16.gmra.mrb[140].mxu0 %v14550_v32  ;;  %v346_v32 = vld [vmem:[%s17530_s0 + $0x9b0] sm:$0xff] }
 0x55a   :  { %5037 = vmatprep.mubr.bf16.mxu0 %v14552_v29  ;;  %v342_v29 = vld [vmem:[%s17530_s0 + $0x990] sm:$0xff] }
 0x55b   :  { %v14580_v17 = vcombine.high %v342_v29, %v346_v32 }
 0x55d   :  { %18384 = vst [vmem:[#allocation321_spill] sm:$0xff] %v14580_v17 }
 0x561   :  { %5038 = vmatmul.mubr.bf16.gmra.mrb[144].mxu0 %v14566_v18  ;;  %v14592_v18 = vcombine.high %v350_v63, %v354_v0 }
 0x562   :  { %5045 = vmatprep.mubr.bf16.mxu0 %v14568_v46  ;;  %v14590_v46 = vcombine.low %v342_v29, %v346_v32  ;;  %v12274_v29 = vld [vmem:[%s17529_s1 + $0x1c8] sm:$0xff]   ;;  %v366_v32 = vld [vmem:[%s17530_s0 + $0xa50] sm:$0xff] }
 0x563   :  { %18386 = vst [vmem:[#allocation323_spill] sm:$0xff] %v14592_v18  ;;  %5281 = vmatpush1.bf16.msra.mxu0 %v12274_v29 }
 0x564   :  { %18385 = vst [vmem:[#allocation322_spill] sm:$0xff] %v14590_v46  ;;  %5282 = vmatprep.subr.bf16.mxu0 %v18108_v10 }
 0x569   :  { %5046 = vmatmul.mubr.bf16.gmra.mrb[148].mxu0 %v14578_v41  ;;  %v14604_v41 = vcombine.high %v358_v62, %v362_v49 }
 0x56a   :  { %5053 = vmatprep.mubr.bf16.mxu0 %v14580_v17  ;;  %v14602_v17 = vcombine.low %v350_v63, %v354_v0  ;;  %v14618_v63 = vcombine.low %v358_v62, %v362_v49  ;;  %v382_v62 = vld [vmem:[%s17530_s0 + $0xad0] sm:$0xff] }
 0x56b   :  { %18388 = vst [vmem:[#allocation325_spill] sm:$0xff] %v14604_v41  ;;  %v386_v49 = vld [vmem:[%s17530_s0 + $0xaf0] sm:$0xff] }
 0x56c   :  { %18387 = vst [vmem:[#allocation324_spill] sm:$0xff] %v14602_v17  ;;  %18389 = vst [vmem:[#allocation326_spill] sm:$0xff] %v14618_v63 }
 0x571   :  { %5054 = vmatmul.mubr.bf16.gmra.mrb[152].mxu0 %v14590_v46 }
 0x572   :  { %5061 = vmatprep.mubr.bf16.mxu0 %v14592_v18  ;;  %v370_v18 = vld [vmem:[%s17530_s0 + $0xa70] sm:$0xff] }
 0x573   :  { %v14620_v0 = vcombine.high %v366_v32, %v370_v18  ;;  %v14630_v46 = vcombine.low %v366_v32, %v370_v18  ;;  %v390_v18 = vld [vmem:[%s17530_s0 + $0xb10] sm:$0xff] }
 0x574   :  { %v394_v32 = vld [vmem:[%s17530_s0 + $0xb30] sm:$0xff] }
 0x575   :  { %18390 = vst [vmem:[#allocation327_spill] sm:$0xff] %v14620_v0  ;;  %18391 = vst [vmem:[#allocation328_spill] sm:$0xff] %v14630_v46 }
 0x579   :  { %5062 = vmatmul.mubr.bf16.gmra.mrb[156].mxu0 %v14602_v17  ;;  %v378_v17 = vld [vmem:[%s17530_s0 + $0xab0] sm:$0xff] }
 0x57a   :  { %5069 = vmatprep.mubr.bf16.mxu0 %v14604_v41  ;;  %v374_v41 = vld [vmem:[%s17530_s0 + $0xa90] sm:$0xff] }
 0x57b   :  { %v14632_v29 = vcombine.high %v374_v41, %v378_v17 }
 0x57d   :  { %18392 = vst [vmem:[#allocation329_spill] sm:$0xff] %v14632_v29 }
 0x581   :  { %5070 = vmatmul.mubr.bf16.gmra.mrb[160].mxu0 %v14618_v63  ;;  %v14644_v63 = vcombine.high %v382_v62, %v386_v49 }
 0x582   :  { %5077 = vmatprep.mubr.bf16.mxu0 %v14620_v0  ;;  %v14642_v0 = vcombine.low %v374_v41, %v378_v17  ;;  %v12275_v41 = vld [vmem:[%s17529_s1 + $0x1d0] sm:$0xff]  }
 0x583   :  { %18394 = vst [vmem:[#allocation331_spill] sm:$0xff] %v14644_v63  ;;  %v398_v17 = vld [vmem:[%s17530_s0 + $0xb50] sm:$0xff]  ;;  %5283 = vmatpush1.bf16.msra.mxu0 %v12275_v41 }
 0x584   :  { %18393 = vst [vmem:[#allocation330_spill] sm:$0xff] %v14642_v0  ;;  %5284 = vmatprep.subr.bf16.mxu0 %v18108_v10 }
 0x589   :  { %5078 = vmatmul.mubr.bf16.gmra.mrb[164].mxu0 %v14630_v46  ;;  %v14656_v46 = vcombine.high %v390_v18, %v394_v32 }
 0x58a   :  { %5085 = vmatprep.mubr.bf16.mxu0 %v14632_v29  ;;  %v14654_v29 = vcombine.low %v382_v62, %v386_v49  ;;  %v14670_v62 = vcombine.low %v390_v18, %v394_v32  ;;  %v12276_v18 = vld [vmem:[%s17529_s1 + $0x1d8] sm:$0xff]   ;;  %v414_v32 = vld [vmem:[%s17530_s0 + $0xbd0] sm:$0xff] }
 0x58b   :  { %18396 = vst [vmem:[#allocation333_spill] sm:$0xff] %v14656_v46  ;;  %5285 = vmatpush1.bf16.msra.mxu0 %v12276_v18 }
 0x58c   :  { %18395 = vst [vmem:[#allocation332_spill] sm:$0xff] %v14654_v29  ;;  %18397 = vst [vmem:[#allocation334_spill] sm:$0xff] %v14670_v62  ;;  %5286 = vmatprep.subr.bf16.mxu0 %v18108_v10 }
 0x591   :  { %5086 = vmatmul.mubr.bf16.gmra.mrb[168].mxu0 %v14642_v0 }
 0x592   :  { %5093 = vmatprep.mubr.bf16.mxu0 %v14644_v63  ;;  %v402_v63 = vld [vmem:[%s17530_s0 + $0xb70] sm:$0xff] }
 0x593   :  { %v14672_v49 = vcombine.high %v398_v17, %v402_v63  ;;  %v14682_v0 = vcombine.low %v398_v17, %v402_v63 }
 0x595   :  { %18398 = vst [vmem:[#allocation335_spill] sm:$0xff] %v14672_v49  ;;  %18399 = vst [vmem:[#allocation336_spill] sm:$0xff] %v14682_v0 }
 0x599   :  { %5094 = vmatmul.mubr.bf16.gmra.mrb[172].mxu0 %v14654_v29  ;;  %v410_v29 = vld [vmem:[%s17530_s0 + $0xbb0] sm:$0xff] }
 0x59a   :  { %5101 = vmatprep.mubr.bf16.mxu0 %v14656_v46  ;;  %v406_v46 = vld [vmem:[%s17530_s0 + $0xb90] sm:$0xff] }
 0x59b   :  { %v14684_v41 = vcombine.high %v406_v46, %v410_v29  ;;  %v14698_v63 = vcombine.low %v406_v46, %v410_v29  ;;  %v422_v46 = vld [vmem:[%s17530_s0 + $0xc10] sm:$0xff] }
 0x59c   :  { %v426_v29 = vld [vmem:[%s17530_s0 + $0xc30] sm:$0xff] }
 0x59d   :  { %18400 = vst [vmem:[#allocation337_spill] sm:$0xff] %v14684_v41  ;;  %18401 = vst [vmem:[#allocation338_spill] sm:$0xff] %v14698_v63 }
 0x5a1   :  { %5102 = vmatmul.mubr.bf16.gmra.mrb[176].mxu0 %v14670_v62 }
 0x5a2   :  { %5109 = vmatprep.mubr.bf16.mxu0 %v14672_v49  ;;  %v418_v49 = vld [vmem:[%s17530_s0 + $0xbf0] sm:$0xff] }
 0x5a3   :  { %v14700_v17 = vcombine.high %v414_v32, %v418_v49  ;;  %v14717_v18 = vcombine.low %v414_v32, %v418_v49  ;;  %v430_v49 = vld [vmem:[%s17530_s0 + $0xc50] sm:$0xff]  ;;  %v14737_v32 = vcombine.low %v422_v46, %v426_v29 }
 0x5a5   :  { %18402 = vst [vmem:[#allocation339_spill] sm:$0xff] %v14700_v17  ;;  %18403 = vst [vmem:[#allocation340_spill] sm:$0xff] %v14717_v18 }
 0x5a6   :  { %18405 = vst [vmem:[#allocation342_spill] sm:$0xff] %v14737_v32 }
 0x5a9   :  { %5110 = vmatmul.mubr.bf16.gmra.mrb[180].mxu0 %v14682_v0  ;;  %v12277_v0 = vld [vmem:[%s17529_s1 + $0x1e0] sm:$0xff]  }
 0x5aa   :  { %5117 = vmatprep.mubr.bf16.mxu0 %v14684_v41  ;;  %5287 = vmatpush1.bf16.msra.mxu0 %v12277_v0  ;;  %v12278_v41 = vld [vmem:[%s17529_s1 + $0x1e8] sm:$0xff]   ;;  %v12279_v0 = vld [vmem:[%s17529_s1 + $0x1f0] sm:$0xff]  }
 0x5ab   :  { %5288 = vmatprep.subr.bf16.mxu0 %v18108_v10 }
 0x5ae   :  { %5289 = vmatpush1.bf16.msra.mxu0 %v12278_v41  ;;  %v434_v41 = vld [vmem:[%s17530_s0 + $0xc70] sm:$0xff] }
 0x5af   :  { %5290 = vmatprep.subr.bf16.mxu0 %v18108_v10  ;;  %v14749_v62 = vcombine.low %v430_v49, %v434_v41 }
 0x5b1   :  { %5118 = vmatmul.mubr.bf16.gmra.mrb[184].mxu0 %v14698_v63  ;;  %v14719_v63 = vcombine.high %v422_v46, %v426_v29  ;;  %18407 = vst [vmem:[#allocation344_spill] sm:$0xff] %v14749_v62  ;;  %v450_v46 = vld [vmem:[%s17530_s0 + $0xcf0] sm:$0xff] }
 0x5b2   :  { %5125 = vmatprep.mubr.bf16.mxu0 %v14700_v17  ;;  %5291 = vmatpush1.bf16.msra.mxu0 %v12279_v0  ;;  %v12280_v17 = vld [vmem:[%s17529_s1 + $0x1f8] sm:$0xff]   ;;  %v438_v0 = vld [vmem:[%s17530_s0 + $0xc90] sm:$0xff] }
 0x5b3   :  { %18404 = vst [vmem:[#allocation341_spill] sm:$0xff] %v14719_v63  ;;  %5292 = vmatprep.subr.bf16.mxu0 %v18108_v10 }
 0x5b6   :  { %5293 = vmatpush1.bf16.msra.mxu0 %v12280_v17  ;;  %v446_v17 = vld [vmem:[%s17530_s0 + $0xcd0] sm:$0xff] }
 0x5b9   :  { %5126 = vmatmul.mubr.bf16.gmra.mrb[188].mxu0 %v14717_v18  ;;  %v14739_v18 = vcombine.high %v430_v49, %v434_v41  ;;  %v454_v49 = vld [vmem:[%s17530_s0 + $0xd10] sm:$0xff] }
 0x5ba   :  { %5133 = vmatprep.mubr.bf16.mxu0 %v14719_v63  ;;  %v442_v63 = vld [vmem:[%s17530_s0 + $0xcb0] sm:$0xff] }
 0x5bb   :  { %18406 = vst [vmem:[#allocation343_spill] sm:$0xff] %v14739_v18  ;;  %v14751_v9 = vcombine.high %v438_v0, %v442_v63  ;;  %v14761_v29 = vcombine.low %v438_v0, %v442_v63  ;;  %v458_v41 = vld [vmem:[%s17530_s0 + $0xd30] sm:$0xff] }
 0x5bc   :  { %v462_v63 = vld [vmem:[%s17530_s0 + $0xd50] sm:$0xff] }
 0x5bd   :  { %18408 = vst [vmem:[#allocation345_spill] sm:$0xff] %v14751_v9  ;;  %18409 = vst [vmem:[#allocation346_spill] sm:$0xff] %v14761_v29  ;;  %v466_v0 = vld [vmem:[%s17530_s0 + $0xd70] sm:$0xff] }
 0x5c1   :  { %5134 = vmatmul.mubr.bf16.gmra.mrb[192].mxu0 %v14737_v32  ;;  %v5815_v32 = vld [vmem:[%s17531_s3 + $0x40] sm:$0xff] }
 0x5c2   :  { %5141 = vmatprep.mubr.bf16.mxu0 %v14739_v18  ;;  %v14763_v18 = vcombine.high %v446_v17, %v450_v46  ;;  %v10359_v55 = vpack.c.bf16 %v5816_v3, %v5815_v32  ;;  %v211_v3 = vld [vmem:[%s17530_s0 + $0x578] sm:$0xff] }
 0x5c4   :  { %18410 = vst [vmem:[#allocation347_spill] sm:$0xff] %v14763_v18 }
 0x5c9   :  { %5142 = vmatmul.mubr.bf16.gmra.mrb[196].mxu0 %v14749_v62  ;;  %v14775_v62 = vcombine.high %v454_v49, %v458_v41 }
 0x5ca   :  { %5149 = vmatprep.mubr.bf16.mxu0 %v14751_v9  ;;  %v14773_v9 = vcombine.low %v446_v17, %v450_v46  ;;  %v470_v17 = vld [vmem:[%s17530_s0 + $0xd90] sm:$0xff] }
 0x5cb   :  { %18412 = vst [vmem:[#allocation349_spill] sm:$0xff] %v14775_v62  ;;  %v474_v46 = vld [vmem:[%s17530_s0 + $0xdb0] sm:$0xff] }
 0x5cc   :  { %18411 = vst [vmem:[#allocation348_spill] sm:$0xff] %v14773_v9 }
 0x5d1   :  { %5150 = vmatmul.mubr.bf16.gmra.mrb[200].mxu0 %v14761_v29  ;;  %v14787_v29 = vcombine.high %v462_v63, %v466_v0 }
 0x5d2   :  { %5157 = vmatprep.mubr.bf16.mxu0 %v14763_v18  ;;  %v14785_v18 = vcombine.low %v454_v49, %v458_v41  ;;  %v478_v49 = vld [vmem:[%s17530_s0 + $0xdd0] sm:$0xff] }
 0x5d3   :  { %18414 = vst [vmem:[#allocation351_spill] sm:$0xff] %v14787_v29  ;;  %v482_v41 = vld [vmem:[%s17530_s0 + $0xdf0] sm:$0xff] }
 0x5d4   :  { %18413 = vst [vmem:[#allocation350_spill] sm:$0xff] %v14785_v18 }
 0x5d9   :  { %5158 = vmatmul.mubr.bf16.gmra.mrb[204].mxu0 %v14773_v9  ;;  %v14799_v9 = vcombine.high %v470_v17, %v474_v46 }
 0x5da   :  { %5165 = vmatprep.mubr.bf16.mxu0 %v14775_v62  ;;  %v14797_v62 = vcombine.low %v462_v63, %v466_v0  ;;  %v486_v63 = vld [vmem:[%s17530_s0 + $0xe10] sm:$0xff] }
 0x5db   :  { %18416 = vst [vmem:[#allocation353_spill] sm:$0xff] %v14799_v9  ;;  %v490_v0 = vld [vmem:[%s17530_s0 + $0xe30] sm:$0xff] }
 0x5dc   :  { %18415 = vst [vmem:[#allocation352_spill] sm:$0xff] %v14797_v62 }
 0x5e1   :  { %5166 = vmatmul.mubr.bf16.gmra.mrb[208].mxu0 %v14785_v18  ;;  %v14811_v18 = vcombine.high %v478_v49, %v482_v41 }
 0x5e2   :  { %5173 = vmatprep.mubr.bf16.mxu0 %v14787_v29  ;;  %v14809_v29 = vcombine.low %v470_v17, %v474_v46  ;;  %v494_v17 = vld [vmem:[%s17530_s0 + $0xe50] sm:$0xff] }
 0x5e3   :  { %18418 = vst [vmem:[#allocation355_spill] sm:$0xff] %v14811_v18  ;;  %v498_v46 = vld [vmem:[%s17530_s0 + $0xe70] sm:$0xff] }
 0x5e4   :  { %18417 = vst [vmem:[#allocation354_spill] sm:$0xff] %v14809_v29 }
 0x5e9   :  { %5174 = vmatmul.mubr.bf16.gmra.mrb[212].mxu0 %v14797_v62  ;;  %v14823_v62 = vcombine.high %v486_v63, %v490_v0 }
 0x5ea   :  { %5181 = vmatprep.mubr.bf16.mxu0 %v14799_v9  ;;  %v14821_v9 = vcombine.low %v478_v49, %v482_v41  ;;  %v502_v49 = vld [vmem:[%s17530_s0 + $0xe90] sm:$0xff] }
 0x5eb   :  { %18420 = vst [vmem:[#allocation357_spill] sm:$0xff] %v14823_v62  ;;  %v506_v41 = vld [vmem:[%s17530_s0 + $0xeb0] sm:$0xff] }
 0x5ec   :  { %18419 = vst [vmem:[#allocation356_spill] sm:$0xff] %v14821_v9 }
 0x5f1   :  { %5182 = vmatmul.mubr.bf16.gmra.mrb[216].mxu0 %v14809_v29  ;;  %v14835_v29 = vcombine.high %v494_v17, %v498_v46 }
 0x5f2   :  { %5189 = vmatprep.mubr.bf16.mxu0 %v14811_v18  ;;  %v14833_v18 = vcombine.low %v486_v63, %v490_v0  ;;  %v510_v63 = vld [vmem:[%s17530_s0 + $0xed0] sm:$0xff] }
 0x5f3   :  { %18422 = vst [vmem:[#allocation359_spill] sm:$0xff] %v14835_v29  ;;  %v514_v0 = vld [vmem:[%s17530_s0 + $0xef0] sm:$0xff] }
 0x5f4   :  { %18421 = vst [vmem:[#allocation358_spill] sm:$0xff] %v14833_v18 }
 0x5f9   :  { %5190 = vmatmul.mubr.bf16.gmra.mrb[220].mxu0 %v14821_v9  ;;  %v14847_v9 = vcombine.high %v502_v49, %v506_v41 }
 0x5fa   :  { %5197 = vmatprep.mubr.bf16.mxu0 %v14823_v62  ;;  %v14845_v62 = vcombine.low %v494_v17, %v498_v46  ;;  %v518_v17 = vld [vmem:[%s17530_s0 + $0xf10] sm:$0xff] }
 0x5fb   :  { %18424 = vst [vmem:[#allocation361_spill] sm:$0xff] %v14847_v9  ;;  %v522_v46 = vld [vmem:[%s17530_s0 + $0xf30] sm:$0xff] }
 0x5fc   :  { %18423 = vst [vmem:[#allocation360_spill] sm:$0xff] %v14845_v62 }
 0x601   :  { %5198 = vmatmul.mubr.bf16.gmra.mrb[224].mxu0 %v14833_v18  ;;  %v14859_v18 = vcombine.high %v510_v63, %v514_v0 }
 0x602   :  { %5205 = vmatprep.mubr.bf16.mxu0 %v14835_v29  ;;  %v14857_v29 = vcombine.low %v502_v49, %v506_v41  ;;  %v526_v49 = vld [vmem:[%s17530_s0 + $0xf50] sm:$0xff] }
 0x603   :  { %18426 = vst [vmem:[#allocation363_spill] sm:$0xff] %v14859_v18  ;;  %v530_v41 = vld [vmem:[%s17530_s0 + $0xf70] sm:$0xff] }
 0x604   :  { %18425 = vst [vmem:[#allocation362_spill] sm:$0xff] %v14857_v29 }
 0x609   :  { %5206 = vmatmul.mubr.bf16.gmra.mrb[228].mxu0 %v14845_v62  ;;  %v14871_v62 = vcombine.high %v518_v17, %v522_v46 }
 0x60a   :  { %5213 = vmatprep.mubr.bf16.mxu0 %v14847_v9  ;;  %v14869_v9 = vcombine.low %v510_v63, %v514_v0  ;;  %v534_v63 = vld [vmem:[%s17530_s0 + $0xf90] sm:$0xff] }
 0x60b   :  { %18428 = vst [vmem:[#allocation365_spill] sm:$0xff] %v14871_v62  ;;  %v538_v0 = vld [vmem:[%s17530_s0 + $0xfb0] sm:$0xff] }
 0x60c   :  { %18427 = vst [vmem:[#allocation364_spill] sm:$0xff] %v14869_v9 }
 0x611   :  { %5214 = vmatmul.mubr.bf16.gmra.mrb[232].mxu0 %v14857_v29  ;;  %v14883_v29 = vcombine.high %v526_v49, %v530_v41 }
 0x612   :  { %5221 = vmatprep.mubr.bf16.mxu0 %v14859_v18  ;;  %v14881_v18 = vcombine.low %v518_v17, %v522_v46  ;;  %v542_v17 = vld [vmem:[%s17530_s0 + $0xfd0] sm:$0xff] }
 0x613   :  { %18430 = vst [vmem:[#allocation367_spill] sm:$0xff] %v14883_v29  ;;  %v546_v46 = vld [vmem:[%s17530_s0 + $0xff0] sm:$0xff] }
 0x614   :  { %18429 = vst [vmem:[#allocation366_spill] sm:$0xff] %v14881_v18 }
 0x619   :  { %5222 = vmatmul.mubr.bf16.gmra.mrb[236].mxu0 %v14869_v9  ;;  %v14895_v9 = vcombine.high %v534_v63, %v538_v0 }
 0x61a   :  { %5229 = vmatprep.mubr.bf16.mxu0 %v14871_v62  ;;  %v14893_v62 = vcombine.low %v526_v49, %v530_v41  ;;  %v39_v49 = vld [vmem:[%s17530_s0 + $0x18] sm:$0xff] }
 0x61b   :  { %18432 = vst [vmem:[#allocation369_spill] sm:$0xff] %v14895_v9  ;;  %v43_v41 = vld [vmem:[%s17530_s0 + $0x38] sm:$0xff] }
 0x61c   :  { %18431 = vst [vmem:[#allocation368_spill] sm:$0xff] %v14893_v62 }
 0x621   :  { %5230 = vmatmul.mubr.bf16.gmra.mrb[240].mxu0 %v14881_v18  ;;  %v14907_v18 = vcombine.high %v542_v17, %v546_v46 }
 0x622   :  { %5237 = vmatprep.mubr.bf16.mxu0 %v14883_v29  ;;  %v14905_v29 = vcombine.low %v534_v63, %v538_v0  ;;  %v47_v63 = vld [vmem:[%s17530_s0 + $0x58] sm:$0xff] }
 0x623   :  { %18434 = vst [vmem:[#allocation371_spill] sm:$0xff] %v14907_v18  ;;  %v51_v0 = vld [vmem:[%s17530_s0 + $0x78] sm:$0xff] }
 0x624   :  { %18433 = vst [vmem:[#allocation370_spill] sm:$0xff] %v14905_v29 }
 0x629   :  { %5238 = vmatmul.mubr.bf16.gmra.mrb[244].mxu0 %v14893_v62  ;;  %v14919_v62 = vcombine.high %v39_v49, %v43_v41 }
 0x62a   :  { %5245 = vmatprep.mubr.bf16.mxu0 %v14895_v9  ;;  %v14917_v9 = vcombine.low %v542_v17, %v546_v46  ;;  %v55_v17 = vld [vmem:[%s17530_s0 + $0x98] sm:$0xff] }
 0x62b   :  { %18436 = vst [vmem:[#allocation373_spill] sm:$0xff] %v14919_v62  ;;  %v59_v46 = vld [vmem:[%s17530_s0 + $0xb8] sm:$0xff] }
 0x62c   :  { %18435 = vst [vmem:[#allocation372_spill] sm:$0xff] %v14917_v9 }
 0x631   :  { %5246 = vmatmul.mubr.bf16.gmra.mrb[248].mxu0 %v14905_v29  ;;  %v14931_v29 = vcombine.high %v47_v63, %v51_v0 }
 0x632   :  { %5253 = vmatprep.mubr.bf16.mxu0 %v14907_v18  ;;  %v14929_v18 = vcombine.low %v39_v49, %v43_v41  ;;  %v63_v49 = vld [vmem:[%s17530_s0 + $0xd8] sm:$0xff] }
 0x633   :  { %18438 = vst [vmem:[#allocation375_spill] sm:$0xff] %v14931_v29  ;;  %v67_v41 = vld [vmem:[%s17530_s0 + $0xf8] sm:$0xff] }
 0x634   :  { %18437 = vst [vmem:[#allocation374_spill] sm:$0xff] %v14929_v18 }
 0x639   :  { %5254 = vmatmul.mubr.bf16.gmra.mrb[252].mxu0 %v14917_v9  ;;  %v14943_v9 = vcombine.high %v55_v17, %v59_v46 }
 0x63a   :  { %5294 = vmatprep.mubr.bf16.mxu0 %v14919_v62  ;;  %v14941_v62 = vcombine.low %v47_v63, %v51_v0  ;;  %v71_v63 = vld [vmem:[%s17530_s0 + $0x118] sm:$0xff] }
 0x63b   :  { %18440 = vst [vmem:[#allocation377_spill] sm:$0xff] %v14943_v9  ;;  %v75_v0 = vld [vmem:[%s17530_s0 + $0x138] sm:$0xff] }
 0x63c   :  { %18439 = vst [vmem:[#allocation376_spill] sm:$0xff] %v14941_v62 }
 0x641   :  { %5295 = vmatmul.mubr.bf16.vlgmr.msra.gmra.mrb[0].mxu0 %v14929_v18  ;;  %v14955_v18 = vcombine.high %v63_v49, %v67_v41 }
 0x642   :  { %5302 = vmatprep.mubr.bf16.mxu0 %v14931_v29  ;;  %v14953_v29 = vcombine.low %v55_v17, %v59_v46  ;;  %v5807_v17 = vld [vmem:[%s17531_s3] sm:$0xff]  ;;  %v5808_v46 = vld [vmem:[%s17531_s3 + $0x8] sm:$0xff] }
 0x643   :  { %18442 = vst [vmem:[#allocation379_spill] sm:$0xff] %v14955_v18 }
 0x644   :  { %18441 = vst [vmem:[#allocation378_spill] sm:$0xff] %v14953_v29 }
 0x649   :  { %5303 = vmatmul.mubr.bf16.gmra.mrb[4].mxu0 %v14941_v62  ;;  %v14967_v62 = vcombine.high %v71_v63, %v75_v0 }
 0x64a   :  { %5310 = vmatprep.mubr.bf16.mxu0 %v14943_v9  ;;  %v14965_v9 = vcombine.low %v63_v49, %v67_v41  ;;  %v83_v49 = vld [vmem:[%s17530_s0 + $0x178] sm:$0xff]  ;;  %v10343_v41 = vpack.c.bf16 %v5808_v46, %v5807_v17 }
 0x64b   :  { %18444 = vst [vmem:[#allocation381_spill] sm:$0xff] %v14967_v62  ;;  %v91_v17 = vld [vmem:[%s17530_s0 + $0x1b8] sm:$0xff] }
 0x64c   :  { %18443 = vst [vmem:[#allocation380_spill] sm:$0xff] %v14965_v9  ;;  %10344 = vmatprep.subr.bf16.mxu0 %v10343_v41  ;;  %10405 = vmatprep.subr.bf16.mxu1 %v10343_v41  ;;  %v95_v46 = vld [vmem:[%s17530_s0 + $0x1d8] sm:$0xff] }
 0x64d   :  { %10346 = vmatpush3.bf16.msra.mxu0 %v10343_v41  ;;  %10413 = vmatpush3.bf16.msra.mxu1 %v10343_v41  ;;  %v99_v41 = vld [vmem:[%s17530_s0 + $0x1f8] sm:$0xff] }
 0x651   :  { %5311 = vmatmul.mubr.bf16.gmra.mrb[8].mxu0 %v14953_v29  ;;  %v87_v29 = vld [vmem:[%s17530_s0 + $0x198] sm:$0xff] }
 0x652   :  { %5318 = vmatprep.mubr.bf16.mxu0 %v14955_v18  ;;  %v79_v18 = vld [vmem:[%s17530_s0 + $0x158] sm:$0xff] }
 0x659   :  { %5319 = vmatmul.mubr.bf16.gmra.mrb[12].mxu0 %v14965_v9  ;;  %v14983_v9 = vcombine.low %v71_v63, %v75_v0  ;;  %v14995_v63 = vcombine.low %v79_v18, %v83_v49  ;;  %v14997_v0 = vcombine.high %v87_v29, %v91_v17 }
 0x65a   :  { %5326 = vmatprep.mubr.bf16.mxu0 %v14967_v62  ;;  %v14985_v62 = vcombine.high %v79_v18, %v83_v49  ;;  %v103_v18 = vld [vmem:[%s17530_s0 + $0x218] sm:$0xff] }
 0x65b   :  { %18445 = vst [vmem:[#allocation382_spill] sm:$0xff] %v14983_v9  ;;  %18447 = vst [vmem:[#allocation384_spill] sm:$0xff] %v14995_v63  ;;  %v107_v49 = vld [vmem:[%s17530_s0 + $0x238] sm:$0xff] }
 0x65c   :  { %18446 = vst [vmem:[#allocation383_spill] sm:$0xff] %v14985_v62  ;;  %18448 = vst [vmem:[#allocation385_spill] sm:$0xff] %v14997_v0 }
 0x661   :  { %5327 = vmatmul.mubr.bf16.gmra.mrb[16].mxu0 %v14983_v9  ;;  %v15009_v9 = vcombine.high %v95_v46, %v99_v41 }
 0x662   :  { %5334 = vmatprep.mubr.bf16.mxu0 %v14985_v62  ;;  %v15007_v62 = vcombine.low %v87_v29, %v91_v17  ;;  %v111_v29 = vld [vmem:[%s17530_s0 + $0x258] sm:$0xff] }
 0x663   :  { %18450 = vst [vmem:[#allocation387_spill] sm:$0xff] %v15009_v9  ;;  %v115_v17 = vld [vmem:[%s17530_s0 + $0x278] sm:$0xff] }
 0x664   :  { %18449 = vst [vmem:[#allocation386_spill] sm:$0xff] %v15007_v62 }
 0x669   :  { %5335 = vmatmul.mubr.bf16.gmra.mrb[20].mxu0 %v14995_v63  ;;  %v15021_v63 = vcombine.high %v103_v18, %v107_v49 }
 0x66a   :  { %5342 = vmatprep.mubr.bf16.mxu0 %v14997_v0  ;;  %v15019_v0 = vcombine.low %v95_v46, %v99_v41  ;;  %v119_v46 = vld [vmem:[%s17530_s0 + $0x298] sm:$0xff] }
 0x66b   :  { %18452 = vst [vmem:[#allocation389_spill] sm:$0xff] %v15021_v63  ;;  %v123_v41 = vld [vmem:[%s17530_s0 + $0x2b8] sm:$0xff] }
 0x66c   :  { %18451 = vst [vmem:[#allocation388_spill] sm:$0xff] %v15019_v0 }
 0x671   :  { %5343 = vmatmul.mubr.bf16.gmra.mrb[24].mxu0 %v15007_v62  ;;  %v15033_v62 = vcombine.high %v111_v29, %v115_v17 }
 0x672   :  { %5350 = vmatprep.mubr.bf16.mxu0 %v15009_v9  ;;  %v15031_v9 = vcombine.low %v103_v18, %v107_v49  ;;  %v127_v18 = vld [vmem:[%s17530_s0 + $0x2d8] sm:$0xff] }
 0x673   :  { %18454 = vst [vmem:[#allocation391_spill] sm:$0xff] %v15033_v62  ;;  %v131_v49 = vld [vmem:[%s17530_s0 + $0x2f8] sm:$0xff] }
 0x674   :  { %18453 = vst [vmem:[#allocation390_spill] sm:$0xff] %v15031_v9 }
 0x679   :  { %5351 = vmatmul.mubr.bf16.gmra.mrb[28].mxu0 %v15019_v0  ;;  %v15045_v0 = vcombine.high %v119_v46, %v123_v41 }
 0x67a   :  { %5358 = vmatprep.mubr.bf16.mxu0 %v15021_v63  ;;  %v15043_v63 = vcombine.low %v111_v29, %v115_v17  ;;  %v135_v29 = vld [vmem:[%s17530_s0 + $0x318] sm:$0xff] }
 0x67b   :  { %18456 = vst [vmem:[#allocation393_spill] sm:$0xff] %v15045_v0  ;;  %v139_v17 = vld [vmem:[%s17530_s0 + $0x338] sm:$0xff] }
 0x67c   :  { %18455 = vst [vmem:[#allocation392_spill] sm:$0xff] %v15043_v63 }
 0x681   :  { %5359 = vmatmul.mubr.bf16.gmra.mrb[32].mxu0 %v15031_v9  ;;  %v15057_v9 = vcombine.high %v127_v18, %v131_v49 }
 0x682   :  { %5366 = vmatprep.mubr.bf16.mxu0 %v15033_v62  ;;  %v15055_v62 = vcombine.low %v119_v46, %v123_v41  ;;  %v5809_v46 = vld [vmem:[%s17531_s3 + $0x10] sm:$0xff]  ;;  %v5810_v41 = vld [vmem:[%s17531_s3 + $0x18] sm:$0xff] }
 0x683   :  { %18458 = vst [vmem:[#allocation395_spill] sm:$0xff] %v15057_v9 }
 0x684   :  { %18457 = vst [vmem:[#allocation394_spill] sm:$0xff] %v15055_v62 }
 0x689   :  { %5367 = vmatmul.mubr.bf16.gmra.mrb[36].mxu0 %v15043_v63  ;;  %v15069_v63 = vcombine.high %v135_v29, %v139_v17 }
 0x68a   :  { %5374 = vmatprep.mubr.bf16.mxu0 %v15045_v0  ;;  %v15067_v0 = vcombine.low %v127_v18, %v131_v49  ;;  %v143_v18 = vld [vmem:[%s17530_s0 + $0x358] sm:$0xff] }
 0x68b   :  { %18460 = vst [vmem:[#allocation397_spill] sm:$0xff] %v15069_v63  ;;  %v147_v49 = vld [vmem:[%s17530_s0 + $0x378] sm:$0xff] }
 0x68c   :  { %18459 = vst [vmem:[#allocation396_spill] sm:$0xff] %v15067_v0 }
 0x691   :  { %5375 = vmatmul.mubr.bf16.gmra.mrb[40].mxu0 %v15055_v62  ;;  %v15087_v62 = vcombine.high %v143_v18, %v147_v49 }
 0x692   :  { %5382 = vmatprep.mubr.bf16.mxu0 %v15057_v9  ;;  %v10347_v9 = vpack.c.bf16 %v5810_v41, %v5809_v46  ;;  %v151_v46 = vld [vmem:[%s17530_s0 + $0x398] sm:$0xff] }
 0x693   :  { %18462 = vst [vmem:[#allocation399_spill] sm:$0xff] %v15087_v62  ;;  %v155_v41 = vld [vmem:[%s17530_s0 + $0x3b8] sm:$0xff] }
 0x694   :  { %10348 = vmatprep.subr.bf16.mxu0 %v10347_v9  ;;  %10406 = vmatprep.subr.bf16.mxu1 %v10347_v9 }
 0x695   :  { %10350 = vmatpush3.bf16.msra.mxu0 %v10347_v9  ;;  %10414 = vmatpush3.bf16.msra.mxu1 %v10347_v9  ;;  %v159_v9 = vld [vmem:[%s17530_s0 + $0x3d8] sm:$0xff] }
 0x699   :  { %5383 = vmatmul.mubr.bf16.gmra.mrb[44].mxu0 %v15067_v0  ;;  %v15085_v0 = vcombine.low %v135_v29, %v139_v17  ;;  %v15099_v29 = vcombine.high %v151_v46, %v155_v41  ;;  %v163_v17 = vld [vmem:[%s17530_s0 + $0x3f8] sm:$0xff] }
 0x69a   :  { %5390 = vmatprep.mubr.bf16.mxu0 %v15069_v63  ;;  %v15097_v63 = vcombine.low %v143_v18, %v147_v49  ;;  %v167_v18 = vld [vmem:[%s17530_s0 + $0x418] sm:$0xff] }
 0x69b   :  { %18461 = vst [vmem:[#allocation398_spill] sm:$0xff] %v15085_v0  ;;  %18464 = vst [vmem:[#allocation401_spill] sm:$0xff] %v15099_v29  ;;  %v171_v49 = vld [vmem:[%s17530_s0 + $0x438] sm:$0xff] }
 0x69c   :  { %18463 = vst [vmem:[#allocation400_spill] sm:$0xff] %v15097_v63 }
 0x6a1   :  { %5391 = vmatmul.mubr.bf16.gmra.mrb[48].mxu0 %v15085_v0  ;;  %v15111_v0 = vcombine.high %v159_v9, %v163_v17 }
 0x6a2   :  { %5398 = vmatprep.mubr.bf16.mxu0 %v15087_v62  ;;  %v15109_v62 = vcombine.low %v151_v46, %v155_v41  ;;  %v175_v46 = vld [vmem:[%s17530_s0 + $0x458] sm:$0xff] }
 0x6a3   :  { %18466 = vst [vmem:[#allocation403_spill] sm:$0xff] %v15111_v0  ;;  %v179_v41 = vld [vmem:[%s17530_s0 + $0x478] sm:$0xff] }
 0x6a4   :  { %18465 = vst [vmem:[#allocation402_spill] sm:$0xff] %v15109_v62 }
 0x6a9   :  { %5399 = vmatmul.mubr.bf16.gmra.mrb[52].mxu0 %v15097_v63  ;;  %v15123_v63 = vcombine.high %v167_v18, %v171_v49 }
 0x6aa   :  { %5406 = vmatprep.mubr.bf16.mxu0 %v15099_v29  ;;  %v15121_v29 = vcombine.low %v159_v9, %v163_v17  ;;  %v183_v9 = vld [vmem:[%s17530_s0 + $0x498] sm:$0xff] }
 0x6ab   :  { %18468 = vst [vmem:[#allocation405_spill] sm:$0xff] %v15123_v63  ;;  %v187_v17 = vld [vmem:[%s17530_s0 + $0x4b8] sm:$0xff] }
 0x6ac   :  { %18467 = vst [vmem:[#allocation404_spill] sm:$0xff] %v15121_v29 }
 0x6b1   :  { %5407 = vmatmul.mubr.bf16.gmra.mrb[56].mxu0 %v15109_v62  ;;  %v15135_v62 = vcombine.high %v175_v46, %v179_v41 }
 0x6b2   :  { %5414 = vmatprep.mubr.bf16.mxu0 %v15111_v0  ;;  %v15133_v0 = vcombine.low %v167_v18, %v171_v49  ;;  %v191_v18 = vld [vmem:[%s17530_s0 + $0x4d8] sm:$0xff] }
 0x6b3   :  { %18470 = vst [vmem:[#allocation407_spill] sm:$0xff] %v15135_v62  ;;  %v195_v49 = vld [vmem:[%s17530_s0 + $0x4f8] sm:$0xff] }
 0x6b4   :  { %18469 = vst [vmem:[#allocation406_spill] sm:$0xff] %v15133_v0 }
 0x6b9   :  { %5415 = vmatmul.mubr.bf16.gmra.mrb[60].mxu0 %v15121_v29  ;;  %v15147_v29 = vcombine.high %v183_v9, %v187_v17 }
 0x6ba   :  { %5422 = vmatprep.mubr.bf16.mxu0 %v15123_v63  ;;  %v15145_v63 = vcombine.low %v175_v46, %v179_v41  ;;  %v5811_v46 = vld [vmem:[%s17531_s3 + $0x20] sm:$0xff]  ;;  %v5812_v41 = vld [vmem:[%s17531_s3 + $0x28] sm:$0xff] }
 0x6bb   :  { %18472 = vst [vmem:[#allocation409_spill] sm:$0xff] %v15147_v29 }
 0x6bc   :  { %18471 = vst [vmem:[#allocation408_spill] sm:$0xff] %v15145_v63 }
 0x6c1   :  { %5423 = vmatmul.mubr.bf16.gmra.mrb[64].mxu0 %v15133_v0  ;;  %v15159_v0 = vcombine.high %v191_v18, %v195_v49 }
 0x6c2   :  { %5430 = vmatprep.mubr.bf16.mxu0 %v15135_v62  ;;  %v15157_v62 = vcombine.low %v183_v9, %v187_v17  ;;  %v5813_v9 = vld [vmem:[%s17531_s3 + $0x30] sm:$0xff]  ;;  %v5814_v17 = vld [vmem:[%s17531_s3 + $0x38] sm:$0xff] }
 0x6c3   :  { %18474 = vst [vmem:[#allocation411_spill] sm:$0xff] %v15159_v0 }
 0x6c4   :  { %18473 = vst [vmem:[#allocation410_spill] sm:$0xff] %v15157_v62 }
 0x6c9   :  { %5431 = vmatmul.mubr.bf16.gmra.mrb[68].mxu0 %v15145_v63  ;;  %v199_v63 = vld [vmem:[%s17530_s0 + $0x518] sm:$0xff] }
 0x6ca   :  { %5438 = vmatprep.mubr.bf16.mxu0 %v15147_v29  ;;  %v10351_v29 = vpack.c.bf16 %v5812_v41, %v5811_v46  ;;  %v203_v46 = vld [vmem:[%s17530_s0 + $0x538] sm:$0xff]  ;;  %v10355_v41 = vpack.c.bf16 %v5814_v17, %v5813_v9 }
 0x6cb   :  { %v15205_v9 = vcombine.low %v199_v63, %v203_v46 }
 0x6cc   :  { %10407 = vmatprep.subr.bf16.mxu1 %v10351_v29  ;;  %10352 = vmatprep.subr.bf16.mxu0 %v10351_v29 }
 0x6cd   :  { %10415 = vmatpush3.bf16.msra.mxu1 %v10351_v29  ;;  %10354 = vmatpush3.bf16.msra.mxu0 %v10351_v29  ;;  %v5817_v29 = vld [vmem:[%s17531_s3 + $0x50] sm:$0xff]  ;;  %18477 = vst [vmem:[#allocation414_spill] sm:$0xff] %v15205_v9 }
 0x6ce   :  { %10408 = vmatprep.subr.bf16.mxu1 %v10355_v41  ;;  %10356 = vmatprep.subr.bf16.mxu0 %v10355_v41 }
 0x6d1   :  { %5439 = vmatmul.mubr.bf16.gmra.mrb[72].mxu0 %v15157_v62  ;;  %v15183_v62 = vcombine.high %v199_v63, %v203_v46  ;;  %10416 = vmatpush3.bf16.msra.mxu1 %v10355_v41  ;;  %v5822_v63 = vld [vmem:[%s17531_s3 + $0x78] sm:$0xff] }
 0x6d2   :  { %5446 = vmatprep.mubr.bf16.mxu0 %v15159_v0  ;;  %v15181_v0 = vcombine.low %v191_v18, %v195_v49  ;;  %10358 = vmatpush3.bf16.msra.mxu0 %v10355_v41  ;;  %v5818_v18 = vld [vmem:[%s17531_s3 + $0x58] sm:$0xff]  ;;  %v5819_v41 = vld [vmem:[%s17531_s3 + $0x60] sm:$0xff] }
 0x6d3   :  { %18476 = vst [vmem:[#allocation413_spill] sm:$0xff] %v15183_v62  ;;  %10409 = vmatprep.subr.bf16.mxu1 %v10359_v55  ;;  %v207_v49 = vld [vmem:[%s17530_s0 + $0x558] sm:$0xff]  ;;  %v10363_v32 = vpack.c.bf16 %v5818_v18, %v5817_v29  ;;  %10360 = vmatprep.subr.bf16.mxu0 %v10359_v55 }
 0x6d4   :  { %18475 = vst [vmem:[#allocation412_spill] sm:$0xff] %v15181_v0  ;;  %v15207_v17 = vcombine.high %v207_v49, %v211_v3  ;;  %v215_v46 = vld [vmem:[%s17530_s0 + $0x598] sm:$0xff]  ;;  %v15229_v18 = vcombine.low %v207_v49, %v211_v3 }
 0x6d5   :  { %10417 = vmatpush3.bf16.msra.mxu1 %v10359_v55 }
 0x6d6   :  { %10362 = vmatpush3.bf16.msra.mxu0 %v10359_v55  ;;  %10410 = vmatprep.subr.bf16.mxu1 %v10363_v32  ;;  %18478 = vst [vmem:[#allocation415_spill] sm:$0xff] %v15207_v17  ;;  %v5821_v55 = vld [vmem:[%s17531_s3 + $0x70] sm:$0xff]  ;;  %18479 = vst [vmem:[#allocation416_spill] sm:$0xff] %v15229_v18 }
 0x6d7   :  { %10364 = vmatprep.subr.bf16.mxu0 %v10363_v32  ;;  %v10371_v29 = vpack.c.bf16 %v5822_v63, %v5821_v55  ;;  %v231_v55 = vld [vmem:[%s17530_s0 + $0x618] sm:$0xff] }
 0x6d8   :  { %v235_v63 = vld [vmem:[%s17530_s0 + $0x638] sm:$0xff] }
 0x6d9   :  { %5447 = vmatmul.mubr.bf16.gmra.mrb[76].mxu0 %v15181_v0  ;;  %10418 = vmatpush3.bf16.msra.mxu1 %v10363_v32 }
 0x6da   :  { %5454 = vmatprep.mubr.bf16.mxu0 %v15183_v62  ;;  %v5820_v62 = vld [vmem:[%s17531_s3 + $0x68] sm:$0xff]  ;;  %10366 = vmatpush3.bf16.msra.mxu0 %v10363_v32 }
 0x6db   :  { %v10367_v0 = vpack.c.bf16 %v5820_v62, %v5819_v41  ;;  %v219_v62 = vld [vmem:[%s17530_s0 + $0x5b8] sm:$0xff] }
 0x6dc   :  { %v15231_v32 = vcombine.high %v215_v46, %v219_v62  ;;  %v223_v41 = vld [vmem:[%s17530_s0 + $0x5d8] sm:$0xff]  ;;  %v15242_v49 = vcombine.low %v215_v46, %v219_v62 }
 0x6dd   :  { %10411 = vmatprep.subr.bf16.mxu1 %v10367_v0  ;;  %10368 = vmatprep.subr.bf16.mxu0 %v10367_v0  ;;  %v239_v46 = vld [vmem:[%s17530_s0 + $0x658] sm:$0xff] }
 0x6de   :  { %10419 = vmatpush3.bf16.msra.mxu1 %v10367_v0  ;;  %10370 = vmatpush3.bf16.msra.mxu0 %v10367_v0  ;;  %18480 = vst [vmem:[#allocation417_spill] sm:$0xff] %v15231_v32  ;;  %v227_v0 = vld [vmem:[%s17530_s0 + $0x5f8] sm:$0xff]  ;;  %18481 = vst [vmem:[#allocation418_spill] sm:$0xff] %v15242_v49 }
 0x6df   :  { %10412 = vmatprep.subr.bf16.mxu1 %v10371_v29  ;;  %10372 = vmatprep.subr.bf16.mxu0 %v10371_v29  ;;  %v15244_v3 = vcombine.high %v223_v41, %v227_v0  ;;  %v243_v62 = vld [vmem:[%s17530_s0 + $0x678] sm:$0xff] }
 0x6e1   :  { %5455 = vmatmul.mubr.bf16.gmra.mrb[80].mxu0 %v15205_v9  ;;  %18482 = vst [vmem:[#allocation419_spill] sm:$0xff] %v15244_v3 }
 0x6e2   :  { %5462 = vmatprep.mubr.bf16.mxu0 %v15207_v17  ;;  %10420 = vmatpush3.bf16.msra.mxu1 %v10371_v29  ;;  %v275_v17 = vld [vmem:[%s17530_s0 + $0x778] sm:$0xff] }
 0x6e3   :  { %6599 = vmatprep.subr.bf16.mxu1 %v18108_v10  ;;  %10374 = vmatpush3.bf16.msra.mxu0 %v10371_v29  ;;  %v15254_v29 = vcombine.low %v223_v41, %v227_v0  ;;  %v247_v41 = vld [vmem:[%s17530_s0 + $0x698] sm:$0xff] }
 0x6e4   :  { %v251_v0 = vld [vmem:[%s17530_s0 + $0x6b8] sm:$0xff] }
 0x6e5   :  { %18483 = vst [vmem:[#allocation420_spill] sm:$0xff] %v15254_v29 }
 0x6e9   :  { %5463 = vmatmul.mubr.bf16.gmra.mrb[84].mxu0 %v15229_v18 }
 0x6ea   :  { %5470 = vmatprep.mubr.bf16.mxu0 %v15231_v32  ;;  %v15256_v32 = vcombine.high %v231_v55, %v235_v63 }
 0x6ec   :  { %18484 = vst [vmem:[#allocation421_spill] sm:$0xff] %v15256_v32 }
 0x6f1   :  { %5471 = vmatmul.mubr.bf16.gmra.mrb[88].mxu0 %v15242_v49  ;;  %v15268_v49 = vcombine.high %v239_v46, %v243_v62 }
 0x6f2   :  { %5478 = vmatprep.mubr.bf16.mxu0 %v15244_v3  ;;  %v15266_v3 = vcombine.low %v231_v55, %v235_v63  ;;  %v255_v55 = vld [vmem:[%s17530_s0 + $0x6d8] sm:$0xff] }
 0x6f3   :  { %18486 = vst [vmem:[#allocation423_spill] sm:$0xff] %v15268_v49  ;;  %v259_v63 = vld [vmem:[%s17530_s0 + $0x6f8] sm:$0xff] }
 0x6f4   :  { %18485 = vst [vmem:[#allocation422_spill] sm:$0xff] %v15266_v3  ;;  %v15304_v18 = vcombine.low %v255_v55, %v259_v63 }
 0x6f6   :  { %18491 = vst [vmem:[#allocation428_spill] sm:$0xff] %v15304_v18 }
 0x6f9   :  { %5479 = vmatmul.mubr.bf16.gmra.mrb[92].mxu0 %v15254_v29  ;;  %v15280_v29 = vcombine.high %v247_v41, %v251_v0 }
 0x6fa   :  { %5486 = vmatprep.mubr.bf16.mxu0 %v15256_v32  ;;  %v15278_v32 = vcombine.low %v239_v46, %v243_v62  ;;  %v263_v46 = vld [vmem:[%s17530_s0 + $0x718] sm:$0xff] }
 0x6fb   :  { %18488 = vst [vmem:[#allocation425_spill] sm:$0xff] %v15280_v29  ;;  %v267_v62 = vld [vmem:[%s17530_s0 + $0x738] sm:$0xff] }
 0x6fc   :  { %18487 = vst [vmem:[#allocation424_spill] sm:$0xff] %v15278_v32 }
 0x701   :  { %5487 = vmatmul.mubr.bf16.gmra.mrb[96].mxu0 %v15266_v3  ;;  %v15292_v3 = vcombine.high %v255_v55, %v259_v63  ;;  %v15320_v63 = vcombine.low %v263_v46, %v267_v62 }
 0x702   :  { %5494 = vmatprep.mubr.bf16.mxu0 %v15268_v49  ;;  %v15290_v49 = vcombine.low %v247_v41, %v251_v0  ;;  %v15308_v0 = vcombine.high %v263_v46, %v267_v62 }
 0x703   :  { %18490 = vst [vmem:[#allocation427_spill] sm:$0xff] %v15292_v3  ;;  %18493 = vst [vmem:[#allocation430_spill] sm:$0xff] %v15320_v63 }
 0x704   :  { %18489 = vst [vmem:[#allocation426_spill] sm:$0xff] %v15290_v49  ;;  %18492 = vst [vmem:[#allocation429_spill] sm:$0xff] %v15308_v0 }
 0x709   :  { %5495 = vmatmul.mubr.bf16.gmra.mrb[100].mxu0 %v15278_v32 }
 0x70a   :  { %5502 = vmatprep.mubr.bf16.mxu0 %v15280_v29 }
 0x711   :  { %5503 = vmatmul.mubr.bf16.gmra.mrb[104].mxu0 %v15290_v49 }
 0x712   :  { %5510 = vmatprep.mubr.bf16.mxu0 %v15292_v3  ;;  %v271_v3 = vld [vmem:[%s17530_s0 + $0x758] sm:$0xff] }
 0x713   :  { %v15336_v62 = vcombine.low %v271_v3, %v275_v17 }
 0x714   :  { %v15302_v29 = vpop.f32.mrb[0].mxu0 }
 0x715   :  { %v5298_v32 = vpop.f32.mrb[1].mxu0  ;;  %18495 = vst [vmem:[#allocation432_spill] sm:$0xff] %v15336_v62 }
 0x716   :  { %v15306_v41 = vpop.f32.mrb[2].mxu0 }
 0x717   :  { %v5301_v49 = vpop.f32.mrb[3].mxu0 }
 0x718   :  { %v15324_v49 = vcombine.high %v271_v3, %v275_v17 }
 0x719   :  { %5511 = vmatmul.mubr.bf16.gmra.mrb[108].mxu0 %v15304_v18 }
 0x71a   :  { %5518 = vmatprep.mubr.bf16.mxu0 %v15308_v0  ;;  %18494 = vst [vmem:[#allocation431_spill] sm:$0xff] %v15324_v49  ;;  %v279_v0 = vld [vmem:[%s17530_s0 + $0x798] sm:$0xff] }
 0x71b   :  { %v15352_v3 = vcombine.low %v279_v0, %v283_v54 }
 0x71c   :  { %v15318_v32 = vpop.f32.mrb[4].mxu0 }
 0x71d   :  { %v5306_v55 = vpop.f32.mrb[5].mxu0  ;;  %18497 = vst [vmem:[#allocation434_spill] sm:$0xff] %v15352_v3 }
 0x71e   :  { %v15322_v9 = vpop.f32.mrb[6].mxu0 }
 0x71f   :  { %v5309_v18 = vpop.f32.mrb[7].mxu0 }
 0x720   :  { %v15340_v18 = vcombine.high %v279_v0, %v283_v54 }
 0x721   :  { %5519 = vmatmul.mubr.bf16.gmra.mrb[112].mxu0 %v15320_v63 }
 0x722   :  { %5526 = vmatprep.mubr.bf16.mxu0 %v15324_v49  ;;  %18496 = vst [vmem:[#allocation433_spill] sm:$0xff] %v15340_v18  ;;  %v287_v49 = vld [vmem:[%s17530_s0 + $0x7d8] sm:$0xff] }
 0x723   :  { %v15368_v0 = vcombine.low %v287_v49, %v291_v33 }
 0x724   :  { %v15334_v55 = vpop.f32.mrb[8].mxu0 }
 0x725   :  { %v5314_v46 = vpop.f32.mrb[9].mxu0  ;;  %18499 = vst [vmem:[#allocation436_spill] sm:$0xff] %v15368_v0 }
 0x726   :  { %v15338_v38 = vpop.f32.mrb[10].mxu0 }
 0x727   :  { %v5317_v63 = vpop.f32.mrb[11].mxu0 }
 0x728   :  { %v15356_v63 = vcombine.high %v287_v49, %v291_v33 }
 0x729   :  { %5527 = vmatmul.mubr.bf16.gmra.mrb[116].mxu0 %v15336_v62 }
 0x72a   :  { %5534 = vmatprep.mubr.bf16.mxu0 %v15340_v18  ;;  %18498 = vst [vmem:[#allocation435_spill] sm:$0xff] %v15356_v63  ;;  %v295_v18 = vld [vmem:[%s17530_s0 + $0x818] sm:$0xff] }
 0x72b   :  { %v15384_v49 = vcombine.low %v295_v18, %v299_v21 }
 0x72c   :  { %v15350_v46 = vpop.f32.mrb[12].mxu0 }
 0x72d   :  { %v5322_v17 = vpop.f32.mrb[13].mxu0  ;;  %18501 = vst [vmem:[#allocation438_spill] sm:$0xff] %v15384_v49 }
 0x72e   :  { %v15354_v24 = vpop.f32.mrb[14].mxu0 }
 0x72f   :  { %v5325_v62 = vpop.f32.mrb[15].mxu0 }
 0x730   :  { %v15372_v62 = vcombine.high %v295_v18, %v299_v21 }
 0x731   :  { %5535 = vmatmul.mubr.bf16.gmra.mrb[120].mxu0 %v15352_v3 }
 0x732   :  { %5542 = vmatprep.mubr.bf16.mxu0 %v15356_v63  ;;  %18500 = vst [vmem:[#allocation437_spill] sm:$0xff] %v15372_v62  ;;  %v303_v63 = vld [vmem:[%s17530_s0 + $0x858] sm:$0xff] }
 0x733   :  { %v15400_v18 = vcombine.low %v303_v63, %v307_v13 }
 0x734   :  { %v15366_v17 = vpop.f32.mrb[16].mxu0 }
 0x735   :  { %v5330_v54 = vpop.f32.mrb[17].mxu0  ;;  %18503 = vst [vmem:[#allocation440_spill] sm:$0xff] %v15400_v18 }
 0x736   :  { %v15370_v14 = vpop.f32.mrb[18].mxu0 }
 0x737   :  { %v5333_v3 = vpop.f32.mrb[19].mxu0 }
 0x738   :  { %v15388_v3 = vcombine.high %v303_v63, %v307_v13 }
 0x739   :  { %5543 = vmatmul.mubr.bf16.gmra.mrb[124].mxu0 %v15368_v0 }
 0x73a   :  { %5550 = vmatprep.mubr.bf16.mxu0 %v15372_v62  ;;  %18502 = vst [vmem:[#allocation439_spill] sm:$0xff] %v15388_v3  ;;  %v311_v62 = vld [vmem:[%s17530_s0 + $0x898] sm:$0xff] }
 0x73b   :  { %v15416_v63 = vcombine.low %v311_v62, %v315_v4 }
 0x73c   :  { %v15382_v54 = vpop.f32.mrb[20].mxu0 }
 0x73d   :  { %v5338_v33 = vpop.f32.mrb[21].mxu0  ;;  %18505 = vst [vmem:[#allocation442_spill] sm:$0xff] %v15416_v63 }
 0x73e   :  { %v15386_v7 = vpop.f32.mrb[22].mxu0 }
 0x73f   :  { %v5341_v0 = vpop.f32.mrb[23].mxu0 }
 0x740   :  { %v15404_v0 = vcombine.high %v311_v62, %v315_v4 }
 0x741   :  { %5551 = vmatmul.mubr.bf16.gmra.mrb[128].mxu0 %v15384_v49 }
 0x742   :  { %5558 = vmatprep.mubr.bf16.mxu0 %v15388_v3  ;;  %18504 = vst [vmem:[#allocation441_spill] sm:$0xff] %v15404_v0  ;;  %v319_v3 = vld [vmem:[%s17530_s0 + $0x8d8] sm:$0xff] }
 0x743   :  { %v15432_v62 = vcombine.low %v319_v3, %v323_v58 }
 0x744   :  { %v15398_v33 = vpop.f32.mrb[24].mxu0 }
 0x745   :  { %v5346_v21 = vpop.f32.mrb[25].mxu0  ;;  %18507 = vst [vmem:[#allocation444_spill] sm:$0xff] %v15432_v62 }
 0x746   :  { %v15402_v59 = vpop.f32.mrb[26].mxu0 }
 0x747   :  { %v5349_v49 = vpop.f32.mrb[27].mxu0 }
 0x748   :  { %v15420_v49 = vcombine.high %v319_v3, %v323_v58 }
 0x749   :  { %5559 = vmatmul.mubr.bf16.gmra.mrb[132].mxu0 %v15400_v18 }
 0x74a   :  { %5566 = vmatprep.mubr.bf16.mxu0 %v15404_v0  ;;  %18506 = vst [vmem:[#allocation443_spill] sm:$0xff] %v15420_v49  ;;  %v327_v0 = vld [vmem:[%s17530_s0 + $0x918] sm:$0xff] }
 0x74b   :  { %v15448_v3 = vcombine.low %v327_v0, %v331_v50 }
 0x74c   :  { %v15414_v21 = vpop.f32.mrb[28].mxu0 }
 0x74d   :  { %v5354_v13 = vpop.f32.mrb[29].mxu0  ;;  %18509 = vst [vmem:[#allocation446_spill] sm:$0xff] %v15448_v3 }
 0x74e   :  { %v15418_v53 = vpop.f32.mrb[30].mxu0 }
 0x74f   :  { %v5357_v18 = vpop.f32.mrb[31].mxu0 }
 0x750   :  { %v15436_v18 = vcombine.high %v327_v0, %v331_v50  ;;  %v15465_v50 = vld [vmem:[%s17532_s2] ss:$0 sm:$0xff] }
 0x751   :  { %5567 = vmatmul.mubr.bf16.gmra.mrb[136].mxu0 %v15416_v63 }
 0x752   :  { %5574 = vmatprep.mubr.bf16.mxu0 %v15420_v49  ;;  %18508 = vst [vmem:[#allocation445_spill] sm:$0xff] %v15436_v18  ;;  %v335_v49 = vld [vmem:[%s17530_s0 + $0x958] sm:$0xff] }
 0x754   :  { %v15430_v13 = vpop.f32.mrb[32].mxu0 }
 0x755   :  { %v5362_v4 = vpop.f32.mrb[33].mxu0 }
 0x756   :  { %v15434_v45 = vpop.f32.mrb[34].mxu0 }
 0x757   :  { %v5365_v63 = vpop.f32.mrb[35].mxu0 }
 0x758   :  { %v15452_v63 = vcombine.high %v335_v49, %v339_v42 }
 0x759   :  { %5575 = vmatmul.mubr.bf16.gmra.mrb[140].mxu0 %v15432_v62 }
 0x75a   :  { %5582 = vmatprep.mubr.bf16.mxu0 %v15436_v18  ;;  %18510 = vst [vmem:[#allocation447_spill] sm:$0xff] %v15452_v63  ;;  %v343_v18 = vld [vmem:[%s17530_s0 + $0x998] sm:$0xff] }
 0x75b   :  { %v15470_v28 = vcombine.high %v343_v18, %v347_v36 }
 0x75c   :  { %v15446_v4 = vpop.f32.mrb[36].mxu0 }
 0x75d   :  { %v5370_v58 = vpop.f32.mrb[37].mxu0  ;;  %18512 = vst [vmem:[#allocation449_spill] sm:$0xff] %v15470_v28 }
 0x75e   :  { %v15450_v37 = vpop.f32.mrb[38].mxu0 }
 0x75f   :  { %v5373_v62 = vpop.f32.mrb[39].mxu0 }
 0x761   :  { %5583 = vmatmul.mubr.bf16.gmra.mrb[144].mxu0 %v15448_v3  ;;  %v15468_v3 = vcombine.low %v335_v49, %v339_v42  ;;  %v355_v42 = vld [vmem:[%s17530_s0 + $0x9f8] sm:$0xff] }
 0x762   :  { %5590 = vmatprep.mubr.bf16.mxu0 %v15452_v63 }
 0x763   :  { %18511 = vst [vmem:[#allocation448_spill] sm:$0xff] %v15468_v3 }
 0x764   :  { %v5376_v0 = vpop.f32.mrb[40].mxu0 }
 0x765   :  { %v5378_v58 = vpop.f32.mrb[41].mxu0  ;;  %v10441_v62 = vadd.f32 %v15465_v50, %v5376_v0 }
 0x766   :  { %v5379_v63 = vpop.f32.mrb[42].mxu0  ;;  %v351_v58 = vld [vmem:[%s17530_s0 + $0x9d8] sm:$0xff] }
 0x767   :  { %v10442_v25 = vadd.f32 %v15465_v50, %v5379_v63  ;;  %v5381_v20 = vpop.f32.mrb[43].mxu0  ;;  %10135 = vmatprep.mubr.f32.mxu1 %v10441_v62  ;;  %v15482_v63 = vcombine.low %v343_v18, %v347_v36  ;;  %v15484_v62 = vcombine.high %v351_v58, %v355_v42 }
 0x769   :  { %5591 = vmatmul.mubr.bf16.gmra.mrb[148].mxu0 %v15468_v3  ;;  %10136 = vmatmul.mubr.f32.vlgmr.msra.gmra.mrb[0].mxu1 %v10442_v25  ;;  %18513 = vst [vmem:[#allocation450_spill] sm:$0xff] %v15482_v63  ;;  %18514 = vst [vmem:[#allocation451_spill] sm:$0xff] %v15484_v62  ;;  %v359_v3 = vld [vmem:[%s17530_s0 + $0xa18] sm:$0xff] }
 0x76a   :  { %5598 = vmatprep.mubr.bf16.mxu0 %v15470_v28 }
 0x76c   :  { %v5384_v49 = vpop.f32.mrb[44].mxu0 }
 0x76d   :  { %v10443_v0 = vadd.f32 %v15465_v50, %v5384_v49  ;;  %v5386_v19 = vpop.f32.mrb[45].mxu0 }
 0x76e   :  { %v5387_v20 = vpop.f32.mrb[46].mxu0  ;;  %v363_v19 = vld [vmem:[%s17530_s0 + $0xa38] sm:$0xff] }
 0x76f   :  { %v10444_v25 = vadd.f32 %v15465_v50, %v5387_v20  ;;  %v5389_v28 = vpop.f32.mrb[47].mxu0  ;;  %10138 = vmatprep.mubr.f32.mxu1 %v10443_v0  ;;  %v15496_v20 = vcombine.low %v351_v58, %v355_v42  ;;  %v15498_v0 = vcombine.high %v359_v3, %v363_v19  ;;  %v371_v58 = vld [vmem:[%s17530_s0 + $0xa78] sm:$0xff] }
 0x771   :  { %5599 = vmatmul.mubr.bf16.gmra.mrb[152].mxu0 %v15482_v63  ;;  %10139 = vmatmul.mubr.f32.gmra.mrb[2].mxu1 %v10444_v25  ;;  %18515 = vst [vmem:[#allocation452_spill] sm:$0xff] %v15496_v20  ;;  %18516 = vst [vmem:[#allocation453_spill] sm:$0xff] %v15498_v0  ;;  %v367_v63 = vld [vmem:[%s17530_s0 + $0xa58] sm:$0xff] }
 0x772   :  { %5606 = vmatprep.mubr.bf16.mxu0 %v15484_v62 }
 0x774   :  { %v5392_v36 = vpop.f32.mrb[48].mxu0 }
 0x775   :  { %v10445_v18 = vadd.f32 %v15465_v50, %v5392_v36  ;;  %v5394_v49 = vpop.f32.mrb[49].mxu0 }
 0x776   :  { %v5395_v28 = vpop.f32.mrb[50].mxu0 }
 0x777   :  { %v10446_v25 = vadd.f32 %v15465_v50, %v5395_v28  ;;  %v5397_v62 = vpop.f32.mrb[51].mxu0  ;;  %10141 = vmatprep.mubr.f32.mxu1 %v10445_v18  ;;  %v15510_v28 = vcombine.low %v359_v3, %v363_v19  ;;  %v15512_v18 = vcombine.high %v367_v63, %v371_v58  ;;  %v379_v3 = vld [vmem:[%s17530_s0 + $0xab8] sm:$0xff] }
 0x779   :  { %5607 = vmatmul.mubr.bf16.gmra.mrb[156].mxu0 %v15496_v20  ;;  %10142 = vmatmul.mubr.f32.gmra.mrb[4].mxu1 %v10446_v25  ;;  %18517 = vst [vmem:[#allocation454_spill] sm:$0xff] %v15510_v28  ;;  %18518 = vst [vmem:[#allocation455_spill] sm:$0xff] %v15512_v18  ;;  %v375_v20 = vld [vmem:[%s17530_s0 + $0xa98] sm:$0xff] }
 0x77a   :  { %5614 = vmatprep.mubr.bf16.mxu0 %v15498_v0 }
 0x77c   :  { %v5400_v42 = vpop.f32.mrb[52].mxu0 }
 0x77d   :  { %v10447_v36 = vadd.f32 %v15465_v50, %v5400_v42  ;;  %v5402_v49 = vpop.f32.mrb[53].mxu0 }
 0x77e   :  { %v5403_v62 = vpop.f32.mrb[54].mxu0 }
 0x77f   :  { %v10448_v25 = vadd.f32 %v15465_v50, %v5403_v62  ;;  %v5405_v0 = vpop.f32.mrb[55].mxu0  ;;  %10144 = vmatprep.mubr.f32.mxu1 %v10447_v36  ;;  %v15524_v62 = vcombine.low %v367_v63, %v371_v58  ;;  %v15526_v36 = vcombine.high %v375_v20, %v379_v3  ;;  %v387_v63 = vld [vmem:[%s17530_s0 + $0xaf8] sm:$0xff] }
 0x781   :  { %5615 = vmatmul.mubr.bf16.gmra.mrb[160].mxu0 %v15510_v28  ;;  %10145 = vmatmul.mubr.f32.gmra.mrb[6].mxu1 %v10448_v25  ;;  %18519 = vst [vmem:[#allocation456_spill] sm:$0xff] %v15524_v62  ;;  %18520 = vst [vmem:[#allocation457_spill] sm:$0xff] %v15526_v36  ;;  %v383_v28 = vld [vmem:[%s17530_s0 + $0xad8] sm:$0xff] }
 0x782   :  { %5622 = vmatprep.mubr.bf16.mxu0 %v15512_v18 }
 0x784   :  { %v5408_v19 = vpop.f32.mrb[56].mxu0 }
 0x785   :  { %v10449_v42 = vadd.f32 %v15465_v50, %v5408_v19  ;;  %v5410_v49 = vpop.f32.mrb[57].mxu0 }
 0x786   :  { %v5411_v0 = vpop.f32.mrb[58].mxu0 }
 0x787   :  { %v10450_v25 = vadd.f32 %v15465_v50, %v5411_v0  ;;  %v5413_v18 = vpop.f32.mrb[59].mxu0  ;;  %10147 = vmatprep.mubr.f32.mxu1 %v10449_v42  ;;  %v15538_v0 = vcombine.low %v375_v20, %v379_v3  ;;  %v15540_v42 = vcombine.high %v383_v28, %v387_v63  ;;  %v395_v20 = vld [vmem:[%s17530_s0 + $0xb38] sm:$0xff] }
 0x789   :  { %5623 = vmatmul.mubr.bf16.gmra.mrb[164].mxu0 %v15524_v62  ;;  %10148 = vmatmul.mubr.f32.gmra.mrb[8].mxu1 %v10450_v25  ;;  %18521 = vst [vmem:[#allocation458_spill] sm:$0xff] %v15538_v0  ;;  %18522 = vst [vmem:[#allocation459_spill] sm:$0xff] %v15540_v42  ;;  %v391_v62 = vld [vmem:[%s17530_s0 + $0xb18] sm:$0xff] }
 0x78a   :  { %5630 = vmatprep.mubr.bf16.mxu0 %v15526_v36 }
 0x78c   :  { %v5416_v58 = vpop.f32.mrb[60].mxu0 }
 0x78d   :  { %v10451_v19 = vadd.f32 %v15465_v50, %v5416_v58  ;;  %v5418_v49 = vpop.f32.mrb[61].mxu0 }
 0x78e   :  { %v5419_v18 = vpop.f32.mrb[62].mxu0 }
 0x78f   :  { %v10452_v25 = vadd.f32 %v15465_v50, %v5419_v18  ;;  %v5421_v36 = vpop.f32.mrb[63].mxu0  ;;  %10150 = vmatprep.mubr.f32.mxu1 %v10451_v19  ;;  %v15552_v18 = vcombine.low %v383_v28, %v387_v63  ;;  %v15554_v19 = vcombine.high %v391_v62, %v395_v20  ;;  %v403_v28 = vld [vmem:[%s17530_s0 + $0xb78] sm:$0xff] }
 0x791   :  { %5631 = vmatmul.mubr.bf16.gmra.mrb[168].mxu0 %v15538_v0  ;;  %10151 = vmatmul.mubr.f32.gmra.mrb[10].mxu1 %v10452_v25  ;;  %18523 = vst [vmem:[#allocation460_spill] sm:$0xff] %v15552_v18  ;;  %18524 = vst [vmem:[#allocation461_spill] sm:$0xff] %v15554_v19  ;;  %v399_v0 = vld [vmem:[%s17530_s0 + $0xb58] sm:$0xff] }
 0x792   :  { %5638 = vmatprep.mubr.bf16.mxu0 %v15540_v42 }
 0x794   :  { %v5424_v3 = vpop.f32.mrb[64].mxu0 }
 0x795   :  { %v10453_v58 = vadd.f32 %v15465_v50, %v5424_v3  ;;  %v5426_v49 = vpop.f32.mrb[65].mxu0 }
 0x796   :  { %v5427_v36 = vpop.f32.mrb[66].mxu0 }
 0x797   :  { %v10454_v25 = vadd.f32 %v15465_v50, %v5427_v36  ;;  %v5429_v42 = vpop.f32.mrb[67].mxu0  ;;  %10153 = vmatprep.mubr.f32.mxu1 %v10453_v58  ;;  %v15566_v36 = vcombine.low %v391_v62, %v395_v20  ;;  %v15568_v58 = vcombine.high %v399_v0, %v403_v28  ;;  %v411_v62 = vld [vmem:[%s17530_s0 + $0xbb8] sm:$0xff] }
 0x799   :  { %5639 = vmatmul.mubr.bf16.gmra.mrb[172].mxu0 %v15552_v18  ;;  %10154 = vmatmul.mubr.f32.gmra.mrb[12].mxu1 %v10454_v25  ;;  %18525 = vst [vmem:[#allocation462_spill] sm:$0xff] %v15566_v36  ;;  %18526 = vst [vmem:[#allocation463_spill] sm:$0xff] %v15568_v58  ;;  %v407_v18 = vld [vmem:[%s17530_s0 + $0xb98] sm:$0xff] }
 0x79a   :  { %5646 = vmatprep.mubr.bf16.mxu0 %v15554_v19 }
 0x79c   :  { %v5432_v63 = vpop.f32.mrb[68].mxu0 }
 0x79d   :  { %v10455_v3 = vadd.f32 %v15465_v50, %v5432_v63  ;;  %v5434_v49 = vpop.f32.mrb[69].mxu0 }
 0x79e   :  { %v5435_v42 = vpop.f32.mrb[70].mxu0 }
 0x79f   :  { %v10456_v25 = vadd.f32 %v15465_v50, %v5435_v42  ;;  %v5437_v19 = vpop.f32.mrb[71].mxu0  ;;  %10156 = vmatprep.mubr.f32.mxu1 %v10455_v3  ;;  %v15580_v42 = vcombine.low %v399_v0, %v403_v28  ;;  %v15582_v3 = vcombine.high %v407_v18, %v411_v62  ;;  %v419_v0 = vld [vmem:[%s17530_s0 + $0xbf8] sm:$0xff] }
 0x7a1   :  { %5647 = vmatmul.mubr.bf16.gmra.mrb[176].mxu0 %v15566_v36  ;;  %10157 = vmatmul.mubr.f32.gmra.mrb[14].mxu1 %v10456_v25  ;;  %18527 = vst [vmem:[#allocation464_spill] sm:$0xff] %v15580_v42  ;;  %18528 = vst [vmem:[#allocation465_spill] sm:$0xff] %v15582_v3  ;;  %v415_v36 = vld [vmem:[%s17530_s0 + $0xbd8] sm:$0xff] }
 0x7a2   :  { %5654 = vmatprep.mubr.bf16.mxu0 %v15568_v58 }
 0x7a4   :  { %v5440_v20 = vpop.f32.mrb[72].mxu0 }
 0x7a5   :  { %v10457_v63 = vadd.f32 %v15465_v50, %v5440_v20  ;;  %v5442_v49 = vpop.f32.mrb[73].mxu0 }
 0x7a6   :  { %v5443_v19 = vpop.f32.mrb[74].mxu0 }
 0x7a7   :  { %v10458_v25 = vadd.f32 %v15465_v50, %v5443_v19  ;;  %v5445_v58 = vpop.f32.mrb[75].mxu0  ;;  %10159 = vmatprep.mubr.f32.mxu1 %v10457_v63  ;;  %v15594_v19 = vcombine.low %v407_v18, %v411_v62  ;;  %v15596_v63 = vcombine.high %v415_v36, %v419_v0  ;;  %v427_v18 = vld [vmem:[%s17530_s0 + $0xc38] sm:$0xff] }
 0x7a9   :  { %5655 = vmatmul.mubr.bf16.gmra.mrb[180].mxu0 %v15580_v42  ;;  %10160 = vmatmul.mubr.f32.gmra.mrb[16].mxu1 %v10458_v25  ;;  %18529 = vst [vmem:[#allocation466_spill] sm:$0xff] %v15594_v19  ;;  %18530 = vst [vmem:[#allocation467_spill] sm:$0xff] %v15596_v63  ;;  %v423_v42 = vld [vmem:[%s17530_s0 + $0xc18] sm:$0xff] }
 0x7aa   :  { %5662 = vmatprep.mubr.bf16.mxu0 %v15582_v3 }
 0x7ac   :  { %v5448_v28 = vpop.f32.mrb[76].mxu0 }
 0x7ad   :  { %v10459_v20 = vadd.f32 %v15465_v50, %v5448_v28  ;;  %v5450_v49 = vpop.f32.mrb[77].mxu0 }
 0x7ae   :  { %v5451_v58 = vpop.f32.mrb[78].mxu0 }
 0x7af   :  { %v10460_v25 = vadd.f32 %v15465_v50, %v5451_v58  ;;  %v5453_v3 = vpop.f32.mrb[79].mxu0  ;;  %10162 = vmatprep.mubr.f32.mxu1 %v10459_v20  ;;  %v15608_v58 = vcombine.low %v415_v36, %v419_v0  ;;  %v15610_v20 = vcombine.high %v423_v42, %v427_v18  ;;  %v435_v36 = vld [vmem:[%s17530_s0 + $0xc78] sm:$0xff] }
 0x7b1   :  { %5663 = vmatmul.mubr.bf16.gmra.mrb[184].mxu0 %v15594_v19  ;;  %10163 = vmatmul.mubr.f32.gmra.mrb[18].mxu1 %v10460_v25  ;;  %18531 = vst [vmem:[#allocation468_spill] sm:$0xff] %v15608_v58  ;;  %18532 = vst [vmem:[#allocation469_spill] sm:$0xff] %v15610_v20  ;;  %v431_v19 = vld [vmem:[%s17530_s0 + $0xc58] sm:$0xff] }
 0x7b2   :  { %5670 = vmatprep.mubr.bf16.mxu0 %v15596_v63 }
 0x7b4   :  { %v5456_v62 = vpop.f32.mrb[80].mxu0 }
 0x7b5   :  { %v10461_v28 = vadd.f32 %v15465_v50, %v5456_v62  ;;  %v5458_v49 = vpop.f32.mrb[81].mxu0 }
 0x7b6   :  { %v5459_v3 = vpop.f32.mrb[82].mxu0 }
 0x7b7   :  { %v10462_v25 = vadd.f32 %v15465_v50, %v5459_v3  ;;  %v5461_v63 = vpop.f32.mrb[83].mxu0  ;;  %10165 = vmatprep.mubr.f32.mxu1 %v10461_v28  ;;  %v15622_v3 = vcombine.low %v423_v42, %v427_v18  ;;  %v15624_v28 = vcombine.high %v431_v19, %v435_v36  ;;  %v443_v42 = vld [vmem:[%s17530_s0 + $0xcb8] sm:$0xff] }
 0x7b9   :  { %5671 = vmatmul.mubr.bf16.gmra.mrb[188].mxu0 %v15608_v58  ;;  %10166 = vmatmul.mubr.f32.gmra.mrb[20].mxu1 %v10462_v25  ;;  %18533 = vst [vmem:[#allocation470_spill] sm:$0xff] %v15622_v3  ;;  %18534 = vst [vmem:[#allocation471_spill] sm:$0xff] %v15624_v28  ;;  %v439_v58 = vld [vmem:[%s17530_s0 + $0xc98] sm:$0xff] }
 0x7ba   :  { %5678 = vmatprep.mubr.bf16.mxu0 %v15610_v20 }
 0x7bc   :  { %v5464_v0 = vpop.f32.mrb[84].mxu0 }
 0x7bd   :  { %v10463_v62 = vadd.f32 %v15465_v50, %v5464_v0  ;;  %v5466_v49 = vpop.f32.mrb[85].mxu0 }
 0x7be   :  { %v5467_v63 = vpop.f32.mrb[86].mxu0 }
 0x7bf   :  { %v10464_v25 = vadd.f32 %v15465_v50, %v5467_v63  ;;  %v5469_v20 = vpop.f32.mrb[87].mxu0  ;;  %10168 = vmatprep.mubr.f32.mxu1 %v10463_v62  ;;  %v15636_v63 = vcombine.low %v431_v19, %v435_v36  ;;  %v15638_v62 = vcombine.high %v439_v58, %v443_v42  ;;  %v451_v19 = vld [vmem:[%s17530_s0 + $0xcf8] sm:$0xff] }
 0x7c1   :  { %5679 = vmatmul.mubr.bf16.gmra.mrb[192].mxu0 %v15622_v3  ;;  %10169 = vmatmul.mubr.f32.gmra.mrb[22].mxu1 %v10464_v25  ;;  %18535 = vst [vmem:[#allocation472_spill] sm:$0xff] %v15636_v63  ;;  %18536 = vst [vmem:[#allocation473_spill] sm:$0xff] %v15638_v62  ;;  %v447_v3 = vld [vmem:[%s17530_s0 + $0xcd8] sm:$0xff] }
 0x7c2   :  { %5686 = vmatprep.mubr.bf16.mxu0 %v15624_v28 }
 0x7c4   :  { %v5472_v18 = vpop.f32.mrb[88].mxu0 }
 0x7c5   :  { %v10465_v0 = vadd.f32 %v15465_v50, %v5472_v18  ;;  %v5474_v49 = vpop.f32.mrb[89].mxu0 }
 0x7c6   :  { %v5475_v20 = vpop.f32.mrb[90].mxu0 }
 0x7c7   :  { %v10466_v25 = vadd.f32 %v15465_v50, %v5475_v20  ;;  %v5477_v28 = vpop.f32.mrb[91].mxu0  ;;  %10171 = vmatprep.mubr.f32.mxu1 %v10465_v0  ;;  %v15650_v20 = vcombine.low %v439_v58, %v443_v42  ;;  %v15652_v0 = vcombine.high %v447_v3, %v451_v19  ;;  %v459_v58 = vld [vmem:[%s17530_s0 + $0xd38] sm:$0xff] }
 0x7c9   :  { %5687 = vmatmul.mubr.bf16.gmra.mrb[196].mxu0 %v15636_v63  ;;  %10172 = vmatmul.mubr.f32.gmra.mrb[24].mxu1 %v10466_v25  ;;  %18537 = vst [vmem:[#allocation474_spill] sm:$0xff] %v15650_v20  ;;  %18538 = vst [vmem:[#allocation475_spill] sm:$0xff] %v15652_v0  ;;  %v455_v63 = vld [vmem:[%s17530_s0 + $0xd18] sm:$0xff] }
 0x7ca   :  { %5694 = vmatprep.mubr.bf16.mxu0 %v15638_v62 }
 0x7cc   :  { %v5480_v36 = vpop.f32.mrb[92].mxu0 }
 0x7cd   :  { %v10467_v18 = vadd.f32 %v15465_v50, %v5480_v36  ;;  %v5482_v49 = vpop.f32.mrb[93].mxu0 }
 0x7ce   :  { %v5483_v28 = vpop.f32.mrb[94].mxu0 }
 0x7cf   :  { %v10468_v25 = vadd.f32 %v15465_v50, %v5483_v28  ;;  %v5485_v62 = vpop.f32.mrb[95].mxu0  ;;  %10174 = vmatprep.mubr.f32.mxu1 %v10467_v18  ;;  %v15664_v28 = vcombine.low %v447_v3, %v451_v19  ;;  %v15666_v18 = vcombine.high %v455_v63, %v459_v58  ;;  %v467_v3 = vld [vmem:[%s17530_s0 + $0xd78] sm:$0xff] }
 0x7d1   :  { %5695 = vmatmul.mubr.bf16.gmra.mrb[200].mxu0 %v15650_v20  ;;  %10175 = vmatmul.mubr.f32.gmra.mrb[26].mxu1 %v10468_v25  ;;  %18539 = vst [vmem:[#allocation476_spill] sm:$0xff] %v15664_v28  ;;  %18540 = vst [vmem:[#allocation477_spill] sm:$0xff] %v15666_v18  ;;  %v463_v20 = vld [vmem:[%s17530_s0 + $0xd58] sm:$0xff] }
 0x7d2   :  { %5702 = vmatprep.mubr.bf16.mxu0 %v15652_v0 }
 0x7d4   :  { %v5488_v42 = vpop.f32.mrb[96].mxu0 }
 0x7d5   :  { %v10469_v36 = vadd.f32 %v15465_v50, %v5488_v42  ;;  %v5490_v49 = vpop.f32.mrb[97].mxu0 }
 0x7d6   :  { %v5491_v62 = vpop.f32.mrb[98].mxu0 }
 0x7d7   :  { %v10470_v25 = vadd.f32 %v15465_v50, %v5491_v62  ;;  %v5493_v0 = vpop.f32.mrb[99].mxu0  ;;  %10177 = vmatprep.mubr.f32.mxu1 %v10469_v36  ;;  %v15678_v62 = vcombine.low %v455_v63, %v459_v58  ;;  %v15680_v36 = vcombine.high %v463_v20, %v467_v3  ;;  %v475_v63 = vld [vmem:[%s17530_s0 + $0xdb8] sm:$0xff] }
 0x7d9   :  { %5703 = vmatmul.mubr.bf16.gmra.mrb[204].mxu0 %v15664_v28  ;;  %10178 = vmatmul.mubr.f32.gmra.mrb[28].mxu1 %v10470_v25  ;;  %18541 = vst [vmem:[#allocation478_spill] sm:$0xff] %v15678_v62  ;;  %18542 = vst [vmem:[#allocation479_spill] sm:$0xff] %v15680_v36  ;;  %v471_v28 = vld [vmem:[%s17530_s0 + $0xd98] sm:$0xff] }
 0x7da   :  { %5710 = vmatprep.mubr.bf16.mxu0 %v15666_v18 }
 0x7dc   :  { %v5496_v19 = vpop.f32.mrb[100].mxu0 }
 0x7dd   :  { %v10471_v42 = vadd.f32 %v15465_v50, %v5496_v19  ;;  %v5498_v49 = vpop.f32.mrb[101].mxu0 }
 0x7de   :  { %v5499_v0 = vpop.f32.mrb[102].mxu0 }
 0x7df   :  { %v10472_v25 = vadd.f32 %v15465_v50, %v5499_v0  ;;  %v5501_v18 = vpop.f32.mrb[103].mxu0  ;;  %10180 = vmatprep.mubr.f32.mxu1 %v10471_v42  ;;  %v15692_v0 = vcombine.low %v463_v20, %v467_v3  ;;  %v15694_v42 = vcombine.high %v471_v28, %v475_v63  ;;  %v483_v20 = vld [vmem:[%s17530_s0 + $0xdf8] sm:$0xff] }
 0x7e1   :  { %5711 = vmatmul.mubr.bf16.gmra.mrb[208].mxu0 %v15678_v62  ;;  %10181 = vmatmul.mubr.f32.gmra.mrb[30].mxu1 %v10472_v25  ;;  %18543 = vst [vmem:[#allocation480_spill] sm:$0xff] %v15692_v0  ;;  %18544 = vst [vmem:[#allocation481_spill] sm:$0xff] %v15694_v42  ;;  %v479_v62 = vld [vmem:[%s17530_s0 + $0xdd8] sm:$0xff] }
 0x7e2   :  { %5718 = vmatprep.mubr.bf16.mxu0 %v15680_v36 }
 0x7e4   :  { %v5504_v58 = vpop.f32.mrb[104].mxu0 }
 0x7e5   :  { %v10473_v19 = vadd.f32 %v15465_v50, %v5504_v58  ;;  %v5506_v49 = vpop.f32.mrb[105].mxu0 }
 0x7e6   :  { %v5507_v18 = vpop.f32.mrb[106].mxu0 }
 0x7e7   :  { %v10474_v25 = vadd.f32 %v15465_v50, %v5507_v18  ;;  %v5509_v36 = vpop.f32.mrb[107].mxu0  ;;  %10183 = vmatprep.mubr.f32.mxu1 %v10473_v19  ;;  %v15706_v18 = vcombine.low %v471_v28, %v475_v63  ;;  %v15708_v19 = vcombine.high %v479_v62, %v483_v20  ;;  %v491_v28 = vld [vmem:[%s17530_s0 + $0xe38] sm:$0xff] }
 0x7e9   :  { %5719 = vmatmul.mubr.bf16.gmra.mrb[212].mxu0 %v15692_v0  ;;  %10184 = vmatmul.mubr.f32.gmra.mrb[32].mxu1 %v10474_v25  ;;  %18545 = vst [vmem:[#allocation482_spill] sm:$0xff] %v15706_v18  ;;  %18546 = vst [vmem:[#allocation483_spill] sm:$0xff] %v15708_v19  ;;  %v487_v0 = vld [vmem:[%s17530_s0 + $0xe18] sm:$0xff] }
 0x7ea   :  { %5726 = vmatprep.mubr.bf16.mxu0 %v15694_v42 }
 0x7ec   :  { %v5512_v3 = vpop.f32.mrb[108].mxu0 }
 0x7ed   :  { %v10475_v58 = vadd.f32 %v15465_v50, %v5512_v3  ;;  %v5514_v49 = vpop.f32.mrb[109].mxu0 }
 0x7ee   :  { %v5515_v36 = vpop.f32.mrb[110].mxu0 }
 0x7ef   :  { %v10476_v25 = vadd.f32 %v15465_v50, %v5515_v36  ;;  %v5517_v42 = vpop.f32.mrb[111].mxu0  ;;  %10186 = vmatprep.mubr.f32.mxu1 %v10475_v58  ;;  %v15720_v36 = vcombine.low %v479_v62, %v483_v20  ;;  %v15722_v58 = vcombine.high %v487_v0, %v491_v28  ;;  %v499_v62 = vld [vmem:[%s17530_s0 + $0xe78] sm:$0xff] }
 0x7f1   :  { %5727 = vmatmul.mubr.bf16.gmra.mrb[216].mxu0 %v15706_v18  ;;  %10187 = vmatmul.mubr.f32.gmra.mrb[34].mxu1 %v10476_v25  ;;  %18547 = vst [vmem:[#allocation484_spill] sm:$0xff] %v15720_v36  ;;  %18548 = vst [vmem:[#allocation485_spill] sm:$0xff] %v15722_v58  ;;  %v495_v18 = vld [vmem:[%s17530_s0 + $0xe58] sm:$0xff] }
 0x7f2   :  { %5734 = vmatprep.mubr.bf16.mxu0 %v15708_v19 }
 0x7f4   :  { %v5520_v63 = vpop.f32.mrb[112].mxu0 }
 0x7f5   :  { %v10477_v3 = vadd.f32 %v15465_v50, %v5520_v63  ;;  %v5522_v49 = vpop.f32.mrb[113].mxu0 }
 0x7f6   :  { %v5523_v42 = vpop.f32.mrb[114].mxu0 }
 0x7f7   :  { %v10478_v25 = vadd.f32 %v15465_v50, %v5523_v42  ;;  %v5525_v19 = vpop.f32.mrb[115].mxu0  ;;  %10189 = vmatprep.mubr.f32.mxu1 %v10477_v3  ;;  %v15734_v42 = vcombine.low %v487_v0, %v491_v28  ;;  %v15736_v3 = vcombine.high %v495_v18, %v499_v62  ;;  %v507_v0 = vld [vmem:[%s17530_s0 + $0xeb8] sm:$0xff] }
 0x7f9   :  { %5735 = vmatmul.mubr.bf16.gmra.mrb[220].mxu0 %v15720_v36  ;;  %10190 = vmatmul.mubr.f32.gmra.mrb[36].mxu1 %v10478_v25  ;;  %18549 = vst [vmem:[#allocation486_spill] sm:$0xff] %v15734_v42  ;;  %18550 = vst [vmem:[#allocation487_spill] sm:$0xff] %v15736_v3  ;;  %v503_v36 = vld [vmem:[%s17530_s0 + $0xe98] sm:$0xff] }
 0x7fa   :  { %5742 = vmatprep.mubr.bf16.mxu0 %v15722_v58 }
 0x7fc   :  { %v5528_v20 = vpop.f32.mrb[116].mxu0 }
 0x7fd   :  { %v10479_v63 = vadd.f32 %v15465_v50, %v5528_v20  ;;  %v5530_v49 = vpop.f32.mrb[117].mxu0 }
 0x7fe   :  { %v5531_v19 = vpop.f32.mrb[118].mxu0 }
 0x7ff   :  { %v10480_v25 = vadd.f32 %v15465_v50, %v5531_v19  ;;  %v5533_v58 = vpop.f32.mrb[119].mxu0  ;;  %10192 = vmatprep.mubr.f32.mxu1 %v10479_v63  ;;  %v15748_v19 = vcombine.low %v495_v18, %v499_v62  ;;  %v15750_v63 = vcombine.high %v503_v36, %v507_v0  ;;  %v515_v18 = vld [vmem:[%s17530_s0 + $0xef8] sm:$0xff] }
 0x801   :  { %5743 = vmatmul.mubr.bf16.gmra.mrb[224].mxu0 %v15734_v42  ;;  %10193 = vmatmul.mubr.f32.gmra.mrb[38].mxu1 %v10480_v25  ;;  %18551 = vst [vmem:[#allocation488_spill] sm:$0xff] %v15748_v19  ;;  %18552 = vst [vmem:[#allocation489_spill] sm:$0xff] %v15750_v63  ;;  %v511_v42 = vld [vmem:[%s17530_s0 + $0xed8] sm:$0xff] }
 0x802   :  { %5750 = vmatprep.mubr.bf16.mxu0 %v15736_v3 }
 0x804   :  { %v5536_v28 = vpop.f32.mrb[120].mxu0 }
 0x805   :  { %v10481_v20 = vadd.f32 %v15465_v50, %v5536_v28  ;;  %v5538_v49 = vpop.f32.mrb[121].mxu0 }
 0x806   :  { %v5539_v58 = vpop.f32.mrb[122].mxu0 }
 0x807   :  { %v10482_v25 = vadd.f32 %v15465_v50, %v5539_v58  ;;  %v5541_v3 = vpop.f32.mrb[123].mxu0  ;;  %10195 = vmatprep.mubr.f32.mxu1 %v10481_v20  ;;  %v15762_v58 = vcombine.low %v503_v36, %v507_v0  ;;  %v15764_v20 = vcombine.high %v511_v42, %v515_v18  ;;  %v523_v36 = vld [vmem:[%s17530_s0 + $0xf38] sm:$0xff] }
 0x809   :  { %5751 = vmatmul.mubr.bf16.gmra.mrb[228].mxu0 %v15748_v19  ;;  %10196 = vmatmul.mubr.f32.gmra.mrb[40].mxu1 %v10482_v25  ;;  %18553 = vst [vmem:[#allocation490_spill] sm:$0xff] %v15762_v58  ;;  %18554 = vst [vmem:[#allocation491_spill] sm:$0xff] %v15764_v20  ;;  %v519_v19 = vld [vmem:[%s17530_s0 + $0xf18] sm:$0xff] }
 0x80a   :  { %5758 = vmatprep.mubr.bf16.mxu0 %v15750_v63 }
 0x80c   :  { %v5544_v62 = vpop.f32.mrb[124].mxu0 }
 0x80d   :  { %v10483_v28 = vadd.f32 %v15465_v50, %v5544_v62  ;;  %v5546_v49 = vpop.f32.mrb[125].mxu0 }
 0x80e   :  { %v5547_v3 = vpop.f32.mrb[126].mxu0 }
 0x80f   :  { %v10484_v25 = vadd.f32 %v15465_v50, %v5547_v3  ;;  %v5549_v63 = vpop.f32.mrb[127].mxu0  ;;  %10198 = vmatprep.mubr.f32.mxu1 %v10483_v28  ;;  %v15776_v3 = vcombine.low %v511_v42, %v515_v18  ;;  %v15778_v28 = vcombine.high %v519_v19, %v523_v36  ;;  %v531_v42 = vld [vmem:[%s17530_s0 + $0xf78] sm:$0xff] }
 0x811   :  { %5759 = vmatmul.mubr.bf16.gmra.mrb[232].mxu0 %v15762_v58  ;;  %10199 = vmatmul.mubr.f32.gmra.mrb[42].mxu1 %v10484_v25  ;;  %18555 = vst [vmem:[#allocation492_spill] sm:$0xff] %v15776_v3  ;;  %18556 = vst [vmem:[#allocation493_spill] sm:$0xff] %v15778_v28  ;;  %v527_v58 = vld [vmem:[%s17530_s0 + $0xf58] sm:$0xff] }
 0x812   :  { %5766 = vmatprep.mubr.bf16.mxu0 %v15764_v20 }
 0x814   :  { %v5552_v0 = vpop.f32.mrb[128].mxu0 }
 0x815   :  { %v10485_v62 = vadd.f32 %v15465_v50, %v5552_v0  ;;  %v5554_v49 = vpop.f32.mrb[129].mxu0 }
 0x816   :  { %v5555_v63 = vpop.f32.mrb[130].mxu0 }
 0x817   :  { %v10486_v25 = vadd.f32 %v15465_v50, %v5555_v63  ;;  %v5557_v20 = vpop.f32.mrb[131].mxu0  ;;  %10201 = vmatprep.mubr.f32.mxu1 %v10485_v62  ;;  %v15790_v63 = vcombine.low %v519_v19, %v523_v36  ;;  %v15792_v62 = vcombine.high %v527_v58, %v531_v42  ;;  %v539_v19 = vld [vmem:[%s17530_s0 + $0xfb8] sm:$0xff] }
 0x819   :  { %5767 = vmatmul.mubr.bf16.gmra.mrb[236].mxu0 %v15776_v3  ;;  %10202 = vmatmul.mubr.f32.gmra.mrb[44].mxu1 %v10486_v25  ;;  %18557 = vst [vmem:[#allocation494_spill] sm:$0xff] %v15790_v63  ;;  %18558 = vst [vmem:[#allocation495_spill] sm:$0xff] %v15792_v62  ;;  %v535_v3 = vld [vmem:[%s17530_s0 + $0xf98] sm:$0xff] }
 0x81a   :  { %5774 = vmatprep.mubr.bf16.mxu0 %v15778_v28 }
 0x81c   :  { %v5560_v18 = vpop.f32.mrb[132].mxu0 }
 0x81d   :  { %v10487_v0 = vadd.f32 %v15465_v50, %v5560_v18  ;;  %v5562_v49 = vpop.f32.mrb[133].mxu0 }
 0x81e   :  { %v5563_v20 = vpop.f32.mrb[134].mxu0 }
 0x81f   :  { %v10488_v25 = vadd.f32 %v15465_v50, %v5563_v20  ;;  %v5565_v28 = vpop.f32.mrb[135].mxu0  ;;  %10204 = vmatprep.mubr.f32.mxu1 %v10487_v0  ;;  %v15804_v20 = vcombine.low %v527_v58, %v531_v42  ;;  %v15806_v0 = vcombine.high %v535_v3, %v539_v19  ;;  %v547_v58 = vld [vmem:[%s17530_s0 + $0xff8] sm:$0xff] }
 0x821   :  { %5775 = vmatmul.mubr.bf16.gmra.mrb[240].mxu0 %v15790_v63  ;;  %10205 = vmatmul.mubr.f32.gmra.mrb[46].mxu1 %v10488_v25  ;;  %18559 = vst [vmem:[#allocation496_spill] sm:$0xff] %v15804_v20  ;;  %18560 = vst [vmem:[#allocation497_spill] sm:$0xff] %v15806_v0  ;;  %v543_v63 = vld [vmem:[%s17530_s0 + $0xfd8] sm:$0xff] }
 0x822   :  { %5782 = vmatprep.mubr.bf16.mxu0 %v15792_v62 }
 0x824   :  { %v5568_v36 = vpop.f32.mrb[136].mxu0 }
 0x825   :  { %v10489_v18 = vadd.f32 %v15465_v50, %v5568_v36  ;;  %v5570_v49 = vpop.f32.mrb[137].mxu0 }
 0x826   :  { %v5571_v28 = vpop.f32.mrb[138].mxu0 }
 0x827   :  { %v10490_v25 = vadd.f32 %v15465_v50, %v5571_v28  ;;  %v5573_v62 = vpop.f32.mrb[139].mxu0  ;;  %10207 = vmatprep.mubr.f32.mxu1 %v10489_v18  ;;  %v15818_v28 = vcombine.low %v535_v3, %v539_v19  ;;  %v15820_v18 = vcombine.high %v543_v63, %v547_v58 }
 0x829   :  { %5783 = vmatmul.mubr.bf16.gmra.mrb[244].mxu0 %v15804_v20  ;;  %10208 = vmatmul.mubr.f32.gmra.mrb[48].mxu1 %v10490_v25  ;;  %18561 = vst [vmem:[#allocation498_spill] sm:$0xff] %v15818_v28  ;;  %18562 = vst [vmem:[#allocation499_spill] sm:$0xff] %v15820_v18 }
 0x82a   :  { %5790 = vmatprep.mubr.bf16.mxu0 %v15806_v0 }
 0x82c   :  { %v5576_v42 = vpop.f32.mrb[140].mxu0 }
 0x82d   :  { %v10491_v36 = vadd.f32 %v15465_v50, %v5576_v42  ;;  %v5578_v49 = vpop.f32.mrb[141].mxu0  ;;  %v15826_v42 = vcombine.low %v543_v63, %v547_v58 }
 0x82e   :  { %v5579_v62 = vpop.f32.mrb[142].mxu0 }
 0x82f   :  { %v10492_v25 = vadd.f32 %v15465_v50, %v5579_v62  ;;  %v5581_v0 = vpop.f32.mrb[143].mxu0  ;;  %10210 = vmatprep.mubr.f32.mxu1 %v10491_v36  ;;  %18563 = vst [vmem:[#allocation500_spill] sm:$0xff] %v15826_v42 }
 0x830   :  { %v10421_v0 = vadd.f32 %v15465_v50, %v15302_v29 }
 0x831   :  { %5791 = vmatmul.mubr.bf16.gmra.mrb[248].mxu0 %v15818_v28  ;;  %10211 = vmatmul.mubr.f32.gmra.mrb[50].mxu1 %v10492_v25 }
 0x832   :  { %5798 = vmatprep.mubr.bf16.mxu0 %v15820_v18 }
 0x834   :  { %v5584_v20 = vpop.f32.mrb[144].mxu0 }
 0x835   :  { %v10493_v16 = vadd.f32 %v15465_v50, %v5584_v20  ;;  %v5586_v15 = vpop.f32.mrb[145].mxu0 }
 0x836   :  { %v5587_v3 = vpop.f32.mrb[146].mxu0 }
 0x837   :  { %v10494_v19 = vadd.f32 %v15465_v50, %v5587_v3  ;;  %v5589_v49 = vpop.f32.mrb[147].mxu0  ;;  %10213 = vmatprep.mubr.f32.mxu1 %v10493_v16  ;;  %v10422_v16 = vadd.f32 %v15465_v50, %v15306_v41 }
 0x838   :  { %v10424_v49 = vadd.f32 %v15465_v50, %v15322_v9  ;;  %v10426_v9 = vadd.f32 %v15465_v50, %v15338_v38 }
 0x839   :  { %5799 = vmatmul.mubr.bf16.gmra.mrb[252].mxu0 %v15826_v42  ;;  %10214 = vmatmul.mubr.f32.gmra.mrb[52].mxu1 %v10494_v19  ;;  %v10423_v19 = vadd.f32 %v15465_v50, %v15318_v32 }
 0x83a   :  { %10105 = vmatprep.mubr.f32.mxu0 %v10421_v0  ;;  %v10425_v0 = vadd.f32 %v15465_v50, %v15334_v55 }
 0x83c   :  { %v5592_v36 = vpop.f32.mrb[148].mxu0  ;;  %v15832_v62 = vpop.f32.mrb[0].mxu1 }
 0x83d   :  { %v10495_v20 = vadd.f32 %v15465_v50, %v5592_v36  ;;  %v5594_v15 = vpop.f32.mrb[149].mxu0  ;;  %v15835_v63 = vpop.f32.mrb[1].mxu1 }
 0x83e   :  { %v5595_v58 = vpop.f32.mrb[150].mxu0 }
 0x83f   :  { %v10496_v29 = vadd.f32 %v15465_v50, %v5595_v58  ;;  %v5597_v3 = vpop.f32.mrb[151].mxu0  ;;  %10216 = vmatprep.mubr.f32.mxu1 %v10495_v20 }
 0x841   :  { %10106 = vmatmul.mubr.f32.vlgmr.msra.gmra.mrb[0].mxu0 %v10422_v16  ;;  %10217 = vmatmul.mubr.f32.gmra.mrb[54].mxu1 %v10496_v29  ;;  %v10427_v29 = vadd.f32 %v15465_v50, %v15350_v46 }
 0x842   :  { %10108 = vmatprep.mubr.f32.mxu0 %v10423_v19  ;;  %v10428_v19 = vadd.f32 %v15465_v50, %v15354_v24  ;;  %v10430_v24 = vadd.f32 %v15465_v50, %v15370_v14 }
 0x844   :  { %v5600_v36 = vpop.f32.mrb[152].mxu0  ;;  %v15848_v15 = vpop.f32.mrb[2].mxu1 }
 0x845   :  { %v10497_v41 = vadd.f32 %v15465_v50, %v5600_v36  ;;  %v5602_v58 = vpop.f32.mrb[153].mxu0  ;;  %10109 = vmatmul.mubr.f32.gmra.mrb[2].mxu0 %v10424_v49  ;;  %v15851_v20 = vpop.f32.mrb[3].mxu1  ;;  %v10429_v49 = vadd.f32 %v15465_v50, %v15366_v17 }
 0x846   :  { %v5603_v3 = vpop.f32.mrb[154].mxu0  ;;  %10111 = vmatprep.mubr.f32.mxu0 %v10425_v0 }
 0x847   :  { %v10498_v16 = vadd.f32 %v15465_v50, %v5603_v3  ;;  %v5605_v55 = vpop.f32.mrb[155].mxu0  ;;  %10219 = vmatprep.mubr.f32.mxu1 %v10497_v41 }
 0x848   :  { %v10432_v55 = vadd.f32 %v15465_v50, %v15386_v7  ;;  %v10434_v7 = vadd.f32 %v15465_v50, %v15402_v59 }
 0x849   :  { %10112 = vmatmul.mubr.f32.gmra.mrb[4].mxu0 %v10426_v9  ;;  %10220 = vmatmul.mubr.f32.gmra.mrb[56].mxu1 %v10498_v16  ;;  %v10431_v16 = vadd.f32 %v15465_v50, %v15382_v54 }
 0x84a   :  { %10114 = vmatprep.mubr.f32.mxu0 %v10427_v29  ;;  %v10433_v29 = vadd.f32 %v15465_v50, %v15398_v33 }
 0x84c   :  { %v5608_v0 = vpop.f32.mrb[156].mxu0  ;;  %v15864_v36 = vpop.f32.mrb[4].mxu1 }
 0x84d   :  { %v10499_v38 = vadd.f32 %v15465_v50, %v5608_v0  ;;  %v5610_v58 = vpop.f32.mrb[157].mxu0  ;;  %10115 = vmatmul.mubr.f32.gmra.mrb[6].mxu0 %v10428_v19  ;;  %v15867_v41 = vpop.f32.mrb[5].mxu1 }
 0x84e   :  { %v5611_v3 = vpop.f32.mrb[158].mxu0  ;;  %10117 = vmatprep.mubr.f32.mxu0 %v10429_v49 }
 0x84f   :  { %v10500_v9 = vadd.f32 %v15465_v50, %v5611_v3  ;;  %v5613_v17 = vpop.f32.mrb[159].mxu0  ;;  %10222 = vmatprep.mubr.f32.mxu1 %v10499_v38 }
 0x850   :  { %v10437_v17 = vadd.f32 %v15465_v50, %v15430_v13 }
 0x851   :  { %10118 = vmatmul.mubr.f32.gmra.mrb[8].mxu0 %v10430_v24  ;;  %10223 = vmatmul.mubr.f32.gmra.mrb[58].mxu1 %v10500_v9  ;;  %v10435_v24 = vadd.f32 %v15465_v50, %v15414_v21  ;;  %v10436_v9 = vadd.f32 %v15465_v50, %v15418_v53  ;;  %v10438_v53 = vadd.f32 %v15465_v50, %v15434_v45 }
 0x852   :  { %10120 = vmatprep.mubr.f32.mxu0 %v10431_v16 }
 0x854   :  { %v5616_v19 = vpop.f32.mrb[160].mxu0  ;;  %v15880_v49 = vpop.f32.mrb[6].mxu1 }
 0x855   :  { %v10501_v14 = vadd.f32 %v15465_v50, %v5616_v19  ;;  %v5618_v0 = vpop.f32.mrb[161].mxu0  ;;  %10121 = vmatmul.mubr.f32.gmra.mrb[10].mxu0 %v10432_v55  ;;  %v15883_v38 = vpop.f32.mrb[7].mxu1 }
 0x856   :  { %v5619_v58 = vpop.f32.mrb[162].mxu0  ;;  %10123 = vmatprep.mubr.f32.mxu0 %v10433_v29 }
 0x857   :  { %v10502_v3 = vadd.f32 %v15465_v50, %v5619_v58  ;;  %v5621_v33 = vpop.f32.mrb[163].mxu0  ;;  %10225 = vmatprep.mubr.f32.mxu1 %v10501_v14  ;;  %v10439_v58 = vadd.f32 %v15465_v50, %v15446_v4 }
 0x859   :  { %10124 = vmatmul.mubr.f32.gmra.mrb[12].mxu0 %v10434_v7  ;;  %10226 = vmatmul.mubr.f32.gmra.mrb[60].mxu1 %v10502_v3  ;;  %v10440_v7 = vadd.f32 %v15465_v50, %v15450_v37 }
 0x85a   :  { %10126 = vmatprep.mubr.f32.mxu0 %v10435_v24 }
 0x85c   :  { %v5624_v16 = vpop.f32.mrb[164].mxu0  ;;  %v15896_v55 = vpop.f32.mrb[8].mxu1 }
 0x85d   :  { %v10503_v59 = vadd.f32 %v15465_v50, %v5624_v16  ;;  %v5626_v29 = vpop.f32.mrb[165].mxu0  ;;  %10127 = vmatmul.mubr.f32.gmra.mrb[14].mxu0 %v10436_v9  ;;  %v15899_v19 = vpop.f32.mrb[9].mxu1 }
 0x85e   :  { %v5627_v14 = vpop.f32.mrb[166].mxu0  ;;  %10129 = vmatprep.mubr.f32.mxu0 %v10437_v17 }
 0x85f   :  { %v10504_v0 = vadd.f32 %v15465_v50, %v5627_v14  ;;  %v5629_v13 = vpop.f32.mrb[167].mxu0  ;;  %10228 = vmatprep.mubr.f32.mxu1 %v10503_v59 }
 0x861   :  { %10130 = vmatmul.mubr.f32.gmra.mrb[16].mxu0 %v10438_v53  ;;  %10229 = vmatmul.mubr.f32.gmra.mrb[62].mxu1 %v10504_v0 }
 0x862   :  { %10132 = vmatprep.mubr.f32.mxu0 %v10439_v58 }
 0x864   :  { %v5632_v3 = vpop.f32.mrb[168].mxu0  ;;  %v15910_v33 = vpop.f32.mrb[10].mxu1 }
 0x865   :  { %v10505_v24 = vadd.f32 %v15465_v50, %v5632_v3  ;;  %v5634_v9 = vpop.f32.mrb[169].mxu0  ;;  %10133 = vmatmul.mubr.f32.gmra.mrb[18].mxu0 %v10440_v7  ;;  %v15913_v45 = vpop.f32.mrb[11].mxu1 }
 0x866   :  { %v5635_v17 = vpop.f32.mrb[170].mxu0 }
 0x867   :  { %v10506_v4 = vadd.f32 %v15465_v50, %v5635_v17  ;;  %v5637_v59 = vpop.f32.mrb[171].mxu0  ;;  %10231 = vmatprep.mubr.f32.mxu1 %v10505_v24 }
 0x869   :  { %10232 = vmatmul.mubr.f32.gmra.mrb[64].mxu1 %v10506_v4 }
 0x86c   :  { %v5640_v29 = vpop.f32.mrb[172].mxu0  ;;  %v15918_v37 = vpop.f32.mrb[12].mxu1 }
 0x86d   :  { %v10507_v14 = vadd.f32 %v15465_v50, %v5640_v29  ;;  %v5642_v53 = vpop.f32.mrb[173].mxu0  ;;  %v15921_v0 = vpop.f32.mrb[13].mxu1 }
 0x86e   :  { %v5643_v13 = vpop.f32.mrb[174].mxu0 }
 0x86f   :  { %v10508_v7 = vadd.f32 %v15465_v50, %v5643_v13  ;;  %v5645_v3 = vpop.f32.mrb[175].mxu0  ;;  %10234 = vmatprep.mubr.f32.mxu1 %v10507_v14 }
 0x871   :  { %10235 = vmatmul.mubr.f32.gmra.mrb[66].mxu1 %v10508_v7 }
 0x874   :  { %v5648_v9 = vpop.f32.mrb[176].mxu0  ;;  %v15926_v24 = vpop.f32.mrb[14].mxu1 }
 0x875   :  { %v10509_v17 = vadd.f32 %v15465_v50, %v5648_v9  ;;  %v5650_v4 = vpop.f32.mrb[177].mxu0  ;;  %v15929_v59 = vpop.f32.mrb[15].mxu1 }
 0x876   :  { %v5651_v29 = vpop.f32.mrb[178].mxu0 }
 0x877   :  { %v10510_v16 = vadd.f32 %v15465_v50, %v5651_v29  ;;  %v5653_v58 = vpop.f32.mrb[179].mxu0  ;;  %10237 = vmatprep.mubr.f32.mxu1 %v10509_v17 }
 0x879   :  { %10238 = vmatmul.mubr.f32.gmra.mrb[68].mxu1 %v10510_v16  ;;  %v15947_v16 = vld [vmem:[%s17532_s2] ss:$0 sm:$0xff] }
 0x87c   :  { %v5656_v13 = vpop.f32.mrb[180].mxu0  ;;  %v15934_v14 = vpop.f32.mrb[16].mxu1 }
 0x87d   :  { %v10511_v7 = vadd.f32 %v15465_v50, %v5656_v13  ;;  %v5658_v3 = vpop.f32.mrb[181].mxu0  ;;  %v15937_v21 = vpop.f32.mrb[17].mxu1 }
 0x87e   :  { %v5659_v9 = vpop.f32.mrb[182].mxu0 }
 0x87f   :  { %v10512_v54 = vadd.f32 %v15465_v50, %v5659_v9  ;;  %v5661_v53 = vpop.f32.mrb[183].mxu0  ;;  %10240 = vmatprep.mubr.f32.mxu1 %v10511_v7 }
 0x881   :  { %10241 = vmatmul.mubr.f32.gmra.mrb[70].mxu1 %v10512_v54 }
 0x884   :  { %v5664_v58 = vpop.f32.mrb[184].mxu0  ;;  %v15942_v17 = vpop.f32.mrb[18].mxu1 }
 0x885   :  { %v10513_v29 = vadd.f32 %v15947_v16, %v5664_v58  ;;  %v5666_v13 = vpop.f32.mrb[185].mxu0  ;;  %v15950_v3 = vpop.f32.mrb[19].mxu1 }
 0x886   :  { %v5667_v46 = vpop.f32.mrb[186].mxu0 }
 0x887   :  { %v10514_v53 = vadd.f32 %v15947_v16, %v5667_v46  ;;  %v5669_v54 = vpop.f32.mrb[187].mxu0  ;;  %10243 = vmatprep.mubr.f32.mxu1 %v10513_v29 }
 0x889   :  { %10244 = vmatmul.mubr.f32.gmra.mrb[72].mxu1 %v10514_v53 }
 0x88c   :  { %v5672_v7 = vpop.f32.mrb[188].mxu0  ;;  %v15955_v9 = vpop.f32.mrb[20].mxu1 }
 0x88d   :  { %v10515_v4 = vadd.f32 %v15947_v16, %v5672_v7  ;;  %v5674_v32 = vpop.f32.mrb[189].mxu0  ;;  %v15958_v25 = vpop.f32.mrb[21].mxu1 }
 0x88e   :  { %v5675_v58 = vpop.f32.mrb[190].mxu0 }
 0x88f   :  { %v10516_v42 = vadd.f32 %v15947_v16, %v5675_v58  ;;  %v5677_v50 = vpop.f32.mrb[191].mxu0  ;;  %10246 = vmatprep.mubr.f32.mxu1 %v10515_v4 }
 0x891   :  { %10247 = vmatmul.mubr.f32.gmra.mrb[74].mxu1 %v10516_v42 }
 0x894   :  { %v5680_v46 = vpop.f32.mrb[192].mxu0  ;;  %v15963_v29 = vpop.f32.mrb[22].mxu1 }
 0x895   :  { %v10517_v53 = vadd.f32 %v15947_v16, %v5680_v46  ;;  %v5682_v54 = vpop.f32.mrb[193].mxu0  ;;  %v15966_v18 = vpop.f32.mrb[23].mxu1 }
 0x896   :  { %v5683_v32 = vpop.f32.mrb[194].mxu0 }
 0x897   :  { %v10518_v28 = vadd.f32 %v15947_v16, %v5683_v32  ;;  %v5685_v13 = vpop.f32.mrb[195].mxu0  ;;  %10249 = vmatprep.mubr.f32.mxu1 %v10517_v53 }
 0x899   :  { %10250 = vmatmul.mubr.f32.gmra.mrb[76].mxu1 %v10518_v28 }
 0x89c   :  { %v5688_v50 = vpop.f32.mrb[196].mxu0  ;;  %v15971_v4 = vpop.f32.mrb[24].mxu1 }
 0x89d   :  { %v10519_v42 = vadd.f32 %v15947_v16, %v5688_v50  ;;  %v5690_v58 = vpop.f32.mrb[197].mxu0  ;;  %v15974_v12 = vpop.f32.mrb[25].mxu1 }
 0x89e   :  { %v5691_v46 = vpop.f32.mrb[198].mxu0 }
 0x89f   :  { %v10520_v11 = vadd.f32 %v15947_v16, %v5691_v46  ;;  %v5693_v7 = vpop.f32.mrb[199].mxu0  ;;  %10252 = vmatprep.mubr.f32.mxu1 %v10519_v42 }
 0x8a1   :  { %10253 = vmatmul.mubr.f32.gmra.mrb[78].mxu1 %v10520_v11 }
 0x8a4   :  { %v5696_v13 = vpop.f32.mrb[200].mxu0  ;;  %v15979_v53 = vpop.f32.mrb[26].mxu1 }
 0x8a5   :  { %v10521_v28 = vadd.f32 %v15947_v16, %v5696_v13  ;;  %v5698_v32 = vpop.f32.mrb[201].mxu0  ;;  %v15982_v6 = vpop.f32.mrb[27].mxu1 }
 0x8a6   :  { %v5699_v50 = vpop.f32.mrb[202].mxu0 }
 0x8a7   :  { %v10522_v5 = vadd.f32 %v15947_v16, %v5699_v50  ;;  %v5701_v54 = vpop.f32.mrb[203].mxu0  ;;  %10255 = vmatprep.mubr.f32.mxu1 %v10521_v28 }
 0x8a9   :  { %10256 = vmatmul.mubr.f32.gmra.mrb[80].mxu1 %v10522_v5 }
 0x8ac   :  { %v5704_v7 = vpop.f32.mrb[204].mxu0  ;;  %v15987_v42 = vpop.f32.mrb[28].mxu1 }
 0x8ad   :  { %v10523_v11 = vadd.f32 %v15947_v16, %v5704_v7  ;;  %v5706_v46 = vpop.f32.mrb[205].mxu0  ;;  %v15990_v2 = vpop.f32.mrb[29].mxu1 }
 0x8ae   :  { %v5707_v13 = vpop.f32.mrb[206].mxu0 }
 0x8af   :  { %v10524_v1 = vadd.f32 %v15947_v16, %v5707_v13  ;;  %v5709_v58 = vpop.f32.mrb[207].mxu0  ;;  %10258 = vmatprep.mubr.f32.mxu1 %v10523_v11 }
 0x8b1   :  { %10259 = vmatmul.mubr.f32.gmra.mrb[82].mxu1 %v10524_v1 }
 0x8b4   :  { %v5712_v54 = vpop.f32.mrb[208].mxu0  ;;  %v15995_v28 = vpop.f32.mrb[30].mxu1 }
 0x8b5   :  { %v10525_v5 = vadd.f32 %v15947_v16, %v5712_v54  ;;  %v5714_v50 = vpop.f32.mrb[209].mxu0  ;;  %v15998_v61 = vpop.f32.mrb[31].mxu1 }
 0x8b6   :  { %v5715_v7 = vpop.f32.mrb[210].mxu0 }
 0x8b7   :  { %v10526_v60 = vadd.f32 %v15947_v16, %v5715_v7  ;;  %v5717_v32 = vpop.f32.mrb[211].mxu0  ;;  %10261 = vmatprep.mubr.f32.mxu1 %v10525_v5 }
 0x8b9   :  { %10262 = vmatmul.mubr.f32.gmra.mrb[84].mxu1 %v10526_v60 }
 0x8bc   :  { %v5720_v58 = vpop.f32.mrb[212].mxu0  ;;  %v16003_v11 = vpop.f32.mrb[32].mxu1 }
 0x8bd   :  { %v10527_v1 = vadd.f32 %v15947_v16, %v5720_v58  ;;  %v5722_v13 = vpop.f32.mrb[213].mxu0  ;;  %v16006_v57 = vpop.f32.mrb[33].mxu1 }
 0x8be   :  { %v5723_v54 = vpop.f32.mrb[214].mxu0 }
 0x8bf   :  { %v10528_v56 = vadd.f32 %v15947_v16, %v5723_v54  ;;  %v5725_v46 = vpop.f32.mrb[215].mxu0  ;;  %10264 = vmatprep.mubr.f32.mxu1 %v10527_v1 }
 0x8c1   :  { %10265 = vmatmul.mubr.f32.gmra.mrb[86].mxu1 %v10528_v56 }
 0x8c4   :  { %v5728_v32 = vpop.f32.mrb[216].mxu0  ;;  %v16011_v5 = vpop.f32.mrb[34].mxu1 }
 0x8c5   :  { %18564 = vst [vmem:[#allocation501_spill] sm:$0xff] %v16011_v5  ;;  %v10529_v60 = vadd.f32 %v15947_v16, %v5728_v32  ;;  %v5730_v7 = vpop.f32.mrb[217].mxu0  ;;  %v16014_v52 = vpop.f32.mrb[35].mxu1 }
 0x8c6   :  { %18565 = vst [vmem:[#allocation502_spill] sm:$0xff] %v16014_v52  ;;  %v5731_v58 = vpop.f32.mrb[218].mxu0 }
 0x8c7   :  { %v10530_v51 = vadd.f32 %v15947_v16, %v5731_v58  ;;  %v5733_v50 = vpop.f32.mrb[219].mxu0  ;;  %10267 = vmatprep.mubr.f32.mxu1 %v10529_v60 }
 0x8c9   :  { %10268 = vmatmul.mubr.f32.gmra.mrb[88].mxu1 %v10530_v51 }
 0x8cc   :  { %v5736_v46 = vpop.f32.mrb[220].mxu0  ;;  %v16019_v1 = vpop.f32.mrb[36].mxu1 }
 0x8cd   :  { %18566 = vst [vmem:[#allocation503_spill] sm:$0xff] %v16019_v1  ;;  %v10531_v56 = vadd.f32 %v15947_v16, %v5736_v46  ;;  %v5738_v54 = vpop.f32.mrb[221].mxu0  ;;  %v16022_v48 = vpop.f32.mrb[37].mxu1 }
 0x8ce   :  { %18567 = vst [vmem:[#allocation504_spill] sm:$0xff] %v16022_v48  ;;  %v5739_v32 = vpop.f32.mrb[222].mxu0 }
 0x8cf   :  { %v10532_v47 = vadd.f32 %v15947_v16, %v5739_v32  ;;  %v5741_v13 = vpop.f32.mrb[223].mxu0  ;;  %10270 = vmatprep.mubr.f32.mxu1 %v10531_v56 }
 0x8d1   :  { %10271 = vmatmul.mubr.f32.gmra.mrb[90].mxu1 %v10532_v47 }
 0x8d4   :  { %v5744_v50 = vpop.f32.mrb[224].mxu0  ;;  %v16027_v60 = vpop.f32.mrb[38].mxu1 }
 0x8d5   :  { %18568 = vst [vmem:[#allocation505_spill] sm:$0xff] %v16027_v60  ;;  %v10533_v51 = vadd.f32 %v15947_v16, %v5744_v50  ;;  %v5746_v58 = vpop.f32.mrb[225].mxu0  ;;  %v16030_v52 = vpop.f32.mrb[39].mxu1 }
 0x8d6   :  { %18569 = vst [vmem:[#allocation506_spill] sm:$0xff] %v16030_v52  ;;  %v5747_v46 = vpop.f32.mrb[226].mxu0 }
 0x8d7   :  { %v10534_v5 = vadd.f32 %v15947_v16, %v5747_v46  ;;  %v5749_v7 = vpop.f32.mrb[227].mxu0  ;;  %10273 = vmatprep.mubr.f32.mxu1 %v10533_v51 }
 0x8d9   :  { %10274 = vmatmul.mubr.f32.gmra.mrb[92].mxu1 %v10534_v5 }
 0x8dc   :  { %v5752_v13 = vpop.f32.mrb[228].mxu0  ;;  %v16035_v56 = vpop.f32.mrb[40].mxu1 }
 0x8dd   :  { %18570 = vst [vmem:[#allocation507_spill] sm:$0xff] %v16035_v56  ;;  %v10535_v47 = vadd.f32 %v15947_v16, %v5752_v13  ;;  %v5754_v32 = vpop.f32.mrb[229].mxu0  ;;  %v16038_v48 = vpop.f32.mrb[41].mxu1 }
 0x8de   :  { %18571 = vst [vmem:[#allocation508_spill] sm:$0xff] %v16038_v48  ;;  %v5755_v50 = vpop.f32.mrb[230].mxu0 }
 0x8df   :  { %v10536_v1 = vadd.f32 %v15947_v16, %v5755_v50  ;;  %v5757_v54 = vpop.f32.mrb[231].mxu0  ;;  %10276 = vmatprep.mubr.f32.mxu1 %v10535_v47 }
 0x8e1   :  { %10277 = vmatmul.mubr.f32.gmra.mrb[94].mxu1 %v10536_v1 }
 0x8e4   :  { %v5760_v7 = vpop.f32.mrb[232].mxu0  ;;  %v16043_v51 = vpop.f32.mrb[42].mxu1 }
 0x8e5   :  { %18572 = vst [vmem:[#allocation509_spill] sm:$0xff] %v16043_v51  ;;  %v10537_v5 = vadd.f32 %v15947_v16, %v5760_v7  ;;  %v5762_v46 = vpop.f32.mrb[233].mxu0  ;;  %v16046_v52 = vpop.f32.mrb[43].mxu1 }
 0x8e6   :  { %18573 = vst [vmem:[#allocation510_spill] sm:$0xff] %v16046_v52  ;;  %v5763_v13 = vpop.f32.mrb[234].mxu0 }
 0x8e7   :  { %v10538_v60 = vadd.f32 %v15947_v16, %v5763_v13  ;;  %v5765_v58 = vpop.f32.mrb[235].mxu0  ;;  %10279 = vmatprep.mubr.f32.mxu1 %v10537_v5 }
 0x8e9   :  { %10280 = vmatmul.mubr.f32.gmra.mrb[96].mxu1 %v10538_v60 }
 0x8ec   :  { %v5768_v54 = vpop.f32.mrb[236].mxu0  ;;  %v16051_v47 = vpop.f32.mrb[44].mxu1 }
 0x8ed   :  { %18574 = vst [vmem:[#allocation511_spill] sm:$0xff] %v16051_v47  ;;  %v10539_v1 = vadd.f32 %v15947_v16, %v5768_v54  ;;  %v5770_v50 = vpop.f32.mrb[237].mxu0  ;;  %v16054_v48 = vpop.f32.mrb[45].mxu1 }
 0x8ee   :  { %18575 = vst [vmem:[#allocation512_spill] sm:$0xff] %v16054_v48  ;;  %v5771_v7 = vpop.f32.mrb[238].mxu0 }
 0x8ef   :  { %v10540_v56 = vadd.f32 %v15947_v16, %v5771_v7  ;;  %v5773_v32 = vpop.f32.mrb[239].mxu0  ;;  %10282 = vmatprep.mubr.f32.mxu1 %v10539_v1 }
 0x8f1   :  { %10283 = vmatmul.mubr.f32.gmra.mrb[98].mxu1 %v10540_v56 }
 0x8f4   :  { %v5776_v58 = vpop.f32.mrb[240].mxu0  ;;  %v16059_v5 = vpop.f32.mrb[46].mxu1 }
 0x8f5   :  { %18576 = vst [vmem:[#allocation513_spill] sm:$0xff] %v16059_v5  ;;  %v10541_v60 = vadd.f32 %v15947_v16, %v5776_v58  ;;  %v5778_v13 = vpop.f32.mrb[241].mxu0  ;;  %v16062_v52 = vpop.f32.mrb[47].mxu1 }
 0x8f6   :  { %18577 = vst [vmem:[#allocation514_spill] sm:$0xff] %v16062_v52  ;;  %v5779_v54 = vpop.f32.mrb[242].mxu0 }
 0x8f7   :  { %v10542_v51 = vadd.f32 %v15947_v16, %v5779_v54  ;;  %v5781_v46 = vpop.f32.mrb[243].mxu0  ;;  %10285 = vmatprep.mubr.f32.mxu1 %v10541_v60 }
 0x8f9   :  { %10286 = vmatmul.mubr.f32.gmra.mrb[100].mxu1 %v10542_v51 }
 0x8fc   :  { %v5784_v32 = vpop.f32.mrb[244].mxu0  ;;  %v16067_v1 = vpop.f32.mrb[48].mxu1 }
 0x8fd   :  { %18578 = vst [vmem:[#allocation515_spill] sm:$0xff] %v16067_v1  ;;  %v10543_v56 = vadd.f32 %v15947_v16, %v5784_v32  ;;  %v5786_v7 = vpop.f32.mrb[245].mxu0  ;;  %v16070_v48 = vpop.f32.mrb[49].mxu1 }
 0x8fe   :  { %18579 = vst [vmem:[#allocation516_spill] sm:$0xff] %v16070_v48  ;;  %v5787_v58 = vpop.f32.mrb[246].mxu0 }
 0x8ff   :  { %v10544_v47 = vadd.f32 %v15947_v16, %v5787_v58  ;;  %v5789_v50 = vpop.f32.mrb[247].mxu0  ;;  %10288 = vmatprep.mubr.f32.mxu1 %v10543_v56 }
 0x901   :  { %10289 = vmatmul.mubr.f32.gmra.mrb[102].mxu1 %v10544_v47 }
 0x904   :  { %v5792_v46 = vpop.f32.mrb[248].mxu0  ;;  %v16075_v60 = vpop.f32.mrb[50].mxu1 }
 0x905   :  { %v10545_v51 = vadd.f32 %v15947_v16, %v5792_v46  ;;  %v5794_v54 = vpop.f32.mrb[249].mxu0  ;;  %v16078_v52 = vpop.f32.mrb[51].mxu1 }
 0x906   :  { %18580 = vst [vmem:[#allocation517_spill] sm:$0xff] %v16078_v52  ;;  %v5795_v32 = vpop.f32.mrb[250].mxu0 }
 0x907   :  { %v10546_v5 = vadd.f32 %v15947_v16, %v5795_v32  ;;  %v5797_v13 = vpop.f32.mrb[251].mxu0  ;;  %10291 = vmatprep.mubr.f32.mxu1 %v10545_v51 }
 0x909   :  { %10292 = vmatmul.mubr.f32.gmra.mrb[104].mxu1 %v10546_v5 }
 0x90c   :  { %v5800_v50 = vpop.f32.mrb[252].mxu0  ;;  %v16083_v56 = vpop.f32.mrb[52].mxu1 }
 0x90d   :  { %v10547_v47 = vadd.f32 %v15947_v16, %v5800_v50  ;;  %v5802_v58 = vpop.f32.mrb[253].mxu0  ;;  %v16086_v48 = vpop.f32.mrb[53].mxu1 }
 0x90e   :  { %v5803_v46 = vpop.f32.mrb[254].mxu0 }
 0x90f   :  { %v10548_v1 = vadd.f32 %v15947_v16, %v5803_v46  ;;  %v5805_v7 = vpop.f32.mrb[255].mxu0  ;;  %10294 = vmatprep.mubr.f32.mxu1 %v10547_v47 }
 0x911   :  { %10295 = vmatmul.mubr.f32.gmra.mrb[106].mxu1 %v10548_v1 }
 0x912   :  { %6631 = vmatprep.mubr.bf16.mxu1 %v12380_v8 }
 0x914   :  { %v10107_v5 = vpop.f32.mrb[0].mxu0  ;;  %v16092_v13 = vpop.f32.mrb[54].mxu1 }
 0x915   :  { %18581 = vst [vmem:[#allocation518_spill] sm:$0xff] %v16092_v13  ;;  %v5889_v51 = vpop.f32.mrb[1].mxu0  ;;  %v16094_v32 = vpop.f32.mrb[55].mxu1 }
 0x916   :  { %18582 = vst [vmem:[#allocation519_spill] sm:$0xff] %v16094_v32  ;;  %v6528_v50 = vpack.c.bf16 %v10107_v5, %v5889_v51 }
 0x918   :  { %v10110_v52 = vpop.f32.mrb[2].mxu0  ;;  %6600 = vmatpush1.bf16.msra.mxu1 %v6528_v50 }
 0x919   :  { %v5899_v54 = vpop.f32.mrb[3].mxu0  ;;  %6601 = vmatprep.subr.bf16.mxu1 %v18108_v10 }
 0x91a   :  { %v6529_v16 = vpack.c.bf16 %v10110_v52, %v5899_v54 }
 0x91c   :  { %v10113_v7 = vpop.f32.mrb[4].mxu0  ;;  %v16099_v1 = vpop.f32.mrb[56].mxu1  ;;  %6602 = vmatpush1.bf16.msra.mxu1 %v6529_v16 }
 0x91d   :  { %18583 = vst [vmem:[#allocation520_spill] sm:$0xff] %v16099_v1  ;;  %v5909_v8 = vpop.f32.mrb[5].mxu0  ;;  %v16101_v47 = vpop.f32.mrb[57].mxu1  ;;  %6603 = vmatprep.subr.bf16.mxu1 %v18108_v10 }
 0x91e   :  { %18584 = vst [vmem:[#allocation521_spill] sm:$0xff] %v16101_v47  ;;  %v6530_v46 = vpack.c.bf16 %v10113_v7, %v5909_v8 }
 0x920   :  { %v10116_v51 = vpop.f32.mrb[6].mxu0  ;;  %6604 = vmatpush1.bf16.msra.mxu1 %v6530_v46 }
 0x921   :  { %v5919_v50 = vpop.f32.mrb[7].mxu0  ;;  %6605 = vmatprep.subr.bf16.mxu1 %v18108_v10 }
 0x922   :  { %v6531_v58 = vpack.c.bf16 %v10116_v51, %v5919_v50 }
 0x924   :  { %v10119_v52 = vpop.f32.mrb[8].mxu0  ;;  %v16107_v54 = vpop.f32.mrb[58].mxu1  ;;  %6606 = vmatpush1.bf16.msra.mxu1 %v6531_v58 }
 0x925   :  { %18585 = vst [vmem:[#allocation522_spill] sm:$0xff] %v16107_v54  ;;  %v5929_v16 = vpop.f32.mrb[9].mxu0  ;;  %v16109_v32 = vpop.f32.mrb[59].mxu1  ;;  %6607 = vmatprep.subr.bf16.mxu1 %v18108_v10 }
 0x926   :  { %18586 = vst [vmem:[#allocation523_spill] sm:$0xff] %v16109_v32  ;;  %v6532_v13 = vpack.c.bf16 %v10119_v52, %v5929_v16 }
 0x928   :  { %v10122_v8 = vpop.f32.mrb[10].mxu0  ;;  %6608 = vmatpush1.bf16.msra.mxu1 %v6532_v13 }
 0x929   :  { %v5939_v46 = vpop.f32.mrb[11].mxu0  ;;  %6609 = vmatprep.subr.bf16.mxu1 %v18108_v10 }
 0x92a   :  { %v6533_v5 = vpack.c.bf16 %v10122_v8, %v5939_v46 }
 0x92c   :  { %v10125_v51 = vpop.f32.mrb[12].mxu0  ;;  %v16115_v50 = vpop.f32.mrb[60].mxu1  ;;  %6610 = vmatpush1.bf16.msra.mxu1 %v6533_v5 }
 0x92d   :  { %v5949_v58 = vpop.f32.mrb[13].mxu0  ;;  %v16117_v47 = vpop.f32.mrb[61].mxu1  ;;  %6611 = vmatprep.subr.bf16.mxu1 %v18108_v10 }
 0x92e   :  { %v6534_v1 = vpack.c.bf16 %v10125_v51, %v5949_v58 }
 0x930   :  { %v10128_v16 = vpop.f32.mrb[14].mxu0  ;;  %6612 = vmatpush1.bf16.msra.mxu1 %v6534_v1 }
 0x931   :  { %v5959_v13 = vpop.f32.mrb[15].mxu0  ;;  %6613 = vmatprep.subr.bf16.mxu1 %v18108_v10 }
 0x932   :  { %v6535_v7 = vpack.c.bf16 %v10128_v16, %v5959_v13 }
 0x934   :  { %v10131_v8 = vpop.f32.mrb[16].mxu0  ;;  %v16123_v46 = vpop.f32.mrb[62].mxu1  ;;  %6614 = vmatpush1.bf16.msra.mxu1 %v6535_v7  ;;  %v18652_v7 = vld [vmem:[#allocation35_spill] sm:$0xff] }
 0x935   :  { %v5969_v5 = vpop.f32.mrb[17].mxu0  ;;  %v16125_v32 = vpop.f32.mrb[63].mxu1  ;;  %6615 = vmatprep.subr.bf16.mxu1 %v18108_v10 }
 0x936   :  { %v6536_v54 = vpack.c.bf16 %v10131_v8, %v5969_v5  ;;  %v18587_v8 = vpack.c.bf16 %v15832_v62, %v15835_v63  ;;  %v18588_v5 = vpack.c.bf16 %v15848_v15, %v15851_v20  ;;  %v18590_v63 = vpack.c.bf16 %v15880_v49, %v15883_v38  ;;  %v18646_v38 = vld [vmem:[#allocation29_spill] sm:$0xff] }
 0x937   :  { %v18650_v20 = vld [vmem:[#allocation33_spill] sm:$0xff] }
 0x938   :  { %v10134_v58 = vpop.f32.mrb[18].mxu0  ;;  %6616 = vmatpush1.bf16.msra.mxu1 %v6536_v54 }
 0x939   :  { %v5979_v1 = vpop.f32.mrb[19].mxu0  ;;  %6617 = vmatprep.subr.bf16.mxu1 %v18108_v10 }
 0x93a   :  { %v6537_v52 = vpack.c.bf16 %v10134_v58, %v5979_v1  ;;  %v18589_v1 = vpack.c.bf16 %v15864_v36, %v15867_v41  ;;  %v18592_v41 = vpack.c.bf16 %v15910_v33, %v15913_v45  ;;  %v18594_v33 = vpack.c.bf16 %v15926_v24, %v15929_v59  ;;  %v18651_v58 = vld [vmem:[#allocation34_spill] sm:$0xff] }
 0x93b   :  { %v18598_v59 = vpack.c.bf16 %v15963_v29, %v15966_v18  ;;  %v18600_v18 = vpack.c.bf16 %v15979_v53, %v15982_v6  ;;  %v18602_v6 = vpack.c.bf16 %v15995_v28, %v15998_v61  ;;  %v18604_v61 = vld [vmem:[#allocation501_spill] sm:$0xff]  ;;  %v18607_v53 = vld [vmem:[#allocation2_spill] sm:$0xff]  ;;  %v18611_v28 = vld [vmem:[#allocation3_spill] sm:$0xff] }
 0x93c   :  { %v16131_v16 = vpop.f32.mrb[64].mxu1  ;;  %6618 = vmatpush1.bf16.msra.mxu1 %v6537_v52 }
 0x93d   :  { %v16133_v13 = vpop.f32.mrb[65].mxu1  ;;  %6619 = vmatprep.subr.bf16.mxu1 %v18108_v10 }
 0x940   :  { %6620 = vmatpush1.bf16.msra.mxu1 %v18587_v8  ;;  %v18591_v8 = vpack.c.bf16 %v15896_v55, %v15899_v19  ;;  %v18593_v55 = vpack.c.bf16 %v15918_v37, %v15921_v0  ;;  %v18596_v0 = vpack.c.bf16 %v15942_v17, %v15950_v3 }
 0x941   :  { %6621 = vmatprep.subr.bf16.mxu1 %v18108_v10 }
 0x944   :  { %v16142_v54 = vpop.f32.mrb[66].mxu1  ;;  %6622 = vmatpush1.bf16.msra.mxu1 %v18588_v5  ;;  %v18612_v5 = vld [vmem:[#allocation505_spill] sm:$0xff] }
 0x945   :  { %v16147_v52 = vpop.f32.mrb[67].mxu1  ;;  %6623 = vmatprep.subr.bf16.mxu1 %v18108_v10 }
 0x948   :  { %6624 = vmatpush1.bf16.msra.mxu1 %v18589_v1  ;;  %v18613_v1 = vld [vmem:[#allocation506_spill] sm:$0xff] }
 0x949   :  { %6625 = vmatprep.subr.bf16.mxu1 %v18108_v10 }
 0x94c   :  { %v16156_v62 = vpop.f32.mrb[68].mxu1  ;;  %6626 = vmatpush1.bf16.msra.mxu1 %v18590_v63  ;;  %v18614_v63 = vpack.c.bf16 %v18612_v5, %v18613_v1 }
 0x94d   :  { %v16161_v15 = vpop.f32.mrb[69].mxu1  ;;  %6627 = vmatprep.subr.bf16.mxu1 %v18108_v10 }
 0x950   :  { %6628 = vmatpush1.bf16.msra.mxu1 %v18591_v8 }
 0x951   :  { %6629 = vmatprep.subr.bf16.mxu1 %v18108_v10 }
 0x954   :  { %v16170_v36 = vpop.f32.mrb[70].mxu1  ;;  %6630 = vmatpush1.bf16.msra.mxu1 %v18592_v41 }
 0x955   :  { %v16175_v49 = vpop.f32.mrb[71].mxu1  ;;  %7144 = vmatprep.subr.bf16.mxu1 %v18108_v10 }
 0x957   :  { %6632 = vmatmul.mubr.bf16.vlgmr.msra.gmra.mrb[108].mxu1 %v12433_v22  ;;  %v18645_v22 = vld [vmem:[#allocation28_spill] sm:$0xff] }
 0x958   :  { %7145 = vmatpush1.bf16.msra.mxu1 %v18593_v55  ;;  %6639 = vmatprep.mubr.bf16.mxu1 %v12435_v23  ;;  %v18595_v23 = vpack.c.bf16 %v15934_v14, %v15937_v21  ;;  %v18615_v55 = vld [vmem:[#allocation4_spill] sm:$0xff] }
 0x959   :  { %7146 = vmatprep.subr.bf16.mxu1 %v18108_v10 }
 0x95c   :  { %v16186_v19 = vpop.f32.mrb[72].mxu1  ;;  %7147 = vmatpush1.bf16.msra.mxu1 %v18594_v33  ;;  %v18616_v33 = vld [vmem:[#allocation507_spill] sm:$0xff] }
 0x95d   :  { %v16191_v45 = vpop.f32.mrb[73].mxu1  ;;  %7148 = vmatprep.subr.bf16.mxu1 %v18108_v10 }
 0x95f   :  { %6640 = vmatmul.mubr.bf16.gmra.mrb[112].mxu1 %v12446_v26 }
 0x960   :  { %7149 = vmatpush1.bf16.msra.mxu1 %v18595_v23  ;;  %6647 = vmatprep.mubr.bf16.mxu1 %v12448_v27  ;;  %v18597_v27 = vpack.c.bf16 %v15955_v9, %v15958_v25  ;;  %v18605_v9 = vld [vmem:[#allocation502_spill] sm:$0xff]  ;;  %v18617_v23 = vld [vmem:[#allocation508_spill] sm:$0xff] }
 0x961   :  { %7150 = vmatprep.subr.bf16.mxu1 %v18108_v10  ;;  %v18606_v29 = vpack.c.bf16 %v18604_v61, %v18605_v9  ;;  %v18623_v61 = vld [vmem:[#allocation6_spill] sm:$0xff]  ;;  %v18624_v9 = vld [vmem:[#allocation7_spill] sm:$0xff] }
 0x964   :  { %v16202_v37 = vpop.f32.mrb[74].mxu1  ;;  %7151 = vmatpush1.bf16.msra.mxu1 %v18596_v0  ;;  %v18618_v0 = vpack.c.bf16 %v18616_v33, %v18617_v23 }
 0x965   :  { %v16207_v24 = vpop.f32.mrb[75].mxu1  ;;  %7152 = vmatprep.subr.bf16.mxu1 %v18108_v10 }
 0x967   :  { %6648 = vmatmul.mubr.bf16.gmra.mrb[116].mxu1 %v12458_v30 }
 0x968   :  { %7153 = vmatpush1.bf16.msra.mxu1 %v18597_v27  ;;  %6655 = vmatprep.mubr.bf16.mxu1 %v12460_v31  ;;  %v18599_v31 = vpack.c.bf16 %v15971_v4, %v15974_v12  ;;  %v18619_v27 = vld [vmem:[#allocation5_spill] sm:$0xff] }
 0x969   :  { %7154 = vmatprep.subr.bf16.mxu1 %v18108_v10 }
 0x96c   :  { %v16218_v21 = vpop.f32.mrb[76].mxu1  ;;  %7155 = vmatpush1.bf16.msra.mxu1 %v18598_v59 }
 0x96d   :  { %v16223_v14 = vpop.f32.mrb[77].mxu1  ;;  %7156 = vmatprep.subr.bf16.mxu1 %v18108_v10 }
 0x96f   :  { %6656 = vmatmul.mubr.bf16.gmra.mrb[120].mxu1 %v12470_v34 }
 0x970   :  { %7157 = vmatpush1.bf16.msra.mxu1 %v18599_v31  ;;  %6663 = vmatprep.mubr.bf16.mxu1 %v12472_v35  ;;  %v18601_v35 = vpack.c.bf16 %v15987_v42, %v15990_v2  ;;  %v18609_v42 = vld [vmem:[#allocation504_spill] sm:$0xff]  ;;  %v18620_v31 = vld [vmem:[#allocation509_spill] sm:$0xff] }
 0x971   :  { %7158 = vmatprep.subr.bf16.mxu1 %v18108_v10 }
 0x974   :  { %v16234_v25 = vpop.f32.mrb[78].mxu1  ;;  %7159 = vmatpush1.bf16.msra.mxu1 %v18600_v18  ;;  %v18621_v18 = vld [vmem:[#allocation510_spill] sm:$0xff] }
 0x975   :  { %v16239_v17 = vpop.f32.mrb[79].mxu1  ;;  %7160 = vmatprep.subr.bf16.mxu1 %v18108_v10 }
 0x977   :  { %6664 = vmatmul.mubr.bf16.gmra.mrb[124].mxu1 %v12486_v39 }
 0x978   :  { %7161 = vmatpush1.bf16.msra.mxu1 %v18601_v35  ;;  %6671 = vmatprep.mubr.bf16.mxu1 %v12488_v40  ;;  %v18603_v40 = vpack.c.bf16 %v16003_v11, %v16006_v57  ;;  %v18608_v57 = vld [vmem:[#allocation503_spill] sm:$0xff]  ;;  %v18622_v35 = vpack.c.bf16 %v18620_v31, %v18621_v18  ;;  %v18630_v31 = vld [vmem:[#allocation13_spill] sm:$0xff] }
 0x979   :  { %7162 = vmatprep.subr.bf16.mxu1 %v18108_v10 }
 0x97c   :  { %v16250_v12 = vpop.f32.mrb[80].mxu1  ;;  %7163 = vmatpush1.bf16.msra.mxu1 %v18602_v6 }
 0x97d   :  { %v16255_v3 = vpop.f32.mrb[81].mxu1  ;;  %7164 = vmatprep.subr.bf16.mxu1 %v18108_v10 }
 0x97f   :  { %6672 = vmatmul.mubr.bf16.gmra.mrb[128].mxu1 %v12498_v43 }
 0x980   :  { %7165 = vmatpush1.bf16.msra.mxu1 %v18603_v40  ;;  %6679 = vmatprep.mubr.bf16.mxu1 %v12500_v44  ;;  %v18610_v44 = vpack.c.bf16 %v18608_v57, %v18609_v42  ;;  %v18625_v42 = vld [vmem:[#allocation8_spill] sm:$0xff] }
 0x981   :  { %7166 = vmatprep.subr.bf16.mxu1 %v18108_v10 }
 0x984   :  { %v16266_v2 = vpop.f32.mrb[82].mxu1  ;;  %7167 = vmatpush1.bf16.msra.mxu1 %v18606_v29 }
 0x985   :  { %v16271_v4 = vpop.f32.mrb[83].mxu1  ;;  %7168 = vmatprep.subr.bf16.mxu1 %v18108_v10 }
 0x987   :  { %6680 = vmatmul.mubr.bf16.gmra.mrb[132].mxu1 %v18607_v53 }
 0x988   :  { %7169 = vmatpush1.bf16.msra.mxu1 %v18610_v44  ;;  %6687 = vmatprep.mubr.bf16.mxu1 %v18611_v28  ;;  %v18626_v44 = vld [vmem:[#allocation9_spill] sm:$0xff] }
 0x989   :  { %7170 = vmatprep.subr.bf16.mxu1 %v18108_v10 }
 0x98c   :  { %v16282_v11 = vpop.f32.mrb[84].mxu1  ;;  %7171 = vmatpush1.bf16.msra.mxu1 %v18614_v63  ;;  %v18627_v63 = vld [vmem:[#allocation10_spill] sm:$0xff] }
 0x98d   :  { %v16287_v8 = vpop.f32.mrb[85].mxu1  ;;  %7172 = vmatprep.subr.bf16.mxu1 %v18108_v10 }
 0x98f   :  { %6688 = vmatmul.mubr.bf16.gmra.mrb[136].mxu1 %v18615_v55  ;;  %v18628_v55 = vld [vmem:[#allocation11_spill] sm:$0xff] }
 0x990   :  { %7173 = vmatpush1.bf16.msra.mxu1 %v18618_v0  ;;  %6695 = vmatprep.mubr.bf16.mxu1 %v18619_v27  ;;  %v18629_v27 = vld [vmem:[#allocation12_spill] sm:$0xff] }
 0x991   :  { %7174 = vmatprep.subr.bf16.mxu1 %v18108_v10 }
 0x994   :  { %v16298_v59 = vpop.f32.mrb[86].mxu1  ;;  %7175 = vmatpush1.bf16.msra.mxu1 %v18622_v35 }
 0x995   :  { %v16303_v6 = vpop.f32.mrb[87].mxu1  ;;  %7689 = vmatprep.subr.bf16.mxu1 %v18108_v10 }
 0x997   :  { %6696 = vmatmul.mubr.bf16.gmra.mrb[140].mxu1 %v18623_v61  ;;  %v18635_v61 = vld [vmem:[#allocation18_spill] sm:$0xff] }
 0x998   :  { %6703 = vmatprep.mubr.bf16.mxu1 %v18624_v9  ;;  %v18631_v9 = vld [vmem:[#allocation14_spill] sm:$0xff] }
 0x99c   :  { %v16310_v29 = vpop.f32.mrb[88].mxu1 }
 0x99d   :  { %v16312_v53 = vpop.f32.mrb[89].mxu1 }
 0x99f   :  { %6704 = vmatmul.mubr.bf16.gmra.mrb[144].mxu1 %v18625_v42  ;;  %v18632_v42 = vld [vmem:[#allocation15_spill] sm:$0xff] }
 0x9a0   :  { %6711 = vmatprep.mubr.bf16.mxu1 %v18626_v44 }
 0x9a4   :  { %v16318_v28 = vpop.f32.mrb[90].mxu1 }
 0x9a5   :  { %v16320_v5 = vpop.f32.mrb[91].mxu1 }
 0x9a7   :  { %6712 = vmatmul.mubr.bf16.gmra.mrb[148].mxu1 %v18627_v63 }
 0x9a8   :  { %6719 = vmatprep.mubr.bf16.mxu1 %v18628_v55  ;;  %v18637_v55 = vld [vmem:[#allocation20_spill] sm:$0xff] }
 0x9ac   :  { %v16326_v33 = vpop.f32.mrb[92].mxu1 }
 0x9ad   :  { %v16328_v23 = vpop.f32.mrb[93].mxu1 }
 0x9af   :  { %6720 = vmatmul.mubr.bf16.gmra.mrb[152].mxu1 %v18629_v27  ;;  %v18633_v27 = vld [vmem:[#allocation16_spill] sm:$0xff] }
 0x9b0   :  { %6727 = vmatprep.mubr.bf16.mxu1 %v18630_v31  ;;  %v18634_v31 = vld [vmem:[#allocation17_spill] sm:$0xff] }
 0x9b4   :  { %v16334_v18 = vpop.f32.mrb[94].mxu1 }
 0x9b5   :  { %v16336_v35 = vpop.f32.mrb[95].mxu1 }
 0x9b7   :  { %6728 = vmatmul.mubr.bf16.gmra.mrb[156].mxu1 %v18631_v9  ;;  %v18639_v9 = vld [vmem:[#allocation22_spill] sm:$0xff] }
 0x9b8   :  { %6735 = vmatprep.mubr.bf16.mxu1 %v18632_v42  ;;  %v18636_v42 = vld [vmem:[#allocation19_spill] sm:$0xff] }
 0x9bc   :  { %v16342_v44 = vpop.f32.mrb[96].mxu1 }
 0x9bd   :  { %v16344_v63 = vpop.f32.mrb[97].mxu1 }
 0x9bf   :  { %6736 = vmatmul.mubr.bf16.gmra.mrb[160].mxu1 %v18633_v27  ;;  %v18641_v27 = vld [vmem:[#allocation24_spill] sm:$0xff] }
 0x9c0   :  { %6743 = vmatprep.mubr.bf16.mxu1 %v18634_v31  ;;  %v18638_v31 = vld [vmem:[#allocation21_spill] sm:$0xff] }
 0x9c4   :  { %v16350_v0 = vpop.f32.mrb[98].mxu1 }
 0x9c5   :  { %v16352_v1 = vpop.f32.mrb[99].mxu1 }
 0x9c7   :  { %6744 = vmatmul.mubr.bf16.gmra.mrb[164].mxu1 %v18635_v61  ;;  %v18643_v61 = vld [vmem:[#allocation26_spill] sm:$0xff] }
 0x9c8   :  { %6751 = vmatprep.mubr.bf16.mxu1 %v18636_v42  ;;  %v18640_v42 = vld [vmem:[#allocation23_spill] sm:$0xff] }
 0x9cc   :  { %v16358_v57 = vpop.f32.mrb[100].mxu1 }
 0x9cd   :  { %v16360_v40 = vpop.f32.mrb[101].mxu1 }
 0x9cf   :  { %6752 = vmatmul.mubr.bf16.gmra.mrb[168].mxu1 %v18637_v55  ;;  %v18647_v55 = vld [vmem:[#allocation30_spill] sm:$0xff] }
 0x9d0   :  { %6759 = vmatprep.mubr.bf16.mxu1 %v18638_v31  ;;  %v18642_v31 = vld [vmem:[#allocation25_spill] sm:$0xff] }
 0x9d4   :  { %v16366_v41 = vpop.f32.mrb[102].mxu1 }
 0x9d5   :  { %v16368_v43 = vpop.f32.mrb[103].mxu1 }
 0x9d7   :  { %6760 = vmatmul.mubr.bf16.gmra.mrb[172].mxu1 %v18639_v9  ;;  %v18653_v9 = vld [vmem:[#allocation36_spill] sm:$0xff] }
 0x9d8   :  { %6767 = vmatprep.mubr.bf16.mxu1 %v18640_v42  ;;  %v18644_v42 = vld [vmem:[#allocation27_spill] sm:$0xff] }
 0x9dc   :  { %v16374_v39 = vpop.f32.mrb[104].mxu1 }
 0x9dd   :  { %v16376_v34 = vpop.f32.mrb[105].mxu1 }
 0x9df   :  { %6768 = vmatmul.mubr.bf16.gmra.mrb[176].mxu1 %v18641_v27  ;;  %v18648_v27 = vld [vmem:[#allocation31_spill] sm:$0xff] }
 0x9e0   :  { %6775 = vmatprep.mubr.bf16.mxu1 %v18642_v31  ;;  %v18649_v31 = vld [vmem:[#allocation32_spill] sm:$0xff] }
 0x9e4   :  { %v16382_v30 = vpop.f32.mrb[106].mxu1 }
 0x9e5   :  { %v16384_v26 = vpop.f32.mrb[107].mxu1 }
 0x9e7   :  { %6776 = vmatmul.mubr.bf16.gmra.mrb[180].mxu1 %v18643_v61  ;;  %v18654_v61 = vld [vmem:[#allocation37_spill] sm:$0xff] }
 0x9e8   :  { %6783 = vmatprep.mubr.bf16.mxu1 %v18644_v42  ;;  %v18655_v42 = vld [vmem:[#allocation38_spill] sm:$0xff] }
 0x9ef   :  { %6784 = vmatmul.mubr.bf16.gmra.mrb[184].mxu1 %v18645_v22  ;;  %v18656_v22 = vld [vmem:[#allocation39_spill] sm:$0xff] }
 0x9f0   :  { %6791 = vmatprep.mubr.bf16.mxu1 %v18646_v38  ;;  %v18657_v38 = vld [vmem:[#allocation40_spill] sm:$0xff] }
 0x9f7   :  { %6792 = vmatmul.mubr.bf16.gmra.mrb[188].mxu1 %v18647_v55  ;;  %v18658_v55 = vld [vmem:[#allocation41_spill] sm:$0xff] }
 0x9f8   :  { %6799 = vmatprep.mubr.bf16.mxu1 %v18648_v27  ;;  %v18659_v27 = vld [vmem:[#allocation42_spill] sm:$0xff] }
 0x9ff   :  { %6800 = vmatmul.mubr.bf16.gmra.mrb[192].mxu1 %v18649_v31  ;;  %v18660_v31 = vld [vmem:[#allocation43_spill] sm:$0xff] }
 0xa00   :  { %6807 = vmatprep.mubr.bf16.mxu1 %v18650_v20  ;;  %v18661_v20 = vld [vmem:[#allocation44_spill] sm:$0xff] }
 0xa07   :  { %6808 = vmatmul.mubr.bf16.gmra.mrb[196].mxu1 %v18651_v58  ;;  %v18662_v58 = vld [vmem:[#allocation45_spill] sm:$0xff] }
 0xa08   :  { %6815 = vmatprep.mubr.bf16.mxu1 %v18652_v7  ;;  %v18663_v7 = vld [vmem:[#allocation46_spill] sm:$0xff] }
 0xa0f   :  { %6816 = vmatmul.mubr.bf16.gmra.mrb[200].mxu1 %v18653_v9  ;;  %v18664_v9 = vld [vmem:[#allocation47_spill] sm:$0xff] }
 0xa10   :  { %6823 = vmatprep.mubr.bf16.mxu1 %v18654_v61  ;;  %v18665_v61 = vld [vmem:[#allocation48_spill] sm:$0xff] }
 0xa17   :  { %6824 = vmatmul.mubr.bf16.gmra.mrb[204].mxu1 %v18655_v42  ;;  %v18666_v42 = vld [vmem:[#allocation49_spill] sm:$0xff] }
 0xa18   :  { %6831 = vmatprep.mubr.bf16.mxu1 %v18656_v22  ;;  %v18667_v22 = vld [vmem:[#allocation50_spill] sm:$0xff] }
 0xa1f   :  { %6832 = vmatmul.mubr.bf16.gmra.mrb[208].mxu1 %v18657_v38  ;;  %v18668_v38 = vld [vmem:[#allocation51_spill] sm:$0xff] }
 0xa20   :  { %6839 = vmatprep.mubr.bf16.mxu1 %v18658_v55  ;;  %v18669_v55 = vld [vmem:[#allocation52_spill] sm:$0xff] }
 0xa27   :  { %6840 = vmatmul.mubr.bf16.gmra.mrb[212].mxu1 %v18659_v27  ;;  %v18670_v27 = vld [vmem:[#allocation53_spill] sm:$0xff] }
 0xa28   :  { %6847 = vmatprep.mubr.bf16.mxu1 %v18660_v31  ;;  %v18671_v31 = vld [vmem:[#allocation54_spill] sm:$0xff] }
 0xa2f   :  { %6848 = vmatmul.mubr.bf16.gmra.mrb[216].mxu1 %v18661_v20  ;;  %v18672_v20 = vld [vmem:[#allocation55_spill] sm:$0xff] }
 0xa30   :  { %6855 = vmatprep.mubr.bf16.mxu1 %v18662_v58  ;;  %v18673_v58 = vld [vmem:[#allocation56_spill] sm:$0xff] }
 0xa37   :  { %6856 = vmatmul.mubr.bf16.gmra.mrb[220].mxu1 %v18663_v7  ;;  %v18674_v7 = vld [vmem:[#allocation57_spill] sm:$0xff] }
 0xa38   :  { %6863 = vmatprep.mubr.bf16.mxu1 %v18664_v9  ;;  %v18675_v9 = vld [vmem:[#allocation58_spill] sm:$0xff] }
 0xa3f   :  { %6864 = vmatmul.mubr.bf16.gmra.mrb[224].mxu1 %v18665_v61  ;;  %v18676_v61 = vld [vmem:[#allocation59_spill] sm:$0xff] }
 0xa40   :  { %6871 = vmatprep.mubr.bf16.mxu1 %v18666_v42  ;;  %v18677_v42 = vld [vmem:[#allocation60_spill] sm:$0xff] }
 0xa47   :  { %6872 = vmatmul.mubr.bf16.gmra.mrb[228].mxu1 %v18667_v22  ;;  %v18678_v22 = vld [vmem:[#allocation61_spill] sm:$0xff] }
 0xa48   :  { %6879 = vmatprep.mubr.bf16.mxu1 %v18668_v38  ;;  %v18679_v38 = vld [vmem:[#allocation62_spill] sm:$0xff] }
 0xa4f   :  { %6880 = vmatmul.mubr.bf16.gmra.mrb[232].mxu1 %v18669_v55  ;;  %v18680_v55 = vld [vmem:[#allocation63_spill] sm:$0xff] }
 0xa50   :  { %6887 = vmatprep.mubr.bf16.mxu1 %v18670_v27  ;;  %v18681_v27 = vld [vmem:[#allocation64_spill] sm:$0xff] }
 0xa57   :  { %6888 = vmatmul.mubr.bf16.gmra.mrb[236].mxu1 %v18671_v31  ;;  %v18682_v31 = vld [vmem:[#allocation65_spill] sm:$0xff] }
 0xa58   :  { %6895 = vmatprep.mubr.bf16.mxu1 %v18672_v20  ;;  %v18683_v20 = vld [vmem:[#allocation66_spill] sm:$0xff] }
 0xa5f   :  { %6896 = vmatmul.mubr.bf16.gmra.mrb[240].mxu1 %v18673_v58  ;;  %v18684_v58 = vld [vmem:[#allocation67_spill] sm:$0xff] }
 0xa60   :  { %6903 = vmatprep.mubr.bf16.mxu1 %v18674_v7  ;;  %v18685_v7 = vld [vmem:[#allocation68_spill] sm:$0xff] }
 0xa67   :  { %6904 = vmatmul.mubr.bf16.gmra.mrb[244].mxu1 %v18675_v9  ;;  %v18686_v9 = vld [vmem:[#allocation69_spill] sm:$0xff] }
 0xa68   :  { %6911 = vmatprep.mubr.bf16.mxu1 %v18676_v61  ;;  %v18687_v61 = vld [vmem:[#allocation70_spill] sm:$0xff] }
 0xa6f   :  { %6912 = vmatmul.mubr.bf16.gmra.mrb[248].mxu1 %v18677_v42  ;;  %v18688_v42 = vld [vmem:[#allocation71_spill] sm:$0xff] }
 0xa70   :  { %6919 = vmatprep.mubr.bf16.mxu1 %v18678_v22  ;;  %v18689_v22 = vld [vmem:[#allocation72_spill] sm:$0xff] }
 0xa77   :  { %6920 = vmatmul.mubr.bf16.gmra.mrb[252].mxu1 %v18679_v38  ;;  %v18690_v38 = vld [vmem:[#allocation73_spill] sm:$0xff] }
 0xa78   :  { %6927 = vmatprep.mubr.bf16.mxu1 %v18680_v55  ;;  %v18691_v55 = vld [vmem:[#allocation74_spill] sm:$0xff] }
 0xa7f   :  { %6928 = vmatmul.mubr.bf16.gmra.mrb[0].mxu1 %v18681_v27  ;;  %v18692_v27 = vld [vmem:[#allocation75_spill] sm:$0xff] }
 0xa80   :  { %6935 = vmatprep.mubr.bf16.mxu1 %v18682_v31  ;;  %v18693_v31 = vld [vmem:[#allocation76_spill] sm:$0xff] }
 0xa87   :  { %6936 = vmatmul.mubr.bf16.gmra.mrb[4].mxu1 %v18683_v20  ;;  %v18694_v20 = vld [vmem:[#allocation77_spill] sm:$0xff] }
 0xa88   :  { %6943 = vmatprep.mubr.bf16.mxu1 %v18684_v58  ;;  %v18695_v58 = vld [vmem:[#allocation78_spill] sm:$0xff] }
 0xa8f   :  { %6944 = vmatmul.mubr.bf16.gmra.mrb[8].mxu1 %v18685_v7  ;;  %v18696_v7 = vld [vmem:[#allocation79_spill] sm:$0xff] }
 0xa90   :  { %6951 = vmatprep.mubr.bf16.mxu1 %v18686_v9  ;;  %v18697_v9 = vld [vmem:[#allocation80_spill] sm:$0xff] }
 0xa97   :  { %6952 = vmatmul.mubr.bf16.gmra.mrb[12].mxu1 %v18687_v61  ;;  %v18698_v61 = vld [vmem:[#allocation81_spill] sm:$0xff] }
 0xa98   :  { %6959 = vmatprep.mubr.bf16.mxu1 %v18688_v42  ;;  %v18699_v42 = vld [vmem:[#allocation82_spill] sm:$0xff] }
 0xa9f   :  { %6960 = vmatmul.mubr.bf16.gmra.mrb[16].mxu1 %v18689_v22  ;;  %v18700_v22 = vld [vmem:[#allocation83_spill] sm:$0xff] }
 0xaa0   :  { %6967 = vmatprep.mubr.bf16.mxu1 %v18690_v38  ;;  %v18701_v38 = vld [vmem:[#allocation84_spill] sm:$0xff] }
 0xaa7   :  { %6968 = vmatmul.mubr.bf16.gmra.mrb[20].mxu1 %v18691_v55  ;;  %v18702_v55 = vld [vmem:[#allocation85_spill] sm:$0xff] }
 0xaa8   :  { %6975 = vmatprep.mubr.bf16.mxu1 %v18692_v27  ;;  %v18703_v27 = vld [vmem:[#allocation86_spill] sm:$0xff] }
 0xaaf   :  { %6976 = vmatmul.mubr.bf16.gmra.mrb[24].mxu1 %v18693_v31  ;;  %v18704_v31 = vld [vmem:[#allocation87_spill] sm:$0xff] }
 0xab0   :  { %6983 = vmatprep.mubr.bf16.mxu1 %v18694_v20  ;;  %v18705_v20 = vld [vmem:[#allocation88_spill] sm:$0xff] }
 0xab7   :  { %6984 = vmatmul.mubr.bf16.gmra.mrb[28].mxu1 %v18695_v58  ;;  %v18706_v58 = vld [vmem:[#allocation89_spill] sm:$0xff] }
 0xab8   :  { %6991 = vmatprep.mubr.bf16.mxu1 %v18696_v7  ;;  %v18707_v7 = vld [vmem:[#allocation90_spill] sm:$0xff] }
 0xabf   :  { %6992 = vmatmul.mubr.bf16.gmra.mrb[32].mxu1 %v18697_v9  ;;  %v18708_v9 = vld [vmem:[#allocation91_spill] sm:$0xff] }
 0xac0   :  { %6999 = vmatprep.mubr.bf16.mxu1 %v18698_v61  ;;  %v18709_v61 = vld [vmem:[#allocation92_spill] sm:$0xff] }
 0xac7   :  { %7000 = vmatmul.mubr.bf16.gmra.mrb[36].mxu1 %v18699_v42  ;;  %v18710_v42 = vld [vmem:[#allocation93_spill] sm:$0xff] }
 0xac8   :  { %7007 = vmatprep.mubr.bf16.mxu1 %v18700_v22  ;;  %v18711_v22 = vld [vmem:[#allocation94_spill] sm:$0xff] }
 0xacf   :  { %7008 = vmatmul.mubr.bf16.gmra.mrb[40].mxu1 %v18701_v38  ;;  %v18712_v38 = vld [vmem:[#allocation95_spill] sm:$0xff] }
 0xad0   :  { %7015 = vmatprep.mubr.bf16.mxu1 %v18702_v55  ;;  %v18713_v55 = vld [vmem:[#allocation96_spill] sm:$0xff] }
 0xad7   :  { %7016 = vmatmul.mubr.bf16.gmra.mrb[44].mxu1 %v18703_v27  ;;  %v18714_v27 = vld [vmem:[#allocation97_spill] sm:$0xff] }
 0xad8   :  { %7023 = vmatprep.mubr.bf16.mxu1 %v18704_v31  ;;  %v18715_v31 = vld [vmem:[#allocation98_spill] sm:$0xff] }
 0xadf   :  { %7024 = vmatmul.mubr.bf16.gmra.mrb[48].mxu1 %v18705_v20  ;;  %v18716_v20 = vld [vmem:[#allocation99_spill] sm:$0xff] }
 0xae0   :  { %7031 = vmatprep.mubr.bf16.mxu1 %v18706_v58  ;;  %v18717_v58 = vld [vmem:[#allocation100_spill] sm:$0xff] }
 0xae7   :  { %7032 = vmatmul.mubr.bf16.gmra.mrb[52].mxu1 %v18707_v7  ;;  %v18718_v7 = vld [vmem:[#allocation101_spill] sm:$0xff] }
 0xae8   :  { %7039 = vmatprep.mubr.bf16.mxu1 %v18708_v9  ;;  %v18719_v9 = vld [vmem:[#allocation102_spill] sm:$0xff] }
 0xaef   :  { %7040 = vmatmul.mubr.bf16.gmra.mrb[56].mxu1 %v18709_v61  ;;  %v18720_v61 = vld [vmem:[#allocation103_spill] sm:$0xff] }
 0xaf0   :  { %7047 = vmatprep.mubr.bf16.mxu1 %v18710_v42  ;;  %v18721_v42 = vld [vmem:[#allocation104_spill] sm:$0xff] }
 0xaf7   :  { %7048 = vmatmul.mubr.bf16.gmra.mrb[60].mxu1 %v18711_v22  ;;  %v18722_v22 = vld [vmem:[#allocation105_spill] sm:$0xff] }
 0xaf8   :  { %7055 = vmatprep.mubr.bf16.mxu1 %v18712_v38  ;;  %v18723_v38 = vld [vmem:[#allocation106_spill] sm:$0xff] }
 0xaff   :  { %7056 = vmatmul.mubr.bf16.gmra.mrb[64].mxu1 %v18713_v55  ;;  %v18724_v55 = vld [vmem:[#allocation107_spill] sm:$0xff] }
 0xb00   :  { %7063 = vmatprep.mubr.bf16.mxu1 %v18714_v27  ;;  %v18725_v27 = vld [vmem:[#allocation108_spill] sm:$0xff] }
 0xb07   :  { %7064 = vmatmul.mubr.bf16.gmra.mrb[68].mxu1 %v18715_v31  ;;  %v18726_v31 = vld [vmem:[#allocation109_spill] sm:$0xff] }
 0xb08   :  { %7071 = vmatprep.mubr.bf16.mxu1 %v18716_v20  ;;  %v18727_v20 = vld [vmem:[#allocation110_spill] sm:$0xff] }
 0xb0f   :  { %7072 = vmatmul.mubr.bf16.gmra.mrb[72].mxu1 %v18717_v58  ;;  %v18728_v58 = vld [vmem:[#allocation111_spill] sm:$0xff] }
 0xb10   :  { %7079 = vmatprep.mubr.bf16.mxu1 %v18718_v7  ;;  %v18729_v7 = vld [vmem:[#allocation112_spill] sm:$0xff] }
 0xb17   :  { %7080 = vmatmul.mubr.bf16.gmra.mrb[76].mxu1 %v18719_v9  ;;  %v18730_v9 = vld [vmem:[#allocation113_spill] sm:$0xff] }
 0xb18   :  { %7087 = vmatprep.mubr.bf16.mxu1 %v18720_v61  ;;  %v18731_v61 = vld [vmem:[#allocation114_spill] sm:$0xff] }
 0xb1f   :  { %7088 = vmatmul.mubr.bf16.gmra.mrb[80].mxu1 %v18721_v42  ;;  %v18732_v42 = vld [vmem:[#allocation115_spill] sm:$0xff] }
 0xb20   :  { %7095 = vmatprep.mubr.bf16.mxu1 %v18722_v22  ;;  %v18733_v22 = vld [vmem:[#allocation116_spill] sm:$0xff] }
 0xb27   :  { %7096 = vmatmul.mubr.bf16.gmra.mrb[84].mxu1 %v18723_v38  ;;  %v18734_v38 = vld [vmem:[#allocation117_spill] sm:$0xff] }
 0xb28   :  { %7103 = vmatprep.mubr.bf16.mxu1 %v18724_v55  ;;  %v18735_v55 = vld [vmem:[#allocation118_spill] sm:$0xff] }
 0xb2f   :  { %7104 = vmatmul.mubr.bf16.gmra.mrb[88].mxu1 %v18725_v27  ;;  %v18736_v27 = vld [vmem:[#allocation511_spill] sm:$0xff] }
 0xb30   :  { %7111 = vmatprep.mubr.bf16.mxu1 %v18726_v31  ;;  %v18737_v31 = vld [vmem:[#allocation512_spill] sm:$0xff] }
 0xb31   :  { %v18738_v51 = vpack.c.bf16 %v18736_v27, %v18737_v31  ;;  %v18750_v31 = vld [vmem:[#allocation122_spill] sm:$0xff] }
 0xb37   :  { %7112 = vmatmul.mubr.bf16.gmra.mrb[92].mxu1 %v18727_v20  ;;  %v18739_v20 = vld [vmem:[#allocation119_spill] sm:$0xff] }
 0xb38   :  { %7119 = vmatprep.mubr.bf16.mxu1 %v18728_v58  ;;  %v18740_v58 = vld [vmem:[#allocation513_spill] sm:$0xff] }
 0xb3f   :  { %7120 = vmatmul.mubr.bf16.gmra.mrb[96].mxu1 %v18729_v7  ;;  %v18741_v7 = vld [vmem:[#allocation514_spill] sm:$0xff] }
 0xb40   :  { %7127 = vmatprep.mubr.bf16.mxu1 %v18730_v9  ;;  %v18742_v9 = vpack.c.bf16 %v18740_v58, %v18741_v7  ;;  %v18752_v58 = vld [vmem:[#allocation123_spill] sm:$0xff]  ;;  %v18753_v7 = vld [vmem:[#allocation518_spill] sm:$0xff] }
 0xb47   :  { %7128 = vmatmul.mubr.bf16.gmra.mrb[100].mxu1 %v18731_v61  ;;  %v18743_v61 = vld [vmem:[#allocation120_spill] sm:$0xff] }
 0xb48   :  { %7135 = vmatprep.mubr.bf16.mxu1 %v18732_v42  ;;  %v18744_v42 = vld [vmem:[#allocation515_spill] sm:$0xff] }
 0xb4f   :  { %7136 = vmatmul.mubr.bf16.gmra.mrb[104].mxu1 %v18733_v22  ;;  %v18745_v22 = vld [vmem:[#allocation516_spill] sm:$0xff] }
 0xb50   :  { %7176 = vmatprep.mubr.bf16.mxu1 %v18734_v38  ;;  %v18746_v38 = vpack.c.bf16 %v18744_v42, %v18745_v22  ;;  %v18757_v42 = vld [vmem:[#allocation520_spill] sm:$0xff]  ;;  %v18758_v22 = vld [vmem:[#allocation521_spill] sm:$0xff] }
 0xb57   :  { %7177 = vmatmul.mubr.bf16.vlgmr.msra.gmra.mrb[108].mxu1 %v18735_v55  ;;  %v18747_v55 = vld [vmem:[#allocation121_spill] sm:$0xff] }
 0xb58   :  { %7690 = vmatpush1.bf16.msra.mxu1 %v18738_v51  ;;  %7184 = vmatprep.mubr.bf16.mxu1 %v18739_v20  ;;  %v18748_v51 = vld [vmem:[#allocation517_spill] sm:$0xff]  ;;  %v18751_v20 = vpack.c.bf16 %v16083_v56, %v16086_v48  ;;  %v18761_v48 = vld [vmem:[#allocation522_spill] sm:$0xff]  ;;  %v18762_v56 = vld [vmem:[#allocation523_spill] sm:$0xff] }
 0xb59   :  { %7691 = vmatprep.subr.bf16.mxu1 %v18108_v10  ;;  %v18749_v27 = vpack.c.bf16 %v16075_v60, %v18748_v51  ;;  %v18756_v60 = vld [vmem:[#allocation124_spill] sm:$0xff]  ;;  %v18763_v51 = vpack.c.bf16 %v18761_v48, %v18762_v56  ;;  %v18792_v48 = vld [vmem:[#allocation146_spill] sm:$0xff]  ;;  %v18793_v56 = vld [vmem:[#allocation147_spill] sm:$0xff] }
 0xb5c   :  { %7692 = vmatpush1.bf16.msra.mxu1 %v18742_v9  ;;  %v18754_v9 = vld [vmem:[#allocation519_spill] sm:$0xff] }
 0xb5d   :  { %7693 = vmatprep.subr.bf16.mxu1 %v18108_v10 }
 0xb5f   :  { %7185 = vmatmul.mubr.bf16.gmra.mrb[112].mxu1 %v18743_v61  ;;  %v18755_v61 = vpack.c.bf16 %v18753_v7, %v18754_v9  ;;  %v18768_v7 = vld [vmem:[#allocation128_spill] sm:$0xff]  ;;  %v18769_v9 = vpack.c.bf16 %v16131_v16, %v16133_v13  ;;  %v18775_v16 = vpack.c.bf16 %v16170_v36, %v16175_v49  ;;  %v18781_v36 = vld [vmem:[#allocation135_spill] sm:$0xff] }
 0xb60   :  { %7694 = vmatpush1.bf16.msra.mxu1 %v18746_v38  ;;  %7192 = vmatprep.mubr.bf16.mxu1 %v18747_v55  ;;  %v18759_v38 = vpack.c.bf16 %v18757_v42, %v18758_v22  ;;  %v18760_v55 = vld [vmem:[#allocation125_spill] sm:$0xff]  ;;  %v18776_v13 = vld [vmem:[#allocation132_spill] sm:$0xff] }
 0xb61   :  { %7695 = vmatprep.subr.bf16.mxu1 %v18108_v10  ;;  %v18782_v49 = vld [vmem:[#allocation136_spill] sm:$0xff]  ;;  %v18787_v22 = vld [vmem:[#allocation141_spill] sm:$0xff] }
 0xb62   :  { %v18786_v42 = vld [vmem:[#allocation140_spill] sm:$0xff] }
 0xb64   :  { %7696 = vmatpush1.bf16.msra.mxu1 %v18749_v27  ;;  %v18764_v27 = vld [vmem:[#allocation126_spill] sm:$0xff] }
 0xb65   :  { %7697 = vmatprep.subr.bf16.mxu1 %v18108_v10 }
 0xb67   :  { %7193 = vmatmul.mubr.bf16.gmra.mrb[116].mxu1 %v18750_v31  ;;  %v18765_v31 = vpack.c.bf16 %v16115_v50, %v16117_v47  ;;  %v18771_v47 = vpack.c.bf16 %v16142_v54, %v16147_v52  ;;  %v18773_v50 = vpack.c.bf16 %v16156_v62, %v16161_v15  ;;  %v18777_v54 = vpack.c.bf16 %v16186_v19, %v16191_v45  ;;  %v18778_v52 = vld [vmem:[#allocation133_spill] sm:$0xff]  ;;  %v18780_v15 = vld [vmem:[#allocation134_spill] sm:$0xff]  ;;  %v18785_v45 = vld [vmem:[#allocation139_spill] sm:$0xff] }
 0xb68   :  { %7698 = vmatpush1.bf16.msra.mxu1 %v18751_v20  ;;  %7200 = vmatprep.mubr.bf16.mxu1 %v18752_v58  ;;  %v18766_v20 = vld [vmem:[#allocation127_spill] sm:$0xff]  ;;  %v18767_v58 = vpack.c.bf16 %v16123_v46, %v16125_v32  ;;  %v18772_v32 = vld [vmem:[#allocation130_spill] sm:$0xff]  ;;  %v18779_v62 = vpack.c.bf16 %v16202_v37, %v16207_v24 }
 0xb69   :  { %7699 = vmatprep.subr.bf16.mxu1 %v18108_v10  ;;  %v18774_v46 = vld [vmem:[#allocation131_spill] sm:$0xff]  ;;  %v18784_v19 = vld [vmem:[#allocation138_spill] sm:$0xff] }
 0xb6a   :  { %v18788_v37 = vld [vmem:[#allocation142_spill] sm:$0xff]  ;;  %v18789_v24 = vld [vmem:[#allocation143_spill] sm:$0xff] }
 0xb6c   :  { %7700 = vmatpush1.bf16.msra.mxu1 %v18755_v61  ;;  %v18770_v61 = vld [vmem:[#allocation129_spill] sm:$0xff] }
 0xb6d   :  { %7701 = vmatprep.subr.bf16.mxu1 %v18108_v10 }
 0xb6f   :  { %7201 = vmatmul.mubr.bf16.gmra.mrb[120].mxu1 %v18756_v60  ;;  %v18783_v60 = vld [vmem:[#allocation137_spill] sm:$0xff] }
 0xb70   :  { %7702 = vmatpush1.bf16.msra.mxu1 %v18759_v38  ;;  %7208 = vmatprep.mubr.bf16.mxu1 %v18760_v55  ;;  %v18790_v38 = vld [vmem:[#allocation144_spill] sm:$0xff]  ;;  %v18791_v55 = vld [vmem:[#allocation145_spill] sm:$0xff] }
 0xb71   :  { %7703 = vmatprep.subr.bf16.mxu1 %v18108_v10 }
 0xb74   :  { %7704 = vmatpush1.bf16.msra.mxu1 %v18763_v51  ;;  %v18794_v51 = vld [vmem:[#allocation148_spill] sm:$0xff] }
 0xb75   :  { %7705 = vmatprep.subr.bf16.mxu1 %v18108_v10 }
 0xb77   :  { %7209 = vmatmul.mubr.bf16.gmra.mrb[124].mxu1 %v18764_v27  ;;  %v18795_v27 = vld [vmem:[#allocation149_spill] sm:$0xff] }
 0xb78   :  { %7706 = vmatpush1.bf16.msra.mxu1 %v18765_v31  ;;  %7216 = vmatprep.mubr.bf16.mxu1 %v18766_v20  ;;  %v18796_v31 = vld [vmem:[#allocation150_spill] sm:$0xff]  ;;  %v18797_v20 = vld [vmem:[#allocation151_spill] sm:$0xff] }
 0xb79   :  { %7707 = vmatprep.subr.bf16.mxu1 %v18108_v10 }
 0xb7c   :  { %7708 = vmatpush1.bf16.msra.mxu1 %v18767_v58  ;;  %v18798_v58 = vld [vmem:[#allocation152_spill] sm:$0xff] }
 0xb7d   :  { %7709 = vmatprep.subr.bf16.mxu1 %v18108_v10 }
 0xb7f   :  { %7217 = vmatmul.mubr.bf16.gmra.mrb[128].mxu1 %v18768_v7  ;;  %v18799_v7 = vld [vmem:[#allocation153_spill] sm:$0xff] }
 0xb80   :  { %7710 = vmatpush1.bf16.msra.mxu1 %v18769_v9  ;;  %7224 = vmatprep.mubr.bf16.mxu1 %v18770_v61  ;;  %v18800_v9 = vld [vmem:[#allocation154_spill] sm:$0xff]  ;;  %v18801_v61 = vld [vmem:[#allocation155_spill] sm:$0xff] }
 0xb81   :  { %7711 = vmatprep.subr.bf16.mxu1 %v18108_v10 }
 0xb84   :  { %7712 = vmatpush1.bf16.msra.mxu1 %v18771_v47  ;;  %v18802_v47 = vld [vmem:[#allocation156_spill] sm:$0xff] }
 0xb85   :  { %7713 = vmatprep.subr.bf16.mxu1 %v18108_v10 }
 0xb87   :  { %7225 = vmatmul.mubr.bf16.gmra.mrb[132].mxu1 %v18772_v32  ;;  %v18803_v32 = vld [vmem:[#allocation157_spill] sm:$0xff] }
 0xb88   :  { %7714 = vmatpush1.bf16.msra.mxu1 %v18773_v50  ;;  %7232 = vmatprep.mubr.bf16.mxu1 %v18774_v46  ;;  %v18804_v50 = vld [vmem:[#allocation158_spill] sm:$0xff]  ;;  %v18805_v46 = vld [vmem:[#allocation159_spill] sm:$0xff] }
 0xb89   :  { %7715 = vmatprep.subr.bf16.mxu1 %v18108_v10 }
 0xb8c   :  { %7716 = vmatpush1.bf16.msra.mxu1 %v18775_v16  ;;  %v18806_v16 = vld [vmem:[#allocation160_spill] sm:$0xff] }
 0xb8d   :  { %7717 = vmatprep.subr.bf16.mxu1 %v18108_v10 }
 0xb8f   :  { %7233 = vmatmul.mubr.bf16.gmra.mrb[136].mxu1 %v18776_v13  ;;  %v18807_v13 = vld [vmem:[#allocation161_spill] sm:$0xff] }
 0xb90   :  { %7718 = vmatpush1.bf16.msra.mxu1 %v18777_v54  ;;  %7240 = vmatprep.mubr.bf16.mxu1 %v18778_v52  ;;  %v18808_v54 = vld [vmem:[#allocation162_spill] sm:$0xff]  ;;  %v18809_v52 = vld [vmem:[#allocation163_spill] sm:$0xff] }
 0xb91   :  { %7719 = vmatprep.subr.bf16.mxu1 %v18108_v10 }
 0xb94   :  { %7720 = vmatpush1.bf16.msra.mxu1 %v18779_v62  ;;  %v18810_v62 = vld [vmem:[#allocation164_spill] sm:$0xff] }
 0xb95   :  { %8234 = vmatprep.subr.bf16.mxu1 %v18108_v10 }
 0xb97   :  { %7241 = vmatmul.mubr.bf16.gmra.mrb[140].mxu1 %v18780_v15  ;;  %v18811_v15 = vld [vmem:[#allocation165_spill] sm:$0xff] }
 0xb98   :  { %7248 = vmatprep.mubr.bf16.mxu1 %v18781_v36  ;;  %v18812_v36 = vld [vmem:[#allocation166_spill] sm:$0xff] }
 0xb9f   :  { %7249 = vmatmul.mubr.bf16.gmra.mrb[144].mxu1 %v18782_v49  ;;  %v18813_v49 = vld [vmem:[#allocation167_spill] sm:$0xff] }
 0xba0   :  { %7256 = vmatprep.mubr.bf16.mxu1 %v18783_v60  ;;  %v18814_v60 = vld [vmem:[#allocation168_spill] sm:$0xff] }
 0xba7   :  { %7257 = vmatmul.mubr.bf16.gmra.mrb[148].mxu1 %v18784_v19  ;;  %v18815_v19 = vld [vmem:[#allocation169_spill] sm:$0xff] }
 0xba8   :  { %7264 = vmatprep.mubr.bf16.mxu1 %v18785_v45  ;;  %v18816_v45 = vld [vmem:[#allocation170_spill] sm:$0xff] }
 0xbaf   :  { %7265 = vmatmul.mubr.bf16.gmra.mrb[152].mxu1 %v18786_v42  ;;  %v18817_v42 = vld [vmem:[#allocation171_spill] sm:$0xff] }
 0xbb0   :  { %7272 = vmatprep.mubr.bf16.mxu1 %v18787_v22  ;;  %v18818_v22 = vld [vmem:[#allocation172_spill] sm:$0xff] }
 0xbb7   :  { %7273 = vmatmul.mubr.bf16.gmra.mrb[156].mxu1 %v18788_v37  ;;  %v18819_v37 = vld [vmem:[#allocation173_spill] sm:$0xff] }
 0xbb8   :  { %7280 = vmatprep.mubr.bf16.mxu1 %v18789_v24  ;;  %v18820_v24 = vld [vmem:[#allocation174_spill] sm:$0xff] }
 0xbbf   :  { %7281 = vmatmul.mubr.bf16.gmra.mrb[160].mxu1 %v18790_v38  ;;  %v18821_v38 = vld [vmem:[#allocation175_spill] sm:$0xff] }
 0xbc0   :  { %7288 = vmatprep.mubr.bf16.mxu1 %v18791_v55  ;;  %v18822_v55 = vld [vmem:[#allocation176_spill] sm:$0xff] }
 0xbc7   :  { %7289 = vmatmul.mubr.bf16.gmra.mrb[164].mxu1 %v18792_v48  ;;  %v18823_v48 = vld [vmem:[#allocation177_spill] sm:$0xff] }
 0xbc8   :  { %7296 = vmatprep.mubr.bf16.mxu1 %v18793_v56  ;;  %v18824_v56 = vld [vmem:[#allocation178_spill] sm:$0xff] }
 0xbcf   :  { %7297 = vmatmul.mubr.bf16.gmra.mrb[168].mxu1 %v18794_v51  ;;  %v18825_v51 = vld [vmem:[#allocation179_spill] sm:$0xff] }
 0xbd0   :  { %7304 = vmatprep.mubr.bf16.mxu1 %v18795_v27  ;;  %v18826_v27 = vld [vmem:[#allocation180_spill] sm:$0xff] }
 0xbd7   :  { %7305 = vmatmul.mubr.bf16.gmra.mrb[172].mxu1 %v18796_v31  ;;  %v18827_v31 = vld [vmem:[#allocation181_spill] sm:$0xff] }
 0xbd8   :  { %7312 = vmatprep.mubr.bf16.mxu1 %v18797_v20  ;;  %v18828_v20 = vld [vmem:[#allocation182_spill] sm:$0xff] }
 0xbdf   :  { %7313 = vmatmul.mubr.bf16.gmra.mrb[176].mxu1 %v18798_v58  ;;  %v18829_v58 = vld [vmem:[#allocation183_spill] sm:$0xff] }
 0xbe0   :  { %7320 = vmatprep.mubr.bf16.mxu1 %v18799_v7  ;;  %v18830_v7 = vld [vmem:[#allocation184_spill] sm:$0xff] }
 0xbe7   :  { %7321 = vmatmul.mubr.bf16.gmra.mrb[180].mxu1 %v18800_v9  ;;  %v18831_v9 = vld [vmem:[#allocation185_spill] sm:$0xff] }
 0xbe8   :  { %7328 = vmatprep.mubr.bf16.mxu1 %v18801_v61  ;;  %v18832_v61 = vld [vmem:[#allocation186_spill] sm:$0xff] }
 0xbef   :  { %7329 = vmatmul.mubr.bf16.gmra.mrb[184].mxu1 %v18802_v47  ;;  %v18833_v47 = vld [vmem:[#allocation187_spill] sm:$0xff] }
 0xbf0   :  { %7336 = vmatprep.mubr.bf16.mxu1 %v18803_v32  ;;  %v18834_v32 = vld [vmem:[#allocation188_spill] sm:$0xff] }
 0xbf7   :  { %7337 = vmatmul.mubr.bf16.gmra.mrb[188].mxu1 %v18804_v50  ;;  %v18835_v50 = vld [vmem:[#allocation189_spill] sm:$0xff] }
 0xbf8   :  { %7344 = vmatprep.mubr.bf16.mxu1 %v18805_v46  ;;  %v18836_v46 = vld [vmem:[#allocation190_spill] sm:$0xff] }
 0xbff   :  { %7345 = vmatmul.mubr.bf16.gmra.mrb[192].mxu1 %v18806_v16  ;;  %v18837_v16 = vld [vmem:[#allocation191_spill] sm:$0xff] }
 0xc00   :  { %7352 = vmatprep.mubr.bf16.mxu1 %v18807_v13  ;;  %v18838_v13 = vld [vmem:[#allocation192_spill] sm:$0xff] }
 0xc07   :  { %7353 = vmatmul.mubr.bf16.gmra.mrb[196].mxu1 %v18808_v54  ;;  %v18839_v54 = vld [vmem:[#allocation193_spill] sm:$0xff] }
 0xc08   :  { %7360 = vmatprep.mubr.bf16.mxu1 %v18809_v52  ;;  %v18840_v52 = vld [vmem:[#allocation194_spill] sm:$0xff] }
 0xc0f   :  { %7361 = vmatmul.mubr.bf16.gmra.mrb[200].mxu1 %v18810_v62  ;;  %v18841_v62 = vld [vmem:[#allocation195_spill] sm:$0xff] }
 0xc10   :  { %7368 = vmatprep.mubr.bf16.mxu1 %v18811_v15  ;;  %v18842_v15 = vld [vmem:[#allocation196_spill] sm:$0xff] }
 0xc17   :  { %7369 = vmatmul.mubr.bf16.gmra.mrb[204].mxu1 %v18812_v36  ;;  %v18843_v36 = vld [vmem:[#allocation197_spill] sm:$0xff] }
 0xc18   :  { %7376 = vmatprep.mubr.bf16.mxu1 %v18813_v49  ;;  %v18844_v49 = vld [vmem:[#allocation198_spill] sm:$0xff] }
 0xc1f   :  { %7377 = vmatmul.mubr.bf16.gmra.mrb[208].mxu1 %v18814_v60  ;;  %v18845_v60 = vld [vmem:[#allocation199_spill] sm:$0xff] }
 0xc20   :  { %7384 = vmatprep.mubr.bf16.mxu1 %v18815_v19  ;;  %v18846_v19 = vld [vmem:[#allocation200_spill] sm:$0xff] }
 0xc27   :  { %7385 = vmatmul.mubr.bf16.gmra.mrb[212].mxu1 %v18816_v45  ;;  %v18847_v45 = vld [vmem:[#allocation201_spill] sm:$0xff] }
 0xc28   :  { %7392 = vmatprep.mubr.bf16.mxu1 %v18817_v42  ;;  %v18848_v42 = vld [vmem:[#allocation202_spill] sm:$0xff] }
 0xc2f   :  { %7393 = vmatmul.mubr.bf16.gmra.mrb[216].mxu1 %v18818_v22  ;;  %v18849_v22 = vld [vmem:[#allocation203_spill] sm:$0xff] }
 0xc30   :  { %7400 = vmatprep.mubr.bf16.mxu1 %v18819_v37  ;;  %v18850_v37 = vld [vmem:[#allocation204_spill] sm:$0xff] }
 0xc37   :  { %7401 = vmatmul.mubr.bf16.gmra.mrb[220].mxu1 %v18820_v24  ;;  %v18851_v24 = vld [vmem:[#allocation205_spill] sm:$0xff] }
 0xc38   :  { %7408 = vmatprep.mubr.bf16.mxu1 %v18821_v38  ;;  %v18852_v38 = vld [vmem:[#allocation206_spill] sm:$0xff] }
 0xc3f   :  { %7409 = vmatmul.mubr.bf16.gmra.mrb[224].mxu1 %v18822_v55  ;;  %v18853_v55 = vld [vmem:[#allocation207_spill] sm:$0xff] }
 0xc40   :  { %7416 = vmatprep.mubr.bf16.mxu1 %v18823_v48  ;;  %v18854_v48 = vld [vmem:[#allocation208_spill] sm:$0xff] }
 0xc47   :  { %7417 = vmatmul.mubr.bf16.gmra.mrb[228].mxu1 %v18824_v56  ;;  %v18855_v56 = vld [vmem:[#allocation209_spill] sm:$0xff] }
 0xc48   :  { %7424 = vmatprep.mubr.bf16.mxu1 %v18825_v51  ;;  %v18856_v51 = vld [vmem:[#allocation210_spill] sm:$0xff] }
 0xc4f   :  { %7425 = vmatmul.mubr.bf16.gmra.mrb[232].mxu1 %v18826_v27  ;;  %v18857_v27 = vld [vmem:[#allocation211_spill] sm:$0xff] }
 0xc50   :  { %7432 = vmatprep.mubr.bf16.mxu1 %v18827_v31  ;;  %v18858_v31 = vld [vmem:[#allocation212_spill] sm:$0xff] }
 0xc57   :  { %7433 = vmatmul.mubr.bf16.gmra.mrb[236].mxu1 %v18828_v20  ;;  %v18859_v20 = vld [vmem:[#allocation213_spill] sm:$0xff] }
 0xc58   :  { %7440 = vmatprep.mubr.bf16.mxu1 %v18829_v58  ;;  %v18860_v58 = vld [vmem:[#allocation214_spill] sm:$0xff] }
 0xc5f   :  { %7441 = vmatmul.mubr.bf16.gmra.mrb[240].mxu1 %v18830_v7  ;;  %v18861_v7 = vld [vmem:[#allocation215_spill] sm:$0xff] }
 0xc60   :  { %7448 = vmatprep.mubr.bf16.mxu1 %v18831_v9  ;;  %v18862_v9 = vld [vmem:[#allocation216_spill] sm:$0xff] }
 0xc67   :  { %7449 = vmatmul.mubr.bf16.gmra.mrb[244].mxu1 %v18832_v61  ;;  %v18863_v61 = vld [vmem:[#allocation217_spill] sm:$0xff] }
 0xc68   :  { %7456 = vmatprep.mubr.bf16.mxu1 %v18833_v47  ;;  %v18864_v47 = vld [vmem:[#allocation218_spill] sm:$0xff] }
 0xc6f   :  { %7457 = vmatmul.mubr.bf16.gmra.mrb[248].mxu1 %v18834_v32  ;;  %v18865_v32 = vld [vmem:[#allocation219_spill] sm:$0xff] }
 0xc70   :  { %7464 = vmatprep.mubr.bf16.mxu1 %v18835_v50  ;;  %v18866_v50 = vld [vmem:[#allocation220_spill] sm:$0xff] }
 0xc77   :  { %7465 = vmatmul.mubr.bf16.gmra.mrb[252].mxu1 %v18836_v46  ;;  %v18867_v46 = vld [vmem:[#allocation221_spill] sm:$0xff] }
 0xc78   :  { %7472 = vmatprep.mubr.bf16.mxu1 %v18837_v16  ;;  %v18868_v16 = vld [vmem:[#allocation222_spill] sm:$0xff] }
 0xc7f   :  { %7473 = vmatmul.mubr.bf16.gmra.mrb[0].mxu1 %v18838_v13  ;;  %v18869_v13 = vld [vmem:[#allocation223_spill] sm:$0xff] }
 0xc80   :  { %7480 = vmatprep.mubr.bf16.mxu1 %v18839_v54  ;;  %v18870_v54 = vld [vmem:[#allocation224_spill] sm:$0xff] }
 0xc87   :  { %7481 = vmatmul.mubr.bf16.gmra.mrb[4].mxu1 %v18840_v52  ;;  %v18871_v52 = vld [vmem:[#allocation225_spill] sm:$0xff] }
 0xc88   :  { %7488 = vmatprep.mubr.bf16.mxu1 %v18841_v62  ;;  %v18872_v62 = vld [vmem:[#allocation226_spill] sm:$0xff] }
 0xc8f   :  { %7489 = vmatmul.mubr.bf16.gmra.mrb[8].mxu1 %v18842_v15  ;;  %v18873_v15 = vld [vmem:[#allocation227_spill] sm:$0xff] }
 0xc90   :  { %7496 = vmatprep.mubr.bf16.mxu1 %v18843_v36  ;;  %v18874_v36 = vld [vmem:[#allocation228_spill] sm:$0xff] }
 0xc97   :  { %7497 = vmatmul.mubr.bf16.gmra.mrb[12].mxu1 %v18844_v49  ;;  %v18875_v49 = vld [vmem:[#allocation229_spill] sm:$0xff] }
 0xc98   :  { %7504 = vmatprep.mubr.bf16.mxu1 %v18845_v60  ;;  %v18876_v60 = vld [vmem:[#allocation230_spill] sm:$0xff] }
 0xc9f   :  { %7505 = vmatmul.mubr.bf16.gmra.mrb[16].mxu1 %v18846_v19  ;;  %v18877_v19 = vld [vmem:[#allocation231_spill] sm:$0xff] }
 0xca0   :  { %7512 = vmatprep.mubr.bf16.mxu1 %v18847_v45  ;;  %v18878_v45 = vld [vmem:[#allocation232_spill] sm:$0xff] }
 0xca7   :  { %7513 = vmatmul.mubr.bf16.gmra.mrb[20].mxu1 %v18848_v42  ;;  %v18879_v42 = vld [vmem:[#allocation233_spill] sm:$0xff] }
 0xca8   :  { %7520 = vmatprep.mubr.bf16.mxu1 %v18849_v22  ;;  %v18880_v22 = vld [vmem:[#allocation234_spill] sm:$0xff] }
 0xcaf   :  { %7521 = vmatmul.mubr.bf16.gmra.mrb[24].mxu1 %v18850_v37  ;;  %v18881_v37 = vld [vmem:[#allocation235_spill] sm:$0xff] }
 0xcb0   :  { %7528 = vmatprep.mubr.bf16.mxu1 %v18851_v24  ;;  %v18882_v24 = vld [vmem:[#allocation236_spill] sm:$0xff] }
 0xcb7   :  { %7529 = vmatmul.mubr.bf16.gmra.mrb[28].mxu1 %v18852_v38  ;;  %v18883_v38 = vld [vmem:[#allocation237_spill] sm:$0xff] }
 0xcb8   :  { %7536 = vmatprep.mubr.bf16.mxu1 %v18853_v55  ;;  %v18884_v55 = vld [vmem:[#allocation238_spill] sm:$0xff] }
 0xcbf   :  { %7537 = vmatmul.mubr.bf16.gmra.mrb[32].mxu1 %v18854_v48  ;;  %v18885_v48 = vld [vmem:[#allocation239_spill] sm:$0xff] }
 0xcc0   :  { %7544 = vmatprep.mubr.bf16.mxu1 %v18855_v56  ;;  %v18886_v56 = vld [vmem:[#allocation240_spill] sm:$0xff] }
 0xcc7   :  { %7545 = vmatmul.mubr.bf16.gmra.mrb[36].mxu1 %v18856_v51  ;;  %v18887_v51 = vld [vmem:[#allocation241_spill] sm:$0xff] }
 0xcc8   :  { %7552 = vmatprep.mubr.bf16.mxu1 %v18857_v27  ;;  %v18888_v27 = vld [vmem:[#allocation242_spill] sm:$0xff] }
 0xccf   :  { %7553 = vmatmul.mubr.bf16.gmra.mrb[40].mxu1 %v18858_v31  ;;  %v18889_v31 = vld [vmem:[#allocation243_spill] sm:$0xff] }
 0xcd0   :  { %7560 = vmatprep.mubr.bf16.mxu1 %v18859_v20  ;;  %v18890_v20 = vld [vmem:[#allocation244_spill] sm:$0xff] }
 0xcd7   :  { %7561 = vmatmul.mubr.bf16.gmra.mrb[44].mxu1 %v18860_v58  ;;  %v18891_v58 = vld [vmem:[#allocation245_spill] sm:$0xff] }
 0xcd8   :  { %7568 = vmatprep.mubr.bf16.mxu1 %v18861_v7  ;;  %v18892_v7 = vld [vmem:[#allocation246_spill] sm:$0xff] }
 0xcdf   :  { %7569 = vmatmul.mubr.bf16.gmra.mrb[48].mxu1 %v18862_v9  ;;  %v18893_v9 = vpack.c.bf16 %v16218_v21, %v16223_v14  ;;  %v18899_v21 = vpack.c.bf16 %v16266_v2, %v16271_v4  ;;  %v18900_v14 = vld [vmem:[#allocation250_spill] sm:$0xff]  ;;  %v18905_v2 = vpack.c.bf16 %v16310_v29, %v16312_v53  ;;  %v18906_v4 = vld [vmem:[#allocation253_spill] sm:$0xff]  ;;  %v18911_v29 = vpack.c.bf16 %v16334_v18, %v16336_v35  ;;  %v18912_v53 = vld [vmem:[#allocation256_spill] sm:$0xff] }
 0xce0   :  { %7576 = vmatprep.mubr.bf16.mxu1 %v18863_v61  ;;  %v18894_v61 = vld [vmem:[#allocation247_spill] sm:$0xff]  ;;  %v18917_v18 = vpack.c.bf16 %v16358_v57, %v16360_v40  ;;  %v18923_v40 = vpack.c.bf16 %v16382_v30, %v16384_v26  ;;  %v18924_v57 = vld [vmem:[#allocation262_spill] sm:$0xff]  ;;  %v18934_v30 = vld [vmem:[#allocation272_spill] sm:$0xff] }
 0xce1   :  { %v18918_v35 = vld [vmem:[#allocation259_spill] sm:$0xff] }
 0xce2   :  { %v18933_v26 = vld [vmem:[#allocation271_spill] sm:$0xff] }
 0xce7   :  { %7577 = vmatmul.mubr.bf16.gmra.mrb[52].mxu1 %v18864_v47  ;;  %v18895_v47 = vpack.c.bf16 %v16234_v25, %v16239_v17  ;;  %v18901_v25 = vpack.c.bf16 %v16282_v11, %v16287_v8  ;;  %v18902_v17 = vld [vmem:[#allocation251_spill] sm:$0xff]  ;;  %v18907_v11 = vpack.c.bf16 %v16318_v28, %v16320_v5  ;;  %v18908_v8 = vld [vmem:[#allocation254_spill] sm:$0xff]  ;;  %v18913_v28 = vpack.c.bf16 %v16342_v44, %v16344_v63  ;;  %v18914_v5 = vld [vmem:[#allocation257_spill] sm:$0xff] }
 0xce8   :  { %7584 = vmatprep.mubr.bf16.mxu1 %v18865_v32  ;;  %v18896_v32 = vld [vmem:[#allocation248_spill] sm:$0xff]  ;;  %v18919_v44 = vpack.c.bf16 %v16366_v41, %v16368_v43  ;;  %v18922_v63 = vld [vmem:[#allocation261_spill] sm:$0xff]  ;;  %v18925_v43 = vld [vmem:[#allocation263_spill] sm:$0xff] }
 0xce9   :  { %v18926_v41 = vld [vmem:[#allocation264_spill] sm:$0xff] }
 0xcef   :  { %7585 = vmatmul.mubr.bf16.gmra.mrb[56].mxu1 %v18866_v50  ;;  %v18897_v50 = vpack.c.bf16 %v16250_v12, %v16255_v3  ;;  %v18903_v12 = vpack.c.bf16 %v16298_v59, %v16303_v6  ;;  %v18904_v3 = vld [vmem:[#allocation252_spill] sm:$0xff]  ;;  %v18909_v59 = vpack.c.bf16 %v16326_v33, %v16328_v23  ;;  %v18910_v6 = vld [vmem:[#allocation255_spill] sm:$0xff]  ;;  %v18915_v33 = vpack.c.bf16 %v16350_v0, %v16352_v1  ;;  %v18916_v23 = vld [vmem:[#allocation258_spill] sm:$0xff] }
 0xcf0   :  { %7592 = vmatprep.mubr.bf16.mxu1 %v18867_v46  ;;  %v18898_v46 = vld [vmem:[#allocation249_spill] sm:$0xff]  ;;  %v18920_v1 = vld [vmem:[#allocation260_spill] sm:$0xff]  ;;  %v18921_v0 = vpack.c.bf16 %v16374_v39, %v16376_v34  ;;  %v18929_v34 = vld [vmem:[#allocation267_spill] sm:$0xff] }
 0xcf1   :  { %v18930_v39 = vld [vmem:[#allocation268_spill] sm:$0xff] }
 0xcf7   :  { %7593 = vmatmul.mubr.bf16.gmra.mrb[60].mxu1 %v18868_v16  ;;  %v18927_v16 = vld [vmem:[#allocation265_spill] sm:$0xff] }
 0xcf8   :  { %7600 = vmatprep.mubr.bf16.mxu1 %v18869_v13  ;;  %v18928_v13 = vld [vmem:[#allocation266_spill] sm:$0xff] }
 0xcff   :  { %7601 = vmatmul.mubr.bf16.gmra.mrb[64].mxu1 %v18870_v54  ;;  %v18931_v54 = vld [vmem:[#allocation269_spill] sm:$0xff] }
 0xd00   :  { %7608 = vmatprep.mubr.bf16.mxu1 %v18871_v52  ;;  %v18935_v52 = vld [vmem:[#allocation273_spill] sm:$0xff] }
 0xd07   :  { %7609 = vmatmul.mubr.bf16.gmra.mrb[68].mxu1 %v18872_v62  ;;  %v18936_v62 = vld [vmem:[#allocation274_spill] sm:$0xff] }
 0xd08   :  { %7616 = vmatprep.mubr.bf16.mxu1 %v18873_v15  ;;  %v18937_v15 = vld [vmem:[#allocation275_spill] sm:$0xff] }
 0xd0f   :  { %7617 = vmatmul.mubr.bf16.gmra.mrb[72].mxu1 %v18874_v36  ;;  %v18938_v36 = vld [vmem:[#allocation276_spill] sm:$0xff] }
 0xd10   :  { %7624 = vmatprep.mubr.bf16.mxu1 %v18875_v49  ;;  %v18939_v49 = vld [vmem:[#allocation277_spill] sm:$0xff] }
 0xd17   :  { %7625 = vmatmul.mubr.bf16.gmra.mrb[76].mxu1 %v18876_v60  ;;  %v18940_v60 = vld [vmem:[#allocation278_spill] sm:$0xff] }
 0xd18   :  { %7632 = vmatprep.mubr.bf16.mxu1 %v18877_v19  ;;  %v18941_v19 = vld [vmem:[#allocation279_spill] sm:$0xff] }
 0xd1f   :  { %7633 = vmatmul.mubr.bf16.gmra.mrb[80].mxu1 %v18878_v45  ;;  %v18942_v45 = vld [vmem:[#allocation280_spill] sm:$0xff] }
 0xd20   :  { %7640 = vmatprep.mubr.bf16.mxu1 %v18879_v42  ;;  %v18943_v42 = vld [vmem:[#allocation281_spill] sm:$0xff] }
 0xd27   :  { %7641 = vmatmul.mubr.bf16.gmra.mrb[84].mxu1 %v18880_v22  ;;  %v18944_v22 = vld [vmem:[#allocation282_spill] sm:$0xff] }
 0xd28   :  { %7648 = vmatprep.mubr.bf16.mxu1 %v18881_v37  ;;  %v18945_v37 = vld [vmem:[#allocation283_spill] sm:$0xff] }
 0xd2f   :  { %7649 = vmatmul.mubr.bf16.gmra.mrb[88].mxu1 %v18882_v24  ;;  %v18946_v24 = vld [vmem:[#allocation284_spill] sm:$0xff] }
 0xd30   :  { %7656 = vmatprep.mubr.bf16.mxu1 %v18883_v38  ;;  %v18947_v38 = vld [vmem:[#allocation285_spill] sm:$0xff] }
 0xd37   :  { %7657 = vmatmul.mubr.bf16.gmra.mrb[92].mxu1 %v18884_v55  ;;  %v18948_v55 = vld [vmem:[#allocation286_spill] sm:$0xff] }
 0xd38   :  { %7664 = vmatprep.mubr.bf16.mxu1 %v18885_v48  ;;  %v18949_v48 = vld [vmem:[#allocation287_spill] sm:$0xff] }
 0xd3f   :  { %7665 = vmatmul.mubr.bf16.gmra.mrb[96].mxu1 %v18886_v56  ;;  %v18950_v56 = vld [vmem:[#allocation288_spill] sm:$0xff] }
 0xd40   :  { %7672 = vmatprep.mubr.bf16.mxu1 %v18887_v51  ;;  %v18951_v51 = vld [vmem:[#allocation289_spill] sm:$0xff] }
 0xd47   :  { %7673 = vmatmul.mubr.bf16.gmra.mrb[100].mxu1 %v18888_v27  ;;  %v18952_v27 = vld [vmem:[#allocation290_spill] sm:$0xff] }
 0xd48   :  { %7680 = vmatprep.mubr.bf16.mxu1 %v18889_v31  ;;  %v18953_v31 = vld [vmem:[#allocation291_spill] sm:$0xff] }
 0xd4f   :  { %7681 = vmatmul.mubr.bf16.gmra.mrb[104].mxu1 %v18890_v20  ;;  %v18954_v20 = vld [vmem:[#allocation292_spill] sm:$0xff] }
 0xd50   :  { %7721 = vmatprep.mubr.bf16.mxu1 %v18891_v58  ;;  %v18955_v58 = vld [vmem:[#allocation293_spill] sm:$0xff] }
 0xd57   :  { %7722 = vmatmul.mubr.bf16.vlgmr.msra.gmra.mrb[108].mxu1 %v18892_v7  ;;  %v18956_v7 = vld [vmem:[#allocation294_spill] sm:$0xff] }
 0xd58   :  { %8235 = vmatpush1.bf16.msra.mxu1 %v18893_v9  ;;  %7729 = vmatprep.mubr.bf16.mxu1 %v18894_v61  ;;  %v18957_v9 = vld [vmem:[#allocation295_spill] sm:$0xff]  ;;  %v18958_v61 = vld [vmem:[#allocation296_spill] sm:$0xff] }
 0xd59   :  { %8236 = vmatprep.subr.bf16.mxu1 %v18108_v10 }
 0xd5c   :  { %8237 = vmatpush1.bf16.msra.mxu1 %v18895_v47  ;;  %v18959_v47 = vld [vmem:[#allocation297_spill] sm:$0xff] }
 0xd5d   :  { %8238 = vmatprep.subr.bf16.mxu1 %v18108_v10 }
 0xd5f   :  { %7730 = vmatmul.mubr.bf16.gmra.mrb[112].mxu1 %v18896_v32  ;;  %v18960_v32 = vld [vmem:[#allocation298_spill] sm:$0xff] }
 0xd60   :  { %8239 = vmatpush1.bf16.msra.mxu1 %v18897_v50  ;;  %7737 = vmatprep.mubr.bf16.mxu1 %v18898_v46  ;;  %v18961_v50 = vld [vmem:[#allocation299_spill] sm:$0xff]  ;;  %v18962_v46 = vld [vmem:[#allocation300_spill] sm:$0xff] }
 0xd61   :  { %8240 = vmatprep.subr.bf16.mxu1 %v18108_v10 }
 0xd64   :  { %8241 = vmatpush1.bf16.msra.mxu1 %v18899_v21  ;;  %v18963_v21 = vld [vmem:[#allocation301_spill] sm:$0xff] }
 0xd65   :  { %8242 = vmatprep.subr.bf16.mxu1 %v18108_v10 }
 0xd67   :  { %7738 = vmatmul.mubr.bf16.gmra.mrb[116].mxu1 %v18900_v14  ;;  %v18964_v14 = vld [vmem:[#allocation302_spill] sm:$0xff] }
 0xd68   :  { %8243 = vmatpush1.bf16.msra.mxu1 %v18901_v25  ;;  %7745 = vmatprep.mubr.bf16.mxu1 %v18902_v17  ;;  %v18965_v25 = vld [vmem:[#allocation303_spill] sm:$0xff]  ;;  %v18966_v17 = vld [vmem:[#allocation304_spill] sm:$0xff] }
 0xd69   :  { %8244 = vmatprep.subr.bf16.mxu1 %v18108_v10 }
 0xd6c   :  { %8245 = vmatpush1.bf16.msra.mxu1 %v18903_v12  ;;  %v18967_v12 = vld [vmem:[#allocation305_spill] sm:$0xff] }
 0xd6d   :  { %8246 = vmatprep.subr.bf16.mxu1 %v18108_v10 }
 0xd6f   :  { %7746 = vmatmul.mubr.bf16.gmra.mrb[120].mxu1 %v18904_v3  ;;  %v18968_v3 = vld [vmem:[#allocation306_spill] sm:$0xff] }
 0xd70   :  { %8247 = vmatpush1.bf16.msra.mxu1 %v18905_v2  ;;  %7753 = vmatprep.mubr.bf16.mxu1 %v18906_v4  ;;  %v18969_v2 = vld [vmem:[#allocation307_spill] sm:$0xff]  ;;  %v18970_v4 = vld [vmem:[#allocation308_spill] sm:$0xff] }
 0xd71   :  { %8248 = vmatprep.subr.bf16.mxu1 %v18108_v10 }
 0xd74   :  { %8249 = vmatpush1.bf16.msra.mxu1 %v18907_v11  ;;  %v18971_v11 = vld [vmem:[#allocation309_spill] sm:$0xff] }
 0xd75   :  { %8250 = vmatprep.subr.bf16.mxu1 %v18108_v10 }
 0xd77   :  { %7754 = vmatmul.mubr.bf16.gmra.mrb[124].mxu1 %v18908_v8  ;;  %v18972_v8 = vld [vmem:[#allocation310_spill] sm:$0xff] }
 0xd78   :  { %8251 = vmatpush1.bf16.msra.mxu1 %v18909_v59  ;;  %7761 = vmatprep.mubr.bf16.mxu1 %v18910_v6  ;;  %v18973_v59 = vld [vmem:[#allocation311_spill] sm:$0xff]  ;;  %v18974_v6 = vld [vmem:[#allocation312_spill] sm:$0xff] }
 0xd79   :  { %8252 = vmatprep.subr.bf16.mxu1 %v18108_v10 }
 0xd7c   :  { %8253 = vmatpush1.bf16.msra.mxu1 %v18911_v29  ;;  %v18975_v29 = vld [vmem:[#allocation313_spill] sm:$0xff] }
 0xd7d   :  { %8254 = vmatprep.subr.bf16.mxu1 %v18108_v10 }
 0xd7f   :  { %7762 = vmatmul.mubr.bf16.gmra.mrb[128].mxu1 %v18912_v53  ;;  %v18976_v53 = vld [vmem:[#allocation314_spill] sm:$0xff] }
 0xd80   :  { %8255 = vmatpush1.bf16.msra.mxu1 %v18913_v28  ;;  %7769 = vmatprep.mubr.bf16.mxu1 %v18914_v5  ;;  %v18977_v28 = vld [vmem:[#allocation315_spill] sm:$0xff]  ;;  %v18978_v5 = vld [vmem:[#allocation316_spill] sm:$0xff] }
 0xd81   :  { %8256 = vmatprep.subr.bf16.mxu1 %v18108_v10 }
 0xd84   :  { %8257 = vmatpush1.bf16.msra.mxu1 %v18915_v33  ;;  %v18979_v33 = vld [vmem:[#allocation317_spill] sm:$0xff] }
 0xd85   :  { %8258 = vmatprep.subr.bf16.mxu1 %v18108_v10 }
 0xd87   :  { %7770 = vmatmul.mubr.bf16.gmra.mrb[132].mxu1 %v18916_v23  ;;  %v18980_v23 = vld [vmem:[#allocation318_spill] sm:$0xff] }
 0xd88   :  { %8259 = vmatpush1.bf16.msra.mxu1 %v18917_v18  ;;  %7777 = vmatprep.mubr.bf16.mxu1 %v18918_v35  ;;  %v18981_v18 = vld [vmem:[#allocation319_spill] sm:$0xff]  ;;  %v18982_v35 = vld [vmem:[#allocation320_spill] sm:$0xff] }
 0xd89   :  { %8260 = vmatprep.subr.bf16.mxu1 %v18108_v10 }
 0xd8c   :  { %8261 = vmatpush1.bf16.msra.mxu1 %v18919_v44  ;;  %v18983_v44 = vld [vmem:[#allocation321_spill] sm:$0xff] }
 0xd8d   :  { %8262 = vmatprep.subr.bf16.mxu1 %v18108_v10 }
 0xd8f   :  { %7778 = vmatmul.mubr.bf16.gmra.mrb[136].mxu1 %v18920_v1  ;;  %v18984_v1 = vld [vmem:[#allocation322_spill] sm:$0xff] }
 0xd90   :  { %8263 = vmatpush1.bf16.msra.mxu1 %v18921_v0  ;;  %7785 = vmatprep.mubr.bf16.mxu1 %v18922_v63  ;;  %v18985_v0 = vld [vmem:[#allocation323_spill] sm:$0xff]  ;;  %v18986_v63 = vld [vmem:[#allocation324_spill] sm:$0xff] }
 0xd91   :  { %8264 = vmatprep.subr.bf16.mxu1 %v18108_v10  ;;  %v18932_v10 = vld [vmem:[#allocation270_spill] sm:$0xff] }
 0xd94   :  { %8265 = vmatpush1.bf16.msra.mxu1 %v18923_v40  ;;  %v18987_v40 = vld [vmem:[#allocation325_spill] sm:$0xff] }
 0xd97   :  { %7786 = vmatmul.mubr.bf16.gmra.mrb[140].mxu1 %v18924_v57  ;;  %v18988_v57 = vld [vmem:[#allocation326_spill] sm:$0xff] }
 0xd98   :  { %7793 = vmatprep.mubr.bf16.mxu1 %v18925_v43  ;;  %v18989_v43 = vld [vmem:[#allocation327_spill] sm:$0xff] }
 0xd9f   :  { %7794 = vmatmul.mubr.bf16.gmra.mrb[144].mxu1 %v18926_v41  ;;  %v18990_v41 = vld [vmem:[#allocation328_spill] sm:$0xff] }
 0xda0   :  { %7801 = vmatprep.mubr.bf16.mxu1 %v18927_v16  ;;  %v18991_v16 = vld [vmem:[#allocation329_spill] sm:$0xff] }
 0xda7   :  { %7802 = vmatmul.mubr.bf16.gmra.mrb[148].mxu1 %v18928_v13  ;;  %v18992_v13 = vld [vmem:[#allocation330_spill] sm:$0xff] }
 0xda8   :  { %7809 = vmatprep.mubr.bf16.mxu1 %v18929_v34  ;;  %v18993_v34 = vld [vmem:[#allocation331_spill] sm:$0xff] }
 0xdaf   :  { %7810 = vmatmul.mubr.bf16.gmra.mrb[152].mxu1 %v18930_v39  ;;  %v18994_v39 = vld [vmem:[#allocation332_spill] sm:$0xff] }
 0xdb0   :  { %7817 = vmatprep.mubr.bf16.mxu1 %v18931_v54  ;;  %v18995_v54 = vld [vmem:[#allocation333_spill] sm:$0xff] }
 0xdb7   :  { %7818 = vmatmul.mubr.bf16.gmra.mrb[156].mxu1 %v18932_v10  ;;  %v18996_v10 = vld [vmem:[#allocation334_spill] sm:$0xff] }
 0xdb8   :  { %7825 = vmatprep.mubr.bf16.mxu1 %v18933_v26  ;;  %v18997_v26 = vld [vmem:[#allocation335_spill] sm:$0xff] }
 0xdbf   :  { %7826 = vmatmul.mubr.bf16.gmra.mrb[160].mxu1 %v18934_v30  ;;  %v18998_v30 = vld [vmem:[#allocation336_spill] sm:$0xff] }
 0xdc0   :  { %7833 = vmatprep.mubr.bf16.mxu1 %v18935_v52  ;;  %v18999_v52 = vld [vmem:[#allocation337_spill] sm:$0xff] }
 0xdc7   :  { %7834 = vmatmul.mubr.bf16.gmra.mrb[164].mxu1 %v18936_v62  ;;  %v19000_v62 = vld [vmem:[#allocation338_spill] sm:$0xff] }
 0xdc8   :  { %7841 = vmatprep.mubr.bf16.mxu1 %v18937_v15  ;;  %v19001_v15 = vld [vmem:[#allocation339_spill] sm:$0xff] }
 0xdcf   :  { %7842 = vmatmul.mubr.bf16.gmra.mrb[168].mxu1 %v18938_v36  ;;  %v19002_v36 = vld [vmem:[#allocation340_spill] sm:$0xff] }
 0xdd0   :  { %7849 = vmatprep.mubr.bf16.mxu1 %v18939_v49  ;;  %v19003_v49 = vld [vmem:[#allocation341_spill] sm:$0xff] }
 0xdd7   :  { %7850 = vmatmul.mubr.bf16.gmra.mrb[172].mxu1 %v18940_v60  ;;  %v19004_v60 = vld [vmem:[#allocation342_spill] sm:$0xff] }
 0xdd8   :  { %7857 = vmatprep.mubr.bf16.mxu1 %v18941_v19  ;;  %v19005_v19 = vld [vmem:[#allocation343_spill] sm:$0xff] }
 0xddf   :  { %7858 = vmatmul.mubr.bf16.gmra.mrb[176].mxu1 %v18942_v45  ;;  %v19006_v45 = vld [vmem:[#allocation344_spill] sm:$0xff] }
 0xde0   :  { %7865 = vmatprep.mubr.bf16.mxu1 %v18943_v42  ;;  %v19007_v42 = vld [vmem:[#allocation345_spill] sm:$0xff] }
 0xde7   :  { %7866 = vmatmul.mubr.bf16.gmra.mrb[180].mxu1 %v18944_v22  ;;  %v19008_v22 = vld [vmem:[#allocation346_spill] sm:$0xff] }
 0xde8   :  { %7873 = vmatprep.mubr.bf16.mxu1 %v18945_v37  ;;  %v19009_v37 = vld [vmem:[#allocation347_spill] sm:$0xff] }
 0xdef   :  { %7874 = vmatmul.mubr.bf16.gmra.mrb[184].mxu1 %v18946_v24  ;;  %v19010_v24 = vld [vmem:[#allocation348_spill] sm:$0xff] }
 0xdf0   :  { %7881 = vmatprep.mubr.bf16.mxu1 %v18947_v38  ;;  %v19011_v38 = vld [vmem:[#allocation349_spill] sm:$0xff] }
 0xdf7   :  { %7882 = vmatmul.mubr.bf16.gmra.mrb[188].mxu1 %v18948_v55  ;;  %v19012_v55 = vld [vmem:[#allocation350_spill] sm:$0xff] }
 0xdf8   :  { %7889 = vmatprep.mubr.bf16.mxu1 %v18949_v48  ;;  %v19013_v48 = vld [vmem:[#allocation351_spill] sm:$0xff] }
 0xdff   :  { %7890 = vmatmul.mubr.bf16.gmra.mrb[192].mxu1 %v18950_v56  ;;  %v19014_v56 = vld [vmem:[#allocation352_spill] sm:$0xff] }
 0xe00   :  { %7897 = vmatprep.mubr.bf16.mxu1 %v18951_v51  ;;  %v19015_v51 = vld [vmem:[#allocation353_spill] sm:$0xff] }
 0xe07   :  { %7898 = vmatmul.mubr.bf16.gmra.mrb[196].mxu1 %v18952_v27  ;;  %v19016_v27 = vld [vmem:[#allocation354_spill] sm:$0xff] }
 0xe08   :  { %7905 = vmatprep.mubr.bf16.mxu1 %v18953_v31  ;;  %v19017_v31 = vld [vmem:[#allocation355_spill] sm:$0xff] }
 0xe0f   :  { %7906 = vmatmul.mubr.bf16.gmra.mrb[200].mxu1 %v18954_v20  ;;  %v19018_v20 = vld [vmem:[#allocation356_spill] sm:$0xff] }
 0xe10   :  { %7913 = vmatprep.mubr.bf16.mxu1 %v18955_v58  ;;  %v19019_v58 = vld [vmem:[#allocation357_spill] sm:$0xff] }
 0xe17   :  { %7914 = vmatmul.mubr.bf16.gmra.mrb[204].mxu1 %v18956_v7  ;;  %v19020_v7 = vld [vmem:[#allocation358_spill] sm:$0xff] }
 0xe18   :  { %7921 = vmatprep.mubr.bf16.mxu1 %v18957_v9  ;;  %v19021_v9 = vld [vmem:[#allocation359_spill] sm:$0xff] }
 0xe1f   :  { %7922 = vmatmul.mubr.bf16.gmra.mrb[208].mxu1 %v18958_v61  ;;  %v19022_v61 = vld [vmem:[#allocation360_spill] sm:$0xff] }
 0xe20   :  { %7929 = vmatprep.mubr.bf16.mxu1 %v18959_v47  ;;  %v19023_v47 = vld [vmem:[#allocation361_spill] sm:$0xff] }
 0xe27   :  { %7930 = vmatmul.mubr.bf16.gmra.mrb[212].mxu1 %v18960_v32  ;;  %v19024_v32 = vld [vmem:[#allocation362_spill] sm:$0xff] }
 0xe28   :  { %7937 = vmatprep.mubr.bf16.mxu1 %v18961_v50  ;;  %v19025_v50 = vld [vmem:[#allocation363_spill] sm:$0xff] }
 0xe2f   :  { %7938 = vmatmul.mubr.bf16.gmra.mrb[216].mxu1 %v18962_v46  ;;  %v19026_v46 = vld [vmem:[#allocation364_spill] sm:$0xff] }
 0xe30   :  { %7945 = vmatprep.mubr.bf16.mxu1 %v18963_v21  ;;  %v19027_v21 = vld [vmem:[#allocation365_spill] sm:$0xff] }
 0xe37   :  { %7946 = vmatmul.mubr.bf16.gmra.mrb[220].mxu1 %v18964_v14  ;;  %v19028_v14 = vld [vmem:[#allocation366_spill] sm:$0xff] }
 0xe38   :  { %7953 = vmatprep.mubr.bf16.mxu1 %v18965_v25  ;;  %v19029_v25 = vld [vmem:[#allocation367_spill] sm:$0xff] }
 0xe3f   :  { %7954 = vmatmul.mubr.bf16.gmra.mrb[224].mxu1 %v18966_v17  ;;  %v19030_v17 = vld [vmem:[#allocation368_spill] sm:$0xff] }
 0xe40   :  { %7961 = vmatprep.mubr.bf16.mxu1 %v18967_v12  ;;  %v19031_v12 = vld [vmem:[#allocation369_spill] sm:$0xff] }
 0xe47   :  { %7962 = vmatmul.mubr.bf16.gmra.mrb[228].mxu1 %v18968_v3  ;;  %v19032_v3 = vld [vmem:[#allocation370_spill] sm:$0xff] }
 0xe48   :  { %7969 = vmatprep.mubr.bf16.mxu1 %v18969_v2  ;;  %v19033_v2 = vld [vmem:[#allocation371_spill] sm:$0xff] }
 0xe4f   :  { %7970 = vmatmul.mubr.bf16.gmra.mrb[232].mxu1 %v18970_v4  ;;  %v19034_v4 = vld [vmem:[#allocation372_spill] sm:$0xff] }
 0xe50   :  { %7977 = vmatprep.mubr.bf16.mxu1 %v18971_v11  ;;  %v19035_v11 = vld [vmem:[#allocation373_spill] sm:$0xff] }
 0xe57   :  { %7978 = vmatmul.mubr.bf16.gmra.mrb[236].mxu1 %v18972_v8  ;;  %v19036_v8 = vld [vmem:[#allocation374_spill] sm:$0xff] }
 0xe58   :  { %7985 = vmatprep.mubr.bf16.mxu1 %v18973_v59  ;;  %v19037_v59 = vld [vmem:[#allocation375_spill] sm:$0xff] }
 0xe5f   :  { %7986 = vmatmul.mubr.bf16.gmra.mrb[240].mxu1 %v18974_v6  ;;  %v19038_v6 = vld [vmem:[#allocation376_spill] sm:$0xff] }
 0xe60   :  { %7993 = vmatprep.mubr.bf16.mxu1 %v18975_v29  ;;  %v19039_v29 = vld [vmem:[#allocation377_spill] sm:$0xff] }
 0xe67   :  { %7994 = vmatmul.mubr.bf16.gmra.mrb[244].mxu1 %v18976_v53  ;;  %v19040_v53 = vld [vmem:[#allocation378_spill] sm:$0xff] }
 0xe68   :  { %8001 = vmatprep.mubr.bf16.mxu1 %v18977_v28  ;;  %v19041_v28 = vld [vmem:[#allocation379_spill] sm:$0xff] }
 0xe6f   :  { %8002 = vmatmul.mubr.bf16.gmra.mrb[248].mxu1 %v18978_v5  ;;  %v19042_v5 = vld [vmem:[#allocation380_spill] sm:$0xff] }
 0xe70   :  { %8009 = vmatprep.mubr.bf16.mxu1 %v18979_v33  ;;  %v19043_v33 = vld [vmem:[#allocation381_spill] sm:$0xff] }
 0xe77   :  { %8010 = vmatmul.mubr.bf16.gmra.mrb[252].mxu1 %v18980_v23  ;;  %v19044_v23 = vld [vmem:[#allocation382_spill] sm:$0xff] }
 0xe78   :  { %8017 = vmatprep.mubr.bf16.mxu1 %v18981_v18  ;;  %v19045_v18 = vld [vmem:[#allocation383_spill] sm:$0xff] }
 0xe7f   :  { %8018 = vmatmul.mubr.bf16.gmra.mrb[0].mxu1 %v18982_v35  ;;  %v19046_v35 = vld [vmem:[#allocation384_spill] sm:$0xff] }
 0xe80   :  { %8025 = vmatprep.mubr.bf16.mxu1 %v18983_v44  ;;  %v19047_v44 = vld [vmem:[#allocation385_spill] sm:$0xff] }
 0xe87   :  { %8026 = vmatmul.mubr.bf16.gmra.mrb[4].mxu1 %v18984_v1  ;;  %v19048_v1 = vld [vmem:[#allocation386_spill] sm:$0xff] }
 0xe88   :  { %8033 = vmatprep.mubr.bf16.mxu1 %v18985_v0  ;;  %v19049_v0 = vld [vmem:[#allocation387_spill] sm:$0xff] }
 0xe8f   :  { %8034 = vmatmul.mubr.bf16.gmra.mrb[8].mxu1 %v18986_v63  ;;  %v19050_v63 = vld [vmem:[#allocation388_spill] sm:$0xff] }
 0xe90   :  { %8041 = vmatprep.mubr.bf16.mxu1 %v18987_v40  ;;  %v19051_v40 = vld [vmem:[#allocation389_spill] sm:$0xff] }
 0xe97   :  { %8042 = vmatmul.mubr.bf16.gmra.mrb[12].mxu1 %v18988_v57  ;;  %v19052_v57 = vld [vmem:[#allocation390_spill] sm:$0xff] }
 0xe98   :  { %8049 = vmatprep.mubr.bf16.mxu1 %v18989_v43  ;;  %v19053_v43 = vld [vmem:[#allocation391_spill] sm:$0xff] }
 0xe9f   :  { %8050 = vmatmul.mubr.bf16.gmra.mrb[16].mxu1 %v18990_v41  ;;  %v19054_v41 = vld [vmem:[#allocation392_spill] sm:$0xff] }
 0xea0   :  { %8057 = vmatprep.mubr.bf16.mxu1 %v18991_v16  ;;  %v19055_v16 = vld [vmem:[#allocation393_spill] sm:$0xff] }
 0xea7   :  { %8058 = vmatmul.mubr.bf16.gmra.mrb[20].mxu1 %v18992_v13  ;;  %v19056_v13 = vld [vmem:[#allocation394_spill] sm:$0xff] }
 0xea8   :  { %8065 = vmatprep.mubr.bf16.mxu1 %v18993_v34  ;;  %v19057_v34 = vld [vmem:[#allocation395_spill] sm:$0xff] }
 0xeaf   :  { %8066 = vmatmul.mubr.bf16.gmra.mrb[24].mxu1 %v18994_v39  ;;  %v19058_v39 = vld [vmem:[#allocation396_spill] sm:$0xff] }
 0xeb0   :  { %8073 = vmatprep.mubr.bf16.mxu1 %v18995_v54  ;;  %v19059_v54 = vld [vmem:[#allocation397_spill] sm:$0xff] }
 0xeb7   :  { %8074 = vmatmul.mubr.bf16.gmra.mrb[28].mxu1 %v18996_v10  ;;  %v19060_v10 = vld [vmem:[#allocation398_spill] sm:$0xff] }
 0xeb8   :  { %8081 = vmatprep.mubr.bf16.mxu1 %v18997_v26  ;;  %v19061_v26 = vld [vmem:[#allocation399_spill] sm:$0xff] }
 0xebf   :  { %8082 = vmatmul.mubr.bf16.gmra.mrb[32].mxu1 %v18998_v30  ;;  %v19062_v30 = vld [vmem:[#allocation400_spill] sm:$0xff] }
 0xec0   :  { %8089 = vmatprep.mubr.bf16.mxu1 %v18999_v52  ;;  %v19063_v52 = vld [vmem:[#allocation401_spill] sm:$0xff] }
 0xec7   :  { %8090 = vmatmul.mubr.bf16.gmra.mrb[36].mxu1 %v19000_v62  ;;  %v19064_v62 = vld [vmem:[#allocation402_spill] sm:$0xff] }
 0xec8   :  { %8097 = vmatprep.mubr.bf16.mxu1 %v19001_v15  ;;  %v19065_v15 = vld [vmem:[#allocation403_spill] sm:$0xff] }
 0xecf   :  { %8098 = vmatmul.mubr.bf16.gmra.mrb[40].mxu1 %v19002_v36  ;;  %v19066_v36 = vld [vmem:[#allocation404_spill] sm:$0xff] }
 0xed0   :  { %8105 = vmatprep.mubr.bf16.mxu1 %v19003_v49  ;;  %v19067_v49 = vld [vmem:[#allocation405_spill] sm:$0xff] }
 0xed7   :  { %8106 = vmatmul.mubr.bf16.gmra.mrb[44].mxu1 %v19004_v60  ;;  %v19068_v60 = vld [vmem:[#allocation406_spill] sm:$0xff] }
 0xed8   :  { %8113 = vmatprep.mubr.bf16.mxu1 %v19005_v19  ;;  %v19069_v19 = vld [vmem:[#allocation407_spill] sm:$0xff] }
 0xedf   :  { %8114 = vmatmul.mubr.bf16.gmra.mrb[48].mxu1 %v19006_v45  ;;  %v19070_v45 = vld [vmem:[#allocation408_spill] sm:$0xff] }
 0xee0   :  { %8121 = vmatprep.mubr.bf16.mxu1 %v19007_v42  ;;  %v19071_v42 = vld [vmem:[#allocation409_spill] sm:$0xff] }
 0xee7   :  { %8122 = vmatmul.mubr.bf16.gmra.mrb[52].mxu1 %v19008_v22  ;;  %v19072_v22 = vld [vmem:[#allocation410_spill] sm:$0xff] }
 0xee8   :  { %8129 = vmatprep.mubr.bf16.mxu1 %v19009_v37  ;;  %v19073_v37 = vld [vmem:[#allocation411_spill] sm:$0xff] }
 0xeef   :  { %8130 = vmatmul.mubr.bf16.gmra.mrb[56].mxu1 %v19010_v24  ;;  %v19074_v24 = vld [vmem:[#allocation412_spill] sm:$0xff] }
 0xef0   :  { %8137 = vmatprep.mubr.bf16.mxu1 %v19011_v38  ;;  %v19075_v38 = vld [vmem:[#allocation413_spill] sm:$0xff] }
 0xef7   :  { %8138 = vmatmul.mubr.bf16.gmra.mrb[60].mxu1 %v19012_v55  ;;  %v19076_v55 = vld [vmem:[#allocation414_spill] sm:$0xff] }
 0xef8   :  { %8145 = vmatprep.mubr.bf16.mxu1 %v19013_v48  ;;  %v19077_v48 = vld [vmem:[#allocation415_spill] sm:$0xff] }
 0xeff   :  { %8146 = vmatmul.mubr.bf16.gmra.mrb[64].mxu1 %v19014_v56  ;;  %v19078_v56 = vld [vmem:[#allocation416_spill] sm:$0xff] }
 0xf00   :  { %8153 = vmatprep.mubr.bf16.mxu1 %v19015_v51  ;;  %v19079_v51 = vld [vmem:[#allocation417_spill] sm:$0xff] }
 0xf07   :  { %8154 = vmatmul.mubr.bf16.gmra.mrb[68].mxu1 %v19016_v27  ;;  %v19080_v27 = vld [vmem:[#allocation418_spill] sm:$0xff] }
 0xf08   :  { %8161 = vmatprep.mubr.bf16.mxu1 %v19017_v31  ;;  %v19081_v31 = vld [vmem:[#allocation419_spill] sm:$0xff] }
 0xf0f   :  { %8162 = vmatmul.mubr.bf16.gmra.mrb[72].mxu1 %v19018_v20  ;;  %v19082_v20 = vld [vmem:[#allocation420_spill] sm:$0xff] }
 0xf10   :  { %8169 = vmatprep.mubr.bf16.mxu1 %v19019_v58  ;;  %v19083_v58 = vld [vmem:[#allocation421_spill] sm:$0xff] }
 0xf17   :  { %8170 = vmatmul.mubr.bf16.gmra.mrb[76].mxu1 %v19020_v7  ;;  %v19084_v7 = vld [vmem:[#allocation422_spill] sm:$0xff] }
 0xf18   :  { %8177 = vmatprep.mubr.bf16.mxu1 %v19021_v9  ;;  %v19085_v9 = vld [vmem:[#allocation423_spill] sm:$0xff] }
 0xf1f   :  { %8178 = vmatmul.mubr.bf16.gmra.mrb[80].mxu1 %v19022_v61  ;;  %v19086_v61 = vld [vmem:[#allocation424_spill] sm:$0xff] }
 0xf20   :  { %8185 = vmatprep.mubr.bf16.mxu1 %v19023_v47  ;;  %v19087_v47 = vld [vmem:[#allocation425_spill] sm:$0xff] }
 0xf27   :  { %8186 = vmatmul.mubr.bf16.gmra.mrb[84].mxu1 %v19024_v32  ;;  %v19088_v32 = vld [vmem:[#allocation426_spill] sm:$0xff] }
 0xf28   :  { %8193 = vmatprep.mubr.bf16.mxu1 %v19025_v50  ;;  %v19089_v50 = vld [vmem:[#allocation427_spill] sm:$0xff] }
 0xf2f   :  { %8194 = vmatmul.mubr.bf16.gmra.mrb[88].mxu1 %v19026_v46  ;;  %v16920_v46 = vld [vmem:[%s17533_s5] ss:$0 sm:$0xff] }
 0xf30   :  { %8201 = vmatprep.mubr.bf16.mxu1 %v19027_v21 }
 0xf37   :  { %8202 = vmatmul.mubr.bf16.gmra.mrb[92].mxu1 %v19028_v14 }
 0xf38   :  { %8209 = vmatprep.mubr.bf16.mxu1 %v19029_v25 }
 0xf3f   :  { %8210 = vmatmul.mubr.bf16.gmra.mrb[96].mxu1 %v19030_v17 }
 0xf40   :  { %8217 = vmatprep.mubr.bf16.mxu1 %v19031_v12 }
 0xf47   :  { %8218 = vmatmul.mubr.bf16.gmra.mrb[100].mxu1 %v19032_v3 }
 0xf48   :  { %8225 = vmatprep.mubr.bf16.mxu1 %v19033_v2 }
 0xf4f   :  { %8226 = vmatmul.mubr.bf16.gmra.mrb[104].mxu1 %v19034_v4  ;;  %v19090_v4 = vld [vmem:[#allocation428_spill] sm:$0xff] }
 0xf50   :  { %8266 = vmatprep.mubr.bf16.mxu1 %v19035_v11  ;;  %v19091_v11 = vld [vmem:[#allocation429_spill] sm:$0xff] }
 0xf57   :  { %8267 = vmatmul.mubr.bf16.vlgmr.msra.gmra.mrb[108].mxu1 %v19036_v8 }
 0xf58   :  { %8274 = vmatprep.mubr.bf16.mxu1 %v19037_v59 }
 0xf5f   :  { %8275 = vmatmul.mubr.bf16.gmra.mrb[112].mxu1 %v19038_v6 }
 0xf60   :  { %8282 = vmatprep.mubr.bf16.mxu1 %v19039_v29 }
 0xf67   :  { %8283 = vmatmul.mubr.bf16.gmra.mrb[116].mxu1 %v19040_v53 }
 0xf68   :  { %8290 = vmatprep.mubr.bf16.mxu1 %v19041_v28 }
 0xf6f   :  { %8291 = vmatmul.mubr.bf16.gmra.mrb[120].mxu1 %v19042_v5 }
 0xf70   :  { %8298 = vmatprep.mubr.bf16.mxu1 %v19043_v33  ;;  %v19092_v33 = vld [vmem:[#allocation430_spill] sm:$0xff] }
 0xf77   :  { %8299 = vmatmul.mubr.bf16.gmra.mrb[124].mxu1 %v19044_v23  ;;  %v19093_v23 = vld [vmem:[#allocation431_spill] sm:$0xff] }
 0xf78   :  { %8306 = vmatprep.mubr.bf16.mxu1 %v19045_v18 }
 0xf7f   :  { %8307 = vmatmul.mubr.bf16.gmra.mrb[128].mxu1 %v19046_v35 }
 0xf80   :  { %8314 = vmatprep.mubr.bf16.mxu1 %v19047_v44 }
 0xf87   :  { %8315 = vmatmul.mubr.bf16.gmra.mrb[132].mxu1 %v19048_v1 }
 0xf88   :  { %8322 = vmatprep.mubr.bf16.mxu1 %v19049_v0 }
 0xf8f   :  { %8323 = vmatmul.mubr.bf16.gmra.mrb[136].mxu1 %v19050_v63 }
 0xf90   :  { %8330 = vmatprep.mubr.bf16.mxu1 %v19051_v40 }
 0xf97   :  { %8331 = vmatmul.mubr.bf16.gmra.mrb[140].mxu1 %v19052_v57  ;;  %v19094_v57 = vld [vmem:[#allocation432_spill] sm:$0xff] }
 0xf98   :  { %8338 = vmatprep.mubr.bf16.mxu1 %v19053_v43  ;;  %v19095_v43 = vld [vmem:[#allocation433_spill] sm:$0xff] }
 0xf9f   :  { %8339 = vmatmul.mubr.bf16.gmra.mrb[144].mxu1 %v19054_v41 }
 0xfa0   :  { %8346 = vmatprep.mubr.bf16.mxu1 %v19055_v16 }
 0xfa7   :  { %8347 = vmatmul.mubr.bf16.gmra.mrb[148].mxu1 %v19056_v13 }
 0xfa8   :  { %8354 = vmatprep.mubr.bf16.mxu1 %v19057_v34 }
 0xfaf   :  { %8355 = vmatmul.mubr.bf16.gmra.mrb[152].mxu1 %v19058_v39 }
 0xfb0   :  { %8362 = vmatprep.mubr.bf16.mxu1 %v19059_v54 }
 0xfb7   :  { %8363 = vmatmul.mubr.bf16.gmra.mrb[156].mxu1 %v19060_v10 }
 0xfb8   :  { %8370 = vmatprep.mubr.bf16.mxu1 %v19061_v26  ;;  %v19096_v26 = vld [vmem:[#allocation434_spill] sm:$0xff] }
 0xfbf   :  { %8371 = vmatmul.mubr.bf16.gmra.mrb[160].mxu1 %v19062_v30  ;;  %v19097_v30 = vld [vmem:[#allocation435_spill] sm:$0xff] }
 0xfc0   :  { %8378 = vmatprep.mubr.bf16.mxu1 %v19063_v52 }
 0xfc7   :  { %8379 = vmatmul.mubr.bf16.gmra.mrb[164].mxu1 %v19064_v62 }
 0xfc8   :  { %8386 = vmatprep.mubr.bf16.mxu1 %v19065_v15 }
 0xfcf   :  { %8387 = vmatmul.mubr.bf16.gmra.mrb[168].mxu1 %v19066_v36 }
 0xfd0   :  { %8394 = vmatprep.mubr.bf16.mxu1 %v19067_v49 }
 0xfd7   :  { %8395 = vmatmul.mubr.bf16.gmra.mrb[172].mxu1 %v19068_v60 }
 0xfd8   :  { %8402 = vmatprep.mubr.bf16.mxu1 %v19069_v19 }
 0xfdf   :  { %8403 = vmatmul.mubr.bf16.gmra.mrb[176].mxu1 %v19070_v45  ;;  %v19098_v45 = vld [vmem:[#allocation436_spill] sm:$0xff] }
 0xfe0   :  { %8410 = vmatprep.mubr.bf16.mxu1 %v19071_v42  ;;  %v19099_v42 = vld [vmem:[#allocation437_spill] sm:$0xff] }
 0xfe7   :  { %8411 = vmatmul.mubr.bf16.gmra.mrb[180].mxu1 %v19072_v22 }
 0xfe8   :  { %8418 = vmatprep.mubr.bf16.mxu1 %v19073_v37 }
 0xfef   :  { %8419 = vmatmul.mubr.bf16.gmra.mrb[184].mxu1 %v19074_v24 }
 0xff0   :  { %8426 = vmatprep.mubr.bf16.mxu1 %v19075_v38 }
 0xff7   :  { %8427 = vmatmul.mubr.bf16.gmra.mrb[188].mxu1 %v19076_v55 }
 0xff8   :  { %8434 = vmatprep.mubr.bf16.mxu1 %v19077_v48 }
 0xfff   :  { %8435 = vmatmul.mubr.bf16.gmra.mrb[192].mxu1 %v19078_v56 }
0x1000   :  { %8442 = vmatprep.mubr.bf16.mxu1 %v19079_v51  ;;  %v19100_v51 = vld [vmem:[#allocation438_spill] sm:$0xff] }
0x1007   :  { %8443 = vmatmul.mubr.bf16.gmra.mrb[196].mxu1 %v19080_v27  ;;  %v19101_v27 = vld [vmem:[#allocation439_spill] sm:$0xff] }
0x1008   :  { %8450 = vmatprep.mubr.bf16.mxu1 %v19081_v31 }
0x100f   :  { %8451 = vmatmul.mubr.bf16.gmra.mrb[200].mxu1 %v19082_v20 }
0x1010   :  { %8458 = vmatprep.mubr.bf16.mxu1 %v19083_v58 }
0x1017   :  { %8459 = vmatmul.mubr.bf16.gmra.mrb[204].mxu1 %v19084_v7 }
0x1018   :  { %8466 = vmatprep.mubr.bf16.mxu1 %v19085_v9 }
0x101f   :  { %8467 = vmatmul.mubr.bf16.gmra.mrb[208].mxu1 %v19086_v61 }
0x1020   :  { %8474 = vmatprep.mubr.bf16.mxu1 %v19087_v47 }
0x1027   :  { %8475 = vmatmul.mubr.bf16.gmra.mrb[212].mxu1 %v19088_v32  ;;  %v19102_v32 = vld [vmem:[#allocation440_spill] sm:$0xff] }
0x1028   :  { %8482 = vmatprep.mubr.bf16.mxu1 %v19089_v50  ;;  %v19103_v50 = vld [vmem:[#allocation441_spill] sm:$0xff] }
0x102a   :  { %v8268_v21 = vpop.f32.mrb[108].mxu1 }
0x102b   :  { %v8270_v14 = vpop.f32.mrb[109].mxu1  ;;  %v16923_v17 = vadd.f32 %v16920_v46, %v8268_v21 }
0x102c   :  { %v8271_v25 = vpop.f32.mrb[110].mxu1 }
0x102d   :  { %v16926_v12 = vadd.f32 %v16920_v46, %v8271_v25  ;;  %v8273_v3 = vpop.f32.mrb[111].mxu1 }
0x102f   :  { %v8783_v2 = vpack.c.bf16 %v16926_v12, %v16923_v17  ;;  %8483 = vmatmul.mubr.bf16.gmra.mrb[216].mxu1 %v19090_v4 }
0x1030   :  { %8490 = vmatprep.mubr.bf16.mxu1 %v19091_v11 }
0x1032   :  { %v8276_v8 = vpop.f32.mrb[112].mxu1 }
0x1033   :  { %v8278_v59 = vpop.f32.mrb[113].mxu1  ;;  %v16933_v29 = vadd.f32 %v16920_v46, %v8276_v8 }
0x1034   :  { %v8279_v6 = vpop.f32.mrb[114].mxu1  ;;  %v19104_v59 = vld [vmem:[#allocation442_spill] sm:$0xff] }
0x1035   :  { %v16936_v53 = vadd.f32 %v16920_v46, %v8279_v6  ;;  %v8281_v28 = vpop.f32.mrb[115].mxu1  ;;  %v19105_v6 = vld [vmem:[#allocation443_spill] sm:$0xff] }
0x1037   :  { %v8784_v5 = vpack.c.bf16 %v16936_v53, %v16933_v29  ;;  %8491 = vmatmul.mubr.bf16.gmra.mrb[220].mxu1 %v19092_v33 }
0x1038   :  { %8498 = vmatprep.mubr.bf16.mxu1 %v19093_v23 }
0x103a   :  { %v8284_v18 = vpop.f32.mrb[116].mxu1 }
0x103b   :  { %v8286_v35 = vpop.f32.mrb[117].mxu1  ;;  %v16943_v1 = vadd.f32 %v16920_v46, %v8284_v18 }
0x103c   :  { %v8287_v44 = vpop.f32.mrb[118].mxu1 }
0x103d   :  { %v16946_v0 = vadd.f32 %v16920_v46, %v8287_v44  ;;  %v8289_v63 = vpop.f32.mrb[119].mxu1 }
0x103f   :  { %v8785_v40 = vpack.c.bf16 %v16946_v0, %v16943_v1  ;;  %8499 = vmatmul.mubr.bf16.gmra.mrb[224].mxu1 %v19094_v57  ;;  %v19106_v57 = vld [vmem:[#allocation444_spill] sm:$0xff] }
0x1040   :  { %8506 = vmatprep.mubr.bf16.mxu1 %v19095_v43  ;;  %v17008_v43 = vld [vmem:[%s17534_s4] sm:$0xff] }
0x1042   :  { %v8292_v41 = vpop.f32.mrb[120].mxu1 }
0x1043   :  { %v8294_v16 = vpop.f32.mrb[121].mxu1  ;;  %v16953_v34 = vadd.f32 %v16920_v46, %v8292_v41  ;;  %v19107_v41 = vld [vmem:[#allocation445_spill] sm:$0xff] }
0x1044   :  { %v8295_v13 = vpop.f32.mrb[122].mxu1  ;;  %v9809_v16 = vcombine.high %v17008_v43, %v17008_v43 }
0x1045   :  { %v16956_v39 = vadd.f32 %v16920_v46, %v8295_v13  ;;  %v8297_v54 = vpop.f32.mrb[123].mxu1 }
0x1046   :  { %8907 = vmatprep.mubr.bf16.mxu0 %v9809_v16  ;;  %v19118_v16 = vld [vmem:[#allocation456_spill] sm:$0xff] }
0x1047   :  { %v8786_v10 = vpack.c.bf16 %v16956_v39, %v16953_v34  ;;  %8507 = vmatmul.mubr.bf16.gmra.mrb[228].mxu1 %v19096_v26 }
0x1048   :  { %8514 = vmatprep.mubr.bf16.mxu1 %v19097_v30 }
0x104a   :  { %v8300_v52 = vpop.f32.mrb[124].mxu1 }
0x104b   :  { %v8302_v62 = vpop.f32.mrb[125].mxu1  ;;  %v16963_v36 = vadd.f32 %v16920_v46, %v8300_v52 }
0x104c   :  { %v8303_v15 = vpop.f32.mrb[126].mxu1 }
0x104d   :  { %v16966_v49 = vadd.f32 %v16920_v46, %v8303_v15  ;;  %v8305_v60 = vpop.f32.mrb[127].mxu1 }
0x104e   :  { %v19108_v60 = vld [vmem:[#allocation446_spill] sm:$0xff] }
0x104f   :  { %v8787_v19 = vpack.c.bf16 %v16966_v49, %v16963_v36  ;;  %8515 = vmatmul.mubr.bf16.gmra.mrb[232].mxu1 %v19098_v45  ;;  %v19109_v45 = vld [vmem:[#allocation447_spill] sm:$0xff] }
0x1050   :  { %8522 = vmatprep.mubr.bf16.mxu1 %v19099_v42 }
0x1052   :  { %v8308_v22 = vpop.f32.mrb[128].mxu1 }
0x1053   :  { %v8310_v37 = vpop.f32.mrb[129].mxu1  ;;  %v16973_v38 = vadd.f32 %v16920_v46, %v8308_v22 }
0x1054   :  { %v8311_v24 = vpop.f32.mrb[130].mxu1 }
0x1055   :  { %v16976_v55 = vadd.f32 %v16920_v46, %v8311_v24  ;;  %v8313_v48 = vpop.f32.mrb[131].mxu1 }
0x1056   :  { %v19110_v48 = vld [vmem:[#allocation448_spill] sm:$0xff] }
0x1057   :  { %v8788_v56 = vpack.c.bf16 %v16976_v55, %v16973_v38  ;;  %8523 = vmatmul.mubr.bf16.gmra.mrb[236].mxu1 %v19100_v51  ;;  %v19111_v51 = vld [vmem:[#allocation449_spill] sm:$0xff] }
0x1058   :  { %8530 = vmatprep.mubr.bf16.mxu1 %v19101_v27 }
0x105a   :  { %v8316_v31 = vpop.f32.mrb[132].mxu1 }
0x105b   :  { %v8318_v20 = vpop.f32.mrb[133].mxu1  ;;  %v16983_v7 = vadd.f32 %v16920_v46, %v8316_v31 }
0x105c   :  { %v8319_v58 = vpop.f32.mrb[134].mxu1 }
0x105d   :  { %v16986_v9 = vadd.f32 %v16920_v46, %v8319_v58  ;;  %v8321_v61 = vpop.f32.mrb[135].mxu1 }
0x105e   :  { %v19112_v61 = vld [vmem:[#allocation450_spill] sm:$0xff] }
0x105f   :  { %v8789_v47 = vpack.c.bf16 %v16986_v9, %v16983_v7  ;;  %8531 = vmatmul.mubr.bf16.gmra.mrb[240].mxu1 %v19102_v32  ;;  %v19113_v32 = vld [vmem:[#allocation451_spill] sm:$0xff] }
0x1060   :  { %8538 = vmatprep.mubr.bf16.mxu1 %v19103_v50 }
0x1062   :  { %v8324_v21 = vpop.f32.mrb[136].mxu1 }
0x1063   :  { %v8326_v14 = vpop.f32.mrb[137].mxu1  ;;  %v16993_v3 = vadd.f32 %v16920_v46, %v8324_v21 }
0x1064   :  { %v8327_v25 = vpop.f32.mrb[138].mxu1 }
0x1065   :  { %v16996_v4 = vadd.f32 %v16920_v46, %v8327_v25  ;;  %v8329_v11 = vpop.f32.mrb[139].mxu1 }
0x1066   :  { %v19114_v11 = vld [vmem:[#allocation452_spill] sm:$0xff] }
0x1067   :  { %v8790_v8 = vpack.c.bf16 %v16996_v4, %v16993_v3  ;;  %8539 = vmatmul.mubr.bf16.gmra.mrb[244].mxu1 %v19104_v59  ;;  %v19115_v59 = vld [vmem:[#allocation453_spill] sm:$0xff] }
0x1068   :  { %8546 = vmatprep.mubr.bf16.mxu1 %v19105_v6 }
0x106a   :  { %v8332_v28 = vpop.f32.mrb[140].mxu1 }
0x106b   :  { %v8334_v33 = vpop.f32.mrb[141].mxu1  ;;  %v10565_v18 = vadd.f32 %v16920_v46, %v8332_v28 }
0x106c   :  { %v8335_v23 = vpop.f32.mrb[142].mxu1 }
0x106d   :  { %v10566_v35 = vadd.f32 %v16920_v46, %v8335_v23  ;;  %v8337_v44 = vpop.f32.mrb[143].mxu1 }
0x106f   :  { %v8791_v63 = vpack.c.bf16 %v10566_v35, %v10565_v18  ;;  %8547 = vmatmul.mubr.bf16.gmra.mrb[248].mxu1 %v19106_v57  ;;  %v19116_v18 = vld [vmem:[#allocation454_spill] sm:$0xff]  ;;  %v19117_v35 = vld [vmem:[#allocation455_spill] sm:$0xff] }
0x1070   :  { %8554 = vmatprep.mubr.bf16.mxu1 %v19107_v41 }
0x1071   :  { %9963 = vmatprep.subr.bf16.mxu0 %v8791_v63 }
0x1072   :  { %v8340_v13 = vpop.f32.mrb[144].mxu1  ;;  %9964 = vmatpush3.bf16.msra.mxu0 %v8783_v2 }
0x1073   :  { %v8342_v54 = vpop.f32.mrb[145].mxu1  ;;  %v10567_v30 = vadd.f32 %v16920_v46, %v8340_v13  ;;  %v19119_v13 = vld [vmem:[#allocation457_spill] sm:$0xff] }
0x1074   :  { %v8343_v26 = vpop.f32.mrb[146].mxu1 }
0x1075   :  { %v10568_v52 = vadd.f32 %v16920_v46, %v8343_v26  ;;  %v8345_v62 = vpop.f32.mrb[147].mxu1 }
0x1076   :  { %v19120_v62 = vld [vmem:[#allocation458_spill] sm:$0xff] }
0x1077   :  { %v8792_v15 = vpack.c.bf16 %v10568_v52, %v10567_v30  ;;  %8555 = vmatmul.mubr.bf16.gmra.mrb[252].mxu1 %v19108_v60  ;;  %v9808_v60 = vcombine.low %v17008_v43, %v17008_v43  ;;  %v19123_v43 = vld [vmem:[#allocation461_spill] sm:$0xff] }
0x1078   :  { %8562 = vmatprep.mubr.bf16.mxu1 %v19109_v45 }
0x1079   :  { %9965 = vmatprep.subr.bf16.mxu0 %v8792_v15  ;;  %v19121_v15 = vld [vmem:[#allocation459_spill] sm:$0xff] }
0x107a   :  { %v8348_v42 = vpop.f32.mrb[148].mxu1  ;;  %9966 = vmatpush3.bf16.msra.mxu0 %v8784_v5 }
0x107b   :  { %v8350_v17 = vpop.f32.mrb[149].mxu1  ;;  %v10569_v2 = vadd.f32 %v16920_v46, %v8348_v42 }
0x107c   :  { %v8351_v12 = vpop.f32.mrb[150].mxu1 }
0x107d   :  { %v10570_v22 = vadd.f32 %v16920_v46, %v8351_v12  ;;  %v8353_v37 = vpop.f32.mrb[151].mxu1 }
0x107f   :  { %v8793_v24 = vpack.c.bf16 %v10570_v22, %v10569_v2  ;;  %8563 = vmatmul.mubr.bf16.gmra.mrb[0].mxu1 %v19110_v48  ;;  %v19122_v2 = vld [vmem:[#allocation460_spill] sm:$0xff] }
0x1080   :  { %8570 = vmatprep.mubr.bf16.mxu1 %v19111_v51  ;;  %v19124_v51 = vld [vmem:[#allocation462_spill] sm:$0xff] }
0x1081   :  { %9967 = vmatprep.subr.bf16.mxu0 %v8793_v24 }
0x1082   :  { %v8356_v27 = vpop.f32.mrb[152].mxu1  ;;  %9968 = vmatpush3.bf16.msra.mxu0 %v8785_v40 }
0x1083   :  { %v8358_v29 = vpop.f32.mrb[153].mxu1  ;;  %v10571_v5 = vadd.f32 %v16920_v46, %v8356_v27  ;;  %v19125_v27 = vld [vmem:[#allocation463_spill] sm:$0xff] }
0x1084   :  { %v8359_v53 = vpop.f32.mrb[154].mxu1 }
0x1085   :  { %v10572_v31 = vadd.f32 %v16920_v46, %v8359_v53  ;;  %v8361_v20 = vpop.f32.mrb[155].mxu1 }
0x1087   :  { %v8794_v58 = vpack.c.bf16 %v10572_v31, %v10571_v5  ;;  %8571 = vmatmul.mubr.bf16.gmra.mrb[4].mxu1 %v19112_v61 }
0x1088   :  { %8578 = vmatprep.mubr.bf16.mxu1 %v19113_v32  ;;  %v19126_v32 = vld [vmem:[#allocation464_spill] sm:$0xff] }
0x1089   :  { %9969 = vmatprep.subr.bf16.mxu0 %v8794_v58 }
0x108a   :  { %v8364_v50 = vpop.f32.mrb[156].mxu1  ;;  %9970 = vmatpush3.bf16.msra.mxu0 %v8786_v10 }
0x108b   :  { %v8366_v1 = vpop.f32.mrb[157].mxu1  ;;  %v10573_v40 = vadd.f32 %v16920_v46, %v8364_v50  ;;  %v19127_v50 = vld [vmem:[#allocation465_spill] sm:$0xff] }
0x108c   :  { %v8367_v0 = vpop.f32.mrb[158].mxu1 }
0x108d   :  { %v10574_v21 = vadd.f32 %v16920_v46, %v8367_v0  ;;  %v8369_v14 = vpop.f32.mrb[159].mxu1 }
0x108f   :  { %v8795_v25 = vpack.c.bf16 %v10574_v21, %v10573_v40  ;;  %8579 = vmatmul.mubr.bf16.gmra.mrb[8].mxu1 %v19114_v11 }
0x1090   :  { %8586 = vmatprep.mubr.bf16.mxu1 %v19115_v59  ;;  %v19128_v59 = vld [vmem:[#allocation466_spill] sm:$0xff] }
0x1091   :  { %9971 = vmatprep.subr.bf16.mxu0 %v8795_v25 }
0x1092   :  { %v8372_v6 = vpop.f32.mrb[160].mxu1  ;;  %9972 = vmatpush3.bf16.msra.mxu0 %v8787_v19 }
0x1093   :  { %v8374_v34 = vpop.f32.mrb[161].mxu1  ;;  %v10575_v10 = vadd.f32 %v16920_v46, %v8372_v6  ;;  %v19129_v6 = vld [vmem:[#allocation467_spill] sm:$0xff] }
0x1094   :  { %v8375_v39 = vpop.f32.mrb[162].mxu1 }
0x1095   :  { %v10576_v28 = vadd.f32 %v16920_v46, %v8375_v39  ;;  %v8377_v33 = vpop.f32.mrb[163].mxu1 }
0x1097   :  { %v8796_v23 = vpack.c.bf16 %v10576_v28, %v10575_v10  ;;  %8587 = vmatmul.mubr.bf16.gmra.mrb[12].mxu1 %v19116_v18 }
0x1098   :  { %8594 = vmatprep.mubr.bf16.mxu1 %v19117_v35  ;;  %v19130_v35 = vld [vmem:[#allocation468_spill] sm:$0xff] }
0x1099   :  { %9973 = vmatprep.subr.bf16.mxu0 %v8796_v23 }
0x109a   :  { %v8380_v44 = vpop.f32.mrb[164].mxu1  ;;  %9974 = vmatpush3.bf16.msra.mxu0 %v8788_v56 }
0x109b   :  { %v8382_v36 = vpop.f32.mrb[165].mxu1  ;;  %v10577_v19 = vadd.f32 %v16920_v46, %v8380_v44  ;;  %v19131_v44 = vld [vmem:[#allocation469_spill] sm:$0xff] }
0x109c   :  { %v8383_v49 = vpop.f32.mrb[166].mxu1 }
0x109d   :  { %v10578_v63 = vadd.f32 %v16920_v46, %v8383_v49  ;;  %v8385_v57 = vpop.f32.mrb[167].mxu1 }
0x109f   :  { %v8797_v41 = vpack.c.bf16 %v10578_v63, %v10577_v19  ;;  %8595 = vmatmul.mubr.bf16.gmra.mrb[16].mxu1 %v19118_v16 }
0x10a0   :  { %8602 = vmatprep.mubr.bf16.mxu1 %v19119_v13  ;;  %v19132_v13 = vld [vmem:[#allocation470_spill] sm:$0xff] }
0x10a1   :  { %9975 = vmatprep.subr.bf16.mxu0 %v8797_v41 }
0x10a2   :  { %v8388_v54 = vpop.f32.mrb[168].mxu1  ;;  %9976 = vmatpush3.bf16.msra.mxu0 %v8789_v47 }
0x10a3   :  { %v8390_v38 = vpop.f32.mrb[169].mxu1  ;;  %v10579_v56 = vadd.f32 %v16920_v46, %v8388_v54  ;;  %v19133_v54 = vld [vmem:[#allocation471_spill] sm:$0xff] }
0x10a4   :  { %v8391_v55 = vpop.f32.mrb[170].mxu1 }
0x10a5   :  { %v10580_v26 = vadd.f32 %v16920_v46, %v8391_v55  ;;  %v8393_v30 = vpop.f32.mrb[171].mxu1 }
0x10a7   :  { %v8798_v52 = vpack.c.bf16 %v10580_v26, %v10579_v56  ;;  %8603 = vmatmul.mubr.bf16.gmra.mrb[20].mxu1 %v19120_v62 }
0x10a8   :  { %8610 = vmatprep.mubr.bf16.mxu1 %v19121_v15  ;;  %v19134_v15 = vld [vmem:[#allocation472_spill] sm:$0xff] }
0x10a9   :  { %9977 = vmatprep.subr.bf16.mxu0 %v8798_v52 }
0x10aa   :  { %v8396_v45 = vpop.f32.mrb[172].mxu1  ;;  %9978 = vmatpush3.bf16.msra.mxu0 %v8790_v8 }
0x10ab   :  { %v8398_v7 = vpop.f32.mrb[173].mxu1  ;;  %v17068_v47 = vadd.f32 %v16920_v46, %v8396_v45 }
0x10ac   :  { %v8399_v9 = vpop.f32.mrb[174].mxu1 }
0x10ad   :  { %v17071_v42 = vadd.f32 %v16920_v46, %v8399_v9  ;;  %v8401_v17 = vpop.f32.mrb[175].mxu1  ;;  %8908 = vmatmul.mubr.bf16.vlgmr.msra.gmra.mrb[20].mxu0 %v9808_v60  ;;  %v19135_v60 = vld [vmem:[#allocation473_spill] sm:$0xff] }
0x10af   :  { %v8799_v12 = vpack.c.bf16 %v17071_v42, %v17068_v47  ;;  %8611 = vmatmul.mubr.bf16.gmra.mrb[24].mxu1 %v19122_v2 }
0x10b0   :  { %8618 = vmatprep.mubr.bf16.mxu1 %v19123_v43 }
0x10b2   :  { %v8404_v22 = vpop.f32.mrb[176].mxu1 }
0x10b3   :  { %v8406_v3 = vpop.f32.mrb[177].mxu1  ;;  %v17078_v8 = vadd.f32 %v16920_v46, %v8404_v22 }
0x10b4   :  { %v8407_v4 = vpop.f32.mrb[178].mxu1  ;;  %v19136_v3 = vld [vmem:[#allocation474_spill] sm:$0xff] }
0x10b5   :  { %v17081_v37 = vadd.f32 %v16920_v46, %v8407_v4  ;;  %v8409_v24 = vpop.f32.mrb[179].mxu1  ;;  %v19137_v4 = vld [vmem:[#allocation475_spill] sm:$0xff] }
0x10b7   :  { %v8800_v48 = vpack.c.bf16 %v17081_v37, %v17078_v8  ;;  %8619 = vmatmul.mubr.bf16.gmra.mrb[28].mxu1 %v19124_v51 }
0x10b8   :  { %8626 = vmatprep.mubr.bf16.mxu1 %v19125_v27 }
0x10ba   :  { %v8412_v29 = vpop.f32.mrb[180].mxu1 }
0x10bb   :  { %v8414_v53 = vpop.f32.mrb[181].mxu1  ;;  %v17088_v31 = vadd.f32 %v16920_v46, %v8412_v29 }
0x10bc   :  { %v8415_v5 = vpop.f32.mrb[182].mxu1 }
0x10bd   :  { %v17091_v20 = vadd.f32 %v16920_v46, %v8415_v5  ;;  %v8417_v58 = vpop.f32.mrb[183].mxu1 }
0x10bf   :  { %v8801_v61 = vpack.c.bf16 %v17091_v20, %v17088_v31  ;;  %8627 = vmatmul.mubr.bf16.gmra.mrb[32].mxu1 %v19126_v32  ;;  %v19138_v32 = vld [vmem:[#allocation476_spill] sm:$0xff] }
0x10c0   :  { %8634 = vmatprep.mubr.bf16.mxu1 %v19127_v50  ;;  %v17153_v50 = vld [vmem:[%s17534_s4 + $0x8] sm:$0xff] }
0x10c2   :  { %v8420_v1 = vpop.f32.mrb[184].mxu1 }
0x10c3   :  { %v8422_v0 = vpop.f32.mrb[185].mxu1  ;;  %v17098_v21 = vadd.f32 %v16920_v46, %v8420_v1  ;;  %v19139_v1 = vld [vmem:[#allocation477_spill] sm:$0xff] }
0x10c4   :  { %v8423_v40 = vpop.f32.mrb[186].mxu1  ;;  %v9811_v0 = vcombine.high %v17153_v50, %v17153_v50 }
0x10c5   :  { %v17101_v14 = vadd.f32 %v16920_v46, %v8423_v40  ;;  %v8425_v25 = vpop.f32.mrb[187].mxu1 }
0x10c6   :  { %8947 = vmatprep.mubr.bf16.mxu0 %v9811_v0  ;;  %v19150_v0 = vld [vmem:[#allocation488_spill] sm:$0xff] }
0x10c7   :  { %v8802_v11 = vpack.c.bf16 %v17101_v14, %v17098_v21  ;;  %8635 = vmatmul.mubr.bf16.gmra.mrb[36].mxu1 %v19128_v59 }
0x10c8   :  { %8642 = vmatprep.mubr.bf16.mxu1 %v19129_v6 }
0x10ca   :  { %v8428_v34 = vpop.f32.mrb[188].mxu1 }
0x10cb   :  { %v8430_v39 = vpop.f32.mrb[189].mxu1  ;;  %v17108_v28 = vadd.f32 %v16920_v46, %v8428_v34 }
0x10cc   :  { %v8431_v10 = vpop.f32.mrb[190].mxu1 }
0x10cd   :  { %v17111_v33 = vadd.f32 %v16920_v46, %v8431_v10  ;;  %v8433_v23 = vpop.f32.mrb[191].mxu1 }
0x10ce   :  { %v19140_v23 = vld [vmem:[#allocation478_spill] sm:$0xff] }
0x10cf   :  { %v8803_v18 = vpack.c.bf16 %v17111_v33, %v17108_v28  ;;  %8643 = vmatmul.mubr.bf16.gmra.mrb[40].mxu1 %v19130_v35  ;;  %v19141_v35 = vld [vmem:[#allocation479_spill] sm:$0xff] }
0x10d0   :  { %8650 = vmatprep.mubr.bf16.mxu1 %v19131_v44 }
0x10d2   :  { %v8436_v36 = vpop.f32.mrb[192].mxu1 }
0x10d3   :  { %v8438_v49 = vpop.f32.mrb[193].mxu1  ;;  %v17118_v63 = vadd.f32 %v16920_v46, %v8436_v36 }
0x10d4   :  { %v8439_v19 = vpop.f32.mrb[194].mxu1 }
0x10d5   :  { %v17121_v57 = vadd.f32 %v16920_v46, %v8439_v19  ;;  %v8441_v41 = vpop.f32.mrb[195].mxu1 }
0x10d6   :  { %v19142_v41 = vld [vmem:[#allocation480_spill] sm:$0xff] }
0x10d7   :  { %v8804_v16 = vpack.c.bf16 %v17121_v57, %v17118_v63  ;;  %8651 = vmatmul.mubr.bf16.gmra.mrb[44].mxu1 %v19132_v13  ;;  %v19143_v13 = vld [vmem:[#allocation481_spill] sm:$0xff] }
0x10d8   :  { %8658 = vmatprep.mubr.bf16.mxu1 %v19133_v54 }
0x10da   :  { %v8444_v38 = vpop.f32.mrb[196].mxu1 }
0x10db   :  { %v8446_v55 = vpop.f32.mrb[197].mxu1  ;;  %v17128_v26 = vadd.f32 %v16920_v46, %v8444_v38 }
0x10dc   :  { %v8447_v56 = vpop.f32.mrb[198].mxu1 }
0x10dd   :  { %v17131_v30 = vadd.f32 %v16920_v46, %v8447_v56  ;;  %v8449_v52 = vpop.f32.mrb[199].mxu1 }
0x10de   :  { %v19144_v52 = vld [vmem:[#allocation482_spill] sm:$0xff] }
0x10df   :  { %v8805_v62 = vpack.c.bf16 %v17131_v30, %v17128_v26  ;;  %8659 = vmatmul.mubr.bf16.gmra.mrb[48].mxu1 %v19134_v15  ;;  %v19145_v15 = vld [vmem:[#allocation483_spill] sm:$0xff] }
0x10e0   :  { %8666 = vmatprep.mubr.bf16.mxu1 %v19135_v60 }
0x10e2   :  { %v8452_v45 = vpop.f32.mrb[200].mxu1 }
0x10e3   :  { %v8454_v7 = vpop.f32.mrb[201].mxu1  ;;  %v17138_v17 = vadd.f32 %v16920_v46, %v8452_v45 }
0x10e4   :  { %v8455_v9 = vpop.f32.mrb[202].mxu1 }
0x10e5   :  { %v17141_v2 = vadd.f32 %v16920_v46, %v8455_v9  ;;  %v8457_v43 = vpop.f32.mrb[203].mxu1 }
0x10e6   :  { %v19146_v43 = vld [vmem:[#allocation484_spill] sm:$0xff] }
0x10e7   :  { %v8806_v22 = vpack.c.bf16 %v17141_v2, %v17138_v17  ;;  %8667 = vmatmul.mubr.bf16.gmra.mrb[52].mxu1 %v19136_v3  ;;  %v19147_v3 = vld [vmem:[#allocation485_spill] sm:$0xff] }
0x10e8   :  { %8674 = vmatprep.mubr.bf16.mxu1 %v19137_v4 }
0x10ea   :  { %v8460_v24 = vpop.f32.mrb[204].mxu1 }
0x10eb   :  { %v8462_v51 = vpop.f32.mrb[205].mxu1  ;;  %v10597_v29 = vadd.f32 %v16920_v46, %v8460_v24 }
0x10ec   :  { %v8463_v27 = vpop.f32.mrb[206].mxu1 }
0x10ed   :  { %v10598_v53 = vadd.f32 %v16920_v46, %v8463_v27  ;;  %v8465_v5 = vpop.f32.mrb[207].mxu1 }
0x10ef   :  { %v8807_v58 = vpack.c.bf16 %v10598_v53, %v10597_v29  ;;  %8675 = vmatmul.mubr.bf16.gmra.mrb[56].mxu1 %v19138_v32  ;;  %v19148_v29 = vld [vmem:[#allocation486_spill] sm:$0xff]  ;;  %v19149_v53 = vld [vmem:[#allocation487_spill] sm:$0xff] }
0x10f0   :  { %8682 = vmatprep.mubr.bf16.mxu1 %v19139_v1 }
0x10f1   :  { %9985 = vmatprep.subr.bf16.mxu0 %v8807_v58 }
0x10f2   :  { %v8468_v40 = vpop.f32.mrb[208].mxu1  ;;  %9986 = vmatpush3.bf16.msra.mxu0 %v8799_v12 }
0x10f3   :  { %v8470_v25 = vpop.f32.mrb[209].mxu1  ;;  %v10599_v6 = vadd.f32 %v16920_v46, %v8468_v40  ;;  %v19151_v40 = vld [vmem:[#allocation489_spill] sm:$0xff] }
0x10f4   :  { %v8471_v59 = vpop.f32.mrb[210].mxu1 }
0x10f5   :  { %v10600_v34 = vadd.f32 %v16920_v46, %v8471_v59  ;;  %v8473_v39 = vpop.f32.mrb[211].mxu1 }
0x10f6   :  { %v19152_v39 = vld [vmem:[#allocation490_spill] sm:$0xff] }
0x10f7   :  { %v8808_v10 = vpack.c.bf16 %v10600_v34, %v10599_v6  ;;  %8683 = vmatmul.mubr.bf16.gmra.mrb[60].mxu1 %v19140_v23  ;;  %v9810_v23 = vcombine.low %v17153_v50, %v17153_v50  ;;  %v19155_v50 = vld [vmem:[#allocation493_spill] sm:$0xff] }
0x10f8   :  { %8690 = vmatprep.mubr.bf16.mxu1 %v19141_v35 }
0x10f9   :  { %9987 = vmatprep.subr.bf16.mxu0 %v8808_v10  ;;  %v19153_v10 = vld [vmem:[#allocation491_spill] sm:$0xff] }
0x10fa   :  { %v8476_v44 = vpop.f32.mrb[212].mxu1  ;;  %9988 = vmatpush3.bf16.msra.mxu0 %v8800_v48 }
0x10fb   :  { %v8478_v47 = vpop.f32.mrb[213].mxu1  ;;  %v10601_v12 = vadd.f32 %v16920_v46, %v8476_v44 }
0x10fc   :  { %v8479_v42 = vpop.f32.mrb[214].mxu1 }
0x10fd   :  { %v10602_v36 = vadd.f32 %v16920_v46, %v8479_v42  ;;  %v8481_v49 = vpop.f32.mrb[215].mxu1 }
0x10ff   :  { %v8809_v19 = vpack.c.bf16 %v10602_v36, %v10601_v12  ;;  %8691 = vmatmul.mubr.bf16.gmra.mrb[64].mxu1 %v19142_v41  ;;  %v19154_v12 = vld [vmem:[#allocation492_spill] sm:$0xff] }
0x1100   :  { %8698 = vmatprep.mubr.bf16.mxu1 %v19143_v13  ;;  %v19156_v13 = vld [vmem:[#allocation494_spill] sm:$0xff] }
0x1101   :  { %9989 = vmatprep.subr.bf16.mxu0 %v8809_v19 }
0x1102   :  { %v8484_v54 = vpop.f32.mrb[216].mxu1  ;;  %9990 = vmatpush3.bf16.msra.mxu0 %v8801_v61 }
0x1103   :  { %v8486_v8 = vpop.f32.mrb[217].mxu1  ;;  %v10603_v48 = vadd.f32 %v16920_v46, %v8484_v54  ;;  %v19157_v54 = vld [vmem:[#allocation495_spill] sm:$0xff] }
0x1104   :  { %v8487_v37 = vpop.f32.mrb[218].mxu1 }
0x1105   :  { %v10604_v38 = vadd.f32 %v16920_v46, %v8487_v37  ;;  %v8489_v55 = vpop.f32.mrb[219].mxu1 }
0x1107   :  { %v8810_v56 = vpack.c.bf16 %v10604_v38, %v10603_v48  ;;  %8699 = vmatmul.mubr.bf16.gmra.mrb[68].mxu1 %v19144_v52 }
0x1108   :  { %8706 = vmatprep.mubr.bf16.mxu1 %v19145_v15  ;;  %v19158_v15 = vld [vmem:[#allocation496_spill] sm:$0xff] }
0x1109   :  { %9991 = vmatprep.subr.bf16.mxu0 %v8810_v56 }
0x110a   :  { %v8492_v60 = vpop.f32.mrb[220].mxu1  ;;  %9992 = vmatpush3.bf16.msra.mxu0 %v8802_v11 }
0x110b   :  { %v8494_v31 = vpop.f32.mrb[221].mxu1  ;;  %v10605_v61 = vadd.f32 %v16920_v46, %v8492_v60  ;;  %v19159_v60 = vld [vmem:[#allocation497_spill] sm:$0xff] }
0x110c   :  { %v8495_v20 = vpop.f32.mrb[222].mxu1 }
0x110d   :  { %v10606_v45 = vadd.f32 %v16920_v46, %v8495_v20  ;;  %v8497_v7 = vpop.f32.mrb[223].mxu1 }
0x110f   :  { %v8811_v9 = vpack.c.bf16 %v10606_v45, %v10605_v61  ;;  %8707 = vmatmul.mubr.bf16.gmra.mrb[72].mxu1 %v19146_v43 }
0x1110   :  { %8714 = vmatprep.mubr.bf16.mxu1 %v19147_v3  ;;  %v19160_v3 = vld [vmem:[#allocation498_spill] sm:$0xff] }
0x1111   :  { %9993 = vmatprep.subr.bf16.mxu0 %v8811_v9 }
0x1112   :  { %v8500_v4 = vpop.f32.mrb[224].mxu1  ;;  %9994 = vmatpush3.bf16.msra.mxu0 %v8803_v18 }
0x1113   :  { %v8502_v21 = vpop.f32.mrb[225].mxu1  ;;  %v10607_v11 = vadd.f32 %v16920_v46, %v8500_v4  ;;  %v19161_v4 = vld [vmem:[#allocation499_spill] sm:$0xff] }
0x1114   :  { %v8503_v14 = vpop.f32.mrb[226].mxu1 }
0x1115   :  { %v10608_v24 = vadd.f32 %v16920_v46, %v8503_v14  ;;  %v8505_v51 = vpop.f32.mrb[227].mxu1 }
0x1117   :  { %v8812_v27 = vpack.c.bf16 %v10608_v24, %v10607_v11  ;;  %8715 = vmatmul.mubr.bf16.gmra.mrb[76].mxu1 %v19148_v29  ;;  %v17255_v24 = vld [vmem:[%s17534_s4 + $0x10] sm:$0xff] }
0x1118   :  { %8722 = vmatprep.mubr.bf16.mxu1 %v19149_v53  ;;  %v9813_v53 = vcombine.high %v17255_v24, %v17255_v24 }
0x1119   :  { %9995 = vmatprep.subr.bf16.mxu0 %v8812_v27 }
0x111a   :  { %v8508_v5 = vpop.f32.mrb[228].mxu1  ;;  %9996 = vmatpush3.bf16.msra.mxu0 %v8804_v16 }
0x111b   :  { %v8510_v28 = vpop.f32.mrb[229].mxu1  ;;  %v10609_v18 = vadd.f32 %v16920_v46, %v8508_v5 }
0x111c   :  { %v8511_v33 = vpop.f32.mrb[230].mxu1  ;;  %v19162_v28 = vld [vmem:[#allocation500_spill] sm:$0xff] }
0x111d   :  { %v10610_v58 = vadd.f32 %v16920_v46, %v8511_v33  ;;  %v8513_v32 = vpop.f32.mrb[231].mxu1 }
0x111f   :  { %v8813_v1 = vpack.c.bf16 %v10610_v58, %v10609_v18  ;;  %8723 = vmatmul.mubr.bf16.gmra.mrb[80].mxu1 %v19150_v0 }
0x1120   :  { %8730 = vmatprep.mubr.bf16.mxu1 %v19151_v40 }
0x1121   :  { %9997 = vmatprep.subr.bf16.mxu0 %v8813_v1 }
0x1122   :  { %v8516_v25 = vpop.f32.mrb[232].mxu1  ;;  %9998 = vmatpush3.bf16.msra.mxu0 %v8805_v62 }
0x1123   :  { %v8518_v63 = vpop.f32.mrb[233].mxu1  ;;  %v10611_v16 = vadd.f32 %v16920_v46, %v8516_v25 }
0x1124   :  { %v8519_v57 = vpop.f32.mrb[234].mxu1 }
0x1125   :  { %v10612_v59 = vadd.f32 %v16920_v46, %v8519_v57  ;;  %v8521_v6 = vpop.f32.mrb[235].mxu1 }
0x1127   :  { %v8814_v34 = vpack.c.bf16 %v10612_v59, %v10611_v16  ;;  %8731 = vmatmul.mubr.bf16.gmra.mrb[84].mxu1 %v19152_v39 }
0x1128   :  { %8738 = vmatprep.mubr.bf16.mxu1 %v19153_v10 }
0x1129   :  { %9999 = vmatprep.subr.bf16.mxu0 %v8814_v34 }
0x112a   :  { %v8524_v35 = vpop.f32.mrb[236].mxu1  ;;  %10000 = vmatpush3.bf16.msra.mxu0 %v8806_v22 }
0x112b   :  { %v8526_v26 = vpop.f32.mrb[237].mxu1  ;;  %v17213_v62 = vadd.f32 %v16920_v46, %v8524_v35 }
0x112c   :  { %v8527_v30 = vpop.f32.mrb[238].mxu1 }
0x112d   :  { %v17216_v44 = vadd.f32 %v16920_v46, %v8527_v30  ;;  %v8529_v47 = vpop.f32.mrb[239].mxu1  ;;  %8948 = vmatmul.mubr.bf16.vlgmr.msra.gmra.mrb[24].mxu0 %v9810_v23 }
0x112e   :  { %8987 = vmatprep.mubr.bf16.mxu0 %v9813_v53 }
0x112f   :  { %v8815_v42 = vpack.c.bf16 %v17216_v44, %v17213_v62  ;;  %8739 = vmatmul.mubr.bf16.gmra.mrb[88].mxu1 %v19154_v12 }
0x1130   :  { %8746 = vmatprep.mubr.bf16.mxu1 %v19155_v50 }
0x1132   :  { %v8532_v36 = vpop.f32.mrb[240].mxu1 }
0x1133   :  { %v8534_v17 = vpop.f32.mrb[241].mxu1  ;;  %v17223_v22 = vadd.f32 %v16920_v46, %v8532_v36 }
0x1134   :  { %v8535_v2 = vpop.f32.mrb[242].mxu1 }
0x1135   :  { %v17226_v49 = vadd.f32 %v16920_v46, %v8535_v2  ;;  %v8537_v19 = vpop.f32.mrb[243].mxu1 }
0x1137   :  { %v8816_v41 = vpack.c.bf16 %v17226_v49, %v17223_v22  ;;  %8747 = vmatmul.mubr.bf16.gmra.mrb[92].mxu1 %v19156_v13 }
0x1138   :  { %8754 = vmatprep.mubr.bf16.mxu1 %v19157_v54 }
0x113a   :  { %v8540_v8 = vpop.f32.mrb[244].mxu1 }
0x113b   :  { %v8542_v37 = vpop.f32.mrb[245].mxu1  ;;  %v17233_v38 = vadd.f32 %v16920_v46, %v8540_v8 }
0x113c   :  { %v8543_v48 = vpop.f32.mrb[246].mxu1 }
0x113d   :  { %v17236_v55 = vadd.f32 %v16920_v46, %v8543_v48  ;;  %v8545_v56 = vpop.f32.mrb[247].mxu1 }
0x113f   :  { %v8817_v52 = vpack.c.bf16 %v17236_v55, %v17233_v38  ;;  %8755 = vmatmul.mubr.bf16.gmra.mrb[96].mxu1 %v19158_v15 }
0x1140   :  { %8762 = vmatprep.mubr.bf16.mxu1 %v19159_v60 }
0x1142   :  { %v8548_v31 = vpop.f32.mrb[248].mxu1 }
0x1143   :  { %v8550_v20 = vpop.f32.mrb[249].mxu1  ;;  %v17243_v45 = vadd.f32 %v16920_v46, %v8548_v31 }
0x1144   :  { %v8551_v61 = vpop.f32.mrb[250].mxu1 }
0x1145   :  { %v17246_v7 = vadd.f32 %v16920_v46, %v8551_v61  ;;  %v8553_v9 = vpop.f32.mrb[251].mxu1 }
0x1147   :  { %v8818_v43 = vpack.c.bf16 %v17246_v7, %v17243_v45  ;;  %8763 = vmatmul.mubr.bf16.gmra.mrb[100].mxu1 %v19160_v3 }
0x1148   :  { %8770 = vmatprep.mubr.bf16.mxu1 %v19161_v4 }
0x114a   :  { %v8556_v21 = vpop.f32.mrb[252].mxu1 }
0x114b   :  { %v8558_v14 = vpop.f32.mrb[253].mxu1  ;;  %v17258_v51 = vadd.f32 %v16920_v46, %v8556_v21 }
0x114c   :  { %v8559_v11 = vpop.f32.mrb[254].mxu1 }
0x114d   :  { %v17261_v27 = vadd.f32 %v16920_v46, %v8559_v11  ;;  %v8561_v29 = vpop.f32.mrb[255].mxu1 }
0x114f   :  { %v8819_v5 = vpack.c.bf16 %v17261_v27, %v17258_v51  ;;  %8771 = vmatmul.mubr.bf16.gmra.mrb[104].mxu1 %v19162_v28 }
0x1152   :  { %v8564_v33 = vpop.f32.mrb[0].mxu1 }
0x1153   :  { %v8566_v18 = vpop.f32.mrb[1].mxu1  ;;  %v17269_v32 = vadd.f32 %v16920_v46, %v8564_v33 }
0x1154   :  { %v8567_v58 = vpop.f32.mrb[2].mxu1 }
0x1155   :  { %v17272_v1 = vadd.f32 %v16920_v46, %v8567_v58  ;;  %v8569_v0 = vpop.f32.mrb[3].mxu1 }
0x1157   :  { %v8820_v40 = vpack.c.bf16 %v17272_v1, %v17269_v32 }
0x115a   :  { %v8572_v25 = vpop.f32.mrb[4].mxu1 }
0x115b   :  { %v8574_v63 = vpop.f32.mrb[5].mxu1  ;;  %v17277_v16 = vadd.f32 %v16920_v46, %v8572_v25 }
0x115c   :  { %v8575_v57 = vpop.f32.mrb[6].mxu1 }
0x115d   :  { %v17280_v59 = vadd.f32 %v16920_v46, %v8575_v57  ;;  %v8577_v6 = vpop.f32.mrb[7].mxu1 }
0x115f   :  { %v8821_v34 = vpack.c.bf16 %v17280_v59, %v17277_v16  ;;  %v17337_v16 = vld [vmem:[%s17534_s4 + $0x18] sm:$0xff] }
0x1162   :  { %v8580_v39 = vpop.f32.mrb[8].mxu1 }
0x1163   :  { %v8582_v10 = vpop.f32.mrb[9].mxu1  ;;  %v17285_v35 = vadd.f32 %v16920_v46, %v8580_v39 }
0x1164   :  { %v8583_v23 = vpop.f32.mrb[10].mxu1 }
0x1165   :  { %v17288_v26 = vadd.f32 %v16920_v46, %v8583_v23  ;;  %v8585_v30 = vpop.f32.mrb[11].mxu1 }
0x1167   :  { %v8822_v47 = vpack.c.bf16 %v17288_v26, %v17285_v35 }
0x116a   :  { %v8588_v12 = vpop.f32.mrb[12].mxu1 }
0x116b   :  { %v8590_v50 = vpop.f32.mrb[13].mxu1  ;;  %v10629_v17 = vadd.f32 %v16920_v46, %v8588_v12  ;;  %v9812_v12 = vcombine.low %v17255_v24, %v17255_v24 }
0x116c   :  { %v8591_v36 = vpop.f32.mrb[14].mxu1 }
0x116d   :  { %v10630_v2 = vadd.f32 %v16920_v46, %v8591_v36  ;;  %v8593_v19 = vpop.f32.mrb[15].mxu1 }
0x116f   :  { %v8823_v13 = vpack.c.bf16 %v10630_v2, %v10629_v17 }
0x1171   :  { %10007 = vmatprep.subr.bf16.mxu0 %v8823_v13 }
0x1172   :  { %v8596_v54 = vpop.f32.mrb[16].mxu1  ;;  %10008 = vmatpush3.bf16.msra.mxu0 %v8815_v42 }
0x1173   :  { %v8598_v8 = vpop.f32.mrb[17].mxu1  ;;  %v10631_v48 = vadd.f32 %v16920_v46, %v8596_v54 }
0x1174   :  { %v8599_v37 = vpop.f32.mrb[18].mxu1 }
0x1175   :  { %v10632_v56 = vadd.f32 %v16920_v46, %v8599_v37  ;;  %v8601_v15 = vpop.f32.mrb[19].mxu1 }
0x1177   :  { %v8824_v60 = vpack.c.bf16 %v10632_v56, %v10631_v48 }
0x1179   :  { %10009 = vmatprep.subr.bf16.mxu0 %v8824_v60 }
0x117a   :  { %v8604_v31 = vpop.f32.mrb[20].mxu1  ;;  %10010 = vmatpush3.bf16.msra.mxu0 %v8816_v41 }
0x117b   :  { %v8606_v20 = vpop.f32.mrb[21].mxu1  ;;  %v10633_v9 = vadd.f32 %v16920_v46, %v8604_v31 }
0x117c   :  { %v8607_v61 = vpop.f32.mrb[22].mxu1 }
0x117d   :  { %v10634_v62 = vadd.f32 %v16920_v46, %v8607_v61  ;;  %v8609_v44 = vpop.f32.mrb[23].mxu1 }
0x117f   :  { %v8825_v42 = vpack.c.bf16 %v10634_v62, %v10633_v9 }
0x1180   :  { %v9979_v56 = vpop.f32.mrb[20].mxu0 }
0x1181   :  { %10011 = vmatprep.subr.bf16.mxu0 %v8825_v42  ;;  %v9980_v60 = vpop.f32.mrb[21].mxu0 }
0x1182   :  { %v8612_v3 = vpop.f32.mrb[24].mxu1  ;;  %10012 = vmatpush3.bf16.msra.mxu0 %v8817_v52  ;;  %v17357_v20 = vadd.f32 %v9980_v60, %v9979_v56  ;;  %v9982_v61 = vpop.f32.mrb[22].mxu0 }
0x1183   :  { %v8614_v4 = vpop.f32.mrb[25].mxu1  ;;  %v10635_v14 = vadd.f32 %v16920_v46, %v8612_v3  ;;  %v9983_v42 = vpop.f32.mrb[23].mxu0 }
0x1184   :  { %v8615_v21 = vpop.f32.mrb[26].mxu1 }
0x1185   :  { %v10636_v22 = vadd.f32 %v16920_v46, %v8615_v21  ;;  %v8617_v49 = vpop.f32.mrb[27].mxu1 }
0x1187   :  { %v8826_v41 = vpack.c.bf16 %v10636_v22, %v10635_v14 }
0x1189   :  { %10013 = vmatprep.subr.bf16.mxu0 %v8826_v41 }
0x118a   :  { %v8620_v11 = vpop.f32.mrb[28].mxu1  ;;  %10014 = vmatpush3.bf16.msra.mxu0 %v8818_v43 }
0x118b   :  { %v8622_v29 = vpop.f32.mrb[29].mxu1  ;;  %v10637_v28 = vadd.f32 %v16920_v46, %v8620_v11 }
0x118c   :  { %v8623_v53 = vpop.f32.mrb[30].mxu1 }
0x118d   :  { %v10638_v38 = vadd.f32 %v16920_v46, %v8623_v53  ;;  %v8625_v55 = vpop.f32.mrb[31].mxu1 }
0x118f   :  { %v8827_v52 = vpack.c.bf16 %v10638_v38, %v10637_v28  ;;  %v17378_v38 = vld [vmem:[%s17533_s5] ss:$0 sm:$0xff] }
0x1191   :  { %10015 = vmatprep.subr.bf16.mxu0 %v8827_v52 }
0x1192   :  { %v8628_v33 = vpop.f32.mrb[32].mxu1  ;;  %10016 = vmatpush3.bf16.msra.mxu0 %v8819_v5 }
0x1193   :  { %v8630_v18 = vpop.f32.mrb[33].mxu1  ;;  %v10639_v0 = vadd.f32 %v16920_v46, %v8628_v33 }
0x1194   :  { %v8631_v58 = vpop.f32.mrb[34].mxu1 }
0x1195   :  { %v10640_v45 = vadd.f32 %v16920_v46, %v8631_v58  ;;  %v8633_v7 = vpop.f32.mrb[35].mxu1 }
0x1197   :  { %v8828_v43 = vpack.c.bf16 %v10640_v45, %v10639_v0 }
0x1199   :  { %10017 = vmatprep.subr.bf16.mxu0 %v8828_v43 }
0x119a   :  { %v8636_v25 = vpop.f32.mrb[36].mxu1  ;;  %10018 = vmatpush3.bf16.msra.mxu0 %v8820_v40 }
0x119b   :  { %v8638_v63 = vpop.f32.mrb[37].mxu1  ;;  %v10641_v6 = vadd.f32 %v16920_v46, %v8636_v25 }
0x119c   :  { %v8639_v57 = vpop.f32.mrb[38].mxu1 }
0x119d   :  { %v10642_v51 = vadd.f32 %v16920_v46, %v8639_v57  ;;  %v8641_v27 = vpop.f32.mrb[39].mxu1 }
0x119f   :  { %v8829_v5 = vpack.c.bf16 %v10642_v51, %v10641_v6 }
0x11a1   :  { %10019 = vmatprep.subr.bf16.mxu0 %v8829_v5 }
0x11a2   :  { %v8644_v39 = vpop.f32.mrb[40].mxu1  ;;  %10020 = vmatpush3.bf16.msra.mxu0 %v8821_v34  ;;  %v9815_v34 = vcombine.high %v17337_v16, %v17337_v16 }
0x11a3   :  { %v8646_v10 = vpop.f32.mrb[41].mxu1  ;;  %v10643_v30 = vadd.f32 %v16920_v46, %v8644_v39 }
0x11a4   :  { %v8647_v23 = vpop.f32.mrb[42].mxu1 }
0x11a5   :  { %v10644_v32 = vadd.f32 %v16920_v46, %v8647_v23  ;;  %v8649_v1 = vpop.f32.mrb[43].mxu1 }
0x11a7   :  { %v8830_v40 = vpack.c.bf16 %v10644_v32, %v10643_v30 }
0x11a9   :  { %10021 = vmatprep.subr.bf16.mxu0 %v8830_v40 }
0x11aa   :  { %v8652_v50 = vpop.f32.mrb[44].mxu1  ;;  %10022 = vmatpush3.bf16.msra.mxu0 %v8822_v47 }
0x11ab   :  { %v8654_v59 = vpop.f32.mrb[45].mxu1  ;;  %v17342_v17 = vadd.f32 %v16920_v46, %v8652_v50 }
0x11ac   :  { %v8655_v36 = vpop.f32.mrb[46].mxu1 }
0x11ad   :  { %v17345_v24 = vadd.f32 %v16920_v46, %v8655_v36  ;;  %v8657_v2 = vpop.f32.mrb[47].mxu1  ;;  %8988 = vmatmul.mubr.bf16.vlgmr.msra.gmra.mrb[28].mxu0 %v9812_v12 }
0x11ae   :  { %9027 = vmatprep.mubr.bf16.mxu0 %v9815_v34 }
0x11af   :  { %v8831_v35 = vpack.c.bf16 %v17345_v24, %v17342_v17 }
0x11b2   :  { %v8660_v26 = vpop.f32.mrb[48].mxu1 }
0x11b3   :  { %v8662_v47 = vpop.f32.mrb[49].mxu1  ;;  %v17350_v13 = vadd.f32 %v16920_v46, %v8660_v26 }
0x11b4   :  { %v8663_v19 = vpop.f32.mrb[50].mxu1 }
0x11b5   :  { %v17353_v54 = vadd.f32 %v16920_v46, %v8663_v19  ;;  %v8665_v8 = vpop.f32.mrb[51].mxu1 }
0x11b7   :  { %v8832_v37 = vpack.c.bf16 %v17353_v54, %v17350_v13 }
0x11ba   :  { %v8668_v48 = vpop.f32.mrb[52].mxu1 }
0x11bb   :  { %v8670_v15 = vpop.f32.mrb[53].mxu1  ;;  %v17360_v9 = vadd.f32 %v16920_v46, %v8668_v48 }
0x11bc   :  { %v8671_v31 = vpop.f32.mrb[54].mxu1 }
0x11bd   :  { %v17363_v62 = vadd.f32 %v16920_v46, %v8671_v31  ;;  %v8673_v44 = vpop.f32.mrb[55].mxu1 }
0x11bf   :  { %v8833_v3 = vpack.c.bf16 %v17363_v62, %v17360_v9 }
0x11c2   :  { %v8676_v4 = vpop.f32.mrb[56].mxu1 }
0x11c3   :  { %v8678_v21 = vpop.f32.mrb[57].mxu1  ;;  %v17368_v22 = vadd.f32 %v16920_v46, %v8676_v4 }
0x11c4   :  { %v8679_v14 = vpop.f32.mrb[58].mxu1 }
0x11c5   :  { %v17371_v49 = vadd.f32 %v16920_v46, %v8679_v14  ;;  %v8681_v41 = vpop.f32.mrb[59].mxu1 }
0x11c7   :  { %v8834_v11 = vpack.c.bf16 %v17371_v49, %v17368_v22 }
0x11ca   :  { %v8684_v29 = vpop.f32.mrb[60].mxu1 }
0x11cb   :  { %v8686_v53 = vpop.f32.mrb[61].mxu1  ;;  %v17381_v55 = vadd.f32 %v17378_v38, %v8684_v29 }
0x11cc   :  { %v8687_v28 = vpop.f32.mrb[62].mxu1 }
0x11cd   :  { %v17384_v52 = vadd.f32 %v17378_v38, %v8687_v28  ;;  %v8689_v46 = vpop.f32.mrb[63].mxu1 }
0x11cf   :  { %v8835_v33 = vpack.c.bf16 %v17384_v52, %v17381_v55 }
0x11d2   :  { %v8692_v18 = vpop.f32.mrb[64].mxu1 }
0x11d3   :  { %v8694_v58 = vpop.f32.mrb[65].mxu1  ;;  %v17389_v45 = vadd.f32 %v17378_v38, %v8692_v18 }
0x11d4   :  { %v8695_v0 = vpop.f32.mrb[66].mxu1 }
0x11d5   :  { %v17392_v7 = vadd.f32 %v17378_v38, %v8695_v0  ;;  %v8697_v43 = vpop.f32.mrb[67].mxu1 }
0x11d7   :  { %v8836_v25 = vpack.c.bf16 %v17392_v7, %v17389_v45 }
0x11da   :  { %v8700_v63 = vpop.f32.mrb[68].mxu1 }
0x11db   :  { %v8702_v57 = vpop.f32.mrb[69].mxu1  ;;  %v17397_v51 = vadd.f32 %v17378_v38, %v8700_v63 }
0x11dc   :  { %v8703_v6 = vpop.f32.mrb[70].mxu1 }
0x11dd   :  { %v17400_v27 = vadd.f32 %v17378_v38, %v8703_v6  ;;  %v8705_v5 = vpop.f32.mrb[71].mxu1 }
0x11df   :  { %v8837_v39 = vpack.c.bf16 %v17400_v27, %v17397_v51  ;;  %v9814_v51 = vcombine.low %v17337_v16, %v17337_v16  ;;  %v9039_v16 = vld [vmem:[%s17535_s6 + $0x20] sm:$0xff] }
0x11e2   :  { %v8708_v10 = vpop.f32.mrb[72].mxu1 }
0x11e3   :  { %v8710_v23 = vpop.f32.mrb[73].mxu1  ;;  %v17405_v32 = vadd.f32 %v17378_v38, %v8708_v10 }
0x11e4   :  { %v8711_v30 = vpop.f32.mrb[74].mxu1 }
0x11e5   :  { %v17408_v1 = vadd.f32 %v17378_v38, %v8711_v30  ;;  %v8713_v40 = vpop.f32.mrb[75].mxu1 }
0x11e7   :  { %v8838_v12 = vpack.c.bf16 %v17408_v1, %v17405_v32  ;;  %v9040_v32 = vld [vmem:[%s17535_s6 + $0x28] sm:$0xff] }
0x11e8   :  { %v10382_v1 = vpack.c.bf16 %v9040_v32, %v9039_v16 }
0x11ea   :  { %v8716_v50 = vpop.f32.mrb[76].mxu1 }
0x11eb   :  { %v8718_v59 = vpop.f32.mrb[77].mxu1  ;;  %v10661_v36 = vadd.f32 %v17378_v38, %v8716_v50 }
0x11ec   :  { %v8719_v34 = vpop.f32.mrb[78].mxu1 }
0x11ed   :  { %v10662_v2 = vadd.f32 %v17378_v38, %v8719_v34  ;;  %v8721_v26 = vpop.f32.mrb[79].mxu1 }
0x11ef   :  { %v8839_v47 = vpack.c.bf16 %v10662_v2, %v10661_v36 }
0x11f1   :  { %10029 = vmatprep.subr.bf16.mxu0 %v8839_v47  ;;  %v9035_v47 = vld [vmem:[%s17535_s6] sm:$0xff] }
0x11f2   :  { %v8724_v19 = vpop.f32.mrb[80].mxu1  ;;  %10030 = vmatpush3.bf16.msra.mxu0 %v8831_v35 }
0x11f3   :  { %v8726_v8 = vpop.f32.mrb[81].mxu1  ;;  %v10663_v56 = vadd.f32 %v17378_v38, %v8724_v19  ;;  %v9036_v19 = vld [vmem:[%s17535_s6 + $0x8] sm:$0xff] }
0x11f4   :  { %v8727_v48 = vpop.f32.mrb[82].mxu1  ;;  %v10376_v27 = vpack.c.bf16 %v9036_v19, %v9035_v47  ;;  %v9038_v8 = vld [vmem:[%s17535_s6 + $0x18] sm:$0xff] }
0x11f5   :  { %v10664_v15 = vadd.f32 %v17378_v38, %v8727_v48  ;;  %v8729_v60 = vpop.f32.mrb[83].mxu1 }
0x11f6   :  { %v9043_v60 = vld [vmem:[%s17535_s6 + $0x40] sm:$0xff] }
0x11f7   :  { %v8840_v31 = vpack.c.bf16 %v10664_v15, %v10663_v56  ;;  %v9042_v56 = vld [vmem:[%s17535_s6 + $0x38] sm:$0xff] }
0x11f9   :  { %10031 = vmatprep.subr.bf16.mxu0 %v8840_v31  ;;  %v9044_v31 = vld [vmem:[%s17535_s6 + $0x48] sm:$0xff] }
0x11fa   :  { %v8732_v61 = vpop.f32.mrb[84].mxu1  ;;  %10032 = vmatpush3.bf16.msra.mxu0 %v8832_v37 }
0x11fb   :  { %v8734_v44 = vpop.f32.mrb[85].mxu1  ;;  %v10665_v4 = vadd.f32 %v17378_v38, %v8732_v61  ;;  %v10388_v61 = vpack.c.bf16 %v9044_v31, %v9043_v60 }
0x11fc   :  { %v8735_v42 = vpop.f32.mrb[86].mxu1  ;;  %v9045_v44 = vld [vmem:[%s17535_s6 + $0x50] sm:$0xff] }
0x11fd   :  { %v10666_v17 = vadd.f32 %v17378_v38, %v8735_v42  ;;  %v8737_v24 = vpop.f32.mrb[87].mxu1  ;;  %v9046_v42 = vld [vmem:[%s17535_s6 + $0x58] sm:$0xff] }
0x11fe   :  { %v9048_v24 = vld [vmem:[%s17535_s6 + $0x68] sm:$0xff] }
0x11ff   :  { %v8841_v35 = vpack.c.bf16 %v10666_v17, %v10665_v4  ;;  %v10391_v4 = vpack.c.bf16 %v9046_v42, %v9045_v44  ;;  %v9047_v17 = vld [vmem:[%s17535_s6 + $0x60] sm:$0xff] }
0x1200   :  { %v10001_v21 = vpop.f32.mrb[24].mxu0 }
0x1201   :  { %10033 = vmatprep.subr.bf16.mxu0 %v8841_v35  ;;  %v10002_v14 = vpop.f32.mrb[25].mxu0  ;;  %v10394_v35 = vpack.c.bf16 %v9048_v24, %v9047_v17 }
0x1202   :  { %v8740_v41 = vpop.f32.mrb[88].mxu1  ;;  %10034 = vmatpush3.bf16.msra.mxu0 %v8833_v3  ;;  %v10003_v29 = vadd.f32 %v10002_v14, %v10001_v21  ;;  %v10004_v53 = vpop.f32.mrb[26].mxu0 }
0x1203   :  { %v8742_v13 = vpop.f32.mrb[89].mxu1  ;;  %v10005_v54 = vpop.f32.mrb[27].mxu0  ;;  %v10667_v46 = vadd.f32 %v17378_v38, %v8740_v41  ;;  %v9049_v41 = vld [vmem:[%s17535_s6 + $0x70] sm:$0xff] }
0x1204   :  { %v8743_v37 = vpop.f32.mrb[90].mxu1  ;;  %v17428_v28 = vadd.f32 %v10003_v29, %v17357_v20  ;;  %v9050_v29 = vld [vmem:[%s17535_s6 + $0x78] sm:$0xff] }
0x1205   :  { %v10668_v18 = vadd.f32 %v17378_v38, %v8743_v37  ;;  %v8745_v58 = vpop.f32.mrb[91].mxu1  ;;  %v10397_v54 = vpack.c.bf16 %v9050_v29, %v9049_v41 }
0x1207   :  { %v8842_v0 = vpack.c.bf16 %v10668_v18, %v10667_v46  ;;  %v12298_v18 = vmov 0.0  }
0x1209   :  { %10035 = vmatprep.subr.bf16.mxu0 %v8842_v0  ;;  %v9129_v0 = vld [vmem:[%s17536_s8] sm:$0xff] }
0x120a   :  { %v8748_v43 = vpop.f32.mrb[92].mxu1  ;;  %10036 = vmatpush3.bf16.msra.mxu0 %v8834_v11 }
0x120b   :  { %v8750_v9 = vpop.f32.mrb[93].mxu1  ;;  %v10669_v3 = vadd.f32 %v17378_v38, %v8748_v43  ;;  %v9130_v43 = vld [vmem:[%s17536_s8 + $0x8] sm:$0xff] }
0x120c   :  { %v8751_v62 = vpop.f32.mrb[94].mxu1 }
0x120d   :  { %v10670_v63 = vadd.f32 %v17378_v38, %v8751_v62  ;;  %v8753_v20 = vpop.f32.mrb[95].mxu1 }
0x120f   :  { %v8843_v57 = vpack.c.bf16 %v10670_v63, %v10669_v3 }
0x1211   :  { %10037 = vmatprep.subr.bf16.mxu0 %v8843_v57  ;;  %v9131_v57 = vld [vmem:[%s17536_s8 + $0x10] sm:$0xff] }
0x1212   :  { %v8756_v6 = vpop.f32.mrb[96].mxu1  ;;  %10038 = vmatpush3.bf16.msra.mxu0 %v8835_v33 }
0x1213   :  { %v8758_v5 = vpop.f32.mrb[97].mxu1  ;;  %v10671_v23 = vadd.f32 %v17378_v38, %v8756_v6  ;;  %v9132_v6 = vld [vmem:[%s17536_s8 + $0x18] sm:$0xff] }
0x1214   :  { %v8759_v10 = vpop.f32.mrb[98].mxu1  ;;  %v10403_v5 = vpack.c.bf16 %v9132_v6, %v9131_v57 }
0x1215   :  { %v10672_v22 = vadd.f32 %v17378_v38, %v8759_v10  ;;  %v8761_v49 = vpop.f32.mrb[99].mxu1  ;;  %v9816_v10 = vld [vmem:[%s17537_s7] ss:$0 sm:$0xff] }
0x1217   :  { %v8844_v11 = vpack.c.bf16 %v10672_v22, %v10671_v23 }
0x1219   :  { %10039 = vmatprep.subr.bf16.mxu0 %v8844_v11 }
0x121a   :  { %v8764_v30 = vpop.f32.mrb[100].mxu1  ;;  %10040 = vmatpush3.bf16.msra.mxu0 %v8836_v25 }
0x121b   :  { %v8766_v40 = vpop.f32.mrb[101].mxu1  ;;  %v10673_v59 = vadd.f32 %v17378_v38, %v8764_v30  ;;  %v9817_v30 = vld [vmem:[%s17538_s9] ss:$0 sm:$0xff] }
0x121c   :  { %v8767_v50 = vpop.f32.mrb[102].mxu1 }
0x121d   :  { %v10674_v55 = vadd.f32 %v17378_v38, %v8767_v50  ;;  %v8769_v52 = vpop.f32.mrb[103].mxu1 }
0x121f   :  { %v8845_v33 = vpack.c.bf16 %v10674_v55, %v10673_v59 }
0x1221   :  { %10041 = vmatprep.subr.bf16.mxu0 %v8845_v33 }
0x1222   :  { %v8772_v34 = vpop.f32.mrb[104].mxu1  ;;  %10042 = vmatpush3.bf16.msra.mxu0 %v8837_v39  ;;  %v9037_v39 = vld [vmem:[%s17535_s6 + $0x10] sm:$0xff] }
0x1223   :  { %v8774_v36 = vpop.f32.mrb[105].mxu1  ;;  %v10675_v26 = vadd.f32 %v17378_v38, %v8772_v34  ;;  %v10379_v48 = vpack.c.bf16 %v9038_v8, %v9037_v39 }
0x1224   :  { %v8775_v2 = vpop.f32.mrb[106].mxu1 }
0x1225   :  { %v10676_v45 = vadd.f32 %v17378_v38, %v8775_v2  ;;  %v8777_v7 = vpop.f32.mrb[107].mxu1  ;;  %v12296_v38 = vmov 0.0|0.0  }
0x1227   :  { %v8846_v25 = vpack.c.bf16 %v10676_v45, %v10675_v26 }
0x1229   :  { %10043 = vmatprep.subr.bf16.mxu0 %v8846_v25 }
0x122a   :  { %10044 = vmatpush3.bf16.msra.mxu0 %v8838_v12  ;;  %v9041_v12 = vld [vmem:[%s17535_s6 + $0x30] sm:$0xff] }
0x122b   :  { %10375 = vmatprep.subr.bf16.mxu0 %v12296_v38  ;;  %v10385_v15 = vpack.c.bf16 %v9042_v56, %v9041_v12 }
0x122d   :  { %9028 = vmatmul.mubr.bf16.vlgmr.msra.gmra.mrb[32].mxu0 %v9814_v51 }
0x122e   :  { %10377 = vmatpush3.bf16.msra.mxu0 %v10376_v27  ;;  %10329 = vmatprep.mubr.msk.f32.mxu0 %vm12297_vm0, %v12298_v18 }
0x122f   :  { %10378 = vmatprep.subr.bf16.mxu0 %v12296_v38 }
0x1232   :  { %10380 = vmatpush3.bf16.msra.mxu0 %v10379_v48 }
0x1233   :  { %10381 = vmatprep.subr.bf16.mxu0 %v12296_v38 }
0x1236   :  { %10383 = vmatpush3.bf16.msra.mxu0 %v10382_v1 }
0x1237   :  { %10384 = vmatprep.subr.bf16.mxu0 %v12296_v38 }
0x123a   :  { %10386 = vmatpush3.bf16.msra.mxu0 %v10385_v15 }
0x123b   :  { %10387 = vmatprep.subr.bf16.mxu0 %v12296_v38 }
0x123e   :  { %10389 = vmatpush3.bf16.msra.mxu0 %v10388_v61 }
0x123f   :  { %10390 = vmatprep.subr.bf16.mxu0 %v12296_v38 }
0x1242   :  { %10392 = vmatpush3.bf16.msra.mxu0 %v10391_v4 }
0x1243   :  { %10393 = vmatprep.subr.bf16.mxu0 %v12296_v38 }
0x1246   :  { %10395 = vmatpush3.bf16.msra.mxu0 %v10394_v35 }
0x1247   :  { %10396 = vmatprep.subr.bf16.mxu0 %v12296_v38 }
0x124a   :  { %10398 = vmatpush3.bf16.msra.mxu0 %v10397_v54 }
0x124b   :  { %10399 = vmatprep.subr.bf16.mxu0 %v12296_v38 }
0x1280   :  { %v10023_v21 = vpop.f32.mrb[28].mxu0 }
0x1281   :  { %v10024_v14 = vpop.f32.mrb[29].mxu0 }
0x1282   :  { %v10025_v53 = vadd.f32 %v10024_v14, %v10023_v21  ;;  %v10026_v13 = vpop.f32.mrb[30].mxu0 }
0x1283   :  { %v10027_v37 = vpop.f32.mrb[31].mxu0 }
0x1284   :  { %v8990_v46 = vadd.f32 %v10025_v53, %v17428_v28  ;;  %v10400_v28 = vpack.c.bf16 %v9130_v43, %v9129_v0 }
0x1300   :  { %v10045_v58 = vpop.f32.mrb[32].mxu0 }
0x1301   :  { %v10046_v9 = vpop.f32.mrb[33].mxu0 }
0x1302   :  { %v10047_v62 = vadd.f32 %v10046_v9, %v10045_v58  ;;  %v10048_v3 = vpop.f32.mrb[34].mxu0 }
0x1303   :  { %v10049_v63 = vpop.f32.mrb[35].mxu0 }
0x1304   :  { %v9030_v20 = vadd.f32 %v10047_v62, %v8990_v46 }
0x1306   :  { %10330 = vmatmul.mubr.f32.vlgmr.msra.gmra.mrb[36].mxu0 %v9030_v20 }
0x1307   :  { %10401 = vmatpush3.bf16.msra.mxu0 %v10400_v28  ;;  %10340 = vmatprep.mubr.msk.f32.mxu0 %vm12297_vm0, %v12298_v18 }
0x1308   :  { %10402 = vmatprep.subr.bf16.mxu0 %v12296_v38 }
0x130b   :  { %10404 = vmatpush3.bf16.msra.mxu0 %v10403_v5 }
0x13d9   :  { %v9124_v23 = vpop.f32.mrb[36].mxu0 }
0x13da   :  { %v9125_v22 = vadd.f32 %v9816_v10, %v9124_v23  ;;  %v10331_v49 = vpop.f32.mrb[37].mxu0 }
0x13dc   :  { %v9128_v11 = vmax.f32 %v9125_v22, 0.0 }
0x13de   :  { %10341 = vmatmul.mubr.msk.f32.vlgmr.msra.gmra.mrb[38].mxu0 %vm9140_vm1, %v9128_v11 }
0x14b1   :  { %v9210_v40 = vpop.f32.mrb[38].mxu0 }
0x14b2   :  { %v9211_v50 = vadd.f32 %v9817_v30, %v9210_v40  ;;  %v10342_v59 = vpop.f32.mrb[39].mxu0 }
0x14b4   :  { %9214 = vmax.xlane.f32.xlu0 %v9211_v50 }
0x1541   :  { %v9215_v55 = vpop.xlane.xlu0 %9214 }
0x1542   :  { %v9216_v52 = vsub.f32 %v9211_v50, %v9215_v55 }
0x1544   :  { %v9217_v33 = vmul.f32 1.442695, %v9216_v52 }
0x1546   :  { %12289 = vpow2.f32 %v9217_v33 }
0x1550   :  { %v12290_v34 = vpop.eup %12289 }
0x1551   :  { %9219 = vadd.xlane.f32.xlu0 %v12290_v34 }
0x15de   :  { %v9220_v36 = vpop.xlane.xlu0 %9219 }
0x15df   :  { %12291 = vlog2.f32 %v9220_v36 }
0x15e9   :  { %v12292_v2 = vpop.eup %12291 }
0x15ea   :  { %v9222_v26 = vmul.f32 0.6931472, %v12292_v2 }
0x15ec   :  { %v9223_v45 = vadd.f32 %v9222_v26, %v9215_v55 }
0x15ee   :  { %v9224_v7 = vsub.f32 %v9211_v50, %v9223_v45 }
0x15f0   :  { %9225 = vst [vmem:[%s17539_s10] sm:$0xff] %v9224_v7 }

</bundles_post_ra>
